<compile_context>
chip_gen: v5e
topology: v5e:2x2
jax: 0.10.0
libtpu: 0.0.40
codegen_flags: <defaults>
</compile_context>

<pallas_src>
import jax
import jax.numpy as jnp
from jax.experimental import pallas as pl
from jax.experimental.pallas import tpu as pltpu

EPS = 1e-5  # PyTorch nn.LayerNorm default

_HAS_BUFFERED = hasattr(pl, "Buffered")


def _layernorm(h, gamma, beta):
    # Two-pass statistics: mean, then E[(h-mean)^2]. Matches PyTorch LayerNorm
    # numerics (no E[x^2]-mean^2 cancellation). VPU/XLU-only work, free in the
    # MXU-bound regime.
    mean = jnp.mean(h, axis=-1, keepdims=True)
    c = h - mean
    var = jnp.mean(c * c, axis=-1, keepdims=True)
    return c * jax.lax.rsqrt(var + EPS) * gamma + beta


def subln_kernel(x_ref, g1_ref, beta1_ref, w1_ref, b1_ref,
                 g2_ref, beta2_ref, w2_ref, b2_ref, o_ref):
    x = x_ref[...].astype(jnp.float32)

    # LN1 (elementwise affine, f32)
    h = _layernorm(x, g1_ref[...], beta1_ref[...])
    # fin: bf16 operands into the MXU, f32 accumulation, f32 bias add
    h = jnp.dot(h.astype(jnp.bfloat16), w1_ref[...],
                preferred_element_type=jnp.float32) + b1_ref[...]
    # LN2
    h = _layernorm(h, g2_ref[...], beta2_ref[...])
    # fout
    h = jnp.dot(h.astype(jnp.bfloat16), w2_ref[...],
                preferred_element_type=jnp.float32) + b2_ref[...]
    # residual in f32
    o_ref[...] = (x + h).astype(o_ref.dtype)


def _vmem_capacity_bytes():
    try:
        return int(pltpu.get_tpu_info().vmem_capacity_bytes)
    except Exception:
        return 64 * 1024 * 1024  # conservative (v7x-sized) fallback


def _footprint_bytes(tm, D, single_weights):
    wbuf = 1 if single_weights else 2
    weights = wbuf * 2 * D * D * 2   # two DxD bf16 weight buffers
    small = wbuf * 6 * D * 4         # biases + LN gamma/beta, f32 (1,D) x 6
    tiles = 2 * 2 * tm * D * 4       # x + out tiles, double-buffered, f32
    temps = 4 * tm * D * 4           # in-kernel f32 intermediates headroom
    return weights + small + tiles + temps


def _pick_tm(B, D, vmem_cap, single_weights):
    """Row tile: 512 on 128 MiB parts (v5e/v6e), 256 on 64 MiB (v7x);
    shrunk to fit VMEM and capped at B//2 so grid >= 2 (both v7x TCs busy)."""
    tm = 512 if vmem_cap >= (96 << 20) else 256
    budget = int(0.70 * vmem_cap)
    while tm > 16 and _footprint_bytes(tm, D, single_weights) > budget:
        tm //= 2
    if B >= 16:
        tm = min(tm, max(8, (B // 2) // 8 * 8))
    if tm >= B:
        return B
    return max(8, (tm // 8) * 8)


def prepare_subln_params(w_in, b_in, w_out, b_out,
                         ln1_gamma=None, ln1_beta=None,
                         ln2_gamma=None, ln2_beta=None):
    """One-time conversion to kernel layout/dtypes (hoists the bf16 weight cast
    out of the per-call path). Weights must be [d_in, d_out] (transpose of
    PyTorch nn.Linear's [out, in])."""
    D = w_in.shape[0]

    def row(v, default):
        v = default if v is None else v
        return jnp.asarray(v, jnp.float32).reshape(1, D)

    ones = jnp.ones((D,), jnp.float32)
    zeros = jnp.zeros((D,), jnp.float32)
    return dict(
        ln1_gamma=row(ln1_gamma, ones), ln1_beta=row(ln1_beta, zeros),
        w_in=jnp.asarray(w_in, jnp.bfloat16), b_in=row(b_in, zeros),
        ln2_gamma=row(ln2_gamma, ones), ln2_beta=row(ln2_beta, zeros),
        w_out=jnp.asarray(w_out, jnp.bfloat16), b_out=row(b_out, zeros),
    )


def subln(x, params, *, tm=None):
    B, D = x.shape
    assert D % 128 == 0, "d_model must be a multiple of 128 (pad the feature dim upstream)"
    cap = _vmem_capacity_bytes()

    def build_and_run(single_weights):
        row_tile = tm if tm is not None else _pick_tm(B, D, cap, single_weights)
        est = _footprint_bytes(row_tile, D, single_weights)
        # Scoped-VMEM request: actual footprint + headroom, never above the
        # physical capacity of the running chip (v7x = 64 MiB).
        vmem_limit = int(min(max(est + (8 << 20), 32 << 20), cap - (8 << 20)))

        def const_spec(shape):
            # Grid-invariant operand: index_map is constant, so a second
            # pipeline buffer is pure VMEM waste -> single-buffer it.
            if single_weights:
                return pl.BlockSpec(shape, lambda i: (0, 0),
                                    pipeline_mode=pl.Buffered(1))
            return pl.BlockSpec(shape, lambda i: (0, 0))

        call = pl.pallas_call(
            subln_kernel,
            out_shape=jax.ShapeDtypeStruct((B, D), x.dtype),
            grid_spec=pltpu.PrefetchScalarGridSpec(
                num_scalar_prefetch=0,
                grid=(pl.cdiv(B, row_tile),),
                in_specs=[
                    pl.BlockSpec((row_tile, D), lambda i: (i, 0)),  # x tile
                    const_spec((1, D)),   # LN1 gamma
                    const_spec((1, D)),   # LN1 beta
                    const_spec((D, D)),   # fin weight  [d_in, d_out], bf16
                    const_spec((1, D)),   # fin bias
                    const_spec((1, D)),   # LN2 gamma
                    const_spec((1, D)),   # LN2 beta
                    const_spec((D, D)),   # fout weight [d_in, d_out], bf16
                    const_spec((1, D)),   # fout bias
                ],
                out_specs=pl.BlockSpec((row_tile, D), lambda i: (i, 0)),
            ),
            compiler_params=pltpu.CompilerParams(
                dimension_semantics=("parallel",),
                vmem_limit_bytes=vmem_limit,
            ),
        )
        return call(x,
                    params["ln1_gamma"], params["ln1_beta"],
                    params["w_in"], params["b_in"],
                    params["ln2_gamma"], params["ln2_beta"],
                    params["w_out"], params["b_out"])

    if _HAS_BUFFERED:
        try:
            # Block here so any lowering/runtime issue with Buffered(1) on this
            # Pallas version surfaces inside the try and we fall back cleanly.
            return jax.block_until_ready(build_and_run(True))
        except Exception:
            pass  # fall back to default (double-buffered, DMA-deduped) constants
    return build_and_run(False)


def subln_ref(x, w_in, b_in, w_out, b_out, ln1_g, ln1_b, ln2_g, ln2_b):
    # Pure f32 reference matching the PyTorch module semantics.
    xf = x.astype(jnp.float32)
    h = _layernorm(xf, ln1_g, ln1_b)
    h = h @ w_in + b_in
    h = _layernorm(h, ln2_g, ln2_b)
    h = h @ w_out + b_out
    return (xf + h).astype(x.dtype)


if __name__ == "__main__":
    B, D = 512, 256  # small shapes; tm is capped at B//2 so grid >= 2
    key = jax.random.PRNGKey(0)
    kx, k1, k2, k3, k4 = jax.random.split(key, 5)

    x = jax.random.normal(kx, (B, D), dtype=jnp.float32)

    # Xavier-normal init (gain=1): std = sqrt(2 / (fan_in + fan_out)) = sqrt(1/D).
    # Stored as [d_in, d_out] (transpose of PyTorch's nn.Linear weight layout).
    std = (2.0 / (D + D)) ** 0.5
    w_in = std * jax.random.normal(k1, (D, D), dtype=jnp.float32)
    w_out = std * jax.random.normal(k2, (D, D), dtype=jnp.float32)
    b_in = jnp.zeros((D,), jnp.float32)
    b_out = jnp.zeros((D,), jnp.float32)
    # LayerNorm affine params (PyTorch default elementwise_affine=True).
    # Perturbed slightly from the init values (gamma=1, beta=0) to exercise the
    # affine path in the kernel.
    ln1_g = 1.0 + 0.1 * jax.random.normal(k3, (D,), dtype=jnp.float32)
    ln1_b = jnp.zeros((D,), jnp.float32)
    ln2_g = 1.0 + 0.1 * jax.random.normal(k4, (D,), dtype=jnp.float32)
    ln2_b = jnp.zeros((D,), jnp.float32)

    params = prepare_subln_params(w_in, b_in, w_out, b_out,
                                  ln1_g, ln1_b, ln2_g, ln2_b)

    out = jax.block_until_ready(subln(x, params))
    ref = subln_ref(x, w_in, b_in, w_out, b_out, ln1_g, ln1_b, ln2_g, ln2_b)

    assert out.shape == (B, D)
    # bf16 MXU operands (f32 accumulation) vs. pure-f32 reference -> loosened tol.
    assert jnp.allclose(out, ref, atol=5e-2, rtol=5e-2), \
        float(jnp.max(jnp.abs(out.astype(jnp.float32) - ref.astype(jnp.float32))))

    print("KERNEL_OK")
</pallas_src>

<mosaic_0001>
module attributes {stable_mosaic.version = 11 : i64} {
  func.func @subln_kernel(%arg0: i32, %arg1: memref<256x256xf32, #tpu.memory_space<vmem>>, %arg2: memref<1x256xf32, #tpu.memory_space<vmem>>, %arg3: memref<1x256xf32, #tpu.memory_space<vmem>>, %arg4: memref<256x256xbf16, #tpu.memory_space<vmem>>, %arg5: memref<1x256xf32, #tpu.memory_space<vmem>>, %arg6: memref<1x256xf32, #tpu.memory_space<vmem>>, %arg7: memref<1x256xf32, #tpu.memory_space<vmem>>, %arg8: memref<256x256xbf16, #tpu.memory_space<vmem>>, %arg9: memref<1x256xf32, #tpu.memory_space<vmem>>, %arg10: memref<256x256xf32, #tpu.memory_space<vmem>>) attributes {dimension_semantics = [#tpu.dimension_semantics<parallel>], iteration_bounds = array<i64: 2>, scalar_prefetch = 0 : i64, scratch_operands = 0 : i64, tpu.core_type = #tpu.core_type<tc>, window_params = [{transform_indices = @transform_0, window_bounds = array<i64: 256, 256>}, {pipeline_mode = #tpu.pipeline_mode<synchronous>, transform_indices = @transform_1, window_bounds = array<i64: 1, 256>}, {pipeline_mode = #tpu.pipeline_mode<synchronous>, transform_indices = @transform_2, window_bounds = array<i64: 1, 256>}, {pipeline_mode = #tpu.pipeline_mode<synchronous>, transform_indices = @transform_3, window_bounds = array<i64: 256, 256>}, {pipeline_mode = #tpu.pipeline_mode<synchronous>, transform_indices = @transform_4, window_bounds = array<i64: 1, 256>}, {pipeline_mode = #tpu.pipeline_mode<synchronous>, transform_indices = @transform_5, window_bounds = array<i64: 1, 256>}, {pipeline_mode = #tpu.pipeline_mode<synchronous>, transform_indices = @transform_6, window_bounds = array<i64: 1, 256>}, {pipeline_mode = #tpu.pipeline_mode<synchronous>, transform_indices = @transform_7, window_bounds = array<i64: 256, 256>}, {pipeline_mode = #tpu.pipeline_mode<synchronous>, transform_indices = @transform_8, window_bounds = array<i64: 1, 256>}, {transform_indices = @transform_9, window_bounds = array<i64: 256, 256>}]} {
    %c0 = arith.constant 0 : index
    %c0_0 = arith.constant 0 : index
    %0 = vector.load %arg1[%c0, %c0_0] : memref<256x256xf32, #tpu.memory_space<vmem>>, vector<256x256xf32>
    %c0_1 = arith.constant 0 : index
    %c0_2 = arith.constant 0 : index
    %1 = vector.load %arg2[%c0_1, %c0_2] : memref<1x256xf32, #tpu.memory_space<vmem>>, vector<1x256xf32>
    %c0_3 = arith.constant 0 : index
    %c0_4 = arith.constant 0 : index
    %2 = vector.load %arg3[%c0_3, %c0_4] : memref<1x256xf32, #tpu.memory_space<vmem>>, vector<1x256xf32>
    %cst = arith.constant dense<0.000000e+00> : vector<256xf32>
    %3 = vector.multi_reduction <add>, %0, %cst [1] : vector<256x256xf32> to vector<256xf32>
    %4 = vector.shape_cast %3 : vector<256xf32> to vector<256x1xf32>
    %cst_5 = arith.constant 2.560000e+02 : f32
    %5 = vector.broadcast %cst_5 : f32 to vector<256x1xf32>
    %6 = arith.divf %4, %5 : vector<256x1xf32>
    %7 = vector.broadcast %6 : vector<256x1xf32> to vector<256x256xf32>
    %8 = arith.subf %0, %7 : vector<256x256xf32>
    %9 = arith.mulf %8, %8 : vector<256x256xf32>
    %cst_6 = arith.constant dense<0.000000e+00> : vector<256xf32>
    %10 = vector.multi_reduction <add>, %9, %cst_6 [1] : vector<256x256xf32> to vector<256xf32>
    %11 = vector.shape_cast %10 : vector<256xf32> to vector<256x1xf32>
    %cst_7 = arith.constant 2.560000e+02 : f32
    %12 = vector.broadcast %cst_7 : f32 to vector<256x1xf32>
    %13 = arith.divf %11, %12 : vector<256x1xf32>
    %cst_8 = arith.constant 9.99999974E-6 : f32
    %14 = vector.broadcast %cst_8 : f32 to vector<256x1xf32>
    %15 = arith.addf %13, %14 : vector<256x1xf32>
    %16 = math.rsqrt %15 : vector<256x1xf32>
    %17 = vector.broadcast %16 : vector<256x1xf32> to vector<256x256xf32>
    %18 = arith.mulf %8, %17 : vector<256x256xf32>
    %19 = vector.broadcast %1 : vector<1x256xf32> to vector<256x256xf32>
    %20 = arith.mulf %18, %19 : vector<256x256xf32>
    %21 = vector.broadcast %2 : vector<1x256xf32> to vector<256x256xf32>
    %22 = arith.addf %20, %21 : vector<256x256xf32>
    %23 = arith.truncf %22 : vector<256x256xf32> to vector<256x256xbf16>
    %c0_9 = arith.constant 0 : index
    %c0_10 = arith.constant 0 : index
    %24 = vector.load %arg4[%c0_9, %c0_10] : memref<256x256xbf16, #tpu.memory_space<vmem>>, vector<256x256xbf16>
    %cst_11 = arith.constant dense<0.000000e+00> : vector<256x256xf32>
    %25 = tpu.matmul %23, %24, %cst_11 {dimension_numbers = #tpu.dot_dimension_numbers<[1], [0], [0], [1], [0, 0, 1, 1], [], []>} : vector<256x256xbf16>, vector<256x256xbf16>, vector<256x256xf32> -> vector<256x256xf32>
    %c0_12 = arith.constant 0 : index
    %c0_13 = arith.constant 0 : index
    %26 = vector.load %arg5[%c0_12, %c0_13] : memref<1x256xf32, #tpu.memory_space<vmem>>, vector<1x256xf32>
    %27 = vector.broadcast %26 : vector<1x256xf32> to vector<256x256xf32>
    %28 = arith.addf %25, %27 : vector<256x256xf32>
    %c0_14 = arith.constant 0 : index
    %c0_15 = arith.constant 0 : index
    %29 = vector.load %arg6[%c0_14, %c0_15] : memref<1x256xf32, #tpu.memory_space<vmem>>, vector<1x256xf32>
    %c0_16 = arith.constant 0 : index
    %c0_17 = arith.constant 0 : index
    %30 = vector.load %arg7[%c0_16, %c0_17] : memref<1x256xf32, #tpu.memory_space<vmem>>, vector<1x256xf32>
    %cst_18 = arith.constant dense<0.000000e+00> : vector<256xf32>
    %31 = vector.multi_reduction <add>, %28, %cst_18 [1] : vector<256x256xf32> to vector<256xf32>
    %32 = vector.shape_cast %31 : vector<256xf32> to vector<256x1xf32>
    %cst_19 = arith.constant 2.560000e+02 : f32
    %33 = vector.broadcast %cst_19 : f32 to vector<256x1xf32>
    %34 = arith.divf %32, %33 : vector<256x1xf32>
    %35 = vector.broadcast %34 : vector<256x1xf32> to vector<256x256xf32>
    %36 = arith.subf %28, %35 : vector<256x256xf32>
    %37 = arith.mulf %36, %36 : vector<256x256xf32>
    %cst_20 = arith.constant dense<0.000000e+00> : vector<256xf32>
    %38 = vector.multi_reduction <add>, %37, %cst_20 [1] : vector<256x256xf32> to vector<256xf32>
    %39 = vector.shape_cast %38 : vector<256xf32> to vector<256x1xf32>
    %cst_21 = arith.constant 2.560000e+02 : f32
    %40 = vector.broadcast %cst_21 : f32 to vector<256x1xf32>
    %41 = arith.divf %39, %40 : vector<256x1xf32>
    %cst_22 = arith.constant 9.99999974E-6 : f32
    %42 = vector.broadcast %cst_22 : f32 to vector<256x1xf32>
    %43 = arith.addf %41, %42 : vector<256x1xf32>
    %44 = math.rsqrt %43 : vector<256x1xf32>
    %45 = vector.broadcast %44 : vector<256x1xf32> to vector<256x256xf32>
    %46 = arith.mulf %36, %45 : vector<256x256xf32>
    %47 = vector.broadcast %29 : vector<1x256xf32> to vector<256x256xf32>
    %48 = arith.mulf %46, %47 : vector<256x256xf32>
    %49 = vector.broadcast %30 : vector<1x256xf32> to vector<256x256xf32>
    %50 = arith.addf %48, %49 : vector<256x256xf32>
    %51 = arith.truncf %50 : vector<256x256xf32> to vector<256x256xbf16>
    %c0_23 = arith.constant 0 : index
    %c0_24 = arith.constant 0 : index
    %52 = vector.load %arg8[%c0_23, %c0_24] : memref<256x256xbf16, #tpu.memory_space<vmem>>, vector<256x256xbf16>
    %cst_25 = arith.constant dense<0.000000e+00> : vector<256x256xf32>
    %53 = tpu.matmul %51, %52, %cst_25 {dimension_numbers = #tpu.dot_dimension_numbers<[1], [0], [0], [1], [0, 0, 1, 1], [], []>} : vector<256x256xbf16>, vector<256x256xbf16>, vector<256x256xf32> -> vector<256x256xf32>
    %c0_26 = arith.constant 0 : index
    %c0_27 = arith.constant 0 : index
    %54 = vector.load %arg9[%c0_26, %c0_27] : memref<1x256xf32, #tpu.memory_space<vmem>>, vector<1x256xf32>
    %55 = vector.broadcast %54 : vector<1x256xf32> to vector<256x256xf32>
    %56 = arith.addf %53, %55 : vector<256x256xf32>
    %57 = arith.addf %0, %56 : vector<256x256xf32>
    %c0_28 = arith.constant 0 : index
    %c0_29 = arith.constant 0 : index
    %58 = vector.load %arg10[%c0_28, %c0_29] : memref<256x256xf32, #tpu.memory_space<vmem>>, vector<256x256xf32>
    tpu.vector_store %arg10[%c0_28, %c0_29], %57 {strides = array<i32>} : memref<256x256xf32, #tpu.memory_space<vmem>>, vector<256x256xf32>,
    return
  }
  func.func @transform_0(%arg0: i32) -> (i32, i32) {
    %c0_i32 = arith.constant 0 : i32
    %c0_i32_0 = arith.constant 0 : i32
    return %arg0, %c0_i32 : i32, i32
  }
  func.func @transform_1(%arg0: i32) -> (i32, i32) {
    %c0_i32 = arith.constant 0 : i32
    %c0_i32_0 = arith.constant 0 : i32
    %c0_i32_1 = arith.constant 0 : i32
    return %c0_i32, %c0_i32_0 : i32, i32
  }
  func.func @transform_2(%arg0: i32) -> (i32, i32) {
    %c0_i32 = arith.constant 0 : i32
    %c0_i32_0 = arith.constant 0 : i32
    %c0_i32_1 = arith.constant 0 : i32
    return %c0_i32, %c0_i32_0 : i32, i32
  }
  func.func @transform_3(%arg0: i32) -> (i32, i32) {
    %c0_i32 = arith.constant 0 : i32
    %c0_i32_0 = arith.constant 0 : i32
    %c0_i32_1 = arith.constant 0 : i32
    return %c0_i32, %c0_i32_0 : i32, i32
  }
  func.func @transform_4(%arg0: i32) -> (i32, i32) {
    %c0_i32 = arith.constant 0 : i32
    %c0_i32_0 = arith.constant 0 : i32
    %c0_i32_1 = arith.constant 0 : i32
    return %c0_i32, %c0_i32_0 : i32, i32
  }
  func.func @transform_5(%arg0: i32) -> (i32, i32) {
    %c0_i32 = arith.constant 0 : i32
    %c0_i32_0 = arith.constant 0 : i32
    %c0_i32_1 = arith.constant 0 : i32
    return %c0_i32, %c0_i32_0 : i32, i32
  }
  func.func @transform_6(%arg0: i32) -> (i32, i32) {
    %c0_i32 = arith.constant 0 : i32
    %c0_i32_0 = arith.constant 0 : i32
    %c0_i32_1 = arith.constant 0 : i32
    return %c0_i32, %c0_i32_0 : i32, i32
  }
  func.func @transform_7(%arg0: i32) -> (i32, i32) {
    %c0_i32 = arith.constant 0 : i32
    %c0_i32_0 = arith.constant 0 : i32
    %c0_i32_1 = arith.constant 0 : i32
    return %c0_i32, %c0_i32_0 : i32, i32
  }
  func.func @transform_8(%arg0: i32) -> (i32, i32) {
    %c0_i32 = arith.constant 0 : i32
    %c0_i32_0 = arith.constant 0 : i32
    %c0_i32_1 = arith.constant 0 : i32
    return %c0_i32, %c0_i32_0 : i32, i32
  }
  func.func @transform_9(%arg0: i32) -> (i32, i32) {
    %c0_i32 = arith.constant 0 : i32
    %c0_i32_0 = arith.constant 0 : i32
    return %arg0, %c0_i32 : i32, i32
  }
}

module attributes {stable_mosaic.version = 11 : i64} {
  func.func @subln_kernel(%arg0: i32, %arg1: memref<256x256xf32, #tpu.memory_space<vmem>>, %arg2: memref<1x256xf32, #tpu.memory_space<vmem>>, %arg3: memref<1x256xf32, #tpu.memory_space<vmem>>, %arg4: memref<256x256xbf16, #tpu.memory_space<vmem>>, %arg5: memref<1x256xf32, #tpu.memory_space<vmem>>, %arg6: memref<1x256xf32, #tpu.memory_space<vmem>>, %arg7: memref<1x256xf32, #tpu.memory_space<vmem>>, %arg8: memref<256x256xbf16, #tpu.memory_space<vmem>>, %arg9: memref<1x256xf32, #tpu.memory_space<vmem>>, %arg10: memref<256x256xf32, #tpu.memory_space<vmem>>) attributes {dimension_semantics = [#tpu.dimension_semantics<parallel>], iteration_bounds = array<i64: 2>, scalar_prefetch = 0 : i64, scratch_operands = 0 : i64, tpu.core_type = #tpu.core_type<tc>, window_params = [{transform_indices = @transform_0, window_bounds = array<i64: 256, 256>}, {pipeline_mode = #tpu.pipeline_mode<synchronous>, transform_indices = @transform_1, window_bounds = array<i64: 1, 256>}, {pipeline_mode = #tpu.pipeline_mode<synchronous>, transform_indices = @transform_2, window_bounds = array<i64: 1, 256>}, {pipeline_mode = #tpu.pipeline_mode<synchronous>, transform_indices = @transform_3, window_bounds = array<i64: 256, 256>}, {pipeline_mode = #tpu.pipeline_mode<synchronous>, transform_indices = @transform_4, window_bounds = array<i64: 1, 256>}, {pipeline_mode = #tpu.pipeline_mode<synchronous>, transform_indices = @transform_5, window_bounds = array<i64: 1, 256>}, {pipeline_mode = #tpu.pipeline_mode<synchronous>, transform_indices = @transform_6, window_bounds = array<i64: 1, 256>}, {pipeline_mode = #tpu.pipeline_mode<synchronous>, transform_indices = @transform_7, window_bounds = array<i64: 256, 256>}, {pipeline_mode = #tpu.pipeline_mode<synchronous>, transform_indices = @transform_8, window_bounds = array<i64: 1, 256>}, {transform_indices = @transform_9, window_bounds = array<i64: 256, 256>}]} {
    %c0 = arith.constant 0 : index
    %c0_0 = arith.constant 0 : index
    %0 = vector.load %arg1[%c0, %c0_0] : memref<256x256xf32, #tpu.memory_space<vmem>>, vector<256x256xf32>
    %c0_1 = arith.constant 0 : index
    %c0_2 = arith.constant 0 : index
    %1 = vector.load %arg2[%c0_1, %c0_2] : memref<1x256xf32, #tpu.memory_space<vmem>>, vector<1x256xf32>
    %c0_3 = arith.constant 0 : index
    %c0_4 = arith.constant 0 : index
    %2 = vector.load %arg3[%c0_3, %c0_4] : memref<1x256xf32, #tpu.memory_space<vmem>>, vector<1x256xf32>
    %cst = arith.constant dense<0.000000e+00> : vector<256xf32>
    %3 = vector.multi_reduction <add>, %0, %cst [1] : vector<256x256xf32> to vector<256xf32>
    %4 = vector.shape_cast %3 : vector<256xf32> to vector<256x1xf32>
    %cst_5 = arith.constant 2.560000e+02 : f32
    %5 = vector.broadcast %cst_5 : f32 to vector<256x1xf32>
    %6 = arith.divf %4, %5 : vector<256x1xf32>
    %7 = vector.broadcast %6 : vector<256x1xf32> to vector<256x256xf32>
    %8 = arith.subf %0, %7 : vector<256x256xf32>
    %9 = arith.mulf %8, %8 : vector<256x256xf32>
    %cst_6 = arith.constant dense<0.000000e+00> : vector<256xf32>
    %10 = vector.multi_reduction <add>, %9, %cst_6 [1] : vector<256x256xf32> to vector<256xf32>
    %11 = vector.shape_cast %10 : vector<256xf32> to vector<256x1xf32>
    %cst_7 = arith.constant 2.560000e+02 : f32
    %12 = vector.broadcast %cst_7 : f32 to vector<256x1xf32>
    %13 = arith.divf %11, %12 : vector<256x1xf32>
    %cst_8 = arith.constant 9.99999974E-6 : f32
    %14 = vector.broadcast %cst_8 : f32 to vector<256x1xf32>
    %15 = arith.addf %13, %14 : vector<256x1xf32>
    %16 = math.rsqrt %15 : vector<256x1xf32>
    %17 = vector.broadcast %16 : vector<256x1xf32> to vector<256x256xf32>
    %18 = arith.mulf %8, %17 : vector<256x256xf32>
    %19 = vector.broadcast %1 : vector<1x256xf32> to vector<256x256xf32>
    %20 = arith.mulf %18, %19 : vector<256x256xf32>
    %21 = vector.broadcast %2 : vector<1x256xf32> to vector<256x256xf32>
    %22 = arith.addf %20, %21 : vector<256x256xf32>
    %23 = arith.truncf %22 : vector<256x256xf32> to vector<256x256xbf16>
    %c0_9 = arith.constant 0 : index
    %c0_10 = arith.constant 0 : index
    %24 = vector.load %arg4[%c0_9, %c0_10] : memref<256x256xbf16, #tpu.memory_space<vmem>>, vector<256x256xbf16>
    %cst_11 = arith.constant dense<0.000000e+00> : vector<256x256xf32>
    %25 = tpu.matmul %23, %24, %cst_11 {dimension_numbers = #tpu.dot_dimension_numbers<[1], [0], [0], [1], [0, 0, 1, 1], [], []>} : vector<256x256xbf16>, vector<256x256xbf16>, vector<256x256xf32> -> vector<256x256xf32>
    %c0_12 = arith.constant 0 : index
    %c0_13 = arith.constant 0 : index
    %26 = vector.load %arg5[%c0_12, %c0_13] : memref<1x256xf32, #tpu.memory_space<vmem>>, vector<1x256xf32>
    %27 = vector.broadcast %26 : vector<1x256xf32> to vector<256x256xf32>
    %28 = arith.addf %25, %27 : vector<256x256xf32>
    %c0_14 = arith.constant 0 : index
    %c0_15 = arith.constant 0 : index
    %29 = vector.load %arg6[%c0_14, %c0_15] : memref<1x256xf32, #tpu.memory_space<vmem>>, vector<1x256xf32>
    %c0_16 = arith.constant 0 : index
    %c0_17 = arith.constant 0 : index
    %30 = vector.load %arg7[%c0_16, %c0_17] : memref<1x256xf32, #tpu.memory_space<vmem>>, vector<1x256xf32>
    %cst_18 = arith.constant dense<0.000000e+00> : vector<256xf32>
    %31 = vector.multi_reduction <add>, %28, %cst_18 [1] : vector<256x256xf32> to vector<256xf32>
    %32 = vector.shape_cast %31 : vector<256xf32> to vector<256x1xf32>
    %cst_19 = arith.constant 2.560000e+02 : f32
    %33 = vector.broadcast %cst_19 : f32 to vector<256x1xf32>
    %34 = arith.divf %32, %33 : vector<256x1xf32>
    %35 = vector.broadcast %34 : vector<256x1xf32> to vector<256x256xf32>
    %36 = arith.subf %28, %35 : vector<256x256xf32>
    %37 = arith.mulf %36, %36 : vector<256x256xf32>
    %cst_20 = arith.constant dense<0.000000e+00> : vector<256xf32>
    %38 = vector.multi_reduction <add>, %37, %cst_20 [1] : vector<256x256xf32> to vector<256xf32>
    %39 = vector.shape_cast %38 : vector<256xf32> to vector<256x1xf32>
    %cst_21 = arith.constant 2.560000e+02 : f32
    %40 = vector.broadcast %cst_21 : f32 to vector<256x1xf32>
    %41 = arith.divf %39, %40 : vector<256x1xf32>
    %cst_22 = arith.constant 9.99999974E-6 : f32
    %42 = vector.broadcast %cst_22 : f32 to vector<256x1xf32>
    %43 = arith.addf %41, %42 : vector<256x1xf32>
    %44 = math.rsqrt %43 : vector<256x1xf32>
    %45 = vector.broadcast %44 : vector<256x1xf32> to vector<256x256xf32>
    %46 = arith.mulf %36, %45 : vector<256x256xf32>
    %47 = vector.broadcast %29 : vector<1x256xf32> to vector<256x256xf32>
    %48 = arith.mulf %46, %47 : vector<256x256xf32>
    %49 = vector.broadcast %30 : vector<1x256xf32> to vector<256x256xf32>
    %50 = arith.addf %48, %49 : vector<256x256xf32>
    %51 = arith.truncf %50 : vector<256x256xf32> to vector<256x256xbf16>
    %c0_23 = arith.constant 0 : index
    %c0_24 = arith.constant 0 : index
    %52 = vector.load %arg8[%c0_23, %c0_24] : memref<256x256xbf16, #tpu.memory_space<vmem>>, vector<256x256xbf16>
    %cst_25 = arith.constant dense<0.000000e+00> : vector<256x256xf32>
    %53 = tpu.matmul %51, %52, %cst_25 {dimension_numbers = #tpu.dot_dimension_numbers<[1], [0], [0], [1], [0, 0, 1, 1], [], []>} : vector<256x256xbf16>, vector<256x256xbf16>, vector<256x256xf32> -> vector<256x256xf32>
    %c0_26 = arith.constant 0 : index
    %c0_27 = arith.constant 0 : index
    %54 = vector.load %arg9[%c0_26, %c0_27] : memref<1x256xf32, #tpu.memory_space<vmem>>, vector<1x256xf32>
    %55 = vector.broadcast %54 : vector<1x256xf32> to vector<256x256xf32>
    %56 = arith.addf %53, %55 : vector<256x256xf32>
    %57 = arith.addf %0, %56 : vector<256x256xf32>
    %c0_28 = arith.constant 0 : index
    %c0_29 = arith.constant 0 : index
    %58 = vector.load %arg10[%c0_28, %c0_29] : memref<256x256xf32, #tpu.memory_space<vmem>>, vector<256x256xf32>
    tpu.vector_store %arg10[%c0_28, %c0_29], %57 {strides = array<i32>} : memref<256x256xf32, #tpu.memory_space<vmem>>, vector<256x256xf32>,
    return
  }
  func.func @transform_0(%arg0: i32) -> (i32, i32) {
    %c0_i32 = arith.constant 0 : i32
    %c0_i32_0 = arith.constant 0 : i32
    return %arg0, %c0_i32 : i32, i32
  }
  func.func @transform_1(%arg0: i32) -> (i32, i32) {
    %c0_i32 = arith.constant 0 : i32
    %c0_i32_0 = arith.constant 0 : i32
    %c0_i32_1 = arith.constant 0 : i32
    return %c0_i32, %c0_i32_0 : i32, i32
  }
  func.func @transform_2(%arg0: i32) -> (i32, i32) {
    %c0_i32 = arith.constant 0 : i32
    %c0_i32_0 = arith.constant 0 : i32
    %c0_i32_1 = arith.constant 0 : i32
    return %c0_i32, %c0_i32_0 : i32, i32
  }
  func.func @transform_3(%arg0: i32) -> (i32, i32) {
    %c0_i32 = arith.constant 0 : i32
    %c0_i32_0 = arith.constant 0 : i32
    %c0_i32_1 = arith.constant 0 : i32
    return %c0_i32, %c0_i32_0 : i32, i32
  }
  func.func @transform_4(%arg0: i32) -> (i32, i32) {
    %c0_i32 = arith.constant 0 : i32
    %c0_i32_0 = arith.constant 0 : i32
    %c0_i32_1 = arith.constant 0 : i32
    return %c0_i32, %c0_i32_0 : i32, i32
  }
  func.func @transform_5(%arg0: i32) -> (i32, i32) {
    %c0_i32 = arith.constant 0 : i32
    %c0_i32_0 = arith.constant 0 : i32
    %c0_i32_1 = arith.constant 0 : i32
    return %c0_i32, %c0_i32_0 : i32, i32
  }
  func.func @transform_6(%arg0: i32) -> (i32, i32) {
    %c0_i32 = arith.constant 0 : i32
    %c0_i32_0 = arith.constant 0 : i32
    %c0_i32_1 = arith.constant 0 : i32
    return %c0_i32, %c0_i32_0 : i32, i32
  }
  func.func @transform_7(%arg0: i32) -> (i32, i32) {
    %c0_i32 = arith.constant 0 : i32
    %c0_i32_0 = arith.constant 0 : i32
    %c0_i32_1 = arith.constant 0 : i32
    return %c0_i32, %c0_i32_0 : i32, i32
  }
  func.func @transform_8(%arg0: i32) -> (i32, i32) {
    %c0_i32 = arith.constant 0 : i32
    %c0_i32_0 = arith.constant 0 : i32
    %c0_i32_1 = arith.constant 0 : i32
    return %c0_i32, %c0_i32_0 : i32, i32
  }
  func.func @transform_9(%arg0: i32) -> (i32, i32) {
    %c0_i32 = arith.constant 0 : i32
    %c0_i32_0 = arith.constant 0 : i32
    return %arg0, %c0_i32 : i32, i32
  }
}

</mosaic_0001>

<bundles_post_ra>
// kernel: tpu_custom_call.1
= control target key start
LH: loop header
LB: loop body
LE: loop exit
PB: predicated region body
PF: predicated region fallthrough
CT: control target
= control target key end

     0   :  { %s7794_s0 = inlined_call_operand.hbm [shape: f32[512,256], index: 0, kind: input, shape index: {}]   ;;  %s7795_s1 = inlined_call_operand.hbm [shape: f32[1,256], index: 1, kind: input, shape index: {}]   ;;  %s7796_s2 = inlined_call_operand.hbm [shape: f32[1,256], index: 2, kind: input, shape index: {}]   ;;  %s7797_s3 = inlined_call_operand.hbm [shape: bf16[256,256], index: 3, kind: input, shape index: {}]   ;;  %s7798_s4 = inlined_call_operand.vmem [shape: f32[1,256], index: 4, kind: input, shape index: {}]   ;;  %s7799_s5 = inlined_call_operand.vmem [shape: f32[1,256], index: 5, kind: input, shape index: {}]   ;;  %s7800_s6 = inlined_call_operand.hbm [shape: f32[1,256], index: 6, kind: input, shape index: {}]   ;;  %s7801_s7 = inlined_call_operand.hbm [shape: bf16[256,256], index: 7, kind: input, shape index: {}]   ;;  %s7802_s8 = inlined_call_operand.vmem [shape: f32[1,256], index: 8, kind: input, shape index: {}]   ;;  %s7803_s9 = inlined_call_operand.hbm [shape: f32[512,256], index: 9, kind: output, shape index: {}]  }
   0x1   :  { %7889 = sst [smem:[#allocation44_spill]] %s7795_s1 }
   0x2   :  { %7890 = sst [smem:[#allocation45_spill]] %s7796_s2 }
   0x3   :  { %7891 = sst [smem:[#allocation46_spill]] %s7797_s3 }
   0x4   :  { %7892 = sst [smem:[#allocation47_spill]] %s7800_s6 }
   0x5   :  { %14 = vsyncpa [#allocation3], 0 }
   0x6   :  { %16 = vsyncpa [#allocation3 + $0x1], 0 }
   0x7   :  { %17 = vsyncpa [#allocation6], 0 }
   0x8   :  { %18 = vsyncpa [#allocation9], 0 }
   0x9   :  { %19 = vsyncpa [#allocation12], 0 }
   0xa   :  { %20 = vsyncpa [#allocation4], 0 }
   0xb   :  { %22 = vsyncpa [#allocation4 + $0x1], 0  ;;  %s4792_s30 = smov 0   ;;  %s4794_s10 = smov 0  }
   0xc   :  { %s4796_s11 = smov 0   ;;  %s4798_s12 = smov 0  }
   0xd LB: > { %s7893_s1 = sld [smem:[#allocation44_spill]]  ;;  %s4816_s16 = sadd.s32 4294967295, %s4728_s12   ;;  %s4728_s12 = sphi %s4798_s12, %s8098_s12   ;;  %s4724_s11 = sphi %s4796_s11, %s8097_s11   ;;  %s4720_s10 = sphi %s4794_s10, %s8096_s10   ;;  %s4716_s30 = sphi %s4792_s30, %s8095_s30  }
   0xe   : > { %p3823_p0 = scmp.ge.s32.totalorder %s4728_s12, 1  ;;  %p49_p1 = scmp.eq.s32.totalorder %s4816_s16, 0 }
   0xf   : > { %p253_p2 = scmp.lt.s32.totalorder %s4728_s12, 3  ;;  %s4730_s18 = smov [#allocation5]  }
  0x10   : > { %s267_s19 = sshll.u32 %s4730_s18, 4  ;;  %s7895_s3 = sld [smem:[#allocation46_spill]]  ;;  %s268_s19 = int_to_ptr.vmem [resolvable:$true] %s267_s19 }
  0x11   : > { %p4821_p3 = pnand %p3823_p0, %p253_p2  ;;  %s4731_s24 = smov [#allocation8]  }
  0x12   : > { %s290_s25 = sshll.u32 %s4731_s24, 4  ;;  %s4732_s26 = smov 128   ;;  %s291_s25 = int_to_ptr.vmem [resolvable:$true] %s290_s25 }
  0x13   : > { %s265_s15 = sshll.u32 %s7893_s1, 4  ;;  %p4196_p5 = pneg %p4821_p3  ;;  %s266_s15 = int_to_ptr.hbm [resolvable:$true] %s265_s15 }
  0x14   : > { %s4733_s27 = smov 8   ;;  %s7897_s2 = sld [smem:[#allocation45_spill]] }
  0x15   : > { %p4833_p6 = pnand %p4196_p5, %p49_p1  ;;  %s4734_s14 = smov [#allocation7]  }
  0x16   : > { %s288_s22 = sshll.u32 %s7895_s3, 4  ;;  %s279_s18 = sshll.u32 %s4734_s14, 4  ;;  %s289_s22 = int_to_ptr.hbm [resolvable:$true] %s288_s22  ;;  %s280_s18 = int_to_ptr.vmem [resolvable:$true] %s279_s18 }
  0x17   : > { %4199 = dma.hbm_to_vmem [thread:$0]  (!%p4833_p6), %s266_s15, 32, %s268_s19, [#allocation6]  }
  0x18   : > { %4205 = dma.hbm_to_vmem [thread:$0]  (!%p4833_p6), %s289_s22, 4096, %s291_s25, [#allocation9], %s4732_s26, %s4732_s26, %s4733_s27  }
  0x19   : > { %s7898_s6 = sld [smem:[#allocation47_spill]]  ;;  %s4735_s19 = smov [#allocation10]  }
  0x1a   : > { %s277_s13 = sshll.u32 %s7897_s2, 4  ;;  %s311_s22 = sshll.u32 %s4735_s19, 4  ;;  %s278_s13 = int_to_ptr.hbm [resolvable:$true] %s277_s13  ;;  %s312_s22 = int_to_ptr.vmem [resolvable:$true] %s311_s22 }
  0x1b   : > { %4202 = dma.hbm_to_vmem [thread:$0]  (!%p4833_p6), %s278_s13, 32, %s280_s18, [#allocation6]  }
  0x1c   : > { %s320_s28 = sshll.u32 %s7801_s7, 4  ;;  %s4736_s29 = smov [#allocation11]   ;;  %s321_s28 = int_to_ptr.hbm [resolvable:$true] %s320_s28 }
  0x1d   : > { %s322_s13 = sshll.u32 %s4736_s29, 4  ;;  %s3822_s14 = sadd.s32 4294967294, %s4728_s12   ;;  %s323_s13 = int_to_ptr.vmem [resolvable:$true] %s322_s13 }
  0x1e   : > { %4211 = dma.hbm_to_vmem [thread:$0]  (!%p4833_p6), %s321_s28, 4096, %s323_s13, [#allocation12], %s4732_s26, %s4732_s26, %s4733_s27  }
  0x1f   : > { %s309_s15 = sshll.u32 %s7898_s6, 4  ;;  %s4858_s18 = sadd.s32 1, %s4728_s12   ;;  %s310_s15 = int_to_ptr.hbm [resolvable:$true] %s309_s15 }
  0x20   : > { %4208 = dma.hbm_to_vmem [thread:$0]  (!%p4833_p6), %s310_s15, 32, %s312_s22, [#allocation9]  }
  0x21   : > { %s35_s20 = sadd.s32 1, %s4724_s11  ;;  %s32_s21 = ssub.s32 %s4728_s12, %s4858_s18 }
  0x22   : > { %p42_p7 = scmp.ne.s32.totalorder %s4724_s11, %s4720_s10  ;;  %p33_p8 = scmp.eq.s32.totalorder %s32_s21, 0 }
  0x23   : > { %p43_p9 = scmp.eq.s32.totalorder %s4728_s12, 0  ;;  %p48_p10 = scmp.ne.s32.totalorder %s4720_s10, %s4716_s30 }
  0x24   : > { %p240_p11 = scmp.eq.s32.totalorder %s4816_s16, 1  ;;  %p246_p2 = scmp.eq.s32.totalorder %s3822_s14, 1 }
  0x25   : > { %s4870_s15 = scalar_select %p33_p8, %s4724_s11, %s35_s20  }
  0x26   : > { %p4872_p12 = por %p43_p9, %p42_p7  ;;  %p4878_p13 = por %p49_p1, %p48_p10 }
  0x27   : > { %p4882_p0 = por %p240_p11, %p42_p7  ;;  %p4225_p5 = scmp.lt.s32.totalorder %s4728_s12, 2 }
  0x28   : > { %s339_s27 = sand.u32 1, %s4724_s11   ;;  %p4888_p6 = por %p246_p2, %p48_p10 }
  0x29   : > { %s3830_s24 = sshll.u32 %s339_s27, 9  ;;  %s4105_s25 = sshll.u32 %s4728_s12, 9 }
  0x2a   : > { %s349_s13 = scalar_lea.hbm %s7794_s0, %s4105_s25  ;;  %s343_s21 = scalar_lea.vmem [#allocation2], %s3830_s24 }
  0x2b   : > { %s350_s20 = sshll.u32 %s349_s13, 4  ;;  %s352_s1 = sshll.u32 %s343_s21, 4  ;;  %s351_s20 = int_to_ptr.hbm [resolvable:$true] %s350_s20  ;;  %s353_s1 = int_to_ptr.vmem [resolvable:$true] %s352_s1 }
  0x2c   : > { %p4898_p7 = pnand %p4225_p5, %p4872_p12  ;;  %s340_s2 = scalar_lea.sflag [#allocation3], %s339_s27 }
  0x2d   : > { %s4620_s3 = sshra.s32 %s351_s20, 4  ;;  %s4627_s28 = scalar_lea.hbm %s7794_s0, 1024  ;;  %s4621_s3 = int_to_ptr.hbm [resolvable:$true] %s4620_s3 }
  0x2e   : > { %s4622_s6 = scalar_lea.hbm %s4621_s3, 512  ;;  %p4624_p9 = pneg %p4898_p7 }
  0x2f   : > { %p4623_p8 = scmp.ne.s32.totalorder %s4621_s3, %s4622_s6  ;;  %p4628_p12 = scmp.lt.s32.totalorder %s4621_s3, %s7794_s0 }
  0x30   : > { %p4629_p2 = scmp.lt.s32.totalorder %s4627_s28, %s4622_s6 }
  0x31   : > { %p4625_p10 = pnand %p4624_p9, %p4623_p8 }
  0x32   : > { %p4630_p5 = por %p4629_p2, %p4628_p12 }
  0x33   : > { %p4626_p11 = pneg %p4625_p10 }
  0x35   : > { %p4631_p4 = pnand %p4630_p5, %p4626_p11 }
  0x37   : > { %4634 = shalt.err (!%p4631_p4)
}
  0x38   : > { %s4737_s27 = smov 256   ;;  %s4738_s13 = smov 16  }
  0x39   : > { %4215 = dma.hbm_to_vmem [thread:$0]  (!%p4898_p7), %s351_s20, 8192, %s353_s1, %s340_s2, %s4737_s27, %s4737_s27, %s4738_s13  }
  0x3a   : > { %364 = sbr.rel (%p4821_p3) target bundleno = 1385 (0x569), region = 56 }
  0x3f   : > { %s4915_s21 = sand.u32 1, %s4720_s10  }
  0x40   : > { %s3835_s3 = sshll.u32 %s4915_s21, 9  ;;  %s367_s6 = scalar_lea.sflag [#allocation3], %s4915_s21 }
  0x41   : > { %s4921_s25 = scalar_lea.vmem [#allocation2], %s3835_s3 }
  0x42   : > { %4695 = dma.done.wait (%p4878_p13), %s367_s6, 8192  }
  0x43   : > { %4697 = vsyncadd (%p4878_p13), %s367_s6, 4294959104 }
  0x44   : > { %4699 = dma.done.wait (%p49_p1), [#allocation6], 64  }
  0x45   : > { %4701 = vsyncadd (%p49_p1), [#allocation6], 4294967232 }
  0x46   : > { %4703 = dma.done.wait (%p49_p1), [#allocation9], 4128  }
  0x47   : > { %4705 = vsyncadd (%p49_p1), [#allocation9], 4294963168 }
  0x48   : > { %4707 = dma.done.wait (%p49_p1), [#allocation12], 4096  }
  0x49   : > { %4709 = vsyncadd (%p49_p1), [#allocation12], 4294963200  ;;  %v4940_v0 = vld [vmem:[%s4921_s25 + $0x20] sm:$0xff]  ;;  %v4943_v1 = vld [vmem:[%s4921_s25 + $0x28] sm:$0xff]  ;;  %v4739_v27 = vmov 256.0   ;;  %s7092_s24 = scalar_lea.vmem [#allocation13], %s3835_s3 }
  0x4a   : > { %v433_v2 = vld [vmem:[%s4921_s25] sm:$0xff]  ;;  %v505_v3 = vadd.f32 %v4943_v1, %v4940_v0  ;;  %v434_v4 = vld [vmem:[%s4921_s25 + $0x8] sm:$0xff]  ;;  %v439_v8 = vld [vmem:[%s4921_s25 + $0x30] sm:$0xff]  ;;  %4276 = vrcp.f32 %v4739_v27  ;;  %s4171_s28 = sshll.u32 %s4816_s16, 9  ;;  %s3698_s13 = sshll.u32 %s7092_s24, 4  ;;  %s3699_s13 = int_to_ptr.vmem [resolvable:$true] %s3698_s13 }
  0x4b   : > { %v499_v5 = vadd.f32 %v434_v4, %v433_v2  ;;  %v441_v6 = vld [vmem:[%s4921_s25 + $0x40] sm:$0xff]  ;;  %v442_v7 = vld [vmem:[%s4921_s25 + $0x48] sm:$0xff]  ;;  %v440_v9 = vld [vmem:[%s4921_s25 + $0x38] sm:$0xff]  ;;  %s3697_s27 = scalar_lea.hbm %s7803_s9, %s4171_s28  ;;  %s3685_s3 = scalar_lea.sflag [#allocation4], %s4915_s21 }
  0x4c   : > { %506 = vadd.xlane.f32.xlu1 %v505_v3  ;;  %v511_v10 = vadd.f32 %v442_v7, %v441_v6  ;;  %v435_v11 = vld [vmem:[%s4921_s25 + $0x10] sm:$0xff]  ;;  %v436_v12 = vld [vmem:[%s4921_s25 + $0x18] sm:$0xff]  ;;  %v508_v13 = vadd.f32 %v440_v9, %v439_v8  ;;  %v4970_v20 = vld [vmem:[%s4921_s25 + $0x60] sm:$0xff]  ;;  %s3700_s16 = sshll.u32 %s3697_s27, 4  ;;  %s4670_s23 = scalar_lea.hbm %s7803_s9, 1024  ;;  %s3701_s16 = int_to_ptr.hbm [resolvable:$true] %s3700_s16 }
  0x4d   : > { %500 = vadd.xlane.f32.xlu0 %v499_v5  ;;  %v4956_v14 = vld [vmem:[%s4921_s25 + $0x50] sm:$0xff]  ;;  %v4959_v15 = vld [vmem:[%s4921_s25 + $0x58] sm:$0xff]  ;;  %v502_v16 = vadd.f32 %v436_v12, %v435_v11  ;;  %v4973_v21 = vld [vmem:[%s4921_s25 + $0x68] sm:$0xff]  ;;  %s4664_s6 = sshra.s32 %s3701_s16, 4  ;;  %s4665_s6 = int_to_ptr.hbm [resolvable:$true] %s4664_s6 }
  0x4e   : > { %512 = vadd.xlane.f32.xlu2 %v511_v10  ;;  %v514_v17 = vadd.f32 %v4959_v15, %v4956_v14  ;;  %v4964_v18 = vld [vmem:[%s4921_s25 + $0x70] sm:$0xff]  ;;  %v4967_v19 = vld [vmem:[%s4921_s25 + $0x78] sm:$0xff]  ;;  %v517_v23 = vadd.f32 %v4973_v21, %v4970_v20  ;;  %v4980_v24 = vld [vmem:[%s4921_s25 + $0x80] sm:$0xff]  ;;  %s4666_s1 = scalar_lea.hbm %s4665_s6, 512  ;;  %p4671_p13 = scmp.lt.s32.totalorder %s4665_s6, %s7803_s9 }
  0x4f   : > { %v520_v22 = vadd.f32 %v4967_v19, %v4964_v18  ;;  %v4983_v25 = vld [vmem:[%s4921_s25 + $0x88] sm:$0xff]  ;;  %v5001_v47 = vld [vmem:[%s4921_s25 + $0x90] sm:$0xff]  ;;  %v5004_v48 = vld [vmem:[%s4921_s25 + $0x98] sm:$0xff]  ;;  %p4667_p1 = scmp.ne.s32.totalorder %s4665_s6, %s4666_s1  ;;  %p4672_p7 = scmp.lt.s32.totalorder %s4670_s23, %s4666_s1 }
  0x50   : > { %v523_v26 = vadd.f32 %v4983_v25, %v4980_v24  ;;  %v4277_v28 = vpop.eup %4276  ;;  %v526_v55 = vadd.f32 %v5004_v48, %v5001_v47  ;;  %v5071_v27 = vld [vmem:[%s4921_s25 + $0xb0] sm:$0xff] }
  0x51   : > { %v596_v29 = vmul.f32 256.0, %v4277_v28  ;;  %vm600_vm0 = vweird.f32 %v4277_v28  ;;  %p4668_p3 = pnand %p4667_p1, %p4882_p0  ;;  %p4673_p8 = por %p4672_p7, %p4671_p13 }
  0x53   : > { %v597_v30 = vsub.f32 1.0, %v596_v29  ;;  %p4669_p4 = pneg %p4668_p3 }
  0x54   : > { %509 = vadd.xlane.f32.xlu1 %v508_v13 }
  0x55   : > { %503 = vadd.xlane.f32.xlu0 %v502_v16  ;;  %v598_v31 = vmul.f32 %v4277_v28, %v597_v30  ;;  %p4674_p9 = pnand %p4673_p8, %p4669_p4 }
  0x56   : > { %515 = vadd.xlane.f32.xlu2 %v514_v17 }
  0x57   : > { %v599_v32 = vadd.f32 %v4277_v28, %v598_v31 }
  0x59   : > { %v4987_v33 = vsel %vm600_vm0, %v4277_v28, %v599_v32  ;;  %v5074_v28 = vld [vmem:[%s4921_s25 + $0xb8] sm:$0xff] }
  0x5c   : > { %521 = vadd.xlane.f32.xlu1 %v520_v22 }
  0x5d   : > { %518 = vadd.xlane.f32.xlu0 %v517_v23  ;;  %v5061_v23 = vld [vmem:[%s4921_s25 + $0xd0] sm:$0xff] }
  0x64   : > { %524 = vadd.xlane.f32.xlu1 %v523_v26  ;;  %v5064_v26 = vld [vmem:[%s4921_s25 + $0xd8] sm:$0xff] }
  0x65   : > { %v538_v29 = vadd.f32 %v5064_v26, %v5061_v23 }
  0xbf   : > { %v507_v34 = vpop.xlane.xlu1 %506 }
  0xc0   : > { %v501_v35 = vpop.xlane.xlu0 %500  ;;  %v604_v49 = vmul.f32 %v4987_v33, %v507_v34 }
  0xc1   : > { %v602_v36 = vmul.f32 %v4987_v33, %v501_v35  ;;  %v513_v39 = vpop.xlane.xlu2 %512  ;;  %v532_v35 = vadd.f32 %v5074_v28, %v5071_v27 }
  0xc2   : > { %v606_v46 = vmul.f32 %v4987_v33, %v513_v39  ;;  %v5027_v60 = vsub.f32 %v4940_v0, %v604_v49  ;;  %v5030_v61 = vsub.f32 %v4943_v1, %v604_v49  ;;  %v5088_v39 = vld [vmem:[%s4921_s25 + $0xe0] sm:$0xff] }
  0xc3   : > { %v4990_v37 = vsub.f32 %v433_v2, %v602_v36  ;;  %v4992_v38 = vsub.f32 %v434_v4, %v602_v36 }
  0xc4   : > { %v5018_v56 = vsub.f32 %v441_v6, %v606_v46  ;;  %v5020_v57 = vsub.f32 %v442_v7, %v606_v46  ;;  %v702_v6 = vmul.f32 %v5027_v60, %v5027_v60  ;;  %v703_v7 = vmul.f32 %v5030_v61, %v5030_v61 }
  0xc5   : > { %v698_v40 = vmul.f32 %v4990_v37, %v4990_v37  ;;  %v699_v41 = vmul.f32 %v4992_v38, %v4992_v38 }
  0xc6   : > { %v706_v5 = vmul.f32 %v5018_v56, %v5018_v56  ;;  %v707_v0 = vmul.f32 %v5020_v57, %v5020_v57  ;;  %v768_v16 = vadd.f32 %v703_v7, %v702_v6  ;;  %v5145_v6 = vld [vmem:[%s4921_s25 + $0x110] sm:$0xff]  ;;  %v5148_v7 = vld [vmem:[%s4921_s25 + $0x118] sm:$0xff] }
  0xc7   : > { %v510_v42 = vpop.xlane.xlu1 %509  ;;  %v762_v43 = vadd.f32 %v699_v41, %v698_v40  ;;  %v5091_v40 = vld [vmem:[%s4921_s25 + $0xe8] sm:$0xff]  ;;  %v5098_v41 = vld [vmem:[%s4921_s25 + $0xc0] sm:$0xff] }
  0xc8   : > { %v605_v44 = vmul.f32 %v4987_v33, %v510_v42  ;;  %v504_v45 = vpop.xlane.xlu0 %503  ;;  %v774_v10 = vadd.f32 %v707_v0, %v706_v5  ;;  %v5101_v42 = vld [vmem:[%s4921_s25 + $0xc8] sm:$0xff]  ;;  %v5137_v0 = vld [vmem:[%s4921_s25 + $0x100] sm:$0xff] }
  0xc9   : > { %v603_v50 = vmul.f32 %v4987_v33, %v504_v45  ;;  %763 = vadd.xlane.f32.xlu2 %v762_v43  ;;  %v516_v3 = vpop.xlane.xlu2 %515  ;;  %v541_v43 = vadd.f32 %v5091_v40, %v5088_v39  ;;  %v535_v46 = vadd.f32 %v5101_v42, %v5098_v41 }
  0xca   : > { %v5008_v51 = vsub.f32 %v439_v8, %v605_v44  ;;  %v5010_v52 = vsub.f32 %v440_v9, %v605_v44  ;;  %v607_v1 = vmul.f32 %v4987_v33, %v516_v3  ;;  %v5046_v8 = vld [vmem:[%s4921_s25 + $0xa0] sm:$0xff]  ;;  %v5049_v9 = vld [vmem:[%s4921_s25 + $0xa8] sm:$0xff] }
  0xcb   : > { %v5012_v53 = vsub.f32 %v435_v11, %v603_v50  ;;  %v5014_v54 = vsub.f32 %v436_v12, %v603_v50  ;;  %v529_v13 = vadd.f32 %v5049_v9, %v5046_v8 }
  0xcc   : > { %v704_v58 = vmul.f32 %v5008_v51, %v5008_v51  ;;  %v705_v59 = vmul.f32 %v5010_v52, %v5010_v52  ;;  %v5052_v11 = vsub.f32 %v4956_v14, %v607_v1  ;;  %v5055_v12 = vsub.f32 %v4959_v15, %v607_v1 }
  0xcd   : > { %v700_v62 = vmul.f32 %v5012_v53, %v5012_v53  ;;  %v701_v63 = vmul.f32 %v5014_v54, %v5014_v54 }
  0xce   : > { %v771_v2 = vadd.f32 %v705_v59, %v704_v58  ;;  %v708_v14 = vmul.f32 %v5052_v11, %v5052_v11  ;;  %v709_v15 = vmul.f32 %v5055_v12, %v5055_v12  ;;  %v5122_v59 = vld [vmem:[%s4921_s25 + $0xf8] sm:$0xff] }
  0xcf   : > { %v765_v4 = vadd.f32 %v701_v63, %v700_v62  ;;  %v522_v30 = vpop.xlane.xlu1 %521 }
  0xd0   : > { %772 = vadd.xlane.f32.xlu1 %v771_v2  ;;  %v519_v17 = vpop.xlane.xlu0 %518  ;;  %v777_v34 = vadd.f32 %v709_v15, %v708_v14  ;;  %v609_v36 = vmul.f32 %v4987_v33, %v522_v30  ;;  %v4121_v14 = vld [vmem:[#allocation8 + $0x74] sm:$0xf0]  ;;  %v3964_v15 = vld [vmem:[#allocation8 + $0xf0] sm:$0xf] }
  0xd1   : > { %527 = vadd.xlane.f32.xlu2 %v526_v55  ;;  %766 = vadd.xlane.f32.xlu0 %v765_v4  ;;  %v608_v22 = vmul.f32 %v4987_v33, %v519_v17  ;;  %v4137_v30 = vld [vmem:[#allocation8 + $0xf4] sm:$0xf0] }
  0xd2   : > { %v5106_v44 = vsub.f32 %v4964_v18, %v609_v36  ;;  %v5109_v45 = vsub.f32 %v4967_v19, %v609_v36  ;;  %v5119_v19 = vld [vmem:[%s4921_s25 + $0xf0] sm:$0xff]  ;;  %v3965_v36 = vor.u32 %v4137_v30, %v3964_v15  ;;  %v4116_v30 = vld [vmem:[#allocation8 + $0x54] sm:$0xf] }
  0xd3   : > { %v5079_v31 = vsub.f32 %v4970_v20, %v608_v22  ;;  %v5082_v32 = vsub.f32 %v4973_v21, %v608_v22  ;;  %v544_v3 = vadd.f32 %v5122_v59, %v5119_v19  ;;  %v3900_v22 = vld [vmem:[#allocation8 + $0x70] sm:$0xf] }
  0xd4   : > { %v712_v58 = vmul.f32 %v5106_v44, %v5106_v44  ;;  %v713_v18 = vmul.f32 %v5109_v45, %v5109_v45  ;;  %1763 = vmatpush.bf16.msra.mxu1 %v3965_v36 }
  0xd5   : > { %v710_v20 = vmul.f32 %v5079_v31, %v5079_v31  ;;  %v711_v21 = vmul.f32 %v5082_v32, %v5082_v32 }
  0xd6   : > { %v783_v2 = vadd.f32 %v713_v18, %v712_v58  ;;  %v4135_v18 = vld [vmem:[#allocation8 + $0xe4] sm:$0xf0] }
  0xd7   : > { %v780_v49 = vadd.f32 %v711_v21, %v710_v20  ;;  %v525_v50 = vpop.xlane.xlu1 %524  ;;  %v4136_v21 = vld [vmem:[#allocation8 + $0xf4] sm:$0xf] }
  0xd8   : > { %775 = vadd.xlane.f32.xlu1 %v774_v10  ;;  %v610_v55 = vmul.f32 %v4987_v33, %v525_v50  ;;  %v550_v10 = vadd.f32 %v5148_v7, %v5145_v6  ;;  %v4119_v50 = vld [vmem:[#allocation8 + $0x64] sm:$0xf0] }
  0xd9   : > { %530 = vadd.xlane.f32.xlu2 %v529_v13  ;;  %769 = vadd.xlane.f32.xlu0 %v768_v16  ;;  %v5153_v13 = vld [vmem:[%s4921_s25 + $0x120] sm:$0xff]  ;;  %v5156_v16 = vld [vmem:[%s4921_s25 + $0x128] sm:$0xff] }
  0xda   : > { %v5125_v62 = vsub.f32 %v4980_v24, %v610_v55  ;;  %v5128_v63 = vsub.f32 %v4983_v25, %v610_v55  ;;  %v5140_v24 = vld [vmem:[%s4921_s25 + $0x108] sm:$0xff]  ;;  %v553_v17 = vadd.f32 %v5156_v16, %v5153_v13  ;;  %v3956_v55 = vld [vmem:[#allocation8 + $0xe0] sm:$0xf] }
  0xdb   : > { %v547_v1 = vadd.f32 %v5140_v24, %v5137_v0 }
  0xdc   : > { %7904 = vst [vmem:[#allocation19_spill] sm:$0xff] %v5128_v63  ;;  %v714_v4 = vmul.f32 %v5125_v62, %v5125_v62  ;;  %v715_v5 = vmul.f32 %v5128_v63, %v5128_v63 }
  0xde   : > { %v786_v25 = vadd.f32 %v715_v5, %v714_v4  ;;  %v3957_v4 = vor.u32 %v4135_v18, %v3956_v55  ;;  %v4114_v18 = vld [vmem:[#allocation8 + $0x44] sm:$0xf] }
  0xe0   : > { %539 = vadd.xlane.f32.xlu1 %v538_v29  ;;  %v3901_v29 = vor.u32 %v4121_v14, %v3900_v22  ;;  %1764 = vmatpush.bf16.msra.mxu1 %v3957_v4  ;;  %v4117_v22 = vld [vmem:[#allocation8 + $0x54] sm:$0xf0]  ;;  %v3948_v14 = vld [vmem:[#allocation8 + $0xd0] sm:$0xf] }
  0xe1   : > { %778 = vadd.xlane.f32.xlu2 %v777_v34  ;;  %533 = vadd.xlane.f32.xlu0 %v532_v35  ;;  %v4120_v34 = vld [vmem:[#allocation8 + $0x74] sm:$0xf]  ;;  %v3902_v35 = vld [vmem:[#allocation8 + $0x78] sm:$0xf0] }
  0xe2   : > { %v3905_v20 = vor.u32 %v4120_v34, %v3902_v35  ;;  %1674 = vmatpush.bf16.msra.mxu0 %v3901_v29  ;;  %v4133_v29 = vld [vmem:[#allocation8 + $0xd4] sm:$0xf0]  ;;  %v3886_v34 = vld [vmem:[#allocation8 + $0x58] sm:$0xf0] }
  0xe3   : > { %v3949_v35 = vor.u32 %v4133_v29, %v3948_v14  ;;  %v3889_v36 = vor.u32 %v4116_v30, %v3886_v34  ;;  %v4112_v29 = vld [vmem:[#allocation8 + $0x34] sm:$0xf]  ;;  %v3870_v30 = vld [vmem:[#allocation8 + $0x38] sm:$0xf0] }
  0xe4   : > { %1852 = vmatpush.bf16.msra.mxu2 %v3905_v20  ;;  %v4132_v20 = vld [vmem:[#allocation8 + $0xd4] sm:$0xf] }
  0xe5   : > { %1765 = vmatpush.bf16.msra.mxu1 %v3949_v35  ;;  %v3873_v35 = vor.u32 %v4112_v29, %v3870_v30  ;;  %v4108_v29 = vld [vmem:[#allocation8 + $0x14] sm:$0xf]  ;;  %v3854_v30 = vld [vmem:[#allocation8 + $0x18] sm:$0xf0] }
  0xe8   : > { %542 = vadd.xlane.f32.xlu1 %v541_v43  ;;  %v3966_v43 = vld [vmem:[#allocation8 + $0xf8] sm:$0xf0] }
  0xe9   : > { %536 = vadd.xlane.f32.xlu0 %v535_v46  ;;  %781 = vadd.xlane.f32.xlu2 %v780_v49  ;;  %v3969_v46 = vor.u32 %v4136_v21, %v3966_v43  ;;  %v3892_v49 = vld [vmem:[#allocation8 + $0x60] sm:$0xf]  ;;  %v3950_v21 = vld [vmem:[#allocation8 + $0xd8] sm:$0xf0] }
  0xea   : > { %v3893_v58 = vor.u32 %v4119_v50, %v3892_v49  ;;  %v3953_v43 = vor.u32 %v4132_v20, %v3950_v21  ;;  %v4115_v49 = vld [vmem:[#allocation8 + $0x44] sm:$0xf0]  ;;  %v3940_v50 = vld [vmem:[#allocation8 + $0xc0] sm:$0xf]  ;;  %v3934_v20 = vld [vmem:[#allocation8 + $0xb8] sm:$0xf0] }
  0xeb   : > { %1941 = vmatpush.bf16.msra.mxu3 %v3969_v46  ;;  %v3876_v46 = vld [vmem:[#allocation8 + $0x40] sm:$0xf] }
  0xec   : > { %1675 = vmatpush.bf16.msra.mxu0 %v3893_v58  ;;  %v3877_v55 = vor.u32 %v4115_v49, %v3876_v46  ;;  %v4131_v58 = vld [vmem:[#allocation8 + $0xc4] sm:$0xf0]  ;;  %v3924_v49 = vld [vmem:[#allocation8 + $0xa0] sm:$0xf] }
  0xed   : > { %v4111_v46 = vld [vmem:[#allocation8 + $0x24] sm:$0xf0] }
  0xf1   : > { %784 = vadd.xlane.f32.xlu0 %v783_v2  ;;  %545 = vadd.xlane.f32.xlu2 %v544_v3  ;;  %v4118_v2 = vld [vmem:[#allocation8 + $0x64] sm:$0xf]  ;;  %v3894_v3 = vld [vmem:[#allocation8 + $0x68] sm:$0xf0] }
  0xf2   : > { %v3897_v5 = vor.u32 %v4118_v2, %v3894_v3  ;;  %v3878_v2 = vld [vmem:[#allocation8 + $0x48] sm:$0xf0]  ;;  %v3941_v3 = vor.u32 %v4131_v58, %v3940_v50  ;;  %v4110_v58 = vld [vmem:[#allocation8 + $0x24] sm:$0xf] }
  0xf3   : > { %v3881_v4 = vor.u32 %v4114_v18, %v3878_v2  ;;  %v3862_v18 = vld [vmem:[#allocation8 + $0x28] sm:$0xf0] }
  0xf4   : > { %1853 = vmatpush.bf16.msra.mxu2 %v3897_v5  ;;  %v4130_v5 = vld [vmem:[#allocation8 + $0xc4] sm:$0xf]  ;;  %1766 = vmatpush.bf16.msra.mxu1 %v3941_v3  ;;  %v3865_v3 = vor.u32 %v4110_v58, %v3862_v18  ;;  %v3908_v58 = vld [vmem:[#allocation8 + $0x80] sm:$0xf]  ;;  %v4123_v18 = vld [vmem:[#allocation8 + $0x84] sm:$0xf0] }
  0xf8   : > { %1854 = vmatpush.bf16.msra.mxu2 %v3889_v36  ;;  %v4128_v36 = vld [vmem:[#allocation8 + $0xb4] sm:$0xf] }
  0xf9   : > { %787 = vadd.xlane.f32.xlu0 %v786_v25  ;;  %548 = vadd.xlane.f32.xlu2 %v547_v1  ;;  %v4134_v25 = vld [vmem:[#allocation8 + $0xe4] sm:$0xf]  ;;  %v3958_v1 = vld [vmem:[#allocation8 + $0xe8] sm:$0xf0]  ;;  %v3937_v21 = vor.u32 %v4128_v36, %v3934_v20  ;;  %v3857_v36 = vor.u32 %v4108_v29, %v3854_v30  ;;  %v4124_v20 = vld [vmem:[#allocation8 + $0x94] sm:$0xf] }
  0xfc   : > { %1855 = vmatpush.bf16.msra.mxu2 %v3881_v4  ;;  %v4126_v4 = vld [vmem:[#allocation8 + $0xa4] sm:$0xf] }
 0x100   : > { %1856 = vmatpush.bf16.msra.mxu2 %v3873_v35 }
 0x101   : > { %551 = vadd.xlane.f32.xlu0 %v550_v10  ;;  %v3961_v10 = vor.u32 %v4134_v25, %v3958_v1  ;;  %v3942_v25 = vld [vmem:[#allocation8 + $0xc8] sm:$0xf0] }
 0x102   : > { %v3945_v1 = vor.u32 %v4130_v5, %v3942_v25  ;;  %v3926_v5 = vld [vmem:[#allocation8 + $0xa8] sm:$0xf0] }
 0x103   : > { %1942 = vmatpush.bf16.msra.mxu3 %v3961_v10  ;;  %v3868_v10 = vld [vmem:[#allocation8 + $0x30] sm:$0xf]  ;;  %v3929_v25 = vor.u32 %v4126_v4, %v3926_v5  ;;  %v3846_v4 = vld [vmem:[#allocation8 + $0x8] sm:$0xf0]  ;;  %v4122_v5 = vld [vmem:[#allocation8 + $0x84] sm:$0xf] }
 0x104   : > { %1857 = vmatpush.bf16.msra.mxu2 %v3865_v3  ;;  %v3909_v3 = vor.u32 %v4123_v18, %v3908_v58 }
 0x107   : > { %1943 = vmatpush.bf16.msra.mxu3 %v3953_v43  ;;  %v3860_v43 = vld [vmem:[#allocation8 + $0x20] sm:$0xf] }
 0x108   : > { %v3861_v50 = vor.u32 %v4111_v46, %v3860_v43  ;;  %1858 = vmatpush.bf16.msra.mxu2 %v3857_v36 }
 0x109   : > { %554 = vadd.xlane.f32.xlu0 %v553_v17  ;;  %v3884_v17 = vld [vmem:[#allocation8 + $0x50] sm:$0xf] }
 0x10a   : > { %v3885_v15 = vor.u32 %v4117_v22, %v3884_v17  ;;  %v4113_v17 = vld [vmem:[#allocation8 + $0x34] sm:$0xf0]  ;;  %v3932_v22 = vld [vmem:[#allocation8 + $0xb0] sm:$0xf] }
 0x10b   : > { %1944 = vmatpush.bf16.msra.mxu3 %v3945_v1  ;;  %v3869_v14 = vor.u32 %v4113_v17, %v3868_v10  ;;  %v3852_v1 = vld [vmem:[#allocation8 + $0x10] sm:$0xf]  ;;  %v4109_v10 = vld [vmem:[#allocation8 + $0x14] sm:$0xf0] }
 0x10c   : > { %1676 = vmatpush.bf16.msra.mxu0 %v3885_v15  ;;  %v4129_v15 = vld [vmem:[#allocation8 + $0xb4] sm:$0xf0]  ;;  %v3916_v17 = vld [vmem:[#allocation8 + $0x90] sm:$0xf] }
 0x10d   : > { %v3933_v34 = vor.u32 %v4129_v15, %v3932_v22  ;;  %v4125_v15 = vld [vmem:[#allocation8 + $0x94] sm:$0xf0] }
 0x10e   : > { %v3917_v35 = vor.u32 %v4125_v15, %v3916_v17 }
 0x10f   : > { %1767 = vmatpush.bf16.msra.mxu1 %v3933_v34  ;;  %1945 = vmatpush.bf16.msra.mxu3 %v3937_v21  ;;  %v3918_v21 = vld [vmem:[#allocation8 + $0x98] sm:$0xf0] }
 0x110   : > { %1677 = vmatpush.bf16.msra.mxu0 %v3877_v55  ;;  %v4127_v55 = vld [vmem:[#allocation8 + $0xa4] sm:$0xf0]  ;;  %v3921_v43 = vor.u32 %v4124_v20, %v3918_v21 }
 0x111   : > { %v3925_v2 = vor.u32 %v4127_v55, %v3924_v49  ;;  %v3844_v49 = vld [vmem:[#allocation8] sm:$0xf] }
 0x113   : > { %1768 = vmatpush.bf16.msra.mxu1 %v3925_v2  ;;  %1946 = vmatpush.bf16.msra.mxu3 %v3929_v25  ;;  %v4106_v2 = vld [vmem:[#allocation8 + $0x4] sm:$0xf]  ;;  %v3910_v25 = vld [vmem:[#allocation8 + $0x88] sm:$0xf0] }
 0x114   : > { %1678 = vmatpush.bf16.msra.mxu0 %v3869_v14  ;;  %v3853_v14 = vor.u32 %v4109_v10, %v3852_v1  ;;  %v3849_v1 = vor.u32 %v4106_v2, %v3846_v4  ;;  %v3913_v10 = vor.u32 %v4122_v5, %v3910_v25 }
 0x116   : > { %1859 = vmatpush.bf16.msra.mxu2 %v3849_v1 }
 0x117   : > { %1769 = vmatpush.bf16.msra.mxu1 %v3917_v35  ;;  %1947 = vmatpush.bf16.msra.mxu3 %v3921_v43 }
 0x118   : > { %1679 = vmatpush.bf16.msra.mxu0 %v3861_v50  ;;  %v4107_v50 = vld [vmem:[#allocation8 + $0x4] sm:$0xf0] }
 0x119   : > { %v3845_v55 = vor.u32 %v4107_v50, %v3844_v49 }
 0x11b   : > { %1770 = vmatpush.bf16.msra.mxu1 %v3909_v3  ;;  %1948 = vmatpush.bf16.msra.mxu3 %v3913_v10 }
 0x11c   : > { %1680 = vmatpush.bf16.msra.mxu0 %v3853_v14 }
 0x120   : > { %1681 = vmatpush.bf16.msra.mxu0 %v3845_v55 }
 0x13c   : > { %v764_v22 = vpop.xlane.xlu2 %763 }
 0x13d   : > { %v858_v34 = vmul.f32 %v764_v22, %v4987_v33 }
 0x13f   : > { %v5161_v46 = vadd.f32 1e-05, %v858_v34 }
 0x141   : > { %4278 = vrsqrt.f32 %v5161_v46  ;;  %vm928_vm2 = vweird.f32 %v5161_v46 }
 0x143   : > { %v773_v17 = vpop.xlane.xlu1 %772 }
 0x144   : > { %v861_v22 = vmul.f32 %v773_v17, %v4987_v33  ;;  %v528_v14 = vpop.xlane.xlu2 %527  ;;  %v767_v15 = vpop.xlane.xlu0 %766  ;;  %v497_v17 = vld [vmem:[#allocation5] sm:$0x3] }
 0x145   : > { %v611_v29 = vmul.f32 %v4987_v33, %v528_v14  ;;  %v859_v30 = vmul.f32 %v767_v15, %v4987_v33 }
 0x146   : > { %v5167_v34 = vadd.f32 1e-05, %v861_v22 }
 0x147   : > { %v4279_v35 = vpop.eup %4278  ;;  %v5170_v36 = vsub.f32 %v5001_v47, %v611_v29  ;;  %v5173_v20 = vsub.f32 %v5004_v48, %v611_v29  ;;  %v5175_v21 = vadd.f32 1e-05, %v859_v30 }
 0x148   : > { %v923_v43 = vmul.f32 %v4279_v35, %v5161_v46  ;;  %4280 = vrsqrt.f32 %v5167_v34  ;;  %vm929_vm1 = vweird.f32 %v4279_v35  ;;  %v5224_v46 = vperm.slane %v497_v17, 1 }
 0x149   : > { %7905 = vst [vmem:[#allocation20_spill] sm:$0xff] %v5170_v36  ;;  %4282 = vrsqrt.f32 %v5175_v21  ;;  %v716_v49 = vmul.f32 %v5170_v36, %v5170_v36  ;;  %v717_v50 = vmul.f32 %v5173_v20, %v5173_v20  ;;  %vm930_vm3 = vmor %vm928_vm2, %vm929_vm1  ;;  %vm938_vm4 = vweird.f32 %v5175_v21 }
 0x14a   : > { %7906 = vst [vmem:[#allocation21_spill] sm:$0xff] %v5173_v20  ;;  %v924_v55 = vmul.f32 %v4279_v35, %v923_v43  ;;  %vm958_vm5 = vweird.f32 %v5167_v34 }
 0x14b   : > { %v776_v47 = vpop.xlane.xlu1 %775  ;;  %v789_v58 = vadd.f32 %v717_v50, %v716_v49  ;;  %v498_v49 = vld [vmem:[#allocation7] sm:$0x3] }
 0x14c   : > { %v925_v18 = vmul.f32 0.5, %v924_v55  ;;  %v862_v48 = vmul.f32 %v776_v47, %v4987_v33  ;;  %v531_v2 = vpop.xlane.xlu2 %530  ;;  %v770_v3 = vpop.xlane.xlu0 %769  ;;  %v5207_v47 = vperm.slane %v497_v17, 0  ;;  %v5231_v63 = vperm.slane %v498_v49, 1 }
 0x14d   : > { %v612_v4 = vmul.f32 %v4987_v33, %v531_v2  ;;  %v860_v5 = vmul.f32 %v770_v3, %v4987_v33  ;;  %790 = vadd.xlane.f32.xlu1 %v789_v58  ;;  %v5215_v58 = vld [vmem:[%s4921_s25 + $0x130] sm:$0xff]  ;;  %v5222_v3 = vperm.slane %v498_v49, 0 }
 0x14e   : > { %v5187_v25 = vpop.eup %4280  ;;  %v926_v1 = vsub.f32 1.5, %v925_v18  ;;  %v5189_v10 = vadd.f32 1e-05, %v862_v48  ;;  %7909 = vst [vmem:[#allocation24_spill] sm:$0xff] %v5215_v58  ;;  %v5218_v18 = vld [vmem:[%s4921_s25 + $0x138] sm:$0xff] }
 0x14f   : > { %v5191_v22 = vpop.eup %4282  ;;  %v953_v14 = vmul.f32 %v5187_v25, %v5167_v34  ;;  %v5196_v15 = vsub.f32 %v5046_v8, %v612_v4  ;;  %v5199_v29 = vsub.f32 %v5049_v9, %v612_v4  ;;  %v5203_v50 = vadd.f32 1e-05, %v860_v5  ;;  %7910 = vst [vmem:[#allocation25_spill] sm:$0xff] %v5218_v18 }
 0x150   : > { %v927_v30 = vmul.f32 %v4279_v35, %v926_v1  ;;  %v933_v43 = vmul.f32 %v5191_v22, %v5175_v21  ;;  %4284 = vrsqrt.f32 %v5189_v10  ;;  %v556_v36 = vadd.f32 %v5218_v18, %v5215_v58 }
 0x151   : > { %7907 = vst [vmem:[#allocation22_spill] sm:$0xff] %v5196_v15  ;;  %v718_v55 = vmul.f32 %v5196_v15, %v5196_v15  ;;  %v719_v9 = vmul.f32 %v5199_v29, %v5199_v29  ;;  %v954_v48 = vmul.f32 %v5187_v25, %v953_v14  ;;  %4286 = vrsqrt.f32 %v5203_v50 }
 0x152   : > { %7908 = vst [vmem:[#allocation23_spill] sm:$0xff] %v5199_v29  ;;  %v934_v8 = vmul.f32 %v5191_v22, %v933_v43  ;;  %v931_v15 = vsel %vm930_vm3, %v4279_v35, %v927_v30  ;;  %v5241_v35 = vld [vmem:[%s4921_s25 + $0x140] sm:$0xff]  ;;  %v5244_v30 = vld [vmem:[%s4921_s25 + $0x148] sm:$0xff]  ;;  %vm939_vm6 = vweird.f32 %v5191_v22  ;;  %vm959_vm7 = vweird.f32 %v5187_v25 }
 0x153   : > { %v540_v2 = vpop.xlane.xlu1 %539  ;;  %v792_v29 = vadd.f32 %v719_v9, %v718_v55  ;;  %7913 = vst [vmem:[#allocation28_spill] sm:$0xff] %v5241_v35  ;;  %v955_v55 = vmul.f32 0.5, %v954_v48  ;;  %v1242_v9 = vmul.f32 %v931_v15, %v4990_v37  ;;  %v1243_v37 = vmul.f32 %v931_v15, %v4992_v38  ;;  %vm940_vm8 = vmor %vm938_vm4, %vm939_vm6 }
 0x154   : > { %v935_v4 = vmul.f32 0.5, %v934_v8  ;;  %v615_v5 = vmul.f32 %v4987_v33, %v540_v2  ;;  %v779_v1 = vpop.xlane.xlu2 %778  ;;  %v534_v43 = vpop.xlane.xlu0 %533  ;;  %7914 = vst [vmem:[#allocation29_spill] sm:$0xff] %v5244_v30  ;;  %vm948_vm10 = vweird.f32 %v5203_v50  ;;  %vm5313_vm11 = vmor %vm958_vm5, %vm959_vm7  ;;  %vm968_vm15 = vweird.f32 %v5189_v10 }
 0x155   : > { %v863_v20 = vmul.f32 %v779_v1, %v4987_v33  ;;  %v613_v14 = vmul.f32 %v4987_v33, %v534_v43  ;;  %793 = vadd.xlane.f32.xlu1 %v792_v29  ;;  %v559_v1 = vadd.f32 %v5244_v30, %v5241_v35  ;;  %v1311_v15 = vmul.f32 %v5207_v47, %v1242_v9 }
 0x156   : > { %v936_v17 = vsub.f32 1.5, %v935_v4  ;;  %v5235_v8 = vsub.f32 %v5061_v23, %v615_v5  ;;  %v5238_v2 = vsub.f32 %v5064_v26, %v615_v5  ;;  %v5251_v4 = vpop.eup %4284 }
 0x157   : > { %v5248_v49 = vadd.f32 1e-05, %v863_v20  ;;  %v5255_v26 = vsub.f32 %v5071_v27, %v613_v14  ;;  %v5258_v29 = vsub.f32 %v5074_v28, %v613_v14  ;;  %v4287_v5 = vpop.eup %4286  ;;  %v956_v14 = vsub.f32 1.5, %v955_v55 }
 0x158   : > { %7911 = vst [vmem:[#allocation26_spill] sm:$0xff] %v5235_v8  ;;  %v937_v23 = vmul.f32 %v5191_v22, %v936_v17  ;;  %v724_v48 = vmul.f32 %v5235_v8, %v5235_v8  ;;  %v725_v20 = vmul.f32 %v5238_v2, %v5238_v2  ;;  %v943_v27 = vmul.f32 %v4287_v5, %v5203_v50 }
 0x159   : > { %7912 = vst [vmem:[#allocation27_spill] sm:$0xff] %v5238_v2  ;;  %4288 = vrsqrt.f32 %v5248_v49  ;;  %v720_v28 = vmul.f32 %v5255_v26, %v5255_v26  ;;  %v721_v43 = vmul.f32 %v5258_v29, %v5258_v29  ;;  %vm949_vm9 = vweird.f32 %v4287_v5 }
 0x15a   : > { %7915 = vst [vmem:[#allocation30_spill] sm:$0xff] %v5255_v26  ;;  %v801_v2 = vadd.f32 %v725_v20, %v724_v48  ;;  %v941_v38 = vsel %vm940_vm8, %v5191_v22, %v937_v23  ;;  %v944_v8 = vmul.f32 %v4287_v5, %v943_v27  ;;  %v963_v26 = vmul.f32 %v5251_v4, %v5189_v10  ;;  %vm950_vm12 = vmor %vm948_vm10, %vm949_vm9 }
 0x15b   : > { %7916 = vst [vmem:[#allocation31_spill] sm:$0xff] %v5258_v29  ;;  %v543_v17 = vpop.xlane.xlu1 %542  ;;  %v795_v18 = vadd.f32 %v721_v43, %v720_v28  ;;  %v1244_v58 = vmul.f32 %v941_v38, %v5012_v53  ;;  %v1245_v55 = vmul.f32 %v941_v38, %v5014_v54  ;;  %v1312_v22 = vmul.f32 %v5224_v46, %v1243_v37 }
 0x15c   : > { %v616_v30 = vmul.f32 %v4987_v33, %v543_v17  ;;  %v782_v21 = vpop.xlane.xlu2 %781  ;;  %v537_v35 = vpop.xlane.xlu0 %536  ;;  %802 = vadd.xlane.f32.xlu0 %v801_v2  ;;  %v945_v23 = vmul.f32 0.5, %v944_v8  ;;  %v1380_v8 = vadd.f32 %v5222_v3, %v1311_v15  ;;  %vm978_vm13 = vweird.f32 %v5248_v49 }
 0x15d   : > { %v614_v29 = vmul.f32 %v4987_v33, %v537_v35  ;;  %557 = vadd.xlane.f32.xlu1 %v556_v36  ;;  %796 = vadd.xlane.f32.xlu2 %v795_v18  ;;  %v1313_v48 = vmul.f32 %v5207_v47, %v1244_v58  ;;  %v864_v36 = vmul.f32 %v782_v21, %v4987_v33  ;;  %vm969_vm0 = vweird.f32 %v5251_v4 }
 0x15e   : > { %v5286_v9 = vsub.f32 %v5088_v39, %v616_v30  ;;  %v5292_v20 = vsub.f32 %v5091_v40, %v616_v30  ;;  %v946_v35 = vsub.f32 1.5, %v945_v23  ;;  %v957_v18 = vmul.f32 %v5187_v25, %v956_v14  ;;  %vm970_vm2 = vmor %vm968_vm15, %vm969_vm0 }
 0x15f   : > { %v5289_v53 = vpop.eup %4288  ;;  %v5295_v2 = vsub.f32 %v5098_v41, %v614_v29  ;;  %v5298_v54 = vsub.f32 %v5101_v42, %v614_v29  ;;  %v1382_v58 = vadd.f32 %v5222_v3, %v1313_v48  ;;  %v1314_v40 = vmul.f32 %v5224_v46, %v1245_v55 }
 0x160   : > { %v973_v39 = vmul.f32 %v5289_v53, %v5248_v49  ;;  %v1381_v41 = vadd.f32 %v5231_v63, %v1312_v22  ;;  %v947_v30 = vmul.f32 %v4287_v5, %v946_v35  ;;  %v726_v27 = vmul.f32 %v5286_v9, %v5286_v9 }
 0x161   : > { %v1444_v37 = vpack.c.bf16 %v1382_v58, %v1380_v8  ;;  %v1383_v50 = vadd.f32 %v5231_v63, %v1314_v40  ;;  %v727_v28 = vmul.f32 %v5292_v20, %v5292_v20  ;;  %v722_v34 = vmul.f32 %v5295_v2, %v5295_v2  ;;  %v5359_v40 = vld [vmem:[%s4921_s25 + $0x150] sm:$0xff] }
 0x162   : > { %v974_v29 = vmul.f32 %v5289_v53, %v973_v39  ;;  %v723_v43 = vmul.f32 %v5298_v54, %v5298_v54  ;;  %v964_v14 = vmul.f32 %v5251_v4, %v963_v26  ;;  %v5329_v17 = vadd.f32 1e-05, %v864_v36 }
 0x163   : > { %1682 = vmatmul.bf16.vlgmr.msra.gmra.mxu0 %v1444_v37  ;;  %1860 = vmatmul.bf16.vlgmr.msra.gmra.mxu2 %v1444_v37  ;;  %v951_v21 = vsel %vm950_vm12, %v4287_v5, %v947_v30  ;;  %v1445_v55 = vpack.c.bf16 %v1383_v50, %v1381_v41  ;;  %v804_v48 = vadd.f32 %v727_v28, %v726_v27  ;;  %v5362_v41 = vld [vmem:[%s4921_s25 + $0x158] sm:$0xff]  ;;  %vm979_vm14 = vweird.f32 %v5289_v53 }
 0x164   : > { %v546_v38 = vpop.xlane.xlu2 %545  ;;  %v785_v15 = vpop.xlane.xlu0 %784  ;;  %v798_v8 = vadd.f32 %v723_v43, %v722_v34  ;;  %v961_v26 = vsel %vm5313_vm11, %v5187_v25, %v957_v18  ;;  %v1246_v35 = vmul.f32 %v951_v21, %v5027_v60  ;;  %v975_v39 = vmul.f32 0.5, %v974_v29  ;;  %v5347_v25 = vld [vmem:[%s4921_s25 + $0x170] sm:$0xff]  ;;  %v5352_v18 = vld [vmem:[%s4921_s25 + $0x178] sm:$0xff]  ;;  %vm5395_vm1 = vmor %vm978_vm13, %vm979_vm14 }
 0x165   : > { %v617_v22 = vmul.f32 %v4987_v33, %v546_v38  ;;  %v865_v23 = vmul.f32 %v785_v15, %v4987_v33  ;;  %560 = vadd.xlane.f32.xlu1 %v559_v1  ;;  %1771 = vmatmul.bf16.vlgmr.msra.gmra.mxu1 %v1445_v55  ;;  %4290 = vrsqrt.f32 %v5329_v17  ;;  %v1248_v60 = vmul.f32 %v961_v26, %v5008_v51 }
 0x166   : > { %1949 = vmatmul.bf16.vlgmr.msra.gmra.mxu3 %v1445_v55  ;;  %805 = vadd.xlane.f32.xlu0 %v804_v48  ;;  %v965_v58 = vmul.f32 0.5, %v964_v14  ;;  %v1315_v42 = vmul.f32 %v5207_v47, %v1246_v35  ;;  %v1247_v30 = vmul.f32 %v951_v21, %v5030_v61  ;;  %v976_v51 = vsub.f32 1.5, %v975_v39 }
 0x167   : > { %v5338_v5 = vsub.f32 %v5119_v19, %v617_v22  ;;  %v5341_v36 = vsub.f32 %v5122_v59, %v617_v22  ;;  %v5343_v1 = vadd.f32 1e-05, %v865_v23  ;;  %799 = vadd.xlane.f32.xlu2 %v798_v8  ;;  %v1249_v37 = vmul.f32 %v961_v26, %v5010_v52  ;;  %v5446_v8 = vld [vmem:[%s4921_s25 + $0x190] sm:$0xff] }
 0x168   : > { %v568_v28 = vadd.f32 %v5352_v18, %v5347_v25  ;;  %v562_v34 = vadd.f32 %v5362_v41, %v5359_v40  ;;  %v1317_v43 = vmul.f32 %v5207_v47, %v1248_v60  ;;  %v966_v14 = vsub.f32 1.5, %v965_v58  ;;  %v5410_v60 = vld [vmem:[%s4921_s25 + $0x188] sm:$0xff] }
 0x169   : > { %4292 = vrsqrt.f32 %v5343_v1  ;;  %v728_v19 = vmul.f32 %v5338_v5, %v5338_v5  ;;  %v729_v59 = vmul.f32 %v5341_v36, %v5341_v36  ;;  %v1316_v52 = vmul.f32 %v5224_v46, %v1247_v30 }
 0x16a   : > { %v1384_v15 = vadd.f32 %v5222_v3, %v1315_v42  ;;  %v977_v55 = vmul.f32 %v5289_v53, %v976_v51  ;;  %v1318_v48 = vmul.f32 %v5224_v46, %v1249_v37  ;;  %v1386_v35 = vadd.f32 %v5222_v3, %v1317_v43 }
 0x16b   : > { %v807_v29 = vadd.f32 %v729_v59, %v728_v19  ;;  %v5378_v38 = vpop.eup %4290  ;;  %v1385_v49 = vadd.f32 %v5231_v63, %v1316_v52  ;;  %v5415_v19 = vld [vmem:[%s4921_s25 + $0x160] sm:$0xff]  ;;  %v5418_v59 = vld [vmem:[%s4921_s25 + $0x168] sm:$0xff]  ;;  %vm998_vm3 = vweird.f32 %v5343_v1  ;;  %vm988_vm5 = vweird.f32 %v5329_v17 }
 0x16c   : > { %v549_v27 = vpop.xlane.xlu2 %548  ;;  %v5368_v50 = vpop.xlane.xlu0 %787  ;;  %v983_v39 = vmul.f32 %v5378_v38, %v5329_v17  ;;  %v1446_v42 = vpack.c.bf16 %v1386_v35, %v1384_v15  ;;  %v981_v37 = vsel %vm5395_vm1, %v5289_v53, %v977_v55  ;;  %vm989_vm6 = vweird.f32 %v5378_v38 }
 0x16d   : > { %v618_v61 = vmul.f32 %v4987_v33, %v549_v27  ;;  %808 = vadd.xlane.f32.xlu1 %v807_v29  ;;  %v1387_v29 = vadd.f32 %v5231_v63, %v1318_v48  ;;  %v1252_v53 = vmul.f32 %v981_v37, %v5052_v11  ;;  %vm990_vm8 = vmor %vm988_vm5, %vm989_vm6 }
 0x16e   : > { %569 = vadd.xlane.f32.xlu0 %v568_v28  ;;  %v984_v43 = vmul.f32 %v5378_v38, %v983_v39 }
 0x16f   : > { %v5383_v21 = vpop.eup %4292  ;;  %v5387_v22 = vsub.f32 %v5137_v0, %v618_v61  ;;  %v5390_v23 = vsub.f32 %v5140_v24, %v618_v61  ;;  %563 = vadd.xlane.f32.xlu2 %v562_v34  ;;  %v5403_v0 = vld [vmem:[%s4921_s25 + $0x180] sm:$0xff]  ;;  %v967_v24 = vmul.f32 %v5251_v4, %v966_v14  ;;  %v565_v34 = vadd.f32 %v5418_v59, %v5415_v19 }
 0x170   : > { %v993_v26 = vmul.f32 %v5383_v21, %v5343_v1  ;;  %v571_v10 = vadd.f32 %v5410_v60, %v5403_v0  ;;  %v1447_v14 = vpack.c.bf16 %v1387_v29, %v1385_v49  ;;  %v985_v35 = vmul.f32 0.5, %v984_v43  ;;  %v5481_v43 = vld [vmem:[%s4921_s25 + $0x1a8] sm:$0xff] }
 0x171   : > { %7919 = vst [vmem:[#allocation32_spill] sm:$0xff] %v5387_v22  ;;  %v730_v58 = vmul.f32 %v5387_v22, %v5387_v22  ;;  %v731_v30 = vmul.f32 %v5390_v23, %v5390_v23  ;;  %v971_v52 = vsel %vm970_vm2, %v5251_v4, %v967_v24  ;;  %v1321_v39 = vmul.f32 %v5207_v47, %v1252_v53 }
 0x172   : > { %7920 = vst [vmem:[#allocation33_spill] sm:$0xff] %v5390_v23  ;;  %v994_v51 = vmul.f32 %v5383_v21, %v993_v26  ;;  %v5449_v26 = vld [vmem:[%s4921_s25 + $0x198] sm:$0xff]  ;;  %v1250_v4 = vmul.f32 %v971_v52, %v5018_v56  ;;  %vm999_vm4 = vweird.f32 %v5383_v21 }
 0x173   : > { %1687 = vmatmul.bf16.gmra.mxu0 %v1446_v42  ;;  %1865 = vmatmul.bf16.gmra.mxu2 %v1446_v42  ;;  %v810_v28 = vadd.f32 %v731_v30, %v730_v58  ;;  %v1251_v58 = vmul.f32 %v971_v52, %v5020_v57  ;;  %v1390_v57 = vadd.f32 %v5222_v3, %v1321_v39  ;;  %vm1000_vm7 = vmor %vm998_vm3, %vm999_vm4  ;;  %v5507_v39 = vld [vmem:[%s4921_s25 + $0x1b8] sm:$0xff] }
 0x174   : > { %v552_v27 = vpop.xlane.xlu0 %551  ;;  %v995_v15 = vmul.f32 0.5, %v994_v51  ;;  %v1319_v30 = vmul.f32 %v5207_v47, %v1250_v4  ;;  %v986_v51 = vsub.f32 1.5, %v985_v35 }
 0x175   : > { %v619_v61 = vmul.f32 %v4987_v33, %v552_v27  ;;  %811 = vadd.xlane.f32.xlu1 %v810_v28  ;;  %1776 = vmatmul.bf16.gmra.mxu1 %v1447_v14  ;;  %v1320_v28 = vmul.f32 %v5224_v46, %v1251_v58 }
 0x176   : > { %1954 = vmatmul.bf16.gmra.mxu3 %v1447_v14  ;;  %572 = vadd.xlane.f32.xlu0 %v571_v10  ;;  %v996_v49 = vsub.f32 1.5, %v995_v15  ;;  %v1388_v14 = vadd.f32 %v5222_v3, %v1319_v30 }
 0x177   : > { %v5440_v55 = vsub.f32 %v5145_v6, %v619_v61  ;;  %v5443_v48 = vsub.f32 %v5148_v7, %v619_v61  ;;  %566 = vadd.xlane.f32.xlu2 %v565_v34  ;;  %v1253_v6 = vmul.f32 %v981_v37, %v5055_v12  ;;  %v574_v7 = vadd.f32 %v5449_v26, %v5446_v8  ;;  %v5478_v34 = vld [vmem:[%s4921_s25 + $0x1a0] sm:$0xff] }
 0x178   : > { %v997_v37 = vmul.f32 %v5383_v21, %v996_v49  ;;  %v987_v61 = vmul.f32 %v5378_v38, %v986_v51  ;;  %v1448_v1 = vpack.c.bf16 %v1390_v57, %v1388_v14  ;;  %v577_v53 = vadd.f32 %v5481_v43, %v5478_v34  ;;  %v5521_v51 = vld [vmem:[%s4921_s25 + $0x1c0] sm:$0xff] }
 0x179   : > { %7923 = vst [vmem:[#allocation34_spill] sm:$0xff] %v5440_v55  ;;  %v732_v11 = vmul.f32 %v5440_v55, %v5440_v55  ;;  %v733_v24 = vmul.f32 %v5443_v48, %v5443_v48  ;;  %v1322_v29 = vmul.f32 %v5224_v46, %v1253_v6  ;;  %v1389_v15 = vadd.f32 %v5231_v63, %v1320_v28 }
 0x17a   : > { %7924 = vst [vmem:[#allocation35_spill] sm:$0xff] %v5443_v48  ;;  %v1001_v4 = vsel %vm1000_vm7, %v5383_v21, %v997_v37  ;;  %v866_v28 = vmul.f32 %v5368_v50, %v4987_v33 }
 0x17b   : > { %v813_v42 = vadd.f32 %v733_v24, %v732_v11  ;;  %v991_v24 = vsel %vm990_vm8, %v5378_v38, %v987_v61  ;;  %v1256_v17 = vmul.f32 %v1001_v4, %v5106_v44  ;;  %v1257_v21 = vmul.f32 %v1001_v4, %v5109_v45 }
 0x17c   : > { %v555_v56 = vpop.xlane.xlu0 %554  ;;  %v1254_v6 = vmul.f32 %v991_v24, %v5079_v31  ;;  %v1255_v38 = vmul.f32 %v991_v24, %v5082_v32  ;;  %v898_v14 = vadd.f32 1e-05, %v866_v28  ;;  %v7927_v28 = vld [vmem:[#allocation24_spill] sm:$0xff] }
 0x17d   : > { %v620_v12 = vmul.f32 %v4987_v33, %v555_v56  ;;  %575 = vadd.xlane.f32.xlu1 %v574_v7  ;;  %v5504_v7 = vld [vmem:[%s4921_s25 + $0x1b0] sm:$0xff]  ;;  %v1325_v49 = vmul.f32 %v5207_v47, %v1256_v17  ;;  %v1326_v56 = vmul.f32 %v5224_v46, %v1257_v21 }
 0x17e   : > { %v580_v44 = vadd.f32 %v5507_v39, %v5504_v7  ;;  %v1323_v58 = vmul.f32 %v5207_v47, %v1254_v6  ;;  %v1324_v31 = vmul.f32 %v5224_v46, %v1255_v38  ;;  %4294 = vrsqrt.f32 %v898_v14 }
 0x17f   : > { %v5471_v27 = vsub.f32 %v5153_v13, %v620_v12  ;;  %v5474_v10 = vsub.f32 %v5156_v16, %v620_v12  ;;  %814 = vadd.xlane.f32.xlu2 %v813_v42  ;;  %v1391_v13 = vadd.f32 %v5231_v63, %v1322_v29  ;;  %v1394_v42 = vadd.f32 %v5222_v3, %v1325_v49  ;;  %v5524_v12 = vld [vmem:[%s4921_s25 + $0x1c8] sm:$0xff] }
 0x180   : > { %v1392_v30 = vadd.f32 %v5222_v3, %v1323_v58  ;;  %v1395_v45 = vadd.f32 %v5231_v63, %v1326_v56  ;;  %v1393_v29 = vadd.f32 %v5231_v63, %v1324_v31  ;;  %v583_v57 = vadd.f32 %v5524_v12, %v5521_v51 }
 0x181   : > { %7925 = vst [vmem:[#allocation36_spill] sm:$0xff] %v5471_v27  ;;  %v734_v16 = vmul.f32 %v5471_v27, %v5471_v27  ;;  %v735_v52 = vmul.f32 %v5474_v10, %v5474_v10  ;;  %v1449_v11 = vpack.c.bf16 %v1391_v13, %v1389_v15  ;;  %vm1008_vm9 = vweird.f32 %v898_v14 }
 0x182   : > { %7926 = vst [vmem:[#allocation37_spill] sm:$0xff] %v5474_v10  ;;  %v1450_v32 = vpack.c.bf16 %v1394_v42, %v1392_v30  ;;  %v1451_v37 = vpack.c.bf16 %v1395_v45, %v1393_v29 }
 0x183   : > { %1692 = vmatmul.bf16.gmra.mxu0 %v1448_v1  ;;  %1870 = vmatmul.bf16.gmra.mxu2 %v1448_v1  ;;  %v816_v35 = vadd.f32 %v735_v52, %v734_v16 }
 0x184   : > { %v4295_v61 = vpop.eup %4294 }
 0x185   : > { %578 = vadd.xlane.f32.xlu1 %v577_v53  ;;  %1781 = vmatmul.bf16.gmra.mxu1 %v1449_v11  ;;  %v1003_v13 = vmul.f32 %v4295_v61, %v898_v14  ;;  %vm1009_vm10 = vweird.f32 %v4295_v61 }
 0x186   : > { %1959 = vmatmul.bf16.gmra.mxu3 %v1449_v11  ;;  %vm1010_vm11 = vmor %vm1008_vm9, %vm1009_vm10 }
 0x187   : > { %817 = vadd.xlane.f32.xlu2 %v816_v35  ;;  %v1004_v16 = vmul.f32 %v4295_v61, %v1003_v13 }
 0x189   : > { %v1005_v15 = vmul.f32 0.5, %v1004_v16 }
 0x18b   : > { %v1006_v4 = vsub.f32 1.5, %v1005_v15 }
 0x18d   : > { %v1007_v17 = vmul.f32 %v4295_v61, %v1006_v4 }
 0x18f   : > { %581 = vadd.xlane.f32.xlu2 %v580_v44  ;;  %v1011_v44 = vsel %vm1010_vm11, %v4295_v61, %v1007_v17  ;;  %v7929_v61 = vld [vmem:[#allocation25_spill] sm:$0xff]  ;;  %v7932_v17 = vld [vmem:[#allocation20_spill] sm:$0xff] }
 0x190   : > { %v1258_v29 = vmul.f32 %v1011_v44, %v5125_v62 }
 0x193   : > { %1697 = vmatmul.bf16.gmra.mxu0 %v1450_v32  ;;  %1875 = vmatmul.bf16.gmra.mxu2 %v1450_v32 }
 0x195   : > { %1786 = vmatmul.bf16.gmra.mxu1 %v1451_v37 }
 0x196   : > { %1964 = vmatmul.bf16.gmra.mxu3 %v1451_v37 }
 0x197   : > { %584 = vadd.xlane.f32.xlu2 %v583_v57 }
 0x1c0   : > { %v791_v52 = vpop.xlane.xlu1 %790 }
 0x1c1   : > { %v867_v1 = vmul.f32 %v791_v52, %v4987_v33 }
 0x1c3   : > { %v899_v53 = vadd.f32 1e-05, %v867_v1  ;;  %v7931_v1 = vld [vmem:[#allocation19_spill] sm:$0xff] }
 0x1c4   : > { %v1259_v15 = vmul.f32 %v1011_v44, %v7931_v1 }
 0x1c5   : > { %4296 = vrsqrt.f32 %v899_v53  ;;  %vm1018_vm13 = vweird.f32 %v899_v53 }
 0x1c8   : > { %v794_v35 = vpop.xlane.xlu1 %793 }
 0x1c9   : > { %v868_v11 = vmul.f32 %v794_v35, %v4987_v33 }
 0x1cb   : > { %v4297_v24 = vpop.eup %4296  ;;  %v5533_v6 = vadd.f32 1e-05, %v868_v11 }
 0x1cc   : > { %v1013_v50 = vmul.f32 %v4297_v24, %v899_v53  ;;  %vm1019_vm12 = vweird.f32 %v4297_v24 }
 0x1cd   : > { %4298 = vrsqrt.f32 %v5533_v6  ;;  %vm1020_vm14 = vmor %vm1018_vm13, %vm1019_vm12  ;;  %vm1028_vm0 = vweird.f32 %v5533_v6 }
 0x1ce   : > { %v1014_v21 = vmul.f32 %v4297_v24, %v1013_v50 }
 0x1cf   : > { %v803_v38 = vpop.xlane.xlu0 %802 }
 0x1d0   : > { %v1015_v49 = vmul.f32 0.5, %v1014_v21  ;;  %v558_v58 = vpop.xlane.xlu1 %557  ;;  %v797_v56 = vpop.xlane.xlu2 %796  ;;  %v871_v42 = vmul.f32 %v803_v38, %v4987_v33  ;;  %v1327_v21 = vmul.f32 %v5207_v47, %v1258_v29  ;;  %v7934_v29 = vld [vmem:[#allocation28_spill] sm:$0xff] }
 0x1d1   : > { %v621_v30 = vmul.f32 %v4987_v33, %v558_v58  ;;  %v869_v45 = vmul.f32 %v797_v56, %v4987_v33  ;;  %v1328_v56 = vmul.f32 %v5224_v46, %v1259_v15 }
 0x1d2   : > { %v1016_v31 = vsub.f32 1.5, %v1015_v49  ;;  %v5539_v32 = vadd.f32 1e-05, %v871_v42  ;;  %v7933_v49 = vld [vmem:[#allocation21_spill] sm:$0xff]  ;;  %v1396_v15 = vadd.f32 %v5222_v3, %v1327_v21 }
 0x1d3   : > { %v5542_v57 = vpop.eup %4298  ;;  %v5545_v14 = vsub.f32 %v7927_v28, %v621_v30  ;;  %v5548_v13 = vsub.f32 %v7929_v61, %v621_v30  ;;  %v5550_v16 = vadd.f32 1e-05, %v869_v45 }
 0x1d4   : > { %v1017_v37 = vmul.f32 %v4297_v24, %v1016_v31  ;;  %v1023_v52 = vmul.f32 %v5542_v57, %v5533_v6  ;;  %4300 = vrsqrt.f32 %v5539_v32  ;;  %vm1029_vm15 = vweird.f32 %v5542_v57 }
 0x1d5   : > { %7928 = vst [vmem:[#allocation24_spill] sm:$0xff] %v5545_v14  ;;  %4302 = vrsqrt.f32 %v5550_v16  ;;  %v736_v62 = vmul.f32 %v5545_v14, %v5545_v14  ;;  %v737_v4 = vmul.f32 %v5548_v13, %v5548_v13  ;;  %vm1038_vm1 = vweird.f32 %v5550_v16  ;;  %vm1030_vm3 = vmor %vm1028_vm0, %vm1029_vm15 }
 0x1d6   : > { %7930 = vst [vmem:[#allocation25_spill] sm:$0xff] %v5548_v13  ;;  %v1024_v35 = vmul.f32 %v5542_v57, %v1023_v52  ;;  %v1021_v11 = vsel %vm1020_vm14, %v4297_v24, %v1017_v37  ;;  %v7936_v52 = vld [vmem:[#allocation29_spill] sm:$0xff]  ;;  %vm1058_vm5 = vweird.f32 %v5539_v32 }
 0x1d7   : > { %v819_v53 = vadd.f32 %v737_v4, %v736_v62  ;;  %v1260_v50 = vmul.f32 %v1021_v11, %v7932_v17  ;;  %v1261_v38 = vmul.f32 %v1021_v11, %v7933_v49  ;;  %v1397_v11 = vadd.f32 %v5231_v63, %v1328_v56 }
 0x1d8   : > { %v1025_v44 = vmul.f32 0.5, %v1024_v35  ;;  %v561_v58 = vpop.xlane.xlu1 %560 }
 0x1d9   : > { %v622_v42 = vmul.f32 %v4987_v33, %v561_v58  ;;  %820 = vadd.xlane.f32.xlu0 %v819_v53  ;;  %v1329_v31 = vmul.f32 %v5207_v47, %v1260_v50  ;;  %v1330_v30 = vmul.f32 %v5224_v46, %v1261_v38  ;;  %v806_v37 = vpop.xlane.xlu0 %805 }
 0x1da   : > { %v5569_v45 = vpop.eup %4300  ;;  %v800_v24 = vpop.xlane.xlu2 %799  ;;  %v1026_v62 = vsub.f32 1.5, %v1025_v44  ;;  %v872_v17 = vmul.f32 %v806_v37, %v4987_v33 }
 0x1db   : > { %v5571_v28 = vpop.eup %4302  ;;  %v5574_v61 = vsub.f32 %v7934_v29, %v622_v42  ;;  %v5577_v1 = vsub.f32 %v7936_v52, %v622_v42  ;;  %v870_v35 = vmul.f32 %v800_v24, %v4987_v33  ;;  %v1053_v53 = vmul.f32 %v5569_v45, %v5539_v32 }
 0x1dc   : > { %v1033_v4 = vmul.f32 %v5571_v28, %v5550_v16  ;;  %v1398_v50 = vadd.f32 %v5222_v3, %v1329_v31  ;;  %v1399_v49 = vadd.f32 %v5231_v63, %v1330_v30  ;;  %v5599_v30 = vadd.f32 1e-05, %v872_v17 }
 0x1dd   : > { %7935 = vst [vmem:[#allocation19_spill] sm:$0xff] %v5574_v61  ;;  %v5590_v21 = vadd.f32 1e-05, %v870_v35  ;;  %v738_v44 = vmul.f32 %v5574_v61, %v5574_v61  ;;  %v739_v58 = vmul.f32 %v5577_v1, %v5577_v1  ;;  %v1054_v35 = vmul.f32 %v5569_v45, %v1053_v53 }
 0x1de   : > { %7937 = vst [vmem:[#allocation20_spill] sm:$0xff] %v5577_v1  ;;  %v1034_v38 = vmul.f32 %v5571_v28, %v1033_v4  ;;  %v1452_v56 = vpack.c.bf16 %v1398_v50, %v1396_v15  ;;  %v1453_v42 = vpack.c.bf16 %v1399_v49, %v1397_v11  ;;  %v1027_v4 = vmul.f32 %v5542_v57, %v1026_v62  ;;  %v5615_v62 = vld [vmem:[%s4921_s25 + $0x1d8] sm:$0xff] }
 0x1df   : > { %4304 = vrsqrt.f32 %v5590_v21  ;;  %v822_v31 = vadd.f32 %v739_v58, %v738_v44  ;;  %v5612_v58 = vld [vmem:[%s4921_s25 + $0x1d0] sm:$0xff]  ;;  %7939 = vst [vmem:[#allocation28_spill] sm:$0xff] %v5615_v62  ;;  %vm1039_vm2 = vweird.f32 %v5571_v28  ;;  %v1055_v6 = vmul.f32 0.5, %v1054_v35  ;;  %v7944_v1 = vld [vmem:[#allocation22_spill] sm:$0xff] }
 0x1e0   : > { %v1035_v24 = vmul.f32 0.5, %v1034_v38  ;;  %v809_v37 = vpop.xlane.xlu1 %808  ;;  %v5597_v29 = vpop.f32.mrf.mxu0  ;;  %1702 = vmatmul.bf16.gmra.mxu0 %v1452_v56  ;;  %1791 = vmatmul.bf16.gmra.mxu1 %v1453_v42  ;;  %7938 = vst [vmem:[#allocation21_spill] sm:$0xff] %v5612_v58  ;;  %4306 = vrsqrt.f32 %v5599_v30  ;;  %vm1040_vm4 = vmor %vm1038_vm1, %vm1039_vm2  ;;  %vm1059_vm6 = vweird.f32 %v5569_v45  ;;  %vm1048_vm9 = vweird.f32 %v5590_v21 }
 0x1e1   : > { %v873_v52 = vmul.f32 %v809_v37, %v4987_v33  ;;  %1880 = vmatmul.bf16.gmra.mxu2 %v1452_v56  ;;  %1969 = vmatmul.bf16.gmra.mxu3 %v1453_v42  ;;  %v570_v50 = vpop.xlane.xlu0 %569  ;;  %vm5767_vm8 = vmor %vm1058_vm5, %vm1059_vm6  ;;  %vm1068_vm11 = vweird.f32 %v5599_v30 }
 0x1e2   : > { %v1036_v15 = vsub.f32 1.5, %v1035_v24  ;;  %v564_v11 = vpop.xlane.xlu2 %563  ;;  %v5607_v17 = vpop.f32.mrf.mxu1  ;;  %v625_v44 = vmul.f32 %v4987_v33, %v570_v50  ;;  %823 = vadd.xlane.f32.xlu0 %v822_v31  ;;  %v586_v31 = vadd.f32 %v5615_v62, %v5612_v58 }
 0x1e3   : > { %v5605_v49 = vadd.f32 1e-05, %v873_v52  ;;  %v623_v38 = vmul.f32 %v4987_v33, %v564_v11  ;;  %v1031_v52 = vsel %vm1030_vm3, %v5542_v57, %v1027_v4  ;;  %v1056_v4 = vsub.f32 1.5, %v1055_v6  ;;  %v5672_v6 = vld [vmem:[%s4921_s25 + $0x1e0] sm:$0xff] }
 0x1e4   : > { %v1037_v53 = vmul.f32 %v5571_v28, %v1036_v15  ;;  %7945 = vst [vmem:[#allocation22_spill] sm:$0xff] %v5672_v6 }
 0x1e5   : > { %v5625_v56 = vsub.f32 %v5359_v40, %v623_v38  ;;  %v5628_v42 = vsub.f32 %v5362_v41, %v623_v38  ;;  %v5630_v24 = vpop.eup %4304  ;;  %4308 = vrsqrt.f32 %v5605_v49  ;;  %v5639_v40 = vsub.f32 %v5347_v25, %v625_v44  ;;  %v1508_v38 = vld [vmem:[%s7798_s4] sm:$0x3] }
 0x1e6   : > { %v1861_v37 = vpop.f32.mrf.mxu2  ;;  %v1043_v15 = vmul.f32 %v5630_v24, %v5590_v21  ;;  %v5642_v41 = vsub.f32 %v5352_v18, %v625_v44  ;;  %v1041_v18 = vsel %vm1040_vm4, %v5571_v28, %v1037_v53  ;;  %v5661_v61 = vpop.eup %4306  ;;  %vm1049_vm7 = vweird.f32 %v5630_v24 }
 0x1e7   : > { %7940 = vst [vmem:[#allocation29_spill] sm:$0xff] %v5625_v56  ;;  %v740_v35 = vmul.f32 %v5625_v56, %v5625_v56  ;;  %v741_v57 = vmul.f32 %v5628_v42, %v5628_v42  ;;  %v1262_v56 = vmul.f32 %v1031_v52, %v7944_v1  ;;  %v744_v28 = vmul.f32 %v5639_v40, %v5639_v40  ;;  %vm1050_vm10 = vmor %vm1048_vm9, %vm1049_vm7 }
 0x1e8   : > { %7941 = vst [vmem:[#allocation38_spill] sm:$0xff] %v5628_v42  ;;  %v812_v11 = vpop.xlane.xlu1 %811  ;;  %v5650_v50 = vpop.f32.mrf.mxu0  ;;  %v1044_v13 = vmul.f32 %v5630_v24, %v1043_v15  ;;  %v745_v53 = vmul.f32 %v5642_v41, %v5642_v41  ;;  %v7947_v15 = vld [vmem:[#allocation30_spill] sm:$0xff]  ;;  %vm1078_vm12 = vweird.f32 %v5605_v49  ;;  %vm1069_vm14 = vweird.f32 %v5661_v61 }
 0x1e9   : > { %7942 = vst [vmem:[#allocation39_spill] sm:$0xff] %v5639_v40  ;;  %v5654_v25 = vpop.f32.mrf.mxu3  ;;  %v825_v16 = vadd.f32 %v741_v57, %v740_v35  ;;  %v573_v10 = vpop.xlane.xlu0 %572  ;;  %v5675_v35 = vld [vmem:[%s4921_s25 + $0x1e8] sm:$0xff]  ;;  %v5679_v57 = vperm.slane %v1508_v38, 1  ;;  %v1264_v62 = vmul.f32 %v1041_v18, %v7947_v15  ;;  %v5686_v40 = vmul.f32 %v5569_v45, %v1056_v4  ;;  %vm5858_vm0 = vmor %vm1068_vm11, %vm1069_vm14 }
 0x1ea   : > { %7943 = vst [vmem:[#allocation40_spill] sm:$0xff] %v5642_v41  ;;  %v567_v44 = vpop.xlane.xlu2 %566  ;;  %v5664_v42 = vpop.f32.mrf.mxu1  ;;  %587 = vadd.xlane.f32.xlu0 %v586_v31  ;;  %v7948_v31 = vld [vmem:[#allocation23_spill] sm:$0xff]  ;;  %v626_v41 = vmul.f32 %v4987_v33, %v573_v10  ;;  %v1331_v23 = vmul.f32 %v5207_v47, %v1262_v56  ;;  %v874_v15 = vmul.f32 %v812_v11, %v4987_v33 }
 0x1eb   : > { %v624_v14 = vmul.f32 %v4987_v33, %v567_v44  ;;  %7946 = vst [vmem:[#allocation41_spill] sm:$0xff] %v5675_v35  ;;  %v5677_v1 = vpop.eup %4308  ;;  %826 = vadd.xlane.f32.xlu1 %v825_v16  ;;  %v5682_v44 = vperm.slane %v1508_v38, 0  ;;  %v1263_v58 = vmul.f32 %v1031_v52, %v7948_v31  ;;  %v589_v16 = vadd.f32 %v5675_v35, %v5672_v6  ;;  %v7950_v11 = vld [vmem:[#allocation31_spill] sm:$0xff] }
 0x1ec   : > { %v1045_v38 = vmul.f32 0.5, %v1044_v13  ;;  %v831_v4 = vadd.f32 %v745_v53, %v744_v28  ;;  %v1063_v31 = vmul.f32 %v5661_v61, %v5599_v30  ;;  %v1073_v10 = vmul.f32 %v5677_v1, %v5605_v49 }
 0x1ed   : > { %v5698_v52 = vsub.f32 %v5415_v19, %v624_v14  ;;  %v5705_v48 = vadd.f32 %v1861_v37, %v5679_v57  ;;  %v1333_v56 = vmul.f32 %v5207_v47, %v1264_v62  ;;  %v5711_v13 = vsub.f32 %v5418_v59, %v624_v14 }
 0x1ee   : > { %v5691_v27 = vpop.f32.mrf.mxu2  ;;  %832 = vadd.xlane.f32.xlu2 %v831_v4  ;;  %v1265_v28 = vmul.f32 %v1041_v18, %v7950_v11  ;;  %v1332_v53 = vmul.f32 %v5224_v46, %v1263_v58  ;;  %v5719_v37 = vsub.f32 %v5403_v0, %v626_v41  ;;  %v5722_v62 = vsub.f32 %v5410_v60, %v626_v41 }
 0x1ef   : > { %v1400_v55 = vadd.f32 %v5222_v3, %v1331_v23  ;;  %v1402_v59 = vadd.f32 %v5222_v3, %v1333_v56  ;;  %v1046_v4 = vsub.f32 1.5, %v1045_v38  ;;  %v1074_v0 = vmul.f32 %v5677_v1, %v1073_v10 }
 0x1f0   : > { %v576_v22 = vpop.xlane.xlu1 %575  ;;  %v5708_v35 = vpop.f32.mrf.mxu0  ;;  %7951 = vst [vmem:[#allocation23_spill] sm:$0xff] %v5722_v62  ;;  %v1334_v18 = vmul.f32 %v5224_v46, %v1265_v28  ;;  %v1401_v41 = vadd.f32 %v5231_v63, %v1332_v53  ;;  %v1064_v10 = vmul.f32 %v5661_v61, %v1063_v31  ;;  %vm1079_vm13 = vweird.f32 %v5677_v1 }
 0x1f1   : > { %7949 = vst [vmem:[#allocation30_spill] sm:$0xff] %v5708_v35  ;;  %v5713_v19 = vpop.f32.mrf.mxu3  ;;  %v627_v6 = vmul.f32 %v4987_v33, %v576_v22  ;;  %v5726_v35 = vadd.f32 1e-05, %v874_v15  ;;  %v742_v22 = vmul.f32 %v5698_v52, %v5698_v52  ;;  %v1454_v60 = vpack.c.bf16 %v1402_v59, %v1400_v55  ;;  %vm5838_vm15 = vmor %vm1078_vm12, %vm1079_vm13 }
 0x1f2   : > { %v815_v14 = vpop.xlane.xlu2 %814  ;;  %v5729_v11 = vpop.f32.mrf.mxu1  ;;  %590 = vadd.xlane.f32.xlu0 %v589_v16  ;;  %v1403_v38 = vadd.f32 %v5231_v63, %v1334_v18  ;;  %v743_v16 = vmul.f32 %v5711_v13, %v5711_v13  ;;  %v746_v55 = vmul.f32 %v5719_v37, %v5719_v37 }
 0x1f3   : > { %v5735_v58 = vsub.f32 %v5446_v8, %v627_v6  ;;  %v5738_v23 = vsub.f32 %v5449_v26, %v627_v6  ;;  %v875_v15 = vmul.f32 %v815_v14, %v4987_v33  ;;  %1707 = vmatmul.bf16.gmra.mxu0 %v1454_v60  ;;  %1885 = vmatmul.bf16.gmra.mxu2 %v1454_v60  ;;  %4310 = vrsqrt.f32 %v5726_v35 }
 0x1f4   : > { %v747_v8 = vmul.f32 %v5722_v62, %v5722_v62  ;;  %v1047_v6 = vmul.f32 %v5630_v24, %v1046_v4  ;;  %v1455_v56 = vpack.c.bf16 %v1403_v38, %v1401_v41  ;;  %v828_v53 = vadd.f32 %v743_v16, %v742_v22 }
 0x1f5   : > { %7952 = vst [vmem:[#allocation31_spill] sm:$0xff] %v5735_v58  ;;  %v5754_v28 = vadd.f32 1e-05, %v875_v15  ;;  %v748_v18 = vmul.f32 %v5735_v58, %v5735_v58  ;;  %v749_v60 = vmul.f32 %v5738_v23, %v5738_v23  ;;  %v1075_v22 = vmul.f32 0.5, %v1074_v0  ;;  %v5784_v0 = vld [vmem:[%s4921_s25 + $0x1f0] sm:$0xff] }
 0x1f6   : > { %7953 = vst [vmem:[#allocation42_spill] sm:$0xff] %v5738_v23  ;;  %v5751_v26 = vpop.f32.mrf.mxu2  ;;  %v834_v59 = vadd.f32 %v747_v8, %v746_v55  ;;  %1796 = vmatmul.bf16.gmra.mxu1 %v1455_v56  ;;  %1974 = vmatmul.bf16.gmra.mxu3 %v1455_v56  ;;  %v1065_v16 = vmul.f32 0.5, %v1064_v10  ;;  %v5787_v55 = vld [vmem:[%s4921_s25 + $0x1f8] sm:$0xff]  ;;  %v1051_v8 = vsel %vm1050_vm10, %v5630_v24, %v1047_v6  ;;  %v7957_v6 = vld [vmem:[#allocation27_spill] sm:$0xff]  ;;  %vm1088_vm1 = vweird.f32 %v5726_v35 }
 0x1f7   : > { %4312 = vrsqrt.f32 %v5754_v28  ;;  %829 = vadd.xlane.f32.xlu1 %v828_v53  ;;  %v837_v15 = vadd.f32 %v749_v60, %v748_v18  ;;  %v1684_v56 = vadd.f32 %v5597_v29, %v5682_v44  ;;  %v5794_v53 = vadd.f32 %v5654_v25, %v5705_v48  ;;  %v7956_v18 = vld [vmem:[#allocation26_spill] sm:$0xff] }
 0x1f8   : > { %v579_v31 = vpop.xlane.xlu1 %578  ;;  %v5757_v14 = vpop.f32.mrf.mxu0  ;;  %835 = vadd.xlane.f32.xlu2 %v834_v59  ;;  %v1061_v10 = vsel %vm5767_vm8, %v5569_v45, %v5686_v40  ;;  %v1266_v59 = vmul.f32 %v1051_v8, %v5295_v2  ;;  %v1267_v24 = vmul.f32 %v1051_v8, %v5298_v54  ;;  %v592_v45 = vadd.f32 %v5787_v55, %v5784_v0 }
 0x1f9   : > { %v5773_v41 = vpop.f32.mrf.mxu3  ;;  %v628_v32 = vmul.f32 %v4987_v33, %v579_v31  ;;  %v1076_v31 = vsub.f32 1.5, %v1075_v22  ;;  %v1268_v60 = vmul.f32 %v1061_v10, %v7956_v18  ;;  %v1269_v62 = vmul.f32 %v1061_v10, %v7957_v6  ;;  %v5804_v29 = vpop.eup %4310 }
 0x1fa   : > { %v5778_v38 = vpop.xlane.xlu2 %817  ;;  %v5781_v21 = vpop.f32.mrf.mxu1  ;;  %838 = vadd.xlane.f32.xlu0 %v837_v15  ;;  %v1335_v2 = vmul.f32 %v5207_v47, %v1266_v59  ;;  %v1066_v54 = vsub.f32 1.5, %v1065_v16  ;;  %v5823_v22 = vadd.f32 %v5607_v17, %v1684_v56  ;;  %v1336_v15 = vmul.f32 %v5224_v46, %v1267_v24 }
 0x1fb   : > { %v5807_v48 = vsub.f32 %v5478_v34, %v628_v32  ;;  %v5810_v25 = vsub.f32 %v5481_v43, %v628_v32  ;;  %v1337_v34 = vmul.f32 %v5207_v47, %v1268_v60  ;;  %v1077_v49 = vmul.f32 %v5677_v1, %v1076_v31 }
 0x1fc   : > { %v1404_v32 = vadd.f32 %v5222_v3, %v1335_v2  ;;  %v1083_v16 = vmul.f32 %v5804_v29, %v5726_v35  ;;  %v1338_v17 = vmul.f32 %v5224_v46, %v1269_v62  ;;  %v2032_v60 = vadd.f32 %v5794_v53, %v5823_v22 }
 0x1fd   : > { %7958 = vst [vmem:[#allocation26_spill] sm:$0xff] %v5807_v48  ;;  %v5817_v4 = vpop.eup %4312  ;;  %v1406_v59 = vadd.f32 %v5222_v3, %v1337_v34  ;;  %v750_v31 = vmul.f32 %v5807_v48, %v5807_v48  ;;  %v751_v24 = vmul.f32 %v5810_v25, %v5810_v25  ;;  %v1067_v6 = vmul.f32 %v5661_v61, %v1066_v54 }
 0x1fe   : > { %7959 = vst [vmem:[#allocation27_spill] sm:$0xff] %v5810_v25  ;;  %v5814_v40 = vpop.f32.mrf.mxu2  ;;  %v1093_v43 = vmul.f32 %v5817_v4, %v5754_v28  ;;  %v1405_v62 = vadd.f32 %v5231_v63, %v1336_v15  ;;  %v1407_v54 = vadd.f32 %v5231_v63, %v1338_v17  ;;  %v1081_v30 = vsel %vm5838_vm15, %v5677_v1, %v1077_v49 }
 0x1ff   : > { %593 = vadd.xlane.f32.xlu1 %v592_v45  ;;  %v1456_v23 = vpack.c.bf16 %v1406_v59, %v1404_v32  ;;  %v840_v58 = vadd.f32 %v751_v24, %v750_v31  ;;  %v1686_v1 = vadd.f32 %v5650_v50, %v5682_v44  ;;  %vm1089_vm2 = vweird.f32 %v5804_v29 }
 0x200   : > { %v5829_v8 = vpop.f32.mrf.mxu0  ;;  %v1094_v48 = vmul.f32 %v5817_v4, %v1093_v43  ;;  %v1457_v32 = vpack.c.bf16 %v1407_v54, %v1405_v62  ;;  %vm1098_vm3 = vweird.f32 %v5754_v28  ;;  %vm1099_vm4 = vweird.f32 %v5817_v4  ;;  %vm1090_vm6 = vmor %vm1088_vm1, %vm1089_vm2 }
 0x201   : > { %v5835_v10 = vpop.f32.mrf.mxu3  ;;  %vm1100_vm5 = vmor %vm1098_vm3, %vm1099_vm4 }
 0x202   : > { %v582_v18 = vpop.xlane.xlu2 %581  ;;  %v5851_v2 = vpop.f32.mrf.mxu1  ;;  %2033 = vadd.xlane.f32.xlu0 %v2032_v60  ;;  %v1095_v56 = vmul.f32 0.5, %v1094_v48 }
 0x203   : > { %v629_v45 = vmul.f32 %v4987_v33, %v582_v18  ;;  %v1084_v18 = vmul.f32 %v5804_v29, %v1083_v16  ;;  %1712 = vmatmul.bf16.gmra.mxu0 %v1456_v23  ;;  %1890 = vmatmul.bf16.gmra.mxu2 %v1456_v23  ;;  %v1864_v23 = vadd.f32 %v5691_v27, %v5679_v57 }
 0x204   : > { %v1272_v16 = vmul.f32 %v1081_v30, %v5338_v5  ;;  %v1273_v27 = vmul.f32 %v1081_v30, %v5341_v36  ;;  %v5899_v5 = vadd.f32 %v5664_v42, %v1686_v1  ;;  %v1096_v62 = vsub.f32 1.5, %v1095_v56 }
 0x205   : > { %v5865_v15 = vsub.f32 %v5504_v7, %v629_v45  ;;  %v5868_v25 = vsub.f32 %v5507_v39, %v629_v45  ;;  %v1071_v39 = vsel %vm5858_vm0, %v5661_v61, %v1067_v6  ;;  %v1085_v31 = vmul.f32 0.5, %v1084_v18 }
 0x206   : > { %v5874_v43 = vpop.f32.mrf.mxu2  ;;  %1801 = vmatmul.bf16.gmra.mxu1 %v1457_v32  ;;  %1979 = vmatmul.bf16.gmra.mxu3 %v1457_v32  ;;  %v1270_v61 = vmul.f32 %v1071_v39, %v5286_v9  ;;  %v5902_v48 = vadd.f32 %v5713_v19, %v1864_v23  ;;  %v1271_v34 = vmul.f32 %v1071_v39, %v5292_v20 }
 0x207   : > { %v752_v17 = vmul.f32 %v5865_v15, %v5865_v15  ;;  %v753_v7 = vmul.f32 %v5868_v25, %v5868_v25  ;;  %841 = vadd.xlane.f32.xlu1 %v840_v58  ;;  %v1341_v58 = vmul.f32 %v5207_v47, %v1272_v16  ;;  %v1086_v36 = vsub.f32 1.5, %v1085_v31 }
 0x208   : > { %v5887_v49 = vpop.f32.mrf.mxu0  ;;  %v1339_v19 = vmul.f32 %v5207_v47, %v1270_v61  ;;  %v1342_v54 = vmul.f32 %v5224_v46, %v1273_v27  ;;  %v1867_v20 = vadd.f32 %v5751_v26, %v5679_v57  ;;  %v1869_v30 = vadd.f32 %v5814_v40, %v5679_v57  ;;  %v7965_v26 = vld [vmem:[#allocation30_spill] sm:$0xff] }
 0x209   : > { %v5890_v59 = vpop.f32.mrf.mxu3  ;;  %v843_v60 = vadd.f32 %v753_v7, %v752_v17  ;;  %v2035_v18 = vadd.f32 %v5902_v48, %v5899_v5  ;;  %v1410_v32 = vadd.f32 %v5222_v3, %v1341_v58  ;;  %v1097_v7 = vmul.f32 %v5817_v4, %v1096_v62 }
 0x20a   : > { %v585_v24 = vpop.xlane.xlu2 %584  ;;  %v5893_v6 = vpop.f32.mrf.mxu1  ;;  %v1340_v1 = vmul.f32 %v5224_v46, %v1271_v34  ;;  %v1689_v56 = vadd.f32 %v7965_v26, %v5682_v44  ;;  %v1408_v40 = vadd.f32 %v5222_v3, %v1339_v19  ;;  %v1691_v31 = vadd.f32 %v5757_v14, %v5682_v44 }
 0x20b   : > { %v630_v50 = vmul.f32 %v4987_v33, %v585_v24  ;;  %844 = vadd.xlane.f32.xlu2 %v843_v60  ;;  %v1087_v60 = vmul.f32 %v5804_v29, %v1086_v36  ;;  %v1411_v24 = vadd.f32 %v5231_v63, %v1342_v54  ;;  %v5951_v28 = vadd.f32 %v5773_v41, %v1867_v20 }
 0x20c   : > { %v5956_v58 = vadd.f32 %v5835_v10, %v1869_v30  ;;  %v1409_v14 = vadd.f32 %v5231_v63, %v1340_v1  ;;  %v1101_v62 = vsel %vm1100_vm5, %v5817_v4, %v1097_v7  ;;  %v5961_v34 = vadd.f32 %v5729_v11, %v1689_v56  ;;  %v7967_v30 = vld [vmem:[#allocation32_spill] sm:$0xff]  ;;  %v7969_v1 = vld [vmem:[#allocation33_spill] sm:$0xff] }
 0x20d   : > { %v5906_v9 = vsub.f32 %v5521_v51, %v630_v50  ;;  %v5909_v45 = vsub.f32 %v5524_v12, %v630_v50  ;;  %v1458_v50 = vpack.c.bf16 %v1410_v32, %v1408_v40  ;;  %v5964_v36 = vadd.f32 %v5781_v21, %v1691_v31  ;;  %v7968_v32 = vld [vmem:[#allocation35_spill] sm:$0xff] }
 0x20e   : > { %v5914_v42 = vpop.f32.mrf.mxu2  ;;  %v1459_v41 = vpack.c.bf16 %v1411_v24, %v1409_v14  ;;  %v1091_v54 = vsel %vm1090_vm6, %v5804_v29, %v1087_v60  ;;  %v2038_v10 = vadd.f32 %v5951_v28, %v5961_v34  ;;  %v1872_v11 = vadd.f32 %v5874_v43, %v5679_v57 }
 0x20f   : > { %7964 = vst [vmem:[#allocation43_spill] sm:$0xff] %v5909_v45  ;;  %v754_v51 = vmul.f32 %v5906_v9, %v5906_v9  ;;  %v755_v12 = vmul.f32 %v5909_v45, %v5909_v45  ;;  %2036 = vadd.xlane.f32.xlu1 %v2035_v18  ;;  %v2041_v21 = vadd.f32 %v5956_v58, %v5964_v36 }
 0x210   : > { %v1698_v17 = vpop.f32.mrf.mxu0  ;;  %v1274_v18 = vmul.f32 %v1091_v54, %v7967_v30  ;;  %v1694_v29 = vadd.f32 %v5829_v8, %v5682_v44  ;;  %v5983_v43 = vadd.f32 %v5890_v59, %v1872_v11 }
 0x211   : > { %v5931_v39 = vpop.f32.mrf.mxu3  ;;  %v1699_v23 = vadd.f32 %v1698_v17, %v5682_v44  ;;  %v846_v16 = vadd.f32 %v755_v12, %v754_v51  ;;  %v7966_v51 = vld [vmem:[#allocation34_spill] sm:$0xff]  ;;  %v1277_v17 = vmul.f32 %v1101_v62, %v7968_v32 }
 0x212   : > { %v1787_v61 = vpop.f32.mrf.mxu1  ;;  %v1276_v12 = vmul.f32 %v1101_v62, %v7966_v51  ;;  %v1343_v26 = vmul.f32 %v5207_v47, %v1274_v18  ;;  %v5988_v56 = vadd.f32 %v5851_v2, %v1694_v29 }
 0x213   : > { %847 = vadd.xlane.f32.xlu2 %v846_v16  ;;  %v5953_v27 = vadd.f32 %v1787_v61, %v1699_v23  ;;  %1717 = vmatmul.bf16.gmra.mxu0 %v1458_v50  ;;  %v1275_v23 = vmul.f32 %v1091_v54, %v7969_v1  ;;  %v1346_v40 = vmul.f32 %v5224_v46, %v1277_v17 }
 0x214   : > { %1895 = vmatmul.bf16.gmra.mxu2 %v1458_v50  ;;  %v1345_v7 = vmul.f32 %v5207_v47, %v1276_v12  ;;  %v2044_v59 = vadd.f32 %v5983_v43, %v5988_v56  ;;  %v1412_v61 = vadd.f32 %v5222_v3, %v1343_v26  ;;  %v876_v12 = vmul.f32 %v5778_v38, %v4987_v33 }
 0x215   : > { %v1344_v24 = vmul.f32 %v5224_v46, %v1275_v23  ;;  %v1415_v14 = vadd.f32 %v5231_v63, %v1346_v40 }
 0x216   : > { %v1876_v35 = vpop.f32.mrf.mxu2  ;;  %1806 = vmatmul.bf16.gmra.mxu1 %v1459_v41  ;;  %1984 = vmatmul.bf16.gmra.mxu3 %v1459_v41  ;;  %v1414_v8 = vadd.f32 %v5222_v3, %v1345_v7  ;;  %v908_v11 = vadd.f32 1e-05, %v876_v12 }
 0x217   : > { %v1877_v19 = vadd.f32 %v1876_v35, %v5679_v57  ;;  %2039 = vadd.xlane.f32.xlu1 %v2038_v10  ;;  %v1413_v41 = vadd.f32 %v5231_v63, %v1344_v24 }
 0x218   : > { %v1700_v60 = vpop.f32.mrf.mxu0  ;;  %v1460_v62 = vpack.c.bf16 %v1414_v8, %v1412_v61  ;;  %4314 = vrsqrt.f32 %v908_v11  ;;  %vm1108_vm7 = vweird.f32 %v908_v11 }
 0x219   : > { %v1965_v4 = vpop.f32.mrf.mxu3  ;;  %v1701_v50 = vadd.f32 %v1700_v60, %v5682_v44  ;;  %v1461_v10 = vpack.c.bf16 %v1415_v14, %v1413_v41 }
 0x21a   : > { %v5975_v20 = vadd.f32 %v1965_v4, %v1877_v19  ;;  %v1789_v19 = vpop.f32.mrf.mxu1 }
 0x21b   : > { %2042 = vadd.xlane.f32.xlu2 %v2041_v21  ;;  %v6002_v54 = vadd.f32 %v1789_v19, %v1701_v50  ;;  %v7970_v50 = vld [vmem:[#allocation36_spill] sm:$0xff] }
 0x21e   : > { %v1878_v16 = vpop.f32.mrf.mxu2  ;;  %v4315_v4 = vpop.eup %4314 }
 0x21f   : > { %v1879_v31 = vadd.f32 %v1878_v16, %v5679_v57  ;;  %v1103_v21 = vmul.f32 %v4315_v4, %v908_v11  ;;  %vm1109_vm8 = vweird.f32 %v4315_v4  ;;  %v7971_v11 = vld [vmem:[#allocation21_spill] sm:$0xff] }
 0x220   : > { %vm1110_vm9 = vmor %vm1108_vm7, %vm1109_vm8 }
 0x221   : > { %v1967_v2 = vpop.f32.mrf.mxu3  ;;  %v1104_v30 = vmul.f32 %v4315_v4, %v1103_v21  ;;  %v7973_v21 = vld [vmem:[#allocation28_spill] sm:$0xff] }
 0x222   : > { %v5999_v35 = vadd.f32 %v1967_v2, %v1879_v31 }
 0x223   : > { %2045 = vadd.xlane.f32.xlu2 %v2044_v59  ;;  %1722 = vmatmul.bf16.gmra.mxu0 %v1460_v62  ;;  %v1105_v17 = vmul.f32 0.5, %v1104_v30 }
 0x224   : > { %1900 = vmatmul.bf16.gmra.mxu2 %v1460_v62  ;;  %v2053_v51 = vadd.f32 %v5999_v35, %v6002_v54 }
 0x225   : > { %v1106_v7 = vsub.f32 1.5, %v1105_v17  ;;  %v7975_v17 = vld [vmem:[#allocation37_spill] sm:$0xff] }
 0x226   : > { %1811 = vmatmul.bf16.gmra.mxu1 %v1461_v10  ;;  %1989 = vmatmul.bf16.gmra.mxu3 %v1461_v10 }
 0x227   : > { %v1107_v26 = vmul.f32 %v4315_v4, %v1106_v7 }
 0x229   : > { %v1111_v31 = vsel %vm1110_vm9, %v4315_v4, %v1107_v26 }
 0x22a   : > { %v1278_v14 = vmul.f32 %v1111_v31, %v7970_v50  ;;  %v1279_v7 = vmul.f32 %v1111_v31, %v7975_v17 }
 0x22b   : > { %2054 = vadd.xlane.f32.xlu2 %v2053_v51 }
 0x24c   : > { %v821_v18 = vpop.xlane.xlu0 %820 }
 0x24d   : > { %v877_v29 = vmul.f32 %v821_v18, %v4987_v33 }
 0x24f   : > { %v909_v32 = vadd.f32 1e-05, %v877_v29  ;;  %v1347_v29 = vmul.f32 %v5207_v47, %v1278_v14 }
 0x251   : > { %4316 = vrsqrt.f32 %v909_v32  ;;  %vm1118_vm11 = vweird.f32 %v909_v32 }
 0x255   : > { %v824_v1 = vpop.xlane.xlu0 %823 }
 0x256   : > { %v878_v16 = vmul.f32 %v824_v1, %v4987_v33 }
 0x257   : > { %v4317_v23 = vpop.eup %4316 }
 0x258   : > { %v1113_v38 = vmul.f32 %v4317_v23, %v909_v32  ;;  %v6010_v40 = vadd.f32 1e-05, %v878_v16  ;;  %vm1119_vm10 = vweird.f32 %v4317_v23 }
 0x259   : > { %vm1120_vm12 = vmor %vm1118_vm11, %vm1119_vm10 }
 0x25a   : > { %v1114_v60 = vmul.f32 %v4317_v23, %v1113_v38  ;;  %4318 = vrsqrt.f32 %v6010_v40  ;;  %vm1128_vm14 = vweird.f32 %v6010_v40 }
 0x25c   : > { %v1115_v8 = vmul.f32 0.5, %v1114_v60 }
 0x25d   : > { %v588_v61 = vpop.xlane.xlu0 %587  ;;  %v1703_v10 = vpop.f32.mrf.mxu0 }
 0x25e   : > { %v1116_v24 = vsub.f32 1.5, %v1115_v8  ;;  %v827_v59 = vpop.xlane.xlu1 %826  ;;  %v631_v41 = vmul.f32 %v4987_v33, %v588_v61  ;;  %v1704_v1 = vadd.f32 %v1703_v10, %v5682_v44  ;;  %v7976_v8 = vld [vmem:[#allocation24_spill] sm:$0xff]  ;;  %v1792_v50 = vpop.f32.mrf.mxu1 }
 0x25f   : > { %v879_v62 = vmul.f32 %v827_v59, %v4987_v33  ;;  %v7977_v59 = vld [vmem:[#allocation25_spill] sm:$0xff] }
 0x260   : > { %v1117_v2 = vmul.f32 %v4317_v23, %v1116_v24  ;;  %v6016_v19 = vpop.eup %4318  ;;  %v6023_v4 = vsub.f32 %v7971_v11, %v631_v41  ;;  %v6026_v30 = vsub.f32 %v7973_v21, %v631_v41  ;;  %v1348_v11 = vmul.f32 %v5224_v46, %v1279_v7  ;;  %v7980_v7 = vld [vmem:[#allocation41_spill] sm:$0xff] }
 0x261   : > { %v1123_v51 = vmul.f32 %v6016_v19, %v6010_v40  ;;  %v6020_v12 = vadd.f32 1e-05, %v879_v62  ;;  %v833_v16 = vpop.xlane.xlu2 %832  ;;  %v6045_v21 = vadd.f32 %v1792_v50, %v1704_v1  ;;  %vm1129_vm13 = vweird.f32 %v6016_v19 }
 0x262   : > { %7972 = vst [vmem:[#allocation30_spill] sm:$0xff] %v6023_v4  ;;  %v1121_v18 = vsel %vm1120_vm12, %v4317_v23, %v1117_v2  ;;  %v756_v26 = vmul.f32 %v6023_v4, %v6023_v4  ;;  %v881_v38 = vmul.f32 %v833_v16, %v4987_v33  ;;  %v757_v23 = vmul.f32 %v6026_v30, %v6026_v30  ;;  %vm1130_vm15 = vmor %vm1128_vm14, %vm1129_vm13 }
 0x263   : > { %7974 = vst [vmem:[#allocation34_spill] sm:$0xff] %v6026_v30  ;;  %v1124_v32 = vmul.f32 %v6016_v19, %v1123_v51  ;;  %4320 = vrsqrt.f32 %v6020_v12  ;;  %v1280_v24 = vmul.f32 %v1121_v18, %v7976_v8  ;;  %v1281_v31 = vmul.f32 %v1121_v18, %v7977_v59 }
 0x264   : > { %v1881_v60 = vpop.f32.mrf.mxu2  ;;  %v6041_v2 = vadd.f32 1e-05, %v881_v38  ;;  %v1970_v62 = vpop.f32.mrf.mxu3  ;;  %v849_v10 = vadd.f32 %v757_v23, %v756_v26  ;;  %v1416_v38 = vadd.f32 %v5222_v3, %v1347_v29  ;;  %v7978_v23 = vld [vmem:[#allocation22_spill] sm:$0xff]  ;;  %vm1138_vm1 = vweird.f32 %v6020_v12 }
 0x265   : > { %v1125_v61 = vmul.f32 0.5, %v1124_v32  ;;  %v1882_v14 = vadd.f32 %v1881_v60, %v5679_v57  ;;  %v591_v41 = vpop.xlane.xlu0 %590  ;;  %v1349_v51 = vmul.f32 %v5207_v47, %v1280_v24  ;;  %v1350_v18 = vmul.f32 %v5224_v46, %v1281_v31 }
 0x266   : > { %v632_v16 = vmul.f32 %v4987_v33, %v591_v41  ;;  %4322 = vrsqrt.f32 %v6041_v2  ;;  %850 = vadd.xlane.f32.xlu0 %v849_v10  ;;  %vm1158_vm3 = vweird.f32 %v6041_v2 }
 0x267   : > { %v6047_v17 = vadd.f32 %v1970_v62, %v1882_v14  ;;  %v1126_v32 = vsub.f32 1.5, %v1125_v61  ;;  %v1418_v26 = vadd.f32 %v5222_v3, %v1349_v51  ;;  %v1417_v61 = vadd.f32 %v5231_v63, %v1348_v11 }
 0x268   : > { %v6055_v8 = vsub.f32 %v7978_v23, %v632_v16  ;;  %v6058_v1 = vsub.f32 %v7980_v7, %v632_v16  ;;  %v1419_v50 = vadd.f32 %v5231_v63, %v1350_v18  ;;  %v1874_v11 = vadd.f32 %v5914_v42, %v5679_v57 }
 0x269   : > { %v4321_v60 = vpop.eup %4320  ;;  %v2056_v24 = vadd.f32 %v6047_v17, %v6045_v21  ;;  %v1462_v31 = vpack.c.bf16 %v1418_v26, %v1416_v38  ;;  %v1127_v62 = vmul.f32 %v6016_v19, %v1126_v32 }
 0x26a   : > { %7979 = vst [vmem:[#allocation32_spill] sm:$0xff] %v6055_v8  ;;  %v1133_v59 = vmul.f32 %v4321_v60, %v6020_v12  ;;  %v758_v29 = vmul.f32 %v6055_v8, %v6055_v8  ;;  %v759_v14 = vmul.f32 %v6058_v1, %v6058_v1  ;;  %v830_v10 = vpop.xlane.xlu1 %829  ;;  %v1463_v16 = vpack.c.bf16 %v1419_v50, %v1417_v61 }
 0x26b   : > { %7981 = vst [vmem:[#allocation35_spill] sm:$0xff] %v6058_v1  ;;  %2057 = vadd.xlane.f32.xlu2 %v2056_v24  ;;  %v836_v51 = vpop.xlane.xlu2 %835  ;;  %1727 = vmatmul.bf16.gmra.mxu0 %v1462_v31  ;;  %v880_v18 = vmul.f32 %v830_v10, %v4987_v33  ;;  %v1696_v24 = vadd.f32 %v5887_v49, %v5682_v44  ;;  %vm1139_vm0 = vweird.f32 %v4321_v60 }
 0x26c   : > { %v1134_v41 = vmul.f32 %v4321_v60, %v1133_v59  ;;  %1905 = vmatmul.bf16.gmra.mxu2 %v1462_v31  ;;  %v882_v38 = vmul.f32 %v836_v51, %v4987_v33  ;;  %v852_v26 = vadd.f32 %v759_v14, %v758_v29  ;;  %v6075_v23 = vpop.eup %4322  ;;  %1816 = vmatmul.bf16.gmra.mxu1 %v1463_v16  ;;  %vm1140_vm2 = vmor %vm1138_vm1, %vm1139_vm0  ;;  %v6099_v10 = vpop.f32.mrf.mxu2  ;;  %v7983_v51 = vld [vmem:[#allocation19_spill] sm:$0xff] }
 0x26d   : > { %1994 = vmatmul.bf16.gmra.mxu3 %v1463_v16  ;;  %v839_v7 = vpop.xlane.xlu0 %838  ;;  %v1153_v42 = vmul.f32 %v6075_v23, %v6041_v2  ;;  %v6084_v59 = vadd.f32 1e-05, %v880_v18  ;;  %v1131_v50 = vsel %vm1130_vm15, %v6016_v19, %v1127_v62  ;;  %v6091_v29 = vadd.f32 %v5931_v39, %v1874_v11  ;;  %v6106_v62 = vpop.f32.mrf.mxu0  ;;  %v7985_v18 = vld [vmem:[#allocation29_spill] sm:$0xff] }
 0x26e   : > { %v1135_v32 = vmul.f32 0.5, %v1134_v41  ;;  %v6086_v31 = vadd.f32 1e-05, %v882_v38  ;;  %v883_v40 = vmul.f32 %v839_v7, %v4987_v33  ;;  %853 = vadd.xlane.f32.xlu0 %v852_v26  ;;  %v1282_v16 = vmul.f32 %v1131_v50, %v7983_v51  ;;  %v7986_v26 = vld [vmem:[#allocation20_spill] sm:$0xff]  ;;  %v7987_v7 = vld [vmem:[#allocation38_spill] sm:$0xff] }
 0x26f   : > { %7982 = vst [vmem:[#allocation33_spill] sm:$0xff] %v6091_v29  ;;  %4324 = vrsqrt.f32 %v6084_v59  ;;  %v1154_v14 = vmul.f32 %v6075_v23, %v1153_v42  ;;  %v6103_v19 = vadd.f32 %v5893_v6, %v1696_v24  ;;  %vm1159_vm4 = vweird.f32 %v6075_v23 }
 0x270   : > { %v1136_v61 = vsub.f32 1.5, %v1135_v32  ;;  %4326 = vrsqrt.f32 %v6086_v31  ;;  %v6097_v41 = vadd.f32 1e-05, %v883_v40  ;;  %v1283_v32 = vmul.f32 %v1131_v50, %v7986_v26  ;;  %vm6172_vm6 = vmor %vm1158_vm3, %vm1159_vm4 }
 0x271   : > { %7984 = vst [vmem:[#allocation36_spill] sm:$0xff] %v6103_v19  ;;  %v2047_v6 = vadd.f32 %v6091_v29, %v6103_v19  ;;  %vm1148_vm7 = vweird.f32 %v6084_v59  ;;  %v2050_v2 = vadd.f32 %v5975_v20, %v5953_v27  ;;  %vm1168_vm9 = vweird.f32 %v6086_v31 }
 0x272   : > { %v1137_v49 = vmul.f32 %v4321_v60, %v1136_v61  ;;  %v594_v39 = vpop.xlane.xlu1 %593  ;;  %4328 = vrsqrt.f32 %v6097_v41  ;;  %v1155_v61 = vmul.f32 0.5, %v1154_v14  ;;  %vm1178_vm11 = vweird.f32 %v6097_v41 }
 0x273   : > { %v633_v11 = vmul.f32 %v4987_v33, %v594_v39  ;;  %v1351_v39 = vmul.f32 %v5207_v47, %v1282_v16 }
 0x274   : > { %v1141_v12 = vsel %vm1140_vm2, %v4321_v60, %v1137_v49  ;;  %v1156_v26 = vsub.f32 1.5, %v1155_v61 }
 0x275   : > { %v1284_v38 = vmul.f32 %v1141_v12, %v7985_v18  ;;  %v1285_v42 = vmul.f32 %v1141_v12, %v7987_v7  ;;  %v2034_v40 = vpop.xlane.xlu0 %2033  ;;  %v4325_v24 = vpop.eup %4324  ;;  %v6115_v51 = vsub.f32 %v5784_v0, %v633_v11  ;;  %v6118_v60 = vsub.f32 %v5787_v55, %v633_v11 }
 0x276   : > { %v2128_v49 = vmul.f32 %v2034_v40, %v4987_v33  ;;  %v6122_v18 = vpop.eup %4326  ;;  %v1143_v50 = vmul.f32 %v4325_v24, %v6084_v59  ;;  %2048 = vadd.xlane.f32.xlu0 %v2047_v6  ;;  %v6127_v12 = vpop.f32.mrf.mxu3  ;;  %v1352_v0 = vmul.f32 %v5224_v46, %v1283_v32  ;;  %vm1149_vm5 = vweird.f32 %v4325_v24 }
 0x277   : > { %7988 = vst [vmem:[#allocation21_spill] sm:$0xff] %v6115_v51  ;;  %v1353_v14 = vmul.f32 %v5207_v47, %v1284_v38  ;;  %v1354_v55 = vmul.f32 %v5224_v46, %v1285_v42  ;;  %v760_v16 = vmul.f32 %v6115_v51, %v6115_v51  ;;  %v761_v40 = vmul.f32 %v6118_v60, %v6118_v60  ;;  %v1794_v38 = vpop.f32.mrf.mxu1  ;;  %v6150_v30 = vpop.f32.mrf.mxu2  ;;  %vm1150_vm8 = vmor %vm1148_vm7, %vm1149_vm5 }
 0x278   : > { %7989 = vst [vmem:[#allocation28_spill] sm:$0xff] %v6118_v60  ;;  %v6131_v11 = vpop.eup %4328  ;;  %v1144_v7 = vmul.f32 %v4325_v24, %v1143_v50  ;;  %v1163_v6 = vmul.f32 %v6122_v18, %v6086_v31  ;;  %v6141_v32 = vsub.f32 %v5823_v22, %v2128_v49  ;;  %v1420_v42 = vadd.f32 %v5222_v3, %v1351_v39 }
 0x279   : > { %v6145_v50 = vsub.f32 %v5794_v53, %v2128_v49  ;;  %v855_v51 = vadd.f32 %v761_v40, %v760_v16  ;;  %v1422_v8 = vadd.f32 %v5222_v3, %v1353_v14  ;;  %v1173_v60 = vmul.f32 %v6131_v11, %v6097_v41  ;;  %v6158_v16 = vpop.f32.mrf.mxu0 }
 0x27a   : > { %v1145_v1 = vmul.f32 0.5, %v1144_v7  ;;  %v842_v61 = vpop.xlane.xlu1 %841  ;;  %v1421_v22 = vadd.f32 %v5231_v63, %v1352_v0  ;;  %v1423_v29 = vadd.f32 %v5231_v63, %v1354_v55  ;;  %v1157_v7 = vmul.f32 %v6075_v23, %v1156_v26 }
 0x27b   : > { %v884_v4 = vmul.f32 %v842_v61, %v4987_v33  ;;  %856 = vadd.xlane.f32.xlu1 %v855_v51  ;;  %v1464_v53 = vpack.c.bf16 %v1422_v8, %v1420_v42  ;;  %v1164_v14 = vmul.f32 %v6122_v18, %v1163_v6  ;;  %v2225_v8 = vmul.f32 %v6145_v50, %v6145_v50 }
 0x27c   : > { %v1146_v19 = vsub.f32 1.5, %v1145_v1  ;;  %v1465_v61 = vpack.c.bf16 %v1423_v29, %v1421_v22  ;;  %v2224_v1 = vmul.f32 %v6141_v32, %v6141_v32  ;;  %v1884_v29 = vadd.f32 %v6099_v10, %v5679_v57 }
 0x27d   : > { %v6160_v40 = vadd.f32 1e-05, %v884_v4  ;;  %1732 = vmatmul.bf16.gmra.mxu0 %v1464_v53  ;;  %1910 = vmatmul.bf16.gmra.mxu2 %v1464_v53  ;;  %v1174_v4 = vmul.f32 %v6131_v11, %v1173_v60  ;;  %v1706_v59 = vadd.f32 %v6106_v62, %v5682_v44  ;;  %v1165_v60 = vmul.f32 0.5, %v1164_v14 }
 0x27e   : > { %v845_v39 = vpop.xlane.xlu2 %844  ;;  %v1147_v45 = vmul.f32 %v4325_v24, %v1146_v19  ;;  %1821 = vmatmul.bf16.gmra.mxu1 %v1465_v61  ;;  %1999 = vmatmul.bf16.gmra.mxu3 %v1465_v61  ;;  %v2288_v19 = vadd.f32 %v2225_v8, %v2224_v1  ;;  %v6182_v55 = vpop.f32.mrf.mxu3  ;;  %v1161_v10 = vsel %vm6172_vm6, %v6075_v23, %v1157_v7  ;;  %vm1169_vm10 = vweird.f32 %v6122_v18 }
 0x27f   : > { %v885_v49 = vmul.f32 %v845_v39, %v4987_v33  ;;  %v6192_v42 = vpop.f32.mrf.mxu1  ;;  %v1175_v22 = vmul.f32 0.5, %v1174_v4  ;;  %v6202_v14 = vpop.f32.mrf.mxu2  ;;  %v6213_v8 = vadd.f32 %v1794_v38, %v1706_v59  ;;  %vm1179_vm12 = vweird.f32 %v6131_v11  ;;  %vm6241_vm13 = vmor %vm1168_vm9, %vm1169_vm10 }
 0x280   : > { %v1151_v26 = vsel %vm1150_vm8, %v4325_v24, %v1147_v45  ;;  %2289 = vadd.xlane.f32.xlu0 %v2288_v19  ;;  %v7992_v24 = vld [vmem:[#allocation39_spill] sm:$0xff]  ;;  %vm1180_vm14 = vmor %vm1178_vm11, %vm1179_vm12  ;;  %vm1188_vm1 = vweird.f32 %v6160_v40 }
 0x281   : > { %v6162_v0 = vadd.f32 1e-05, %v885_v49  ;;  %v1286_v45 = vmul.f32 %v1151_v26, %v5698_v52  ;;  %v1288_v62 = vmul.f32 %v1161_v10, %v7992_v24  ;;  %v6200_v49 = vadd.f32 %v6127_v12, %v1884_v29  ;;  %v6217_v4 = vpop.f32.mrf.mxu0 }
 0x282   : > { %v2037_v6 = vpop.xlane.xlu1 %2036  ;;  %v1166_v52 = vsub.f32 1.5, %v1165_v60  ;;  %v1176_v12 = vsub.f32 1.5, %v1175_v22 }
 0x283   : > { %4330 = vrsqrt.f32 %v6162_v0  ;;  %v2129_v39 = vmul.f32 %v2037_v6, %v4987_v33  ;;  %2051 = vadd.xlane.f32.xlu1 %v2050_v2  ;;  %v1355_v7 = vmul.f32 %v5207_v47, %v1286_v45  ;;  %v1357_v51 = vmul.f32 %v5207_v47, %v1288_v62 }
 0x284   : > { %4332 = vrsqrt.f32 %v6160_v40  ;;  %v2059_v19 = vadd.f32 %v6200_v49, %v6213_v8  ;;  %v1887_v2 = vadd.f32 %v6150_v30, %v5679_v57  ;;  %v1167_v59 = vmul.f32 %v6122_v18, %v1166_v52 }
 0x285   : > { %v6205_v61 = vsub.f32 %v5899_v5, %v2129_v39  ;;  %v6208_v23 = vsub.f32 %v5902_v48, %v2129_v39  ;;  %v1287_v48 = vmul.f32 %v1151_v26, %v5711_v13  ;;  %v1424_v26 = vadd.f32 %v5222_v3, %v1355_v7  ;;  %v7993_v39 = vld [vmem:[#allocation40_spill] sm:$0xff] }
 0x286   : > { %v6195_v53 = vpop.xlane.xlu2 %847  ;;  %v1426_v22 = vadd.f32 %v5222_v3, %v1357_v51  ;;  %v1289_v45 = vmul.f32 %v1161_v10, %v7993_v39  ;;  %v1177_v30 = vmul.f32 %v6131_v11, %v1176_v12  ;;  %v6248_v7 = vpop.f32.mrf.mxu3  ;;  %v1171_v41 = vsel %vm6241_vm13, %v6122_v18, %v1167_v59 }
 0x287   : > { %v2226_v5 = vmul.f32 %v6205_v61, %v6205_v61  ;;  %v2227_v38 = vmul.f32 %v6208_v23, %v6208_v23  ;;  %v1290_v59 = vmul.f32 %v1171_v41, %v5719_v37  ;;  %vm1198_vm15 = vweird.f32 %v6162_v0 }
 0x288   : > { %2060 = vadd.xlane.f32.xlu0 %v2059_v19  ;;  %v1466_v31 = vpack.c.bf16 %v1426_v22, %v1424_v26  ;;  %v1358_v10 = vmul.f32 %v5224_v46, %v1289_v45  ;;  %v6260_v19 = vpop.f32.mrf.mxu1  ;;  %v1891_v22 = vpop.f32.mrf.mxu2 }
 0x289   : > { %v6211_v1 = vpop.eup %4330  ;;  %v2291_v6 = vadd.f32 %v2227_v38, %v2226_v5  ;;  %v1356_v5 = vmul.f32 %v5224_v46, %v1287_v48  ;;  %v1709_v38 = vadd.f32 %v6158_v16, %v5682_v44  ;;  %v6273_v16 = vadd.f32 %v6182_v55, %v1887_v2  ;;  %v1713_v55 = vpop.f32.mrf.mxu0 }
 0x28a   : > { %v6222_v29 = vpop.eup %4332  ;;  %v1193_v13 = vmul.f32 %v6211_v1, %v6162_v0  ;;  %v2040_v60 = vpop.xlane.xlu1 %2039  ;;  %v1427_v26 = vadd.f32 %v5231_v63, %v1358_v10  ;;  %vm1199_vm0 = vweird.f32 %v6211_v1 }
 0x28b   : > { %v1183_v62 = vmul.f32 %v6222_v29, %v6160_v40  ;;  %v2130_v52 = vmul.f32 %v2040_v60, %v4987_v33  ;;  %2292 = vadd.xlane.f32.xlu1 %v2291_v6  ;;  %v1425_v39 = vadd.f32 %v5231_v63, %v1356_v5  ;;  %v1181_v6 = vsel %vm1180_vm14, %v6131_v11, %v1177_v30  ;;  %v7997_v30 = vld [vmem:[#allocation31_spill] sm:$0xff]  ;;  %vm1200_vm3 = vmor %vm1198_vm15, %vm1199_vm0 }
 0x28c   : > { %v1194_v60 = vmul.f32 %v6211_v1, %v1193_v13  ;;  %v6287_v11 = vadd.f32 %v6192_v42, %v1709_v38  ;;  %v7999_v38 = vld [vmem:[#allocation23_spill] sm:$0xff]  ;;  %vm1189_vm2 = vweird.f32 %v6222_v29 }
 0x28d   : > { %v6264_v48 = vsub.f32 %v5961_v34, %v2130_v52  ;;  %1737 = vmatmul.bf16.gmra.mxu0 %v1466_v31  ;;  %1915 = vmatmul.bf16.gmra.mxu2 %v1466_v31  ;;  %v1184_v13 = vmul.f32 %v6222_v29, %v1183_v62  ;;  %v6277_v34 = vsub.f32 %v5951_v28, %v2130_v52  ;;  %v7998_v52 = vld [vmem:[#allocation42_spill] sm:$0xff]  ;;  %vm1190_vm4 = vmor %vm1188_vm1, %vm1189_vm2 }
 0x28e   : > { %v2043_v51 = vpop.xlane.xlu2 %2042  ;;  %v1467_v45 = vpack.c.bf16 %v1427_v26, %v1425_v39  ;;  %v1195_v2 = vmul.f32 0.5, %v1194_v60  ;;  %v1292_v28 = vmul.f32 %v1181_v6, %v7997_v30  ;;  %v2062_v37 = vadd.f32 %v6273_v16, %v6287_v11  ;;  %v1980_v39 = vpop.f32.mrf.mxu3 }
 0x28f   : > { %v2131_v12 = vmul.f32 %v2043_v51, %v4987_v33  ;;  %7996 = vst [vmem:[#allocation37_spill] sm:$0xff] %v6277_v34  ;;  %v2228_v24 = vmul.f32 %v6264_v48, %v6264_v48  ;;  %v1185_v62 = vmul.f32 0.5, %v1184_v13  ;;  %v1293_v51 = vmul.f32 %v1181_v6, %v7998_v52 }
 0x290   : > { %1826 = vmatmul.bf16.gmra.mxu1 %v1467_v45  ;;  %2004 = vmatmul.bf16.gmra.mxu3 %v1467_v45  ;;  %v1291_v60 = vmul.f32 %v1171_v41, %v7999_v38  ;;  %v1359_v13 = vmul.f32 %v5207_v47, %v1290_v59  ;;  %v1802_v41 = vpop.f32.mrf.mxu1  ;;  %v1892_v38 = vadd.f32 %v1891_v22, %v5679_v57 }
 0x291   : > { %v6280_v5 = vsub.f32 %v5964_v36, %v2131_v12  ;;  %v6283_v18 = vsub.f32 %v5956_v58, %v2131_v12  ;;  %v1889_v36 = vadd.f32 %v6202_v14, %v5679_v57  ;;  %v2229_v58 = vmul.f32 %v6277_v34, %v6277_v34  ;;  %2063 = vadd.xlane.f32.xlu0 %v2062_v37 }
 0x292   : > { %v1196_v14 = vsub.f32 1.5, %v1195_v2  ;;  %v1186_v52 = vsub.f32 1.5, %v1185_v62  ;;  %v1711_v34 = vadd.f32 %v6217_v4, %v5682_v44  ;;  %v1893_v2 = vpop.f32.mrf.mxu2  ;;  %v1360_v62 = vmul.f32 %v5224_v46, %v1291_v60 }
 0x293   : > { %v2230_v10 = vmul.f32 %v6280_v5, %v6280_v5  ;;  %v2231_v12 = vmul.f32 %v6283_v18, %v6283_v18  ;;  %v2294_v26 = vadd.f32 %v2229_v58, %v2228_v24  ;;  %v6324_v4 = vadd.f32 %v6248_v7, %v1889_v36 }
 0x294   : > { %v1197_v0 = vmul.f32 %v6211_v1, %v1196_v14  ;;  %v1187_v58 = vmul.f32 %v6222_v29, %v1186_v52  ;;  %v6333_v37 = vadd.f32 %v6260_v19, %v1711_v34  ;;  %v1894_v14 = vadd.f32 %v1893_v2, %v5679_v57 }
 0x295   : > { %v2297_v30 = vadd.f32 %v2231_v12, %v2230_v10  ;;  %2295 = vadd.xlane.f32.xlu1 %v2294_v26  ;;  %v1429_v19 = vadd.f32 %v5231_v63, %v1360_v62  ;;  %v1714_v34 = vadd.f32 %v1713_v55, %v5682_v44 }
 0x296   : > { %v2046_v42 = vpop.xlane.xlu2 %2045  ;;  %v1201_v12 = vsel %vm1200_vm3, %v6211_v1, %v1197_v0  ;;  %v2065_v60 = vadd.f32 %v6324_v4, %v6333_v37  ;;  %v1191_v40 = vsel %vm1190_vm4, %v6222_v29, %v1187_v58  ;;  %v1982_v26 = vpop.f32.mrf.mxu3  ;;  %v8005_v58 = vld [vmem:[#allocation27_spill] sm:$0xff] }
 0x297   : > { %v2132_v31 = vmul.f32 %v2046_v42, %v4987_v33  ;;  %v1361_v42 = vmul.f32 %v5207_v47, %v1292_v28  ;;  %2298 = vadd.xlane.f32.xlu2 %v2297_v30  ;;  %v1428_v28 = vadd.f32 %v5222_v3, %v1359_v13  ;;  %v1296_v1 = vmul.f32 %v1201_v12, %v5865_v15 }
 0x298   : > { %v1804_v52 = vpop.f32.mrf.mxu1  ;;  %v6354_v29 = vadd.f32 %v1802_v41, %v1714_v34  ;;  %v1297_v2 = vmul.f32 %v1201_v12, %v5868_v25  ;;  %v1295_v41 = vmul.f32 %v1191_v40, %v8005_v58 }
 0x299   : > { %v6307_v45 = vsub.f32 %v5988_v56, %v2132_v31  ;;  %v6310_v6 = vsub.f32 %v5983_v43, %v2132_v31  ;;  %v1430_v56 = vadd.f32 %v5222_v3, %v1361_v42  ;;  %v1362_v43 = vmul.f32 %v5224_v46, %v1293_v51  ;;  %v1715_v51 = vpop.f32.mrf.mxu0 }
 0x29a   : > { %v1716_v22 = vadd.f32 %v1715_v51, %v5682_v44  ;;  %v6349_v42 = vadd.f32 %v1980_v39, %v1892_v38  ;;  %v1896_v55 = vpop.f32.mrf.mxu2 }
 0x29b   : > { %8000 = vst [vmem:[#allocation24_spill] sm:$0xff] %v6307_v45  ;;  %v2232_v59 = vmul.f32 %v6307_v45, %v6307_v45  ;;  %v2233_v24 = vmul.f32 %v6310_v6, %v6310_v6  ;;  %v1468_v7 = vpack.c.bf16 %v1430_v56, %v1428_v28  ;;  %v1431_v36 = vadd.f32 %v5231_v63, %v1362_v43  ;;  %v8002_v56 = vld [vmem:[#allocation26_spill] sm:$0xff] }
 0x29c   : > { %8001 = vst [vmem:[#allocation25_spill] sm:$0xff] %v6310_v6  ;;  %v1294_v43 = vmul.f32 %v1191_v40, %v8002_v56  ;;  %v6363_v39 = vadd.f32 %v1804_v52, %v1716_v22  ;;  %v2068_v62 = vadd.f32 %v6349_v42, %v6354_v29  ;;  %v1897_v51 = vadd.f32 %v1896_v55, %v5679_v57 }
 0x29d   : > { %v2300_v10 = vadd.f32 %v2233_v24, %v2232_v59  ;;  %1742 = vmatmul.bf16.gmra.mxu0 %v1468_v7  ;;  %1920 = vmatmul.bf16.gmra.mxu2 %v1468_v7  ;;  %v1469_v30 = vpack.c.bf16 %v1431_v36, %v1429_v19  ;;  %v6352_v59 = vadd.f32 %v1982_v26, %v1894_v14 }
 0x29e   : > { %v2055_v31 = vpop.xlane.xlu2 %2054  ;;  %2066 = vadd.xlane.f32.xlu1 %v2065_v60  ;;  %v1365_v24 = vmul.f32 %v5207_v47, %v1296_v1  ;;  %v1985_v12 = vpop.f32.mrf.mxu3  ;;  %v1364_v14 = vmul.f32 %v5224_v46, %v1295_v41  ;;  %v886_v52 = vmul.f32 %v6195_v53, %v4987_v33 }
 0x29f   : > { %v2135_v13 = vmul.f32 %v2055_v31, %v4987_v33  ;;  %2301 = vadd.xlane.f32.xlu2 %v2300_v10  ;;  %v1366_v10 = vmul.f32 %v5224_v46, %v1297_v2  ;;  %v6380_v38 = vadd.f32 %v1985_v12, %v1897_v51  ;;  %v4094_v51 = vld [vmem:[#allocation11 + $0xf8] sm:$0xf0]  ;;  %v4092_v12 = vld [vmem:[#allocation11 + $0xf0] sm:$0xf] }
 0x2a0   : > { %1831 = vmatmul.bf16.gmra.mxu1 %v1469_v30  ;;  %2009 = vmatmul.bf16.gmra.mxu3 %v1469_v30  ;;  %v1434_v31 = vadd.f32 %v5222_v3, %v1365_v24  ;;  %v1807_v19 = vpop.f32.mrf.mxu1  ;;  %v1433_v1 = vadd.f32 %v5231_v63, %v1364_v14  ;;  %v918_v56 = vadd.f32 1e-05, %v886_v52  ;;  %v4152_v24 = vld [vmem:[#allocation11 + $0x74] sm:$0xf] }
 0x2a1   : > { %v6357_v0 = vsub.f32 %v6002_v54, %v2135_v13  ;;  %v6360_v15 = vsub.f32 %v5999_v35, %v2135_v13  ;;  %v1718_v28 = vpop.f32.mrf.mxu0  ;;  %v2071_v54 = vadd.f32 %v6352_v59, %v6363_v39  ;;  %v1363_v35 = vmul.f32 %v5207_v47, %v1294_v43  ;;  %8006 = vst [vmem:[#allocation19_spill] sm:$0xff] %v6380_v38 }
 0x2a2   : > { %v1719_v36 = vadd.f32 %v1718_v28, %v5682_v44  ;;  %v1435_v13 = vadd.f32 %v5231_v63, %v1366_v10  ;;  %4334 = vrsqrt.f32 %v918_v56  ;;  %v6394_v55 = vpop.f32.mrf.mxu2  ;;  %v4030_v28 = vld [vmem:[#allocation11 + $0x78] sm:$0xf0]  ;;  %v4153_v10 = vld [vmem:[#allocation11 + $0x74] sm:$0xf0]  ;;  %vm1208_vm5 = vweird.f32 %v918_v56 }
 0x2a3   : > { %8003 = vst [vmem:[#allocation22_spill] sm:$0xff] %v6357_v0  ;;  %v2238_v25 = vmul.f32 %v6357_v0, %v6357_v0  ;;  %v2239_v7 = vmul.f32 %v6360_v15, %v6360_v15  ;;  %v1432_v60 = vadd.f32 %v5222_v3, %v1363_v35  ;;  %v4033_v41 = vor.u32 %v4152_v24, %v4030_v28 }
 0x2a4   : > { %8004 = vst [vmem:[#allocation41_spill] sm:$0xff] %v6360_v15  ;;  %v6384_v34 = vadd.f32 %v1807_v19, %v1719_v36  ;;  %v1471_v30 = vpack.c.bf16 %v1435_v13, %v1433_v1  ;;  %v4169_v19 = vld [vmem:[#allocation11 + $0xf4] sm:$0xf0] }
 0x2a5   : > { %v2309_v40 = vadd.f32 %v2239_v7, %v2238_v25  ;;  %v1470_v26 = vpack.c.bf16 %v1434_v31, %v1432_v60  ;;  %3378 = vmatpush.bf16.msrb.mxu2 %v4033_v41  ;;  %v4028_v31 = vld [vmem:[#allocation11 + $0x70] sm:$0xf]  ;;  %v8017_v15 = vld [vmem:[#allocation30_spill] sm:$0xff] }
 0x2a6   : > { %2069 = vadd.xlane.f32.xlu1 %v2068_v62  ;;  %v2074_v22 = vadd.f32 %v6380_v38, %v6384_v34  ;;  %v4168_v62 = vld [vmem:[#allocation11 + $0xf4] sm:$0xf]  ;;  %v4029_v14 = vor.u32 %v4153_v10, %v4028_v31 }
 0x2a7   : > { %2072 = vadd.xlane.f32.xlu2 %v2071_v54  ;;  %v6398_v54 = vpop.f32.mrf.mxu3  ;;  %v4097_v35 = vor.u32 %v4168_v62, %v4094_v51 }
 0x2a8   : > { %v4335_v2 = vpop.eup %4334  ;;  %v6396_v58 = vpop.f32.mrf.mxu1  ;;  %3200 = vmatpush.bf16.msrb.mxu0 %v4029_v14 }
 0x2a9   : > { %v6392_v43 = vpop.f32.mrf.mxu0  ;;  %v1203_v25 = vmul.f32 %v4335_v2, %v918_v56  ;;  %3467 = vmatpush.bf16.msrb.mxu3 %v4097_v35  ;;  %vm1209_vm6 = vweird.f32 %v4335_v2 }
 0x2aa   : > { %v6402_v7 = vpop.f32.mrf.mxu2  ;;  %vm1210_vm7 = vmor %vm1208_vm5, %vm1209_vm6 }
 0x2ab   : > { %v1204_v36 = vmul.f32 %v4335_v2, %v1203_v25 }
 0x2ad   : > { %1747 = vmatmul.bf16.gmra.mxu0 %v1470_v26  ;;  %1925 = vmatmul.bf16.gmra.mxu2 %v1470_v26  ;;  %v4093_v26 = vor.u32 %v4169_v19, %v4092_v12  ;;  %v1205_v13 = vmul.f32 0.5, %v1204_v36 }
 0x2ae   : > { %2310 = vadd.xlane.f32.xlu1 %v2309_v40 }
 0x2af   : > { %2075 = vadd.xlane.f32.xlu2 %v2074_v22  ;;  %v6407_v22 = vpop.f32.mrf.mxu3  ;;  %3289 = vmatpush.bf16.msrb.mxu1 %v4093_v26  ;;  %v1206_v28 = vsub.f32 1.5, %v1205_v13 }
 0x2b0   : > { %1836 = vmatmul.bf16.gmra.mxu1 %v1471_v30  ;;  %2014 = vmatmul.bf16.gmra.mxu3 %v1471_v30  ;;  %v6405_v1 = vpop.f32.mrf.mxu1 }
 0x2b1   : > { %v6400_v53 = vpop.f32.mrf.mxu0  ;;  %v1207_v12 = vmul.f32 %v4335_v2, %v1206_v28 }
 0x2b2   : > { %v1903_v35 = vpop.f32.mrf.mxu2 }
 0x2b3   : > { %v1211_v13 = vsel %vm1210_vm7, %v4335_v2, %v1207_v12 }
 0x2b7   : > { %v1992_v26 = vpop.f32.mrf.mxu3 }
 0x2b9   : > { %v1725_v51 = vpop.f32.mrf.mxu0 }
 0x2ba   : > { %v1726_v56 = vadd.f32 %v1725_v51, %v5682_v44 }
 0x2d9   : > { %v851_v60 = vpop.xlane.xlu0 %850 }
 0x2da   : > { %v887_v40 = vmul.f32 %v851_v60, %v4987_v33 }
 0x2dc   : > { %v919_v30 = vadd.f32 1e-05, %v887_v40  ;;  %v1814_v40 = vpop.f32.mrf.mxu1 }
 0x2de   : > { %v2058_v52 = vpop.xlane.xlu2 %2057  ;;  %4336 = vrsqrt.f32 %v919_v30  ;;  %vm1218_vm9 = vweird.f32 %v919_v30 }
 0x2df   : > { %v2136_v24 = vmul.f32 %v2058_v52, %v4987_v33 }
 0x2e1   : > { %v6411_v62 = vsub.f32 %v6045_v21, %v2136_v24  ;;  %v6414_v41 = vsub.f32 %v6047_v17, %v2136_v24  ;;  %v854_v25 = vpop.xlane.xlu0 %853  ;;  %v1904_v21 = vadd.f32 %v1903_v35, %v5679_v57 }
 0x2e2   : > { %v888_v10 = vmul.f32 %v854_v25, %v4987_v33  ;;  %v6428_v25 = vadd.f32 %v1814_v40, %v1726_v56 }
 0x2e3   : > { %8007 = vst [vmem:[#allocation29_spill] sm:$0xff] %v6411_v62  ;;  %v2240_v36 = vmul.f32 %v6411_v62, %v6411_v62  ;;  %v2241_v31 = vmul.f32 %v6414_v41, %v6414_v41  ;;  %v6426_v52 = vadd.f32 %v1992_v26, %v1904_v21  ;;  %v8012_v21 = vld [vmem:[#allocation36_spill] sm:$0xff] }
 0x2e4   : > { %8008 = vst [vmem:[#allocation20_spill] sm:$0xff] %v6414_v41  ;;  %v4337_v14 = vpop.eup %4336  ;;  %v6422_v17 = vadd.f32 1e-05, %v888_v10  ;;  %v8011_v10 = vld [vmem:[#allocation43_spill] sm:$0xff] }
 0x2e5   : > { %v2312_v60 = vadd.f32 %v2241_v31, %v2240_v36  ;;  %v1213_v19 = vmul.f32 %v4337_v14, %v919_v30  ;;  %8009 = vst [vmem:[#allocation38_spill] sm:$0xff] %v6426_v52  ;;  %v1298_v31 = vmul.f32 %v1211_v13, %v5906_v9  ;;  %v1299_v41 = vmul.f32 %v1211_v13, %v8011_v10 }
 0x2e6   : > { %4338 = vrsqrt.f32 %v6422_v17  ;;  %8010 = vst [vmem:[#allocation39_spill] sm:$0xff] %v6428_v25  ;;  %vm1219_vm8 = vweird.f32 %v4337_v14  ;;  %v2083_v2 = vadd.f32 %v6426_v52, %v6428_v25  ;;  %vm1228_vm12 = vweird.f32 %v6422_v17  ;;  %v3990_v25 = vld [vmem:[#allocation11 + $0x28] sm:$0xf0] }
 0x2e7   : > { %2313 = vadd.xlane.f32.xlu1 %v2312_v60  ;;  %v1214_v24 = vmul.f32 %v4337_v14, %v1213_v19  ;;  %v8014_v19 = vld [vmem:[#allocation33_spill] sm:$0xff]  ;;  %vm1220_vm10 = vmor %vm1218_vm9, %vm1219_vm8  ;;  %v1367_v10 = vmul.f32 %v5207_v47, %v1298_v31 }
 0x2e8   : > { %v1728_v28 = vpop.f32.mrf.mxu0 }
 0x2e9   : > { %v1215_v35 = vmul.f32 0.5, %v1214_v24  ;;  %v2049_v36 = vpop.xlane.xlu0 %2048  ;;  %v1729_v62 = vadd.f32 %v1728_v28, %v5682_v44  ;;  %v1817_v24 = vpop.f32.mrf.mxu1 }
 0x2ea   : > { %v2133_v51 = vmul.f32 %v2049_v36, %v4987_v33 }
 0x2eb   : > { %v1216_v60 = vsub.f32 1.5, %v1215_v35 }
 0x2ec   : > { %v6436_v12 = vpop.eup %4338  ;;  %v6439_v56 = vsub.f32 %v8012_v21, %v2133_v51  ;;  %v6442_v40 = vsub.f32 %v8014_v19, %v2133_v51  ;;  %v6453_v21 = vadd.f32 %v1817_v24, %v1729_v62  ;;  %v1368_v19 = vmul.f32 %v5224_v46, %v1299_v41 }
 0x2ed   : > { %v1217_v9 = vmul.f32 %v4337_v14, %v1216_v60  ;;  %v1223_v26 = vmul.f32 %v6436_v12, %v6422_v17  ;;  %vm1229_vm11 = vweird.f32 %v6436_v12  ;;  %v1899_v17 = vadd.f32 %v6394_v55, %v5679_v57 }
 0x2ee   : > { %8013 = vst [vmem:[#allocation40_spill] sm:$0xff] %v6439_v56  ;;  %v2234_v35 = vmul.f32 %v6439_v56, %v6439_v56  ;;  %v2235_v36 = vmul.f32 %v6442_v40, %v6442_v40  ;;  %v857_v60 = vpop.xlane.xlu1 %856  ;;  %v1437_v24 = vadd.f32 %v5231_v63, %v1368_v19  ;;  %vm1230_vm13 = vmor %vm1228_vm12, %vm1229_vm11 }
 0x2ef   : > { %8015 = vst [vmem:[#allocation31_spill] sm:$0xff] %v6442_v40  ;;  %2084 = vadd.xlane.f32.xlu1 %v2083_v2  ;;  %v1906_v13 = vpop.f32.mrf.mxu2  ;;  %v1221_v51 = vsel %vm1220_vm10, %v4337_v14, %v1217_v9  ;;  %v1224_v30 = vmul.f32 %v6436_v12, %v1223_v26  ;;  %v889_v56 = vmul.f32 %v857_v60, %v4987_v33  ;;  %v4167_v60 = vld [vmem:[#allocation11 + $0xe4] sm:$0xf0] }
 0x2f0   : > { %v1907_v28 = vadd.f32 %v1906_v13, %v5679_v57  ;;  %8016 = vst [vmem:[#allocation42_spill] sm:$0xff] %v6453_v21  ;;  %v1995_v2 = vpop.f32.mrf.mxu3  ;;  %v1300_v0 = vmul.f32 %v1221_v51, %v8017_v15  ;;  %v8018_v13 = vld [vmem:[#allocation34_spill] sm:$0xff]  ;;  %v2303_v52 = vadd.f32 %v2235_v36, %v2234_v35  ;;  %v1436_v15 = vadd.f32 %v5222_v3, %v1367_v10 }
 0x2f1   : > { %v1301_v6 = vmul.f32 %v1221_v51, %v8018_v13  ;;  %v1225_v40 = vmul.f32 0.5, %v1224_v30  ;;  %v6461_v31 = vadd.f32 1e-05, %v889_v56  ;;  %v4151_v51 = vld [vmem:[#allocation11 + $0x64] sm:$0xf0] }
 0x2f2   : > { %v6459_v45 = vadd.f32 %v1995_v2, %v1907_v28  ;;  %v1369_v62 = vmul.f32 %v5207_v47, %v1300_v0  ;;  %2304 = vadd.xlane.f32.xlu0 %v2303_v52  ;;  %v4150_v0 = vld [vmem:[#allocation11 + $0x64] sm:$0xf]  ;;  %v4084_v30 = vld [vmem:[#allocation11 + $0xe0] sm:$0xf] }
 0x2f3   : > { %v1370_v9 = vmul.f32 %v5224_v46, %v1301_v6  ;;  %v1226_v41 = vsub.f32 1.5, %v1225_v40  ;;  %4340 = vrsqrt.f32 %v6461_v31  ;;  %v2290_v35 = vpop.xlane.xlu0 %2289  ;;  %v4022_v6 = vld [vmem:[#allocation11 + $0x68] sm:$0xf0]  ;;  %v4020_v40 = vld [vmem:[#allocation11 + $0x60] sm:$0xf]  ;;  %vm1238_vm15 = vweird.f32 %v6461_v31 }
 0x2f4   : > { %8019 = vst [vmem:[#allocation23_spill] sm:$0xff] %v6459_v45  ;;  %v2086_v14 = vadd.f32 %v6459_v45, %v6453_v21  ;;  %v1438_v26 = vadd.f32 %v5222_v3, %v1369_v62  ;;  %v2384_v52 = vmul.f32 %v2290_v35, %v4987_v33  ;;  %v4025_v19 = vor.u32 %v4150_v0, %v4022_v6  ;;  %v4012_v45 = vld [vmem:[#allocation11 + $0x50] sm:$0xf]  ;;  %v4165_v0 = vld [vmem:[#allocation11 + $0xd4] sm:$0xf0] }
 0x2f5   : > { %v1439_v56 = vadd.f32 %v5231_v63, %v1370_v9  ;;  %v1227_v28 = vmul.f32 %v6436_v12, %v1226_v41  ;;  %v4021_v13 = vor.u32 %v4151_v51, %v4020_v40  ;;  %v4085_v62 = vor.u32 %v4167_v60, %v4084_v30  ;;  %v4166_v9 = vld [vmem:[#allocation11 + $0xe4] sm:$0xf]  ;;  %v4086_v41 = vld [vmem:[#allocation11 + $0xe8] sm:$0xf0]  ;;  %v4148_v6 = vld [vmem:[#allocation11 + $0x54] sm:$0xf] }
 0x2f6   : > { %v1472_v36 = vpack.c.bf16 %v1438_v26, %v1436_v15  ;;  %v2052_v2 = vpop.xlane.xlu1 %2051  ;;  %v6479_v35 = vadd.f32 1e-05, %v2384_v52  ;;  %v4149_v15 = vld [vmem:[#allocation11 + $0x54] sm:$0xf0]  ;;  %v4076_v26 = vld [vmem:[#allocation11 + $0xd0] sm:$0xf]  ;;  %3379 = vmatpush.bf16.msrb.mxu2 %v4025_v19 }
 0x2f7   : > { %2087 = vadd.xlane.f32.xlu1 %v2086_v14  ;;  %v1473_v10 = vpack.c.bf16 %v1439_v56, %v1437_v24  ;;  %v2134_v14 = vmul.f32 %v2052_v2, %v4987_v33  ;;  %v6484_v24 = vsel %vm1230_vm13, %v6436_v12, %v1227_v28  ;;  %v4089_v56 = vor.u32 %v4166_v9, %v4086_v41  ;;  %v4014_v40 = vld [vmem:[#allocation11 + $0x58] sm:$0xf0]  ;;  %v4164_v12 = vld [vmem:[#allocation11 + $0xd4] sm:$0xf] }
 0x2f8   : > { %1752 = vmatmul.bf16.gmra.mxu0 %v1472_v36  ;;  %1930 = vmatmul.bf16.gmra.mxu2 %v1472_v36  ;;  %4342 = vrsqrt.f32 %v6479_v35  ;;  %v4013_v55 = vor.u32 %v4149_v15, %v4012_v45  ;;  %v4078_v28 = vld [vmem:[#allocation11 + $0xd8] sm:$0xf0]  ;;  %v4017_v60 = vor.u32 %v4148_v6, %v4014_v40  ;;  %v6504_v45 = vadd.f32 %v6398_v54, %v1899_v17  ;;  %v4068_v15 = vld [vmem:[#allocation11 + $0xc0] sm:$0xf]  ;;  %v4006_v6 = vld [vmem:[#allocation11 + $0x48] sm:$0xf0] }
 0x2f9   : > { %1841 = vmatmul.bf16.gmra.mxu1 %v1473_v10  ;;  %2019 = vmatmul.bf16.gmra.mxu3 %v1473_v10  ;;  %v6486_v51 = vpop.eup %4340  ;;  %v6489_v52 = vsub.f32 %v5953_v27, %v2134_v14  ;;  %v6492_v30 = vsub.f32 %v5975_v20, %v2134_v14  ;;  %v4077_v10 = vor.u32 %v4165_v0, %v4076_v26  ;;  %v4147_v14 = vld [vmem:[#allocation11 + $0x44] sm:$0xf0]  ;;  %v4146_v0 = vld [vmem:[#allocation11 + $0x44] sm:$0xf]  ;;  %vm2454_vm2 = vweird.f32 %v6479_v35 }
 0x2fa   : > { %3201 = vmatpush.bf16.msrb.mxu0 %v4021_v13  ;;  %v1233_v36 = vmul.f32 %v6486_v51, %v6461_v31  ;;  %3290 = vmatpush.bf16.msrb.mxu1 %v4085_v62  ;;  %v1721_v27 = vadd.f32 %v6392_v43, %v5682_v44  ;;  %v4081_v19 = vor.u32 %v4164_v12, %v4078_v28  ;;  %v4004_v43 = vld [vmem:[#allocation11 + $0x40] sm:$0xf]  ;;  %v8023_v26 = vld [vmem:[#allocation32_spill] sm:$0xff]  ;;  %vm1239_vm14 = vweird.f32 %v6486_v51 }
 0x2fb   : > { %8020 = vst [vmem:[#allocation26_spill] sm:$0xff] %v6489_v52  ;;  %3468 = vmatpush.bf16.msrb.mxu3 %v4089_v56  ;;  %v2236_v20 = vmul.f32 %v6489_v52, %v6489_v52  ;;  %v2237_v2 = vmul.f32 %v6492_v30, %v6492_v30  ;;  %v1724_v13 = vadd.f32 %v6400_v53, %v5682_v44  ;;  %v2061_v41 = vpop.xlane.xlu0 %2060  ;;  %v4163_v53 = vld [vmem:[#allocation11 + $0xc4] sm:$0xf0]  ;;  %v4070_v52 = vld [vmem:[#allocation11 + $0xc8] sm:$0xf0]  ;;  %vm6534_vm0 = vmor %vm1238_vm15, %vm1239_vm14 }
 0x2fc   : > { %8021 = vst [vmem:[#allocation27_spill] sm:$0xff] %v6492_v30  ;;  %v1902_v62 = vadd.f32 %v6402_v7, %v5679_v57  ;;  %v1234_v9 = vmul.f32 %v6486_v51, %v1233_v36  ;;  %v1302_v56 = vmul.f32 %v6484_v24, %v8023_v26  ;;  %v2137_v54 = vmul.f32 %v2061_v41, %v4987_v33  ;;  %v4162_v30 = vld [vmem:[#allocation11 + $0xc4] sm:$0xf]  ;;  %v4145_v41 = vld [vmem:[#allocation11 + $0x34] sm:$0xf0] }
 0x2fd   : > { %8022 = vst [vmem:[#allocation43_spill] sm:$0xff] %v6504_v45  ;;  %v2306_v17 = vadd.f32 %v2237_v2, %v2236_v20  ;;  %3380 = vmatpush.bf16.msrb.mxu2 %v4017_v60  ;;  %v4005_v12 = vor.u32 %v4147_v14, %v4004_v43  ;;  %v4069_v28 = vor.u32 %v4163_v53, %v4068_v15  ;;  %v8027_v43 = vld [vmem:[#allocation35_spill] sm:$0xff]  ;;  %v4160_v53 = vld [vmem:[#allocation11 + $0xb4] sm:$0xf] }
 0x2fe   : > { %3202 = vmatpush.bf16.msrb.mxu0 %v4013_v55  ;;  %v1235_v7 = vmul.f32 0.5, %v1234_v9  ;;  %v2293_v40 = vpop.xlane.xlu1 %2292  ;;  %3291 = vmatpush.bf16.msrb.mxu1 %v4077_v10  ;;  %v4009_v36 = vor.u32 %v4146_v0, %v4006_v6  ;;  %v6515_v26 = vpop.eup %4342  ;;  %v6519_v20 = vsub.f32 %v6213_v8, %v2137_v54  ;;  %v6522_v55 = vsub.f32 %v6200_v49, %v2137_v54  ;;  %v3996_v9 = vld [vmem:[#allocation11 + $0x30] sm:$0xf]  ;;  %v4062_v6 = vld [vmem:[#allocation11 + $0xb8] sm:$0xf0] }
 0x2ff   : > { %3469 = vmatpush.bf16.msrb.mxu3 %v4081_v19  ;;  %v2385_v21 = vmul.f32 %v2293_v40, %v4987_v33  ;;  %2307 = vadd.xlane.f32.xlu0 %v2306_v17  ;;  %v4073_v60 = vor.u32 %v4162_v30, %v4070_v52  ;;  %v6525_v10 = vadd.f32 %v6396_v58, %v1721_v27  ;;  %v4060_v30 = vld [vmem:[#allocation11 + $0xb0] sm:$0xf]  ;;  %v4161_v27 = vld [vmem:[#allocation11 + $0xb4] sm:$0xf0]  ;;  %v6549_v54 = vpop.f32.mrf.mxu2  ;;  %v3998_v17 = vld [vmem:[#allocation11 + $0x38] sm:$0xf0]  ;;  %vm2455_vm1 = vweird.f32 %v6515_v26 }
 0x300   : > { %8024 = vst [vmem:[#allocation36_spill] sm:$0xff] %v6519_v20  ;;  %v1236_v2 = vsub.f32 1.5, %v1235_v7  ;;  %v2449_v19 = vmul.f32 %v6515_v26, %v6479_v35  ;;  %v1303_v8 = vmul.f32 %v6484_v24, %v8027_v43  ;;  %v2242_v58 = vmul.f32 %v6519_v20, %v6519_v20  ;;  %v3988_v7 = vld [vmem:[#allocation11 + $0x20] sm:$0xf]  ;;  %v4143_v40 = vld [vmem:[#allocation11 + $0x24] sm:$0xf0]  ;;  %vm6596_vm3 = vmor %vm2454_vm2, %vm2455_vm1 }
 0x301   : > { %8025 = vst [vmem:[#allocation33_spill] sm:$0xff] %v6522_v55  ;;  %v6538_v52 = vadd.f32 1e-05, %v2385_v21  ;;  %v2243_v31 = vmul.f32 %v6522_v55, %v6522_v55  ;;  %3381 = vmatpush.bf16.msrb.mxu2 %v4009_v36  ;;  %v6545_v24 = vadd.f32 %v6405_v1, %v1724_v13  ;;  %v4144_v21 = vld [vmem:[#allocation11 + $0x34] sm:$0xf]  ;;  %v6552_v0 = vadd.f32 %v6407_v22, %v1902_v62  ;;  %v8031_v55 = vld [vmem:[#allocation28_spill] sm:$0xff] }
 0x302   : > { %8026 = vst [vmem:[#allocation30_spill] sm:$0xff] %v6525_v10  ;;  %3203 = vmatpush.bf16.msrb.mxu0 %v4005_v12  ;;  %v1237_v14 = vmul.f32 %v6486_v51, %v1236_v2  ;;  %v2450_v15 = vmul.f32 %v6515_v26, %v2449_v19  ;;  %3292 = vmatpush.bf16.msrb.mxu1 %v4069_v28  ;;  %v1730_v28 = vpop.f32.mrf.mxu0  ;;  %v4052_v22 = vld [vmem:[#allocation11 + $0xa0] sm:$0xf]  ;;  %v4159_v62 = vld [vmem:[#allocation11 + $0xa4] sm:$0xf0]  ;;  %v8030_v19 = vld [vmem:[#allocation21_spill] sm:$0xff] }
 0x303   : > { %3470 = vmatpush.bf16.msrb.mxu3 %v4073_v60  ;;  %4344 = vrsqrt.f32 %v6538_v52  ;;  %v2077_v1 = vadd.f32 %v6504_v45, %v6525_v10  ;;  %v1371_v13 = vmul.f32 %v5207_v47, %v1302_v56  ;;  %v2315_v60 = vadd.f32 %v2243_v31, %v2242_v58  ;;  %v4142_v10 = vld [vmem:[#allocation11 + $0x24] sm:$0xf]  ;;  %v4054_v58 = vld [vmem:[#allocation11 + $0xa8] sm:$0xf0] }
 0x304   : > { %v1241_v12 = vsel %vm6534_vm0, %v6486_v51, %v1237_v14  ;;  %v2451_v36 = vmul.f32 0.5, %v2450_v15  ;;  %v3997_v2 = vor.u32 %v4145_v41, %v3996_v9  ;;  %v1372_v45 = vmul.f32 %v5224_v46, %v1303_v8  ;;  %v4158_v15 = vld [vmem:[#allocation11 + $0xa4] sm:$0xf]  ;;  %v2064_v9 = vpop.xlane.xlu0 %2063  ;;  %v6566_v8 = vpop.f32.mrf.mxu3 }
 0x305   : > { %v1304_v43 = vmul.f32 %v1241_v12, %v8030_v19  ;;  %v1305_v20 = vmul.f32 %v1241_v12, %v8031_v55  ;;  %v4061_v56 = vor.u32 %v4161_v27, %v4060_v30  ;;  %2316 = vadd.xlane.f32.xlu2 %v2315_v60  ;;  %v4001_v49 = vor.u32 %v4144_v21, %v3998_v17  ;;  %v3980_v12 = vld [vmem:[#allocation11 + $0x10] sm:$0xf]  ;;  %v4140_v19 = vld [vmem:[#allocation11 + $0x14] sm:$0xf] }
 0x306   : > { %v2452_v38 = vsub.f32 1.5, %v2451_v36  ;;  %3204 = vmatpush.bf16.msrb.mxu0 %v3997_v2  ;;  %v4065_v51 = vor.u32 %v4160_v53, %v4062_v6  ;;  %v3989_v14 = vor.u32 %v4143_v40, %v3988_v7  ;;  %v4053_v55 = vor.u32 %v4159_v62, %v4052_v22  ;;  %v4141_v36 = vld [vmem:[#allocation11 + $0x14] sm:$0xf0]  ;;  %v4044_v60 = vld [vmem:[#allocation11 + $0x90] sm:$0xf] }
 0x307   : > { %2078 = vadd.xlane.f32.xlu0 %v2077_v1  ;;  %v1373_v41 = vmul.f32 %v5207_v47, %v1304_v43  ;;  %v1374_v31 = vmul.f32 %v5224_v46, %v1305_v20  ;;  %3293 = vmatpush.bf16.msrb.mxu1 %v4061_v56  ;;  %v2138_v30 = vmul.f32 %v2064_v9, %v4987_v33  ;;  %v6576_v1 = vpop.f32.mrf.mxu1  ;;  %v4157_v62 = vld [vmem:[#allocation11 + $0x94] sm:$0xf0]  ;;  %v3982_v43 = vld [vmem:[#allocation11 + $0x18] sm:$0xf0]  ;;  %v6601_v35 = vpop.f32.mrf.mxu2  ;;  %vm2464_vm5 = vweird.f32 %v6538_v52 }
 0x308   : > { %3382 = vmatpush.bf16.msrb.mxu2 %v4001_v49  ;;  %3471 = vmatpush.bf16.msrb.mxu3 %v4065_v51  ;;  %v2080_v27 = vadd.f32 %v6552_v0, %v6545_v24  ;;  %v3993_v21 = vor.u32 %v4142_v10, %v3990_v25  ;;  %v2296_v53 = vpop.xlane.xlu1 %2295  ;;  %v4057_v20 = vor.u32 %v4158_v15, %v4054_v58  ;;  %v4046_v56 = vld [vmem:[#allocation11 + $0x98] sm:$0xf0]  ;;  %v3972_v15 = vld [vmem:[#allocation11] sm:$0xf]  ;;  %v4139_v58 = vld [vmem:[#allocation11 + $0x4] sm:$0xf0] }
 0x309   : > { %v6571_v17 = vpop.eup %4344  ;;  %v1442_v47 = vadd.f32 %v5222_v3, %v1373_v41  ;;  %v1443_v46 = vadd.f32 %v5231_v63, %v1374_v31  ;;  %v2453_v6 = vmul.f32 %v6515_v26, %v2452_v38  ;;  %v2386_v40 = vmul.f32 %v2296_v53, %v4987_v33  ;;  %v6613_v9 = vld [vmem:[%s7799_s5] sm:$0x3] }
 0x30a   : > { %v2459_v7 = vmul.f32 %v6571_v17, %v6538_v52  ;;  %v1440_v25 = vadd.f32 %v5222_v3, %v1371_v13  ;;  %v2299_v10 = vpop.xlane.xlu2 %2298  ;;  %3205 = vmatpush.bf16.msrb.mxu0 %v3989_v14  ;;  %v6585_v2 = vsub.f32 %v6287_v11, %v2138_v30  ;;  %v6588_v22 = vsub.f32 %v6273_v16, %v2138_v30  ;;  %v4036_v30 = vld [vmem:[#allocation11 + $0x80] sm:$0xf] }
 0x30b   : > { %v1441_v38 = vadd.f32 %v5231_v63, %v1372_v45  ;;  %3294 = vmatpush.bf16.msrb.mxu1 %v4053_v55  ;;  %v6592_v3 = vadd.f32 %v1730_v28, %v5682_v44  ;;  %v6603_v16 = vadd.f32 1e-05, %v2386_v40  ;;  %v4156_v45 = vld [vmem:[#allocation11 + $0x94] sm:$0xf]  ;;  %v1909_v28 = vadd.f32 %v6549_v54, %v5679_v57  ;;  %v6620_v54 = vpop.f32.mrf.mxu0 }
 0x30c   : > { %v2460_v11 = vmul.f32 %v6571_v17, %v2459_v7  ;;  %v1474_v63 = vpack.c.bf16 %v1442_v47, %v1440_v25  ;;  %3383 = vmatpush.bf16.msrb.mxu2 %v3993_v21  ;;  %3472 = vmatpush.bf16.msrb.mxu3 %v4057_v20  ;;  %v2387_v51 = vmul.f32 %v2299_v10, %v4987_v33  ;;  %v4155_v21 = vld [vmem:[#allocation11 + $0x84] sm:$0xf0]  ;;  %vm2465_vm4 = vweird.f32 %v6571_v17  ;;  %v3974_v20 = vld [vmem:[#allocation11 + $0x8] sm:$0xf0]  ;;  %v4154_v10 = vld [vmem:[#allocation11 + $0x84] sm:$0xf] }
 0x30d   : > { %v1475_v49 = vpack.c.bf16 %v1443_v46, %v1441_v38  ;;  %v2244_v14 = vmul.f32 %v6585_v2, %v6585_v2  ;;  %v6618_v41 = vsel %vm6596_vm3, %v6515_v26, %v2453_v6  ;;  %4346 = vrsqrt.f32 %v6603_v16  ;;  %v4138_v46 = vld [vmem:[#allocation11 + $0x4] sm:$0xf]  ;;  %v4038_v38 = vld [vmem:[#allocation11 + $0x88] sm:$0xf0]  ;;  %vm2466_vm6 = vmor %vm2464_vm5, %vm2465_vm4 }
 0x30e   : > { %v2461_v31 = vmul.f32 0.5, %v2460_v11  ;;  %1757 = vmatmul.bf16.gmra.mxu0 %v1474_v63  ;;  %1935 = vmatmul.bf16.gmra.mxu2 %v1474_v63  ;;  %v2245_v55 = vmul.f32 %v6588_v22, %v6588_v22  ;;  %v6626_v53 = vadd.f32 1e-05, %v2387_v51  ;;  %v3981_v26 = vor.u32 %v4141_v36, %v3980_v12 }
 0x30f   : > { %1846 = vmatmul.bf16.gmra.mxu1 %v1475_v49  ;;  %2024 = vmatmul.bf16.gmra.mxu3 %v1475_v49  ;;  %v4045_v47 = vor.u32 %v4157_v62, %v4044_v60  ;;  %v3985_v40 = vor.u32 %v4140_v19, %v3982_v43  ;;  %v4049_v25 = vor.u32 %v4156_v45, %v4046_v56  ;;  %v2000_v60 = vpop.f32.mrf.mxu3  ;;  %v1822_v49 = vpop.f32.mrf.mxu1  ;;  %vm2474_vm8 = vweird.f32 %v6603_v16 }
 0x310   : > { %v2462_v6 = vsub.f32 1.5, %v2461_v31  ;;  %2081 = vadd.xlane.f32.xlu0 %v2080_v27  ;;  %v2318_v7 = vadd.f32 %v2245_v55, %v2244_v14  ;;  %v2768_v13 = vmul.f32 %v6618_v41, %v6141_v32  ;;  %4348 = vrsqrt.f32 %v6626_v53  ;;  %3206 = vmatpush.bf16.msrb.mxu0 %v3981_v26 }
 0x311   : > { %v2067_v11 = vpop.xlane.xlu1 %2066  ;;  %3295 = vmatpush.bf16.msrb.mxu1 %v4045_v47  ;;  %v3973_v12 = vor.u32 %v4139_v58, %v3972_v15  ;;  %3384 = vmatpush.bf16.msrb.mxu2 %v3985_v40  ;;  %v4037_v19 = vor.u32 %v4155_v21, %v4036_v30  ;;  %v6637_v32 = vperm.slane %v6613_v9, 0  ;;  %v3977_v52 = vor.u32 %v4138_v46, %v3974_v20  ;;  %v2031_v15 = vld [vmem:[#allocation10] sm:$0x3] }
 0x312   : > { %v2463_v36 = vmul.f32 %v6571_v17, %v2462_v6  ;;  %v2139_v27 = vmul.f32 %v2067_v11, %v4987_v33  ;;  %2319 = vadd.xlane.f32.xlu2 %v2318_v7  ;;  %v6634_v62 = vpop.xlane.xlu2 %2301  ;;  %3473 = vmatpush.bf16.msrb.mxu3 %v4049_v25  ;;  %v4041_v43 = vor.u32 %v4154_v10, %v4038_v38  ;;  %vm2484_vm11 = vweird.f32 %v6626_v53 }
 0x313   : > { %v6641_v63 = vpop.eup %4346  ;;  %v6644_v45 = vadd.f32 %v6566_v8, %v1909_v28  ;;  %v2837_v8 = vmul.f32 %v6637_v32, %v2768_v13  ;;  %v6661_v28 = vpop.f32.mrf.mxu2  ;;  %v1912_v55 = vadd.f32 %v6601_v35, %v5679_v57  ;;  %v1734_v26 = vadd.f32 %v6620_v54, %v5682_v44 }
 0x314   : > { %v2467_v56 = vsel %vm2466_vm6, %v6571_v17, %v2463_v36  ;;  %v6648_v51 = vsub.f32 %v6333_v37, %v2139_v27  ;;  %v6651_v14 = vsub.f32 %v6324_v4, %v2139_v27  ;;  %v2469_v31 = vmul.f32 %v6641_v63, %v6603_v16  ;;  %3207 = vmatpush.bf16.msrb.mxu0 %v3973_v12  ;;  %v1735_v47 = vpop.f32.mrf.mxu0 }
 0x315   : > { %v2770_v58 = vmul.f32 %v2467_v56, %v6205_v61  ;;  %3296 = vmatpush.bf16.msrb.mxu1 %v4037_v19  ;;  %v6659_v17 = vadd.f32 %v6576_v1, %v6592_v3  ;;  %3385 = vmatpush.bf16.msrb.mxu2 %v3977_v52  ;;  %v6671_v1 = vperm.slane %v2031_v15, 0  ;;  %v2769_v3 = vmul.f32 %v6618_v41, %v6145_v50 }
 0x316   : > { %v2246_v4 = vmul.f32 %v6648_v51, %v6648_v51  ;;  %v2247_v37 = vmul.f32 %v6651_v14, %v6651_v14  ;;  %v4349_v61 = vpop.eup %4348  ;;  %v2470_v30 = vmul.f32 %v6641_v63, %v2469_v31  ;;  %3474 = vmatpush.bf16.msrb.mxu3 %v4041_v43  ;;  %v2771_v35 = vmul.f32 %v2467_v56, %v6208_v23 }
 0x317   : > { %v2839_v21 = vmul.f32 %v6637_v32, %v2770_v58  ;;  %v2479_v46 = vmul.f32 %v4349_v61, %v6626_v53  ;;  %v2089_v20 = vadd.f32 %v6644_v45, %v6659_v17  ;;  %v2906_v25 = vadd.f32 %v6671_v1, %v2837_v8  ;;  %v2002_v12 = vpop.f32.mrf.mxu3  ;;  %v1824_v58 = vpop.f32.mrf.mxu1 }
 0x318   : > { %v2471_v6 = vmul.f32 0.5, %v2470_v30  ;;  %v2321_v40 = vadd.f32 %v2247_v37, %v2246_v4  ;;  %v6685_v41 = vperm.slane %v6613_v9, 1  ;;  %v6687_v13 = vadd.f32 %v2000_v60, %v1912_v55 }
 0x319   : > { %v2070_v7 = vpop.xlane.xlu1 %2069  ;;  %v2480_v10 = vmul.f32 %v4349_v61, %v2479_v46  ;;  %v2908_v50 = vadd.f32 %v6671_v1, %v2839_v21  ;;  %vm2475_vm7 = vweird.f32 %v6641_v63  ;;  %v6694_v52 = vperm.slane %v2031_v15, 1 }
 0x31a   : > { %v2140_v38 = vmul.f32 %v2070_v7, %v4987_v33  ;;  %2090 = vadd.xlane.f32.xlu2 %v2089_v20  ;;  %v2073_v54 = vpop.xlane.xlu2 %2072  ;;  %v2472_v11 = vsub.f32 1.5, %v2471_v6  ;;  %2322 = vadd.xlane.f32.xlu0 %v2321_v40  ;;  %v2838_v60 = vmul.f32 %v6685_v41, %v2769_v3  ;;  %v2840_v56 = vmul.f32 %v6685_v41, %v2771_v35  ;;  %vm2476_vm10 = vmor %vm2474_vm8, %vm2475_vm7 }
 0x31b   : > { %v2141_v23 = vmul.f32 %v2073_v54, %v4987_v33  ;;  %v2481_v36 = vmul.f32 0.5, %v2480_v10  ;;  %v2970_v19 = vpack.c.bf16 %v2908_v50, %v2906_v25  ;;  %vm2485_vm9 = vweird.f32 %v4349_v61  ;;  %v1916_v4 = vpop.f32.mrf.mxu2 }
 0x31c   : > { %v6692_v27 = vsub.f32 %v6354_v29, %v2140_v38  ;;  %v2473_v9 = vmul.f32 %v6641_v63, %v2472_v11  ;;  %v6698_v43 = vsub.f32 %v6349_v42, %v2140_v38  ;;  %v6703_v29 = vadd.f32 %v1822_v49, %v1734_v26  ;;  %vm2486_vm12 = vmor %vm2484_vm11, %vm2485_vm9  ;;  %v1738_v21 = vpop.f32.mrf.mxu0 }
 0x31d   : > { %v2482_v31 = vsub.f32 1.5, %v2481_v36  ;;  %v6709_v42 = vsub.f32 %v6363_v39, %v2141_v23  ;;  %v2907_v37 = vadd.f32 %v6694_v52, %v2838_v60  ;;  %v2909_v49 = vadd.f32 %v6694_v52, %v2840_v56 }
 0x31e   : > { %8034 = vst [vmem:[#allocation34_spill] sm:$0xff] %v6692_v27  ;;  %3208 = vmatmul.bf16.vlgmr.msrb.gmra.mxu0 %v2970_v19  ;;  %3386 = vmatmul.bf16.vlgmr.msrb.gmra.mxu2 %v2970_v19  ;;  %v2248_v15 = vmul.f32 %v6692_v27, %v6692_v27  ;;  %v2477_v16 = vsel %vm2476_vm10, %v6641_v63, %v2473_v9 }
 0x31f   : > { %8035 = vst [vmem:[#allocation32_spill] sm:$0xff] %v6698_v43  ;;  %v2483_v8 = vmul.f32 %v4349_v61, %v2482_v31  ;;  %v6717_v55 = vsub.f32 %v6352_v59, %v2141_v23  ;;  %v2249_v53 = vmul.f32 %v6698_v43, %v6698_v43  ;;  %v2092_v39 = vadd.f32 %v6687_v13, %v6703_v29  ;;  %v1827_v11 = vpop.f32.mrf.mxu1  ;;  %v8055_v43 = vld [vmem:[#allocation30_spill] sm:$0xff] }
 0x320   : > { %v2971_v3 = vpack.c.bf16 %v2909_v49, %v2907_v37  ;;  %v2772_v26 = vmul.f32 %v2477_v16, %v6264_v48  ;;  %v1914_v46 = vadd.f32 %v6661_v28, %v5679_v57  ;;  %v1736_v7 = vadd.f32 %v1735_v47, %v5682_v44  ;;  %v8037_v28 = vld [vmem:[#allocation37_spill] sm:$0xff] }
 0x321   : > { %8036 = vst [vmem:[#allocation35_spill] sm:$0xff] %v6717_v55  ;;  %v2487_v30 = vsel %vm2486_vm12, %v4349_v61, %v2483_v8  ;;  %v2324_v35 = vadd.f32 %v2249_v53, %v2248_v15  ;;  %v2250_v61 = vmul.f32 %v6709_v42, %v6709_v42  ;;  %v2251_v48 = vmul.f32 %v6717_v55, %v6717_v55 }
 0x322   : > { %v2076_v63 = vpop.xlane.xlu2 %2075  ;;  %v2774_v20 = vmul.f32 %v2487_v30, %v6280_v5  ;;  %2093 = vadd.xlane.f32.xlu2 %v2092_v39  ;;  %v2775_v59 = vmul.f32 %v2487_v30, %v6283_v18  ;;  %3297 = vmatmul.bf16.vlgmr.msrb.gmra.mxu1 %v2971_v3  ;;  %v2773_v40 = vmul.f32 %v2477_v16, %v8037_v28  ;;  %v2005_v5 = vpop.f32.mrf.mxu3  ;;  %v8039_v18 = vld [vmem:[#allocation19_spill] sm:$0xff] }
 0x323   : > { %3475 = vmatmul.bf16.vlgmr.msrb.gmra.mxu3 %v2971_v3  ;;  %v2142_v6 = vmul.f32 %v2076_v63, %v4987_v33  ;;  %2325 = vadd.xlane.f32.xlu0 %v2324_v35  ;;  %v6741_v38 = vadd.f32 %v2002_v12, %v1914_v46  ;;  %v2327_v50 = vadd.f32 %v2251_v48, %v2250_v61  ;;  %v1918_v9 = vpop.f32.mrf.mxu2 }
 0x324   : > { %v2841_v54 = vmul.f32 %v6637_v32, %v2772_v26  ;;  %v2843_v47 = vmul.f32 %v6637_v32, %v2774_v20  ;;  %v2844_v23 = vmul.f32 %v6685_v41, %v2775_v59  ;;  %v6746_v36 = vadd.f32 %v1824_v58, %v1736_v7  ;;  %v1740_v15 = vpop.f32.mrf.mxu0 }
 0x325   : > { %v6736_v25 = vsub.f32 %v6384_v34, %v2142_v6  ;;  %v6739_v10 = vsub.f32 %v8039_v18, %v2142_v6  ;;  %2328 = vadd.xlane.f32.xlu1 %v2327_v50  ;;  %v2842_v56 = vmul.f32 %v6685_v41, %v2773_v40  ;;  %v1917_v31 = vadd.f32 %v1916_v4, %v5679_v57 }
 0x326   : > { %v2910_v12 = vadd.f32 %v6671_v1, %v2841_v54  ;;  %v2912_v60 = vadd.f32 %v6671_v1, %v2843_v47  ;;  %v2095_v58 = vadd.f32 %v6741_v38, %v6746_v36  ;;  %v2913_v8 = vadd.f32 %v6694_v52, %v2844_v23  ;;  %v2311_v54 = vpop.xlane.xlu1 %2310 }
 0x327   : > { %8038 = vst [vmem:[#allocation21_spill] sm:$0xff] %v6736_v25  ;;  %v2252_v34 = vmul.f32 %v6736_v25, %v6736_v25  ;;  %v2253_v19 = vmul.f32 %v6739_v10, %v6739_v10  ;;  %v1739_v37 = vadd.f32 %v1738_v21, %v5682_v44  ;;  %v2911_v53 = vadd.f32 %v6694_v52, %v2842_v56  ;;  %v1829_v46 = vpop.f32.mrf.mxu1 }
 0x328   : > { %8040 = vst [vmem:[#allocation28_spill] sm:$0xff] %v6739_v10  ;;  %v2972_v16 = vpack.c.bf16 %v2912_v60, %v2910_v12  ;;  %v6761_v39 = vadd.f32 %v2005_v5, %v1917_v31  ;;  %v1919_v30 = vadd.f32 %v1918_v9, %v5679_v57  ;;  %v1741_v26 = vadd.f32 %v1740_v15, %v5682_v44 }
 0x329   : > { %v2330_v49 = vadd.f32 %v2253_v19, %v2252_v34  ;;  %v2973_v3 = vpack.c.bf16 %v2913_v8, %v2911_v53  ;;  %v6764_v63 = vadd.f32 %v1827_v11, %v1739_v37  ;;  %v2388_v11 = vmul.f32 %v6634_v62, %v4987_v33  ;;  %v8043_v37 = vld [vmem:[#allocation38_spill] sm:$0xff] }
 0x32a   : > { %v2007_v4 = vpop.f32.mrf.mxu3  ;;  %v6771_v59 = vadd.f32 %v1829_v46, %v1741_v26 }
 0x32b   : > { %2096 = vadd.xlane.f32.xlu0 %v2095_v58  ;;  %v6767_v20 = vadd.f32 %v2007_v4, %v1919_v30  ;;  %v2098_v21 = vadd.f32 %v6761_v39, %v6764_v63  ;;  %v1921_v35 = vpop.f32.mrf.mxu2  ;;  %v2420_v47 = vadd.f32 1e-05, %v2388_v11  ;;  %v2391_v58 = vmul.f32 %v2311_v54, %v4987_v33  ;;  %v8045_v54 = vld [vmem:[#allocation42_spill] sm:$0xff] }
 0x32c   : > { %v1743_v6 = vpop.f32.mrf.mxu0  ;;  %v1922_v61 = vadd.f32 %v1921_v35, %v5679_v57 }
 0x32d   : > { %2331 = vadd.xlane.f32.xlu1 %v2330_v49  ;;  %v2101_v7 = vadd.f32 %v6767_v20, %v6771_v59  ;;  %v1744_v48 = vadd.f32 %v1743_v6, %v5682_v44  ;;  %4350 = vrsqrt.f32 %v2420_v47  ;;  %vm2494_vm14 = vweird.f32 %v2420_v47 }
 0x32e   : > { %3213 = vmatmul.bf16.gmra.mxu0 %v2972_v16  ;;  %3391 = vmatmul.bf16.gmra.mxu2 %v2972_v16  ;;  %v8041_v16 = vld [vmem:[#allocation39_spill] sm:$0xff] }
 0x32f   : > { %v1832_v5 = vpop.f32.mrf.mxu1 }
 0x330   : > { %v6779_v18 = vadd.f32 %v1832_v5, %v1744_v48 }
 0x332   : > { %3302 = vmatmul.bf16.gmra.mxu1 %v2973_v3  ;;  %v2010_v28 = vpop.f32.mrf.mxu3 }
 0x333   : > { %3480 = vmatmul.bf16.gmra.mxu3 %v2973_v3  ;;  %2099 = vadd.xlane.f32.xlu0 %v2098_v21  ;;  %v6777_v40 = vadd.f32 %v2010_v28, %v1922_v61  ;;  %v6785_v23 = vpop.f32.mrf.mxu2  ;;  %v4351_v60 = vpop.eup %4350  ;;  %v6809_v3 = vadd.f32 1e-05, %v2391_v58 }
 0x334   : > { %v6787_v19 = vpop.f32.mrf.mxu0  ;;  %v2489_v62 = vmul.f32 %v4351_v60, %v2420_v47  ;;  %vm2495_vm13 = vweird.f32 %v4351_v60  ;;  %v8051_v47 = vld [vmem:[#allocation24_spill] sm:$0xff] }
 0x335   : > { %2102 = vadd.xlane.f32.xlu1 %v2101_v7  ;;  %v2104_v50 = vadd.f32 %v6777_v40, %v6779_v18  ;;  %4352 = vrsqrt.f32 %v6809_v3  ;;  %vm2496_vm15 = vmor %vm2494_vm14, %vm2495_vm13  ;;  %vm2524_vm5 = vweird.f32 %v6809_v3 }
 0x336   : > { %v2490_v46 = vmul.f32 %v4351_v60, %v2489_v62 }
 0x337   : > { %v6789_v9 = vpop.f32.mrf.mxu1 }
 0x33a   : > { %v6791_v12 = vpop.f32.mrf.mxu3 }
 0x33b   : > { %v6795_v15 = vpop.f32.mrf.mxu2 }
 0x33c   : > { %v6803_v53 = vpop.f32.mrf.mxu0 }
 0x33d   : > { %2105 = vadd.xlane.f32.xlu1 %v2104_v50  ;;  %v2491_v50 = vmul.f32 0.5, %v2490_v46  ;;  %v6832_v46 = vpop.eup %4352 }
 0x33e   : > { %vm2525_vm3 = vweird.f32 %v6832_v46 }
 0x33f   : > { %v6811_v21 = vpop.f32.mrf.mxu1  ;;  %vm2526_vm7 = vmor %vm2524_vm5, %vm2525_vm3 }
 0x342   : > { %v6814_v61 = vpop.f32.mrf.mxu3 }
 0x343   : > { %v1928_v58 = vpop.f32.mrf.mxu2 }
 0x35a   : > { %v2314_v34 = vpop.xlane.xlu1 %2313 }
 0x35b   : > { %v2392_v5 = vmul.f32 %v2314_v34, %v4987_v33  ;;  %v1929_v34 = vadd.f32 %v1928_v58, %v5679_v57 }
 0x362   : > { %v2085_v56 = vpop.xlane.xlu1 %2084 }
 0x363   : > { %v2145_v31 = vmul.f32 %v2085_v56, %v4987_v33  ;;  %v8047_v56 = vld [vmem:[#allocation23_spill] sm:$0xff] }
 0x365   : > { %v6798_v8 = vsub.f32 %v8041_v16, %v2145_v31  ;;  %v6801_v49 = vsub.f32 %v8043_v37, %v2145_v31  ;;  %v2305_v26 = vpop.xlane.xlu0 %2304  ;;  %v1750_v37 = vpop.f32.mrf.mxu0 }
 0x366   : > { %v2389_v35 = vmul.f32 %v2305_v26, %v4987_v33 }
 0x367   : > { %8042 = vst [vmem:[#allocation37_spill] sm:$0xff] %v6798_v8  ;;  %v2258_v30 = vmul.f32 %v6798_v8, %v6798_v8  ;;  %v2259_v4 = vmul.f32 %v6801_v49, %v6801_v49 }
 0x368   : > { %8044 = vst [vmem:[#allocation19_spill] sm:$0xff] %v6801_v49  ;;  %v2421_v48 = vadd.f32 1e-05, %v2389_v35 }
 0x369   : > { %v2339_v6 = vadd.f32 %v2259_v4, %v2258_v30  ;;  %v6829_v30 = vadd.f32 1e-05, %v2392_v5  ;;  %v2492_v4 = vsub.f32 1.5, %v2491_v50  ;;  %v2519_v5 = vmul.f32 %v6832_v46, %v6809_v3 }
 0x36a   : > { %v2088_v7 = vpop.xlane.xlu1 %2087  ;;  %4354 = vrsqrt.f32 %v2421_v48  ;;  %vm2504_vm1 = vweird.f32 %v2421_v48 }
 0x36b   : > { %v2146_v28 = vmul.f32 %v2088_v7, %v4987_v33  ;;  %2340 = vadd.xlane.f32.xlu0 %v2339_v6  ;;  %v1751_v6 = vadd.f32 %v1750_v37, %v5682_v44  ;;  %v1839_v7 = vpop.f32.mrf.mxu1  ;;  %4356 = vrsqrt.f32 %v6829_v30  ;;  %vm2534_vm10 = vweird.f32 %v6829_v30 }
 0x36d   : > { %v6820_v11 = vsub.f32 %v8045_v54, %v2146_v28  ;;  %v6823_v31 = vsub.f32 %v8047_v56, %v2146_v28  ;;  %v2017_v28 = vpop.f32.mrf.mxu3  ;;  %v2493_v56 = vmul.f32 %v4351_v60, %v2492_v4  ;;  %v2520_v4 = vmul.f32 %v6832_v46, %v2519_v5 }
 0x36e   : > { %v6838_v50 = vadd.f32 %v2017_v28, %v1929_v34 }
 0x36f   : > { %8046 = vst [vmem:[#allocation39_spill] sm:$0xff] %v6820_v11  ;;  %v2260_v62 = vmul.f32 %v6820_v11, %v6820_v11  ;;  %v2261_v16 = vmul.f32 %v6823_v31, %v6823_v31  ;;  %v2497_v11 = vsel %vm2496_vm15, %v4351_v60, %v2493_v56  ;;  %v2521_v5 = vmul.f32 0.5, %v2520_v4 }
 0x370   : > { %8048 = vst [vmem:[#allocation38_spill] sm:$0xff] %v6823_v31  ;;  %v4355_v35 = vpop.eup %4354  ;;  %v6841_v31 = vadd.f32 %v1839_v7, %v1751_v6  ;;  %v2776_v6 = vmul.f32 %v2497_v11, %v8051_v47  ;;  %v8052_v7 = vld [vmem:[#allocation25_spill] sm:$0xff] }
 0x371   : > { %v2342_v26 = vadd.f32 %v2261_v16, %v2260_v62  ;;  %v2499_v54 = vmul.f32 %v4355_v35, %v2421_v48  ;;  %8049 = vst [vmem:[#allocation42_spill] sm:$0xff] %v6838_v50  ;;  %v6848_v8 = vpop.eup %4356  ;;  %vm2505_vm0 = vweird.f32 %v4355_v35 }
 0x372   : > { %v2308_v58 = vpop.xlane.xlu0 %2307  ;;  %8050 = vst [vmem:[#allocation23_spill] sm:$0xff] %v6841_v31  ;;  %v2113_v49 = vadd.f32 %v6838_v50, %v6841_v31  ;;  %vm2506_vm2 = vmor %vm2504_vm1, %vm2505_vm0  ;;  %v8053_v50 = vld [vmem:[#allocation40_spill] sm:$0xff]  ;;  %vm2535_vm9 = vweird.f32 %v6848_v8 }
 0x373   : > { %2343 = vadd.xlane.f32.xlu0 %v2342_v26  ;;  %v2500_v62 = vmul.f32 %v4355_v35, %v2499_v54  ;;  %v2390_v16 = vmul.f32 %v2308_v58, %v4987_v33  ;;  %v2777_v54 = vmul.f32 %v2497_v11, %v8052_v7  ;;  %vm2536_vm11 = vmor %vm2534_vm10, %vm2535_vm9 }
 0x375   : > { %v2501_v37 = vmul.f32 0.5, %v2500_v62  ;;  %v6843_v26 = vadd.f32 1e-05, %v2390_v16  ;;  %v1753_v28 = vpop.f32.mrf.mxu0  ;;  %v2529_v62 = vmul.f32 %v6848_v8, %v6829_v30 }
 0x376   : > { %v1842_v60 = vpop.f32.mrf.mxu1  ;;  %v1754_v25 = vadd.f32 %v1753_v28, %v5682_v44  ;;  %v2846_v28 = vmul.f32 %v6685_v41, %v2777_v54 }
 0x377   : > { %v2502_v34 = vsub.f32 1.5, %v2501_v37  ;;  %4358 = vrsqrt.f32 %v6843_v26  ;;  %vm2514_vm6 = vweird.f32 %v6843_v26 }
 0x378   : > { %v2317_v56 = vpop.xlane.xlu2 %2316 }
 0x379   : > { %v2503_v58 = vmul.f32 %v4355_v35, %v2502_v34  ;;  %v2393_v16 = vmul.f32 %v2317_v56, %v4987_v33  ;;  %v8054_v34 = vld [vmem:[#allocation31_spill] sm:$0xff] }
 0x37a   : > { %v2079_v37 = vpop.xlane.xlu0 %2078  ;;  %v8057_v56 = vld [vmem:[#allocation43_spill] sm:$0xff] }
 0x37b   : > { %2114 = vadd.xlane.f32.xlu0 %v2113_v49  ;;  %v2507_v10 = vsel %vm2506_vm2, %v4355_v35, %v2503_v58  ;;  %v2143_v49 = vmul.f32 %v2079_v37, %v4987_v33  ;;  %v1931_v47 = vpop.f32.mrf.mxu2  ;;  %v6860_v7 = vadd.f32 1e-05, %v2393_v16  ;;  %v2845_v35 = vmul.f32 %v6637_v32, %v2776_v6 }
 0x37c   : > { %v2778_v11 = vmul.f32 %v2507_v10, %v8053_v50  ;;  %v2779_v48 = vmul.f32 %v2507_v10, %v8054_v34  ;;  %v1932_v4 = vadd.f32 %v1931_v47, %v5679_v57  ;;  %v2522_v58 = vsub.f32 1.5, %v2521_v5  ;;  %v2020_v16 = vpop.f32.mrf.mxu3 }
 0x37d   : > { %v4359_v31 = vpop.eup %4358  ;;  %v6864_v27 = vsub.f32 %v8055_v43, %v2143_v49  ;;  %v6867_v55 = vsub.f32 %v8057_v56, %v2143_v49  ;;  %v2530_v50 = vmul.f32 %v6848_v8, %v2529_v62  ;;  %4360 = vrsqrt.f32 %v6860_v7  ;;  %v6884_v62 = vpop.f32.mrf.mxu0 }
 0x37e   : > { %v2509_v10 = vmul.f32 %v4359_v31, %v6843_v26  ;;  %v6874_v37 = vadd.f32 %v1842_v60, %v1754_v25  ;;  %v6876_v47 = vadd.f32 %v2020_v16, %v1932_v4  ;;  %v2847_v54 = vmul.f32 %v6637_v32, %v2778_v11 }
 0x37f   : > { %8056 = vst [vmem:[#allocation24_spill] sm:$0xff] %v6864_v27  ;;  %v2254_v43 = vmul.f32 %v6864_v27, %v6864_v27  ;;  %v2255_v6 = vmul.f32 %v6867_v55, %v6867_v55  ;;  %v2848_v5 = vmul.f32 %v6685_v41, %v2779_v48  ;;  %v2914_v4 = vadd.f32 %v6671_v1, %v2845_v35 }
 0x380   : > { %8058 = vst [vmem:[#allocation25_spill] sm:$0xff] %v6867_v55  ;;  %v2510_v49 = vmul.f32 %v4359_v31, %v2509_v10  ;;  %v2116_v25 = vadd.f32 %v6876_v47, %v6874_v37  ;;  %v2916_v56 = vadd.f32 %v6671_v1, %v2847_v54  ;;  %v2523_v55 = vmul.f32 %v6832_v46, %v2522_v58  ;;  %v6893_v10 = vpop.f32.mrf.mxu1 }
 0x381   : > { %8059 = vst [vmem:[#allocation40_spill] sm:$0xff] %v6874_v37  ;;  %v2333_v34 = vadd.f32 %v2255_v6, %v2254_v43  ;;  %v2917_v16 = vadd.f32 %v6694_v52, %v2848_v5  ;;  %v2531_v11 = vmul.f32 0.5, %v2530_v50  ;;  %v2915_v43 = vadd.f32 %v6694_v52, %v2846_v28 }
 0x382   : > { %8060 = vst [vmem:[#allocation31_spill] sm:$0xff] %v6876_v47  ;;  %v2511_v60 = vmul.f32 0.5, %v2510_v49  ;;  %vm2515_vm4 = vweird.f32 %v4359_v31  ;;  %v2974_v54 = vpack.c.bf16 %v2916_v56, %v2914_v4  ;;  %v2527_v3 = vsel %vm2526_vm7, %v6832_v46, %v2523_v55  ;;  %v8063_v46 = vld [vmem:[#allocation26_spill] sm:$0xff]  ;;  %v8071_v47 = vld [vmem:[#allocation36_spill] sm:$0xff] }
 0x383   : > { %v2082_v48 = vpop.xlane.xlu0 %2081  ;;  %2334 = vadd.xlane.f32.xlu2 %v2333_v34  ;;  %2117 = vadd.xlane.f32.xlu0 %v2116_v25  ;;  %v6896_v6 = vpop.eup %4360  ;;  %v2975_v5 = vpack.c.bf16 %v2917_v16, %v2915_v43  ;;  %v1746_v26 = vadd.f32 %v6787_v19, %v5682_v44  ;;  %v2532_v4 = vsub.f32 1.5, %v2531_v11  ;;  %vm2516_vm8 = vmor %vm2514_vm6, %vm2515_vm4  ;;  %v1924_v19 = vadd.f32 %v6785_v23, %v5679_v57  ;;  %v8064_v43 = vld [vmem:[#allocation27_spill] sm:$0xff] }
 0x384   : > { %v2512_v49 = vsub.f32 1.5, %v2511_v60  ;;  %v2144_v35 = vmul.f32 %v2082_v48, %v4987_v33  ;;  %v2539_v58 = vmul.f32 %v6896_v6, %v6860_v7  ;;  %3218 = vmatmul.bf16.gmra.mxu0 %v2974_v54  ;;  %v6917_v16 = vpop.f32.mrf.mxu2  ;;  %3396 = vmatmul.bf16.gmra.mxu2 %v2974_v54  ;;  %vm2545_vm12 = vweird.f32 %v6896_v6 }
 0x385   : > { %v2320_v50 = vpop.xlane.xlu2 %2319  ;;  %3307 = vmatmul.bf16.gmra.mxu1 %v2975_v5  ;;  %3485 = vmatmul.bf16.gmra.mxu3 %v2975_v5  ;;  %v8066_v5 = vld [vmem:[#allocation41_spill] sm:$0xff]  ;;  %vm2544_vm13 = vweird.f32 %v6860_v7 }
 0x386   : > { %v2513_v28 = vmul.f32 %v4359_v31, %v2512_v49  ;;  %v2394_v34 = vmul.f32 %v2320_v50, %v4987_v33  ;;  %v6907_v25 = vsub.f32 %v6545_v24, %v2144_v35  ;;  %v6910_v60 = vsub.f32 %v6552_v0, %v2144_v35  ;;  %vm2546_vm14 = vmor %vm2544_vm13, %vm2545_vm12 }
 0x387   : > { %v2540_v56 = vmul.f32 %v6896_v6, %v2539_v58  ;;  %v6929_v58 = vpop.f32.mrf.mxu3 }
 0x388   : > { %8061 = vst [vmem:[#allocation30_spill] sm:$0xff] %v6907_v25  ;;  %v2517_v24 = vsel %vm2516_vm8, %v4359_v31, %v2513_v28  ;;  %v6919_v48 = vadd.f32 1e-05, %v2394_v34  ;;  %v2256_v0 = vmul.f32 %v6907_v25, %v6907_v25  ;;  %v2257_v55 = vmul.f32 %v6910_v60, %v6910_v60  ;;  %v8065_v31 = vld [vmem:[#allocation22_spill] sm:$0xff] }
 0x389   : > { %8062 = vst [vmem:[#allocation43_spill] sm:$0xff] %v6910_v60  ;;  %v2780_v11 = vmul.f32 %v2517_v24, %v8063_v46  ;;  %v2781_v49 = vmul.f32 %v2517_v24, %v8064_v43  ;;  %v2541_v35 = vmul.f32 0.5, %v2540_v56  ;;  %v2782_v54 = vmul.f32 %v2527_v3, %v8065_v31 }
 0x38a   : > { %4362 = vrsqrt.f32 %v6919_v48  ;;  %v2336_v50 = vadd.f32 %v2257_v55, %v2256_v0  ;;  %v2783_v28 = vmul.f32 %v2527_v3, %v8066_v5  ;;  %v2533_v34 = vmul.f32 %v6848_v8, %v2532_v4 }
 0x38b   : > { %v6936_v60 = vpop.f32.mrf.mxu0  ;;  %v2542_v23 = vsub.f32 1.5, %v2541_v35  ;;  %v2849_v24 = vmul.f32 %v6637_v32, %v2780_v11  ;;  %v6940_v56 = vadd.f32 %v6789_v9, %v1746_v26  ;;  %v6943_v46 = vadd.f32 %v6791_v12, %v1924_v19 }
 0x38c   : > { %2337 = vadd.xlane.f32.xlu2 %v2336_v50  ;;  %v6946_v0 = vpop.f32.mrf.mxu1  ;;  %v2850_v4 = vmul.f32 %v6685_v41, %v2781_v49  ;;  %v1749_v55 = vadd.f32 %v6803_v53, %v5682_v44  ;;  %v1927_v43 = vadd.f32 %v6795_v15, %v5679_v57  ;;  %v2851_v12 = vmul.f32 %v6637_v32, %v2782_v54 }
 0x38d   : > { %v2091_v3 = vpop.xlane.xlu2 %2090  ;;  %v2323_v26 = vpop.xlane.xlu0 %2322  ;;  %v2537_v19 = vsel %vm2536_vm11, %v6848_v8, %v2533_v34  ;;  %v2852_v11 = vmul.f32 %v6685_v41, %v2783_v28  ;;  %v2543_v53 = vmul.f32 %v6896_v6, %v2542_v23  ;;  %v2918_v31 = vadd.f32 %v6671_v1, %v2849_v24  ;;  %v8069_v24 = vld [vmem:[#allocation29_spill] sm:$0xff] }
 0x38e   : > { %v2147_v9 = vmul.f32 %v2091_v3, %v4987_v33  ;;  %v2395_v30 = vmul.f32 %v2323_v26, %v4987_v33  ;;  %v2107_v5 = vadd.f32 %v6943_v46, %v6940_v56  ;;  %v2919_v28 = vadd.f32 %v6694_v52, %v2850_v4  ;;  %v8070_v26 = vld [vmem:[#allocation20_spill] sm:$0xff] }
 0x38f   : > { %v2920_v34 = vadd.f32 %v6671_v1, %v2851_v12  ;;  %v6985_v23 = vadd.f32 %v6814_v61, %v1927_v43  ;;  %v2784_v3 = vmul.f32 %v2537_v19, %v8069_v24  ;;  %v2547_v12 = vsel %vm2546_vm14, %v6896_v6, %v2543_v53  ;;  %v3034_v6 = vld [vmem:[%s7802_s8] sm:$0x3] }
 0x390   : > { %v6959_v49 = vpop.eup %4362  ;;  %v6963_v15 = vsub.f32 %v6659_v17, %v2147_v9  ;;  %v6966_v35 = vsub.f32 %v6644_v45, %v2147_v9  ;;  %v6971_v54 = vadd.f32 1e-05, %v2395_v30  ;;  %v2921_v9 = vadd.f32 %v6694_v52, %v2852_v11  ;;  %v8072_v11 = vld [vmem:[#allocation33_spill] sm:$0xff] }
 0x391   : > { %v2549_v8 = vmul.f32 %v6959_v49, %v6919_v48  ;;  %v6973_v50 = vpop.f32.mrf.mxu2  ;;  %v2785_v30 = vmul.f32 %v2537_v19, %v8070_v26  ;;  %v2976_v61 = vpack.c.bf16 %v2920_v34, %v2918_v31  ;;  %v2786_v37 = vmul.f32 %v2547_v12, %v8071_v47 }
 0x392   : > { %8067 = vst [vmem:[#allocation26_spill] sm:$0xff] %v6963_v15  ;;  %v2262_v45 = vmul.f32 %v6963_v15, %v6963_v15  ;;  %v2263_v17 = vmul.f32 %v6966_v35, %v6966_v35  ;;  %4364 = vrsqrt.f32 %v6971_v54  ;;  %v6991_v4 = vpop.f32.mrf.mxu3  ;;  %v2977_v24 = vpack.c.bf16 %v2921_v9, %v2919_v28 }
 0x393   : > { %8068 = vst [vmem:[#allocation27_spill] sm:$0xff] %v6966_v35  ;;  %v6993_v7 = vpop.f32.mrf.mxu0  ;;  %v2550_v43 = vmul.f32 %v6959_v49, %v2549_v8  ;;  %v7000_v15 = vadd.f32 %v6811_v21, %v1749_v55  ;;  %v2787_v53 = vmul.f32 %v2547_v12, %v8072_v11  ;;  %v2853_v55 = vmul.f32 %v6637_v32, %v2784_v3 }
 0x394   : > { %v2345_v35 = vadd.f32 %v2263_v17, %v2262_v45  ;;  %2108 = vadd.xlane.f32.xlu2 %v2107_v5  ;;  %3223 = vmatmul.bf16.gmra.mxu0 %v2976_v61  ;;  %v7003_v27 = vpop.f32.mrf.mxu1  ;;  %v2854_v47 = vmul.f32 %v6685_v41, %v2785_v30  ;;  %v1756_v17 = vadd.f32 %v6884_v62, %v5682_v44  ;;  %v7028_v9 = vperm.slane %v3034_v6, 0 }
 0x395   : > { %v2094_v25 = vpop.xlane.xlu2 %2093  ;;  %3312 = vmatmul.bf16.gmra.mxu1 %v2977_v24  ;;  %3401 = vmatmul.bf16.gmra.mxu2 %v2976_v61  ;;  %v2110_v21 = vadd.f32 %v6985_v23, %v7000_v15  ;;  %v2551_v8 = vmul.f32 0.5, %v2550_v43  ;;  %v1934_v34 = vadd.f32 %v6917_v16, %v5679_v57  ;;  %v2855_v12 = vmul.f32 %v6637_v32, %v2786_v37 }
 0x396   : > { %2346 = vadd.xlane.f32.xlu1 %v2345_v35  ;;  %v2148_v19 = vmul.f32 %v2094_v25, %v4987_v33  ;;  %v2326_v31 = vpop.xlane.xlu0 %2325  ;;  %3490 = vmatmul.bf16.gmra.mxu3 %v2977_v24  ;;  %v2922_v16 = vadd.f32 %v6671_v1, %v2853_v55  ;;  %v2923_v43 = vadd.f32 %v6694_v52, %v2854_v47  ;;  %vm2555_vm15 = vweird.f32 %v6959_v49 }
 0x397   : > { %v2396_v28 = vmul.f32 %v2326_v31, %v4987_v33  ;;  %v2552_v24 = vsub.f32 1.5, %v2551_v8  ;;  %v2856_v31 = vmul.f32 %v6685_v41, %v2787_v53  ;;  %v7049_v55 = vadd.f32 %v6929_v58, %v1934_v34 }
 0x398   : > { %v4365_v35 = vpop.eup %4364  ;;  %v7015_v25 = vsub.f32 %v6703_v29, %v2148_v19  ;;  %v7018_v5 = vsub.f32 %v6687_v13, %v2148_v19  ;;  %v2329_v62 = vpop.xlane.xlu1 %2328  ;;  %v1759_v47 = vadd.f32 %v6936_v60, %v5682_v44  ;;  %vm2554_vm1 = vweird.f32 %v6919_v48 }
 0x399   : > { %v7021_v45 = vpop.f32.mrf.mxu2  ;;  %v2559_v3 = vmul.f32 %v4365_v35, %v6971_v54  ;;  %v7030_v26 = vadd.f32 1e-05, %v2396_v28  ;;  %v2397_v11 = vmul.f32 %v2329_v62, %v4987_v33  ;;  %v7045_v28 = vadd.f32 %v6893_v10, %v1756_v17  ;;  %vm2556_vm4 = vmor %vm2554_vm1, %vm2555_vm15 }
 0x39a   : > { %8073 = vst [vmem:[#allocation22_spill] sm:$0xff] %v7018_v5  ;;  %v2264_v13 = vmul.f32 %v7015_v25, %v7015_v25  ;;  %v2265_v30 = vmul.f32 %v7018_v5, %v7018_v5  ;;  %v7040_v19 = vpop.f32.mrf.mxu3  ;;  %v2924_v5 = vadd.f32 %v6671_v1, %v2855_v12  ;;  %vm2565_vm0 = vweird.f32 %v4365_v35 }
 0x39b   : > { %v3209_v29 = vpop.f32.mrf.mxu0  ;;  %v2560_v61 = vmul.f32 %v4365_v35, %v2559_v3  ;;  %4366 = vrsqrt.f32 %v7030_v26  ;;  %v7053_v8 = vadd.f32 1e-05, %v2397_v11  ;;  %v7057_v17 = vperm.slane %v3034_v6, 1 }
 0x39c   : > { %2111 = vadd.xlane.f32.xlu2 %v2110_v21  ;;  %v3210_v3 = vadd.f32 %v3209_v29, %v7028_v9  ;;  %v2348_v21 = vadd.f32 %v2265_v30, %v2264_v13  ;;  %v2553_v29 = vmul.f32 %v6959_v49, %v2552_v24  ;;  %v2925_v13 = vadd.f32 %v6694_v52, %v2856_v31 }
 0x39d   : > { %v2561_v37 = vmul.f32 0.5, %v2560_v61  ;;  %4368 = vrsqrt.f32 %v7053_v8  ;;  %vm2564_vm2 = vweird.f32 %v6971_v54  ;;  %v1937_v6 = vadd.f32 %v6973_v50, %v5679_v57 }
 0x39e   : > { %v2097_v10 = vpop.xlane.xlu0 %2096  ;;  %2349 = vadd.xlane.f32.xlu1 %v2348_v21  ;;  %vm2566_vm3 = vmor %vm2564_vm2, %vm2565_vm0  ;;  %v2978_v48 = vpack.c.bf16 %v2924_v5, %v2922_v16  ;;  %v2119_v5 = vadd.f32 %v7049_v55, %v7045_v28  ;;  %v2979_v16 = vpack.c.bf16 %v2925_v13, %v2923_v43  ;;  %vm2584_vm6 = vweird.f32 %v7053_v8 }
 0x39f   : > { %v2562_v53 = vsub.f32 1.5, %v2561_v37  ;;  %v3298_v58 = vpop.f32.mrf.mxu1  ;;  %v2149_v34 = vmul.f32 %v2097_v10, %v4987_v33  ;;  %v4406_v37 = vld [vmem:[%s4921_s25] sm:$0xff]  ;;  %v7104_v43 = vadd.f32 %v6991_v4, %v1937_v6  ;;  %v7113_v4 = vadd.f32 %v6993_v7, %v5682_v44 }
 0x3a0   : > { %v3299_v12 = vadd.f32 %v3298_v58, %v3210_v3  ;;  %v7082_v21 = vpop.xlane.xlu1 %2331  ;;  %vm2574_vm9 = vweird.f32 %v7030_v26 }
 0x3a1   : > { %v3387_v60 = vpop.f32.mrf.mxu2  ;;  %v2563_v30 = vmul.f32 %v4365_v35, %v2562_v53  ;;  %v7065_v61 = vpop.eup %4366  ;;  %v7071_v62 = vsub.f32 %v6746_v36, %v2149_v34  ;;  %v7074_v24 = vsub.f32 %v6741_v38, %v2149_v34  ;;  %v2557_v36 = vsel %vm2556_vm4, %v6959_v49, %v2553_v29 }
 0x3a2   : > { %v2569_v31 = vmul.f32 %v7065_v61, %v7030_v26  ;;  %v3556_v3 = vadd.f32 %v4406_v37, %v3299_v12  ;;  %v3388_v50 = vadd.f32 %v3387_v60, %v7057_v17  ;;  %v7086_v38 = vadd.f32 %v6946_v0, %v1759_v47 }
 0x3a3   : > { %v3211_v11 = vpop.f32.mrf.mxu0  ;;  %v2567_v54 = vsel %vm2566_vm3, %v4365_v35, %v2563_v30  ;;  %v2266_v53 = vmul.f32 %v7071_v62, %v7071_v62  ;;  %v2267_v49 = vmul.f32 %v7074_v24, %v7074_v24  ;;  %v7100_v0 = vpop.eup %4368  ;;  %vm2575_vm7 = vweird.f32 %v7065_v61 }
 0x3a4   : > { %3620 = vst [vmem:[%s7092_s24] sm:$0xff] %v3556_v3  ;;  %v3212_v35 = vadd.f32 %v3211_v11, %v7028_v9  ;;  %3228 = vmatmul.bf16.gmra.mxu0 %v2978_v48  ;;  %v2790_v47 = vmul.f32 %v2567_v54, %v6648_v51  ;;  %v2570_v10 = vmul.f32 %v7065_v61, %v2569_v31  ;;  %vm2585_vm5 = vweird.f32 %v7100_v0  ;;  %vm2576_vm10 = vmor %vm2574_vm9, %vm2575_vm7 }
 0x3a5   : > { %3317 = vmatmul.bf16.gmra.mxu1 %v2979_v16  ;;  %3406 = vmatmul.bf16.gmra.mxu2 %v2978_v48  ;;  %v2791_v58 = vmul.f32 %v2567_v54, %v6651_v14  ;;  %v2579_v34 = vmul.f32 %v7100_v0, %v7053_v8  ;;  %v2788_v51 = vmul.f32 %v2557_v36, %v6585_v2  ;;  %v4407_v54 = vld [vmem:[%s4921_s25 + $0x8] sm:$0xff]  ;;  %vm2586_vm8 = vmor %vm2584_vm6, %vm2585_vm5  ;;  %v4410_v8 = vld [vmem:[%s4921_s25 + $0x20] sm:$0xff] }
 0x3a6   : > { %v3476_v29 = vpop.f32.mrf.mxu3  ;;  %v2100_v13 = vpop.xlane.xlu0 %2099  ;;  %2120 = vadd.xlane.f32.xlu1 %v2119_v5  ;;  %3495 = vmatmul.bf16.gmra.mxu3 %v2979_v16  ;;  %v2351_v6 = vadd.f32 %v2267_v49, %v2266_v53  ;;  %v2789_v11 = vmul.f32 %v2557_v36, %v6588_v22  ;;  %v2571_v3 = vmul.f32 0.5, %v2570_v10  ;;  %v4408_v22 = vld [vmem:[%s4921_s25 + $0x10] sm:$0xff]  ;;  %v1939_v10 = vadd.f32 %v7021_v45, %v5679_v57 }
 0x3a7   : > { %v3477_v60 = vadd.f32 %v3476_v29, %v3388_v50  ;;  %v3300_v30 = vpop.f32.mrf.mxu1  ;;  %v2150_v12 = vmul.f32 %v2100_v13, %v4987_v33  ;;  %v2580_v48 = vmul.f32 %v7100_v0, %v2579_v34  ;;  %v2859_v50 = vmul.f32 %v6637_v32, %v2790_v47 }
 0x3a8   : > { %v3301_v37 = vadd.f32 %v3300_v30, %v3212_v35  ;;  %2352 = vadd.xlane.f32.xlu2 %v2351_v6  ;;  %v2103_v53 = vpop.xlane.xlu1 %2102  ;;  %v2860_v35 = vmul.f32 %v6685_v41, %v2791_v58  ;;  %v2857_v58 = vmul.f32 %v6637_v32, %v2788_v51  ;;  %v2858_v6 = vmul.f32 %v6685_v41, %v2789_v11  ;;  %v4409_v11 = vld [vmem:[%s4921_s25 + $0x18] sm:$0xff] }
 0x3a9   : > { %v3389_v14 = vpop.f32.mrf.mxu2  ;;  %v3557_v31 = vadd.f32 %v4407_v54, %v3477_v60  ;;  %v7120_v2 = vsub.f32 %v6764_v63, %v2150_v12  ;;  %v7123_v44 = vsub.f32 %v6761_v39, %v2150_v12  ;;  %v2581_v5 = vmul.f32 0.5, %v2580_v48 }
 0x3aa   : > { %v3558_v36 = vadd.f32 %v4408_v22, %v3301_v37  ;;  %v3390_v16 = vadd.f32 %v3389_v14, %v7057_v17  ;;  %v2151_v63 = vmul.f32 %v2103_v53, %v4987_v33  ;;  %v2122_v39 = vadd.f32 %v7104_v43, %v7086_v38 }
 0x3ab   : > { %v3214_v7 = vpop.f32.mrf.mxu0  ;;  %3621 = vst [vmem:[%s7092_s24 + $0x8] sm:$0xff] %v3557_v31  ;;  %v2268_v49 = vmul.f32 %v7120_v2, %v7120_v2  ;;  %v2269_v47 = vmul.f32 %v7123_v44, %v7123_v44  ;;  %v2582_v29 = vsub.f32 1.5, %v2581_v5  ;;  %v2572_v60 = vsub.f32 1.5, %v2571_v3 }
 0x3ac   : > { %3622 = vst [vmem:[%s7092_s24 + $0x10] sm:$0xff] %v3558_v36  ;;  %v3215_v34 = vadd.f32 %v3214_v7, %v7028_v9  ;;  %v7143_v30 = vsub.f32 %v6771_v59, %v2151_v63  ;;  %v7146_v12 = vsub.f32 %v6767_v20, %v2151_v63  ;;  %v2928_v45 = vadd.f32 %v6671_v1, %v2859_v50 }
 0x3ad   : > { %v2929_v14 = vadd.f32 %v6694_v52, %v2860_v35  ;;  %v2583_v51 = vmul.f32 %v7100_v0, %v2582_v29  ;;  %v2354_v54 = vadd.f32 %v2269_v47, %v2268_v49  ;;  %v2926_v7 = vadd.f32 %v6671_v1, %v2857_v58 }
 0x3ae   : > { %v3478_v13 = vpop.f32.mrf.mxu3  ;;  %2123 = vadd.xlane.f32.xlu1 %v2122_v39  ;;  %v2270_v20 = vmul.f32 %v7143_v30, %v7143_v30  ;;  %v2271_v59 = vmul.f32 %v7146_v12, %v7146_v12  ;;  %v2573_v50 = vmul.f32 %v7065_v61, %v2572_v60  ;;  %v2927_v36 = vadd.f32 %v6694_v52, %v2858_v6  ;;  %v8074_v60 = vld [vmem:[#allocation35_spill] sm:$0xff] }
 0x3af   : > { %v3479_v57 = vadd.f32 %v3478_v13, %v3390_v16  ;;  %v3303_v48 = vpop.f32.mrf.mxu1  ;;  %v7164_v16 = vadd.f32 %v7040_v19, %v1939_v10  ;;  %v2980_v39 = vpack.c.bf16 %v2928_v45, %v2926_v7  ;;  %v2587_v49 = vsel %vm2586_vm8, %v7100_v0, %v2583_v51  ;;  %v8075_v45 = vld [vmem:[#allocation34_spill] sm:$0xff] }
 0x3b0   : > { %v3304_v3 = vadd.f32 %v3303_v48, %v3215_v34  ;;  %2355 = vadd.xlane.f32.xlu2 %v2354_v54  ;;  %v2357_v22 = vadd.f32 %v2271_v59, %v2270_v20  ;;  %v2106_v63 = vpop.xlane.xlu1 %2105  ;;  %v2981_v29 = vpack.c.bf16 %v2929_v14, %v2927_v36  ;;  %v7176_v19 = vadd.f32 %v7003_v27, %v7113_v4  ;;  %v4411_v14 = vld [vmem:[%s4921_s25 + $0x28] sm:$0xff]  ;;  %v4412_v59 = vld [vmem:[%s4921_s25 + $0x30] sm:$0xff] }
 0x3b1   : > { %v3392_v31 = vpop.f32.mrf.mxu2  ;;  %v3559_v37 = vadd.f32 %v4409_v11, %v3479_v57  ;;  %v2152_v47 = vmul.f32 %v2106_v63, %v4987_v33  ;;  %v2577_v34 = vsel %vm2576_vm10, %v7065_v61, %v2573_v50  ;;  %v2794_v27 = vmul.f32 %v2587_v49, %v6709_v42  ;;  %v8076_v54 = vld [vmem:[#allocation32_spill] sm:$0xff] }
 0x3b2   : > { %v3560_v53 = vadd.f32 %v4410_v8, %v3304_v3  ;;  %v3393_v35 = vadd.f32 %v3392_v31, %v7057_v17  ;;  %2358 = vadd.xlane.f32.xlu0 %v2357_v22  ;;  %v2795_v13 = vmul.f32 %v2587_v49, %v8074_v60  ;;  %v2125_v61 = vadd.f32 %v7164_v16, %v7176_v19 }
 0x3b3   : > { %v3216_v5 = vpop.f32.mrf.mxu0  ;;  %3623 = vst [vmem:[%s7092_s24 + $0x18] sm:$0xff] %v3559_v37  ;;  %v7184_v0 = vsub.f32 %v6779_v18, %v2152_v47  ;;  %v7187_v58 = vsub.f32 %v6777_v40, %v2152_v47  ;;  %v2792_v42 = vmul.f32 %v2577_v34, %v8075_v45  ;;  %v2793_v31 = vmul.f32 %v2577_v34, %v8076_v54 }
 0x3b4   : > { %3624 = vst [vmem:[%s7092_s24 + $0x20] sm:$0xff] %v3560_v53  ;;  %v3217_v10 = vadd.f32 %v3216_v5, %v7028_v9  ;;  %3233 = vmatmul.bf16.gmra.mxu0 %v2980_v39  ;;  %v2863_v3 = vmul.f32 %v6637_v32, %v2794_v27  ;;  %v2864_v7 = vmul.f32 %v6685_v41, %v2795_v13 }
 0x3b5   : > { %3322 = vmatmul.bf16.gmra.mxu1 %v2981_v29  ;;  %3411 = vmatmul.bf16.gmra.mxu2 %v2980_v39  ;;  %v2272_v18 = vmul.f32 %v7184_v0, %v7184_v0  ;;  %v2273_v40 = vmul.f32 %v7187_v58, %v7187_v58  ;;  %v2861_v50 = vmul.f32 %v6637_v32, %v2792_v42 }
 0x3b6   : > { %v3481_v26 = vpop.f32.mrf.mxu3  ;;  %3500 = vmatmul.bf16.gmra.mxu3 %v2981_v29  ;;  %v2862_v22 = vmul.f32 %v6685_v41, %v2793_v31  ;;  %v2932_v8 = vadd.f32 %v6671_v1, %v2863_v3  ;;  %v2933_v53 = vadd.f32 %v6694_v52, %v2864_v7 }
 0x3b7   : > { %v3482_v4 = vadd.f32 %v3481_v26, %v3393_v35  ;;  %v3305_v6 = vpop.f32.mrf.mxu1  ;;  %v2360_v20 = vadd.f32 %v2273_v40, %v2272_v18  ;;  %v4413_v35 = vld [vmem:[%s4921_s25 + $0x38] sm:$0xff]  ;;  %v2930_v39 = vadd.f32 %v6671_v1, %v2861_v50  ;;  %v8077_v40 = vld [vmem:[#allocation23_spill] sm:$0xff] }
 0x3b8   : > { %v3306_v48 = vadd.f32 %v3305_v6, %v3217_v10  ;;  %2126 = vadd.xlane.f32.xlu2 %v2125_v61  ;;  %v2931_v49 = vadd.f32 %v6694_v52, %v2862_v22  ;;  %v2398_v10 = vmul.f32 %v7082_v21, %v4987_v33  ;;  %v8078_v21 = vld [vmem:[#allocation42_spill] sm:$0xff] }
 0x3b9   : > { %v3394_v57 = vpop.f32.mrf.mxu2  ;;  %v3561_v51 = vadd.f32 %v4411_v14, %v3482_v4  ;;  %v2982_v47 = vpack.c.bf16 %v2932_v8, %v2930_v39  ;;  %v8079_v8 = vld [vmem:[#allocation21_spill] sm:$0xff] }
 0x3ba   : > { %v3562_v11 = vadd.f32 %v4412_v59, %v3306_v48  ;;  %v3395_v37 = vadd.f32 %v3394_v57, %v7057_v17  ;;  %2361 = vadd.xlane.f32.xlu0 %v2360_v20  ;;  %v2983_v29 = vpack.c.bf16 %v2933_v53, %v2931_v49  ;;  %v2430_v34 = vadd.f32 1e-05, %v2398_v10 }
 0x3bb   : > { %3625 = vst [vmem:[%s7092_s24 + $0x28] sm:$0xff] %v3561_v51 }
 0x3bc   : > { %3626 = vst [vmem:[%s7092_s24 + $0x30] sm:$0xff] %v3562_v11  ;;  %4370 = vrsqrt.f32 %v2430_v34  ;;  %vm2594_vm12 = vweird.f32 %v2430_v34 }
 0x3be   : > { %v3483_v5 = vpop.f32.mrf.mxu3 }
 0x3bf   : > { %v3484_v36 = vadd.f32 %v3483_v5, %v3395_v37 }
 0x3c1   : > { %v3563_v63 = vadd.f32 %v4413_v35, %v3484_v36 }
 0x3c2   : > { %v4371_v4 = vpop.eup %4370 }
 0x3c3   : > { %3627 = vst [vmem:[%s7092_s24 + $0x38] sm:$0xff] %v3563_v63  ;;  %v2589_v13 = vmul.f32 %v4371_v4, %v2430_v34  ;;  %vm2595_vm11 = vweird.f32 %v4371_v4 }
 0x3c4   : > { %3238 = vmatmul.bf16.gmra.mxu0 %v2982_v47  ;;  %vm2596_vm13 = vmor %vm2594_vm12, %vm2595_vm11 }
 0x3c5   : > { %3327 = vmatmul.bf16.gmra.mxu1 %v2983_v29  ;;  %3416 = vmatmul.bf16.gmra.mxu2 %v2982_v47  ;;  %v2590_v57 = vmul.f32 %v4371_v4, %v2589_v13 }
 0x3c6   : > { %3505 = vmatmul.bf16.gmra.mxu3 %v2983_v29  ;;  %v8080_v29 = vld [vmem:[#allocation28_spill] sm:$0xff] }
 0x3c7   : > { %v2591_v14 = vmul.f32 0.5, %v2590_v57 }
 0x3c9   : > { %v2592_v59 = vsub.f32 1.5, %v2591_v14 }
 0x3cb   : > { %v2593_v50 = vmul.f32 %v4371_v4, %v2592_v59 }
 0x3cd   : > { %v2597_v36 = vsel %vm2596_vm13, %v4371_v4, %v2593_v50 }
 0x3ce   : > { %v2796_v53 = vmul.f32 %v2597_v36, %v8079_v8  ;;  %v2797_v10 = vmul.f32 %v2597_v36, %v8080_v29 }
 0x3d0   : > { %v2865_v4 = vmul.f32 %v6637_v32, %v2796_v53 }
 0x3d2   : > { %v7252_v59 = vadd.f32 %v6671_v1, %v2865_v4 }
 0x3de   : > { %v2341_v26 = vpop.xlane.xlu0 %2340 }
 0x3df   : > { %v2401_v60 = vmul.f32 %v2341_v26, %v4987_v33 }
 0x3e1   : > { %v7217_v6 = vadd.f32 1e-05, %v2401_v60 }
 0x3e3   : > { %4372 = vrsqrt.f32 %v7217_v6  ;;  %vm2624_vm0 = vweird.f32 %v7217_v6 }
 0x3e6   : > { %v2344_v27 = vpop.xlane.xlu0 %2343 }
 0x3e7   : > { %v2402_v54 = vmul.f32 %v2344_v27, %v4987_v33 }
 0x3e9   : > { %v4373_v20 = vpop.eup %4372  ;;  %v7232_v11 = vadd.f32 1e-05, %v2402_v54 }
 0x3ea   : > { %v2619_v3 = vmul.f32 %v4373_v20, %v7217_v6  ;;  %vm2625_vm14 = vweird.f32 %v4373_v20 }
 0x3eb   : > { %4374 = vrsqrt.f32 %v7232_v11  ;;  %vm2626_vm2 = vmor %vm2624_vm0, %vm2625_vm14  ;;  %vm2634_vm8 = vweird.f32 %v7232_v11 }
 0x3ec   : > { %v2620_v22 = vmul.f32 %v4373_v20, %v2619_v3  ;;  %v4414_v3 = vld [vmem:[%s4921_s25 + $0x40] sm:$0xff] }
 0x3ee   : > { %v2115_v61 = vpop.xlane.xlu0 %2114  ;;  %v2621_v35 = vmul.f32 0.5, %v2620_v22 }
 0x3ef   : > { %v2155_v18 = vmul.f32 %v2115_v61, %v4987_v33 }
 0x3f0   : > { %v2622_v34 = vsub.f32 1.5, %v2621_v35 }
 0x3f1   : > { %v7222_v45 = vsub.f32 %v8077_v40, %v2155_v18  ;;  %v7225_v42 = vsub.f32 %v8078_v21, %v2155_v18  ;;  %v7238_v39 = vpop.eup %4374  ;;  %v2866_v40 = vmul.f32 %v6685_v41, %v2797_v10 }
 0x3f2   : > { %v2629_v60 = vmul.f32 %v7238_v39, %v7232_v11  ;;  %vm2635_vm7 = vweird.f32 %v7238_v39 }
 0x3f3   : > { %v2278_v51 = vmul.f32 %v7222_v45, %v7222_v45  ;;  %v2279_v48 = vmul.f32 %v7225_v42, %v7225_v42  ;;  %v2935_v8 = vadd.f32 %v6694_v52, %v2866_v40  ;;  %v8082_v40 = vld [vmem:[#allocation25_spill] sm:$0xff]  ;;  %vm2636_vm9 = vmor %vm2634_vm8, %vm2635_vm7 }
 0x3f4   : > { %v2630_v54 = vmul.f32 %v7238_v39, %v2629_v60 }
 0x3f5   : > { %v2369_v31 = vadd.f32 %v2279_v48, %v2278_v51  ;;  %v2623_v48 = vmul.f32 %v4373_v20, %v2622_v34 }
 0x3f6   : > { %v2335_v37 = vpop.xlane.xlu2 %2334  ;;  %v2118_v14 = vpop.xlane.xlu0 %2117  ;;  %v7272_v10 = vmul.f32 0.5, %v2630_v54 }
 0x3f7   : > { %2370 = vadd.xlane.f32.xlu0 %v2369_v31  ;;  %v2399_v7 = vmul.f32 %v2335_v37, %v4987_v33  ;;  %v2156_v22 = vmul.f32 %v2118_v14, %v4987_v33 }
 0x3f9   : > { %v2431_v5 = vadd.f32 1e-05, %v2399_v7 }
 0x3fb   : > { %4376 = vrsqrt.f32 %v2431_v5  ;;  %vm2604_vm1 = vweird.f32 %v2431_v5 }
 0x3ff   : > { %v2338_v63 = vpop.xlane.xlu2 %2337 }
 0x400   : > { %v2400_v49 = vmul.f32 %v2338_v63, %v4987_v33 }
 0x401   : > { %v4377_v47 = vpop.eup %4376  ;;  %v3219_v13 = vpop.f32.mrf.mxu0 }
 0x402   : > { %v2599_v26 = vmul.f32 %v4377_v47, %v2431_v5  ;;  %v7242_v27 = vadd.f32 1e-05, %v2400_v49  ;;  %v3220_v57 = vadd.f32 %v3219_v13, %v7028_v9  ;;  %v3308_v18 = vpop.f32.mrf.mxu1  ;;  %vm2605_vm15 = vweird.f32 %v4377_v47 }
 0x403   : > { %v7270_v5 = vsel %vm2626_vm2, %v4373_v20, %v2623_v48  ;;  %vm2606_vm3 = vmor %vm2604_vm1, %vm2605_vm15  ;;  %v8083_v48 = vld [vmem:[#allocation40_spill] sm:$0xff] }
 0x404   : > { %v2600_v61 = vmul.f32 %v4377_v47, %v2599_v26  ;;  %4378 = vrsqrt.f32 %v7242_v27  ;;  %v3309_v51 = vadd.f32 %v3308_v18, %v3220_v57  ;;  %v8081_v57 = vld [vmem:[#allocation24_spill] sm:$0xff]  ;;  %v7287_v54 = vsub.f32 %v8083_v48, %v2156_v22 }
 0x405   : > { %vm2614_vm5 = vweird.f32 %v7242_v27 }
 0x406   : > { %v2601_v21 = vmul.f32 0.5, %v2600_v61  ;;  %v3564_v7 = vadd.f32 %v4414_v3, %v3309_v51  ;;  %v4415_v3 = vld [vmem:[%s4921_s25 + $0x48] sm:$0xff] }
 0x407   : > { %v2109_v31 = vpop.xlane.xlu2 %2108  ;;  %v3397_v6 = vpop.f32.mrf.mxu2 }
 0x408   : > { %v2602_v37 = vsub.f32 1.5, %v2601_v21  ;;  %v2153_v50 = vmul.f32 %v2109_v31, %v4987_v33  ;;  %3628 = vst [vmem:[%s7092_s24 + $0x40] sm:$0xff] %v3564_v7  ;;  %v3398_v34 = vadd.f32 %v3397_v6, %v7057_v17  ;;  %v3486_v60 = vpop.f32.mrf.mxu3 }
 0x409   : > { %v2347_v36 = vpop.xlane.xlu1 %2346  ;;  %v3221_v13 = vpop.f32.mrf.mxu0 }
 0x40a   : > { %v7259_v53 = vpop.eup %4378  ;;  %v2603_v35 = vmul.f32 %v4377_v47, %v2602_v37  ;;  %v2403_v63 = vmul.f32 %v2347_v36, %v4987_v33  ;;  %v7265_v49 = vsub.f32 %v6940_v56, %v2153_v50  ;;  %v7268_v29 = vsub.f32 %v6943_v46, %v2153_v50  ;;  %v3310_v61 = vpop.f32.mrf.mxu1 }
 0x40b   : > { %v2609_v26 = vmul.f32 %v7259_v53, %v7242_v27  ;;  %v3222_v46 = vadd.f32 %v3221_v13, %v7028_v9  ;;  %v3487_v51 = vadd.f32 %v3486_v60, %v3398_v34  ;;  %vm2615_vm4 = vweird.f32 %v7259_v53 }
 0x40c   : > { %v2607_v56 = vsel %vm2606_vm3, %v4377_v47, %v2603_v35  ;;  %v7278_v4 = vadd.f32 1e-05, %v2403_v63  ;;  %v2274_v20 = vmul.f32 %v7265_v49, %v7265_v49  ;;  %v2275_v31 = vmul.f32 %v7268_v29, %v7268_v29  ;;  %v8084_v63 = vld [vmem:[#allocation31_spill] sm:$0xff]  ;;  %vm2616_vm6 = vmor %vm2614_vm5, %vm2615_vm4 }
 0x40d   : > { %v2798_v18 = vmul.f32 %v2607_v56, %v8081_v57  ;;  %v2799_v21 = vmul.f32 %v2607_v56, %v8082_v40  ;;  %v2610_v14 = vmul.f32 %v7259_v53, %v2609_v26  ;;  %v3311_v47 = vadd.f32 %v3310_v61, %v3222_v46  ;;  %v4416_v26 = vld [vmem:[%s4921_s25 + $0x50] sm:$0xff] }
 0x40e   : > { %4380 = vrsqrt.f32 %v7278_v4  ;;  %v3565_v7 = vadd.f32 %v4415_v3, %v3487_v51  ;;  %v7296_v6 = vsub.f32 %v8084_v63, %v2156_v22  ;;  %v2363_v13 = vadd.f32 %v2275_v31, %v2274_v20 }
 0x40f   : > { %v2611_v37 = vmul.f32 0.5, %v2610_v14  ;;  %v2112_v50 = vpop.xlane.xlu2 %2111  ;;  %v2867_v36 = vmul.f32 %v6637_v32, %v2798_v18  ;;  %v2868_v35 = vmul.f32 %v6685_v41, %v2799_v21  ;;  %v3566_v34 = vadd.f32 %v4416_v26, %v3311_v47  ;;  %v3399_v18 = vpop.f32.mrf.mxu2 }
 0x410   : > { %v2154_v60 = vmul.f32 %v2112_v50, %v4987_v33  ;;  %3629 = vst [vmem:[%s7092_s24 + $0x48] sm:$0xff] %v3565_v7  ;;  %2364 = vadd.xlane.f32.xlu1 %v2363_v13  ;;  %v2280_v20 = vmul.f32 %v7287_v54, %v7287_v54  ;;  %v3400_v14 = vadd.f32 %v3399_v18, %v7057_v17  ;;  %v3488_v51 = vpop.f32.mrf.mxu3  ;;  %v2632_v63 = vsub.f32 1.5, %v7272_v10  ;;  %v8087_v18 = vld [vmem:[#allocation43_spill] sm:$0xff] }
 0x411   : > { %v2612_v56 = vsub.f32 1.5, %v2611_v37  ;;  %v2936_v46 = vadd.f32 %v6671_v1, %v2867_v36  ;;  %v2937_v61 = vadd.f32 %v6694_v52, %v2868_v35  ;;  %3630 = vst [vmem:[%s7092_s24 + $0x50] sm:$0xff] %v3566_v34  ;;  %v2350_v21 = vpop.xlane.xlu1 %2349  ;;  %v8085_v36 = vld [vmem:[#allocation37_spill] sm:$0xff]  ;;  %vm2644_vm11 = vweird.f32 %v7278_v4 }
 0x412   : > { %v7307_v57 = vsub.f32 %v7000_v15, %v2154_v60  ;;  %v7310_v22 = vsub.f32 %v6985_v23, %v2154_v60  ;;  %v2404_v15 = vmul.f32 %v2350_v21, %v4987_v33  ;;  %v3224_v23 = vpop.f32.mrf.mxu0  ;;  %v3313_v31 = vpop.f32.mrf.mxu1  ;;  %v3489_v50 = vadd.f32 %v3488_v51, %v3400_v14  ;;  %v8088_v51 = vld [vmem:[#allocation19_spill] sm:$0xff] }
 0x413   : > { %v2613_v40 = vmul.f32 %v7259_v53, %v2612_v56  ;;  %v2984_v27 = vpack.c.bf16 %v2936_v46, %v7252_v59  ;;  %v2985_v48 = vpack.c.bf16 %v2937_v61, %v2935_v8  ;;  %v2281_v59 = vmul.f32 %v7296_v6, %v7296_v6  ;;  %v4417_v56 = vld [vmem:[%s4921_s25 + $0x58] sm:$0xff] }
 0x414   : > { %v7317_v47 = vpop.eup %4380  ;;  %v2276_v37 = vmul.f32 %v7307_v57, %v7307_v57  ;;  %v2277_v3 = vmul.f32 %v7310_v22, %v7310_v22  ;;  %v2802_v35 = vmul.f32 %v7270_v5, %v8085_v36  ;;  %v7334_v26 = vadd.f32 1e-05, %v2404_v15 }
 0x415   : > { %v2617_v8 = vsel %vm2616_vm6, %v7259_v53, %v2613_v40  ;;  %v2639_v7 = vmul.f32 %v7317_v47, %v7278_v4  ;;  %3243 = vmatmul.bf16.gmra.mxu0 %v2984_v27  ;;  %3332 = vmatmul.bf16.gmra.mxu1 %v2985_v48  ;;  %v3225_v34 = vadd.f32 %v3224_v23, %v7028_v9  ;;  %v8086_v53 = vld [vmem:[#allocation30_spill] sm:$0xff]  ;;  %vm2645_vm10 = vweird.f32 %v7317_v47 }
 0x416   : > { %3421 = vmatmul.bf16.gmra.mxu2 %v2984_v27  ;;  %3510 = vmatmul.bf16.gmra.mxu3 %v2985_v48  ;;  %v2800_v60 = vmul.f32 %v2617_v8, %v8086_v53  ;;  %v3567_v46 = vadd.f32 %v4417_v56, %v3489_v50  ;;  %v2366_v61 = vadd.f32 %v2277_v3, %v2276_v37  ;;  %4382 = vrsqrt.f32 %v7334_v26  ;;  %v4418_v48 = vld [vmem:[%s4921_s25 + $0x60] sm:$0xff]  ;;  %vm2646_vm12 = vmor %vm2644_vm11, %vm2645_vm10 }
 0x417   : > { %v2640_v13 = vmul.f32 %v7317_v47, %v2639_v7  ;;  %v2801_v40 = vmul.f32 %v2617_v8, %v8087_v18  ;;  %v3314_v21 = vadd.f32 %v3313_v31, %v3225_v34  ;;  %v2372_v10 = vadd.f32 %v2281_v59, %v2280_v20 }
 0x418   : > { %3631 = vst [vmem:[%s7092_s24 + $0x58] sm:$0xff] %v3567_v46  ;;  %2367 = vadd.xlane.f32.xlu2 %v2366_v61  ;;  %v2803_v27 = vmul.f32 %v7270_v5, %v8088_v51  ;;  %v3402_v23 = vpop.f32.mrf.mxu2  ;;  %v2871_v7 = vmul.f32 %v6637_v32, %v2802_v35  ;;  %v2633_v37 = vmul.f32 %v7238_v39, %v2632_v63  ;;  %vm2654_vm15 = vweird.f32 %v7334_v26 }
 0x419   : > { %v2641_v14 = vmul.f32 0.5, %v2640_v13  ;;  %v3568_v15 = vadd.f32 %v4418_v48, %v3314_v21  ;;  %2373 = vadd.xlane.f32.xlu1 %v2372_v10  ;;  %v2121_v3 = vpop.xlane.xlu1 %2120  ;;  %v3403_v20 = vadd.f32 %v3402_v23, %v7057_v17  ;;  %v3491_v31 = vpop.f32.mrf.mxu3  ;;  %v2869_v59 = vmul.f32 %v6637_v32, %v2800_v60  ;;  %v4419_v21 = vld [vmem:[%s4921_s25 + $0x68] sm:$0xff] }
 0x41a   : > { %v2157_v50 = vmul.f32 %v2121_v3, %v4987_v33  ;;  %v3226_v5 = vpop.f32.mrf.mxu0  ;;  %v3315_v36 = vpop.f32.mrf.mxu1  ;;  %v2870_v34 = vmul.f32 %v6685_v41, %v2801_v40  ;;  %v2940_v46 = vadd.f32 %v6671_v1, %v2871_v7  ;;  %v2872_v11 = vmul.f32 %v6685_v41, %v2803_v27  ;;  %v8089_v3 = vld [vmem:[#allocation39_spill] sm:$0xff] }
 0x41b   : > { %v2642_v8 = vsub.f32 1.5, %v2641_v14  ;;  %3632 = vst [vmem:[%s7092_s24 + $0x60] sm:$0xff] %v3568_v15  ;;  %v3492_v35 = vadd.f32 %v3491_v31, %v3403_v20  ;;  %v3227_v63 = vadd.f32 %v3226_v5, %v7028_v9  ;;  %v2353_v56 = vpop.xlane.xlu2 %2352  ;;  %v2637_v61 = vsel %vm2636_vm9, %v7238_v39, %v2633_v37  ;;  %v4420_v15 = vld [vmem:[%s4921_s25 + $0x70] sm:$0xff] }
 0x41c   : > { %v7356_v53 = vpop.eup %4382  ;;  %v7361_v60 = vsub.f32 %v7045_v28, %v2157_v50  ;;  %v7364_v13 = vsub.f32 %v7049_v55, %v2157_v50  ;;  %v2405_v18 = vmul.f32 %v2353_v56, %v4987_v33  ;;  %v2938_v40 = vadd.f32 %v6671_v1, %v2869_v59  ;;  %v8090_v56 = vld [vmem:[#allocation38_spill] sm:$0xff] }
 0x41d   : > { %v2643_v28 = vmul.f32 %v7317_v47, %v2642_v8  ;;  %v3569_v55 = vadd.f32 %v4419_v21, %v3492_v35  ;;  %v3316_v10 = vadd.f32 %v3315_v36, %v3227_v63  ;;  %v2939_v14 = vadd.f32 %v6694_v52, %v2870_v34 }
 0x41e   : > { %v2649_v51 = vmul.f32 %v7356_v53, %v7334_v26  ;;  %v7377_v27 = vadd.f32 1e-05, %v2405_v18  ;;  %v2282_v39 = vmul.f32 %v7361_v60, %v7361_v60  ;;  %v2283_v48 = vmul.f32 %v7364_v13, %v7364_v13 }
 0x41f   : > { %3633 = vst [vmem:[%s7092_s24 + $0x68] sm:$0xff] %v3569_v55  ;;  %v3570_v23 = vadd.f32 %v4420_v15, %v3316_v10  ;;  %v2941_v37 = vadd.f32 %v6694_v52, %v2872_v11  ;;  %v2804_v20 = vmul.f32 %v2637_v61, %v8089_v3  ;;  %v2986_v50 = vpack.c.bf16 %v2940_v46, %v2938_v40  ;;  %v8091_v55 = vld [vmem:[#allocation26_spill] sm:$0xff] }
 0x420   : > { %v3404_v7 = vpop.f32.mrf.mxu2  ;;  %4384 = vrsqrt.f32 %v7377_v27  ;;  %v2375_v59 = vadd.f32 %v2283_v48, %v2282_v39  ;;  %v2647_v5 = vsel %vm2646_vm12, %v7317_v47, %v2643_v28  ;;  %v2805_v11 = vmul.f32 %v2637_v61, %v8090_v56  ;;  %v4421_v48 = vld [vmem:[%s4921_s25 + $0x78] sm:$0xff] }
 0x421   : > { %v2124_v31 = vpop.xlane.xlu1 %2123  ;;  %v3493_v8 = vpop.f32.mrf.mxu3  ;;  %3634 = vst [vmem:[%s7092_s24 + $0x70] sm:$0xff] %v3570_v23  ;;  %v3405_v36 = vadd.f32 %v3404_v7, %v7057_v17  ;;  %v2987_v34 = vpack.c.bf16 %v2941_v37, %v2939_v14  ;;  %v2650_v18 = vmul.f32 %v7356_v53, %v2649_v51  ;;  %v2806_v61 = vmul.f32 %v2647_v5, %v8091_v55  ;;  %v8092_v51 = vld [vmem:[#allocation27_spill] sm:$0xff] }
 0x422   : > { %v2158_v4 = vmul.f32 %v2124_v31, %v4987_v33  ;;  %v3229_v35 = vpop.f32.mrf.mxu0  ;;  %v3318_v63 = vpop.f32.mrf.mxu1  ;;  %2376 = vadd.xlane.f32.xlu2 %v2375_v59  ;;  %v2807_v39 = vmul.f32 %v2647_v5, %v8092_v51  ;;  %v4422_v31 = vld [vmem:[%s4921_s25 + $0x80] sm:$0xff]  ;;  %vm2655_vm13 = vweird.f32 %v7356_v53  ;;  %vm2664_vm0 = vweird.f32 %v7377_v27 }
 0x423   : > { %v3230_v21 = vadd.f32 %v3229_v35, %v7028_v9  ;;  %v2356_v40 = vpop.xlane.xlu2 %2355  ;;  %v3494_v28 = vadd.f32 %v3493_v8, %v3405_v36  ;;  %v2651_v37 = vmul.f32 0.5, %v2650_v18  ;;  %v2874_v36 = vmul.f32 %v6685_v41, %v2805_v11  ;;  %vm2656_vm2 = vmor %vm2654_vm15, %vm2655_vm13 }
 0x424   : > { %v7399_v46 = vsub.f32 %v7086_v38, %v2158_v4  ;;  %v7402_v47 = vsub.f32 %v7104_v43, %v2158_v4  ;;  %v2406_v10 = vmul.f32 %v2356_v40, %v4987_v33  ;;  %v2873_v4 = vmul.f32 %v6637_v32, %v2804_v20 }
 0x425   : > { %3248 = vmatmul.bf16.gmra.mxu0 %v2986_v50  ;;  %3337 = vmatmul.bf16.gmra.mxu1 %v2987_v34  ;;  %v3319_v14 = vadd.f32 %v3318_v63, %v3230_v21  ;;  %v3571_v38 = vadd.f32 %v4421_v48, %v3494_v28  ;;  %v2359_v15 = vpop.xlane.xlu0 %2358  ;;  %v2875_v56 = vmul.f32 %v6637_v32, %v2806_v61  ;;  %v2652_v20 = vsub.f32 1.5, %v2651_v37 }
 0x426   : > { %3426 = vmatmul.bf16.gmra.mxu2 %v2986_v50  ;;  %3515 = vmatmul.bf16.gmra.mxu3 %v2987_v34  ;;  %v2284_v43 = vmul.f32 %v7399_v46, %v7399_v46  ;;  %v2285_v23 = vmul.f32 %v7402_v47, %v7402_v47  ;;  %v4385_v7 = vpop.eup %4384  ;;  %v7412_v3 = vadd.f32 1e-05, %v2406_v10  ;;  %v2407_v8 = vmul.f32 %v2359_v15, %v4987_v33 }
 0x427   : > { %v3572_v59 = vadd.f32 %v4422_v31, %v3319_v14  ;;  %v2659_v50 = vmul.f32 %v4385_v7, %v7377_v27  ;;  %3635 = vst [vmem:[%s7092_s24 + $0x78] sm:$0xff] %v3571_v38  ;;  %v2876_v55 = vmul.f32 %v6685_v41, %v2807_v39  ;;  %v2942_v61 = vadd.f32 %v6671_v1, %v2873_v4  ;;  %v4424_v4 = vld [vmem:[%s4921_s25 + $0x90] sm:$0xff] }
 0x428   : > { %v3407_v5 = vpop.f32.mrf.mxu2  ;;  %4386 = vrsqrt.f32 %v7412_v3  ;;  %v7422_v34 = vadd.f32 1e-05, %v2407_v8  ;;  %v2378_v35 = vadd.f32 %v2285_v23, %v2284_v43  ;;  %v2943_v48 = vadd.f32 %v6694_v52, %v2874_v36  ;;  %v4423_v23 = vld [vmem:[%s4921_s25 + $0x88] sm:$0xff] }
 0x429   : > { %3636 = vst [vmem:[%s7092_s24 + $0x80] sm:$0xff] %v3572_v59  ;;  %v3496_v63 = vpop.f32.mrf.mxu3  ;;  %v2660_v18 = vmul.f32 %v4385_v7, %v2659_v50  ;;  %v3408_v21 = vadd.f32 %v3407_v5, %v7057_v17  ;;  %v2944_v15 = vadd.f32 %v6671_v1, %v2875_v56  ;;  %vm2665_vm14 = vweird.f32 %v4385_v7 }
 0x42a   : > { %v3231_v40 = vpop.f32.mrf.mxu0  ;;  %v3320_v28 = vpop.f32.mrf.mxu1  ;;  %4388 = vrsqrt.f32 %v7422_v34  ;;  %2379 = vadd.xlane.f32.xlu0 %v2378_v35  ;;  %v2945_v31 = vadd.f32 %v6694_v52, %v2876_v55  ;;  %v2653_v8 = vmul.f32 %v7356_v53, %v2652_v20  ;;  %vm2666_vm1 = vmor %vm2664_vm0, %vm2665_vm14  ;;  %vm2684_vm5 = vweird.f32 %v7422_v34 }
 0x42b   : > { %v3232_v11 = vadd.f32 %v3231_v40, %v7028_v9  ;;  %v2661_v10 = vmul.f32 0.5, %v2660_v18  ;;  %v2127_v14 = vpop.xlane.xlu2 %2126  ;;  %v3497_v51 = vadd.f32 %v3496_v63, %v3408_v21  ;;  %v2988_v27 = vpack.c.bf16 %v2944_v15, %v2942_v61 }
 0x42c   : > { %v2159_v38 = vmul.f32 %v2127_v14, %v4987_v33  ;;  %v2989_v55 = vpack.c.bf16 %v2945_v31, %v2943_v48  ;;  %v8093_v31 = vld [vmem:[#allocation22_spill] sm:$0xff]  ;;  %vm2674_vm7 = vweird.f32 %v7412_v3 }
 0x42d   : > { %v3321_v39 = vadd.f32 %v3320_v28, %v3232_v11  ;;  %v2662_v43 = vsub.f32 1.5, %v2661_v10  ;;  %v3573_v37 = vadd.f32 %v4423_v23, %v3497_v51  ;;  %v2657_v10 = vsel %vm2656_vm2, %v7356_v53, %v2653_v8  ;;  %v4425_v53 = vld [vmem:[%s4921_s25 + $0x98] sm:$0xff] }
 0x42e   : > { %v7436_v59 = vpop.eup %4386  ;;  %v7440_v50 = vsub.f32 %v7176_v19, %v2159_v38  ;;  %v7443_v5 = vsub.f32 %v7164_v16, %v2159_v38  ;;  %v2808_v23 = vmul.f32 %v2657_v10, %v7015_v25  ;;  %v2809_v8 = vmul.f32 %v2657_v10, %v8093_v31 }
 0x42f   : > { %v3574_v36 = vadd.f32 %v4424_v4, %v3321_v39  ;;  %v2663_v35 = vmul.f32 %v4385_v7, %v2662_v43  ;;  %v2669_v63 = vmul.f32 %v7436_v59, %v7412_v3  ;;  %3637 = vst [vmem:[%s7092_s24 + $0x88] sm:$0xff] %v3573_v37  ;;  %vm2675_vm4 = vweird.f32 %v7436_v59  ;;  %v4429_v3 = vld [vmem:[%s4921_s25 + $0xb8] sm:$0xff] }
 0x430   : > { %v3409_v56 = vpop.f32.mrf.mxu2  ;;  %v7451_v18 = vpop.eup %4388  ;;  %v2286_v16 = vmul.f32 %v7440_v50, %v7440_v50  ;;  %v2287_v19 = vmul.f32 %v7443_v5, %v7443_v5  ;;  %vm2676_vm8 = vmor %vm2674_vm7, %vm2675_vm4 }
 0x431   : > { %3638 = vst [vmem:[%s7092_s24 + $0x90] sm:$0xff] %v3574_v36  ;;  %v3410_v26 = vadd.f32 %v3409_v56, %v7057_v17  ;;  %v3498_v21 = vpop.f32.mrf.mxu3  ;;  %v2667_v40 = vsel %vm2666_vm1, %v4385_v7, %v2663_v35  ;;  %v2679_v28 = vmul.f32 %v7451_v18, %v7422_v34  ;;  %v2670_v14 = vmul.f32 %v7436_v59, %v2669_v63 }
 0x432   : > { %v3234_v20 = vpop.f32.mrf.mxu0  ;;  %v3323_v11 = vpop.f32.mrf.mxu1  ;;  %v2381_v38 = vadd.f32 %v2287_v19, %v2286_v16  ;;  %v2810_v7 = vmul.f32 %v2667_v40, %v7071_v62  ;;  %v2811_v39 = vmul.f32 %v2667_v40, %v7074_v24  ;;  %v4426_v62 = vld [vmem:[%s4921_s25 + $0xa0] sm:$0xff]  ;;  %v2877_v40 = vmul.f32 %v6637_v32, %v2808_v23 }
 0x433   : > { %v2680_v51 = vmul.f32 %v7451_v18, %v2679_v28  ;;  %v3499_v61 = vadd.f32 %v3498_v21, %v3410_v26  ;;  %v3235_v48 = vadd.f32 %v3234_v20, %v7028_v9  ;;  %v2671_v4 = vmul.f32 0.5, %v2670_v14  ;;  %v4427_v20 = vld [vmem:[%s4921_s25 + $0xa8] sm:$0xff] }
 0x434   : > { %2382 = vadd.xlane.f32.xlu1 %v2381_v38  ;;  %v2879_v24 = vmul.f32 %v6637_v32, %v2810_v7  ;;  %v2880_v25 = vmul.f32 %v6685_v41, %v2811_v39  ;;  %vm2685_vm3 = vweird.f32 %v7451_v18 }
 0x435   : > { %3253 = vmatmul.bf16.gmra.mxu0 %v2988_v27  ;;  %3342 = vmatmul.bf16.gmra.mxu1 %v2989_v55  ;;  %v2681_v15 = vmul.f32 0.5, %v2680_v51  ;;  %v3575_v43 = vadd.f32 %v4425_v53, %v3499_v61  ;;  %v3324_v37 = vadd.f32 %v3323_v11, %v3235_v48  ;;  %v2672_v28 = vsub.f32 1.5, %v2671_v4  ;;  %v4428_v61 = vld [vmem:[%s4921_s25 + $0xb0] sm:$0xff]  ;;  %vm2686_vm6 = vmor %vm2684_vm5, %vm2685_vm3 }
 0x436   : > { %3431 = vmatmul.bf16.gmra.mxu2 %v2988_v27  ;;  %3520 = vmatmul.bf16.gmra.mxu3 %v2989_v55  ;;  %v2878_v55 = vmul.f32 %v6685_v41, %v2809_v8  ;;  %v2948_v14 = vadd.f32 %v6671_v1, %v2879_v24  ;;  %v2949_v38 = vadd.f32 %v6694_v52, %v2880_v25 }
 0x437   : > { %3639 = vst [vmem:[%s7092_s24 + $0x98] sm:$0xff] %v3575_v43  ;;  %v3576_v35 = vadd.f32 %v4426_v62, %v3324_v37  ;;  %v2682_v16 = vsub.f32 1.5, %v2681_v15  ;;  %v2946_v48 = vadd.f32 %v6671_v1, %v2877_v40  ;;  %v2673_v39 = vmul.f32 %v7436_v59, %v2672_v28 }
 0x438   : > { %v3412_v36 = vpop.f32.mrf.mxu2  ;;  %v2947_v53 = vadd.f32 %v6694_v52, %v2878_v55 }
 0x439   : > { %v3413_v63 = vadd.f32 %v3412_v36, %v7057_v17  ;;  %v3501_v56 = vpop.f32.mrf.mxu3  ;;  %3640 = vst [vmem:[%s7092_s24 + $0xa0] sm:$0xff] %v3576_v35  ;;  %v2683_v51 = vmul.f32 %v7451_v18, %v2682_v16  ;;  %v2990_v37 = vpack.c.bf16 %v2948_v14, %v2946_v48  ;;  %v2677_v35 = vsel %vm2676_vm8, %v7436_v59, %v2673_v39 }
 0x43a   : > { %v3236_v19 = vpop.f32.mrf.mxu0  ;;  %v3325_v26 = vpop.f32.mrf.mxu1  ;;  %v2991_v8 = vpack.c.bf16 %v2949_v38, %v2947_v53  ;;  %v2812_v16 = vmul.f32 %v2677_v35, %v7120_v2  ;;  %v2813_v25 = vmul.f32 %v2677_v35, %v7123_v44 }
 0x43b   : > { %v3502_v21 = vadd.f32 %v3501_v56, %v3413_v63  ;;  %v3237_v27 = vadd.f32 %v3236_v19, %v7028_v9  ;;  %v2687_v31 = vsel %vm2686_vm6, %v7451_v18, %v2683_v51  ;;  %v4430_v19 = vld [vmem:[%s4921_s25 + $0xc0] sm:$0xff] }
 0x43c   : > { %v2814_v63 = vmul.f32 %v2687_v31, %v7143_v30  ;;  %v2815_v24 = vmul.f32 %v2687_v31, %v7146_v12  ;;  %v2881_v55 = vmul.f32 %v6637_v32, %v2812_v16  ;;  %v2882_v44 = vmul.f32 %v6685_v41, %v2813_v25 }
 0x43d   : > { %v3577_v11 = vadd.f32 %v4427_v20, %v3502_v21  ;;  %v3326_v10 = vadd.f32 %v3325_v26, %v3237_v27 }
 0x43e   : > { %v2883_v27 = vmul.f32 %v6637_v32, %v2814_v63  ;;  %v2884_v12 = vmul.f32 %v6685_v41, %v2815_v24  ;;  %v2950_v48 = vadd.f32 %v6671_v1, %v2881_v55 }
 0x43f   : > { %3641 = vst [vmem:[%s7092_s24 + $0xa8] sm:$0xff] %v3577_v11  ;;  %v3578_v7 = vadd.f32 %v4428_v61, %v3326_v10  ;;  %v4431_v11 = vld [vmem:[%s4921_s25 + $0xc8] sm:$0xff]  ;;  %v4432_v61 = vld [vmem:[%s4921_s25 + $0xd0] sm:$0xff] }
 0x440   : > { %v3414_v15 = vpop.f32.mrf.mxu2  ;;  %v2952_v51 = vadd.f32 %v6671_v1, %v2883_v27  ;;  %v2953_v38 = vadd.f32 %v6694_v52, %v2884_v12 }
 0x441   : > { %3642 = vst [vmem:[%s7092_s24 + $0xb0] sm:$0xff] %v3578_v7  ;;  %v3415_v43 = vadd.f32 %v3414_v15, %v7057_v17  ;;  %v3503_v23 = vpop.f32.mrf.mxu3  ;;  %v2951_v15 = vadd.f32 %v6694_v52, %v2882_v44 }
 0x442   : > { %v3239_v4 = vpop.f32.mrf.mxu0  ;;  %v3328_v36 = vpop.f32.mrf.mxu1 }
 0x443   : > { %v3504_v34 = vadd.f32 %v3503_v23, %v3415_v43  ;;  %v3240_v62 = vadd.f32 %v3239_v4, %v7028_v9  ;;  %v2992_v43 = vpack.c.bf16 %v2952_v51, %v2950_v48 }
 0x445   : > { %3258 = vmatmul.bf16.gmra.mxu0 %v2990_v37  ;;  %3347 = vmatmul.bf16.gmra.mxu1 %v2991_v8  ;;  %v3579_v56 = vadd.f32 %v4429_v3, %v3504_v34  ;;  %v3329_v18 = vadd.f32 %v3328_v36, %v3240_v62  ;;  %v2362_v36 = vpop.xlane.xlu0 %2361 }
 0x446   : > { %3436 = vmatmul.bf16.gmra.mxu2 %v2990_v37  ;;  %3525 = vmatmul.bf16.gmra.mxu3 %v2991_v8  ;;  %v2993_v37 = vpack.c.bf16 %v2953_v38, %v2951_v15  ;;  %v4433_v8 = vld [vmem:[%s4921_s25 + $0xd8] sm:$0xff]  ;;  %v2408_v34 = vmul.f32 %v2362_v36, %v4987_v33 }
 0x447   : > { %3643 = vst [vmem:[%s7092_s24 + $0xb8] sm:$0xff] %v3579_v56  ;;  %v3580_v26 = vadd.f32 %v4430_v19, %v3329_v18 }
 0x448   : > { %v3417_v21 = vpop.f32.mrf.mxu2  ;;  %v2440_v62 = vadd.f32 1e-05, %v2408_v34 }
 0x449   : > { %3644 = vst [vmem:[%s7092_s24 + $0xc0] sm:$0xff] %v3580_v26  ;;  %v3418_v59 = vadd.f32 %v3417_v21, %v7057_v17  ;;  %v3506_v30 = vpop.f32.mrf.mxu3 }
 0x44a   : > { %v3241_v40 = vpop.f32.mrf.mxu0  ;;  %v3330_v20 = vpop.f32.mrf.mxu1  ;;  %4390 = vrsqrt.f32 %v2440_v62  ;;  %vm2694_vm10 = vweird.f32 %v2440_v62 }
 0x44b   : > { %v3507_v28 = vadd.f32 %v3506_v30, %v3418_v59  ;;  %v3242_v2 = vadd.f32 %v3241_v40, %v7028_v9 }
 0x44d   : > { %v3581_v10 = vadd.f32 %v4431_v11, %v3507_v28  ;;  %v3331_v14 = vadd.f32 %v3330_v20, %v3242_v2 }
 0x44f   : > { %3645 = vst [vmem:[%s7092_s24 + $0xc8] sm:$0xff] %v3581_v10  ;;  %v3582_v7 = vadd.f32 %v4432_v61, %v3331_v14 }
 0x450   : > { %v3419_v39 = vpop.f32.mrf.mxu2  ;;  %v4391_v35 = vpop.eup %4390 }
 0x451   : > { %3646 = vst [vmem:[%s7092_s24 + $0xd0] sm:$0xff] %v3582_v7  ;;  %v3420_v53 = vadd.f32 %v3419_v39, %v7057_v17  ;;  %v3508_v23 = vpop.f32.mrf.mxu3  ;;  %v2689_v3 = vmul.f32 %v4391_v35, %v2440_v62  ;;  %vm2695_vm9 = vweird.f32 %v4391_v35 }
 0x452   : > { %vm2696_vm11 = vmor %vm2694_vm10, %vm2695_vm9 }
 0x453   : > { %v3509_v31 = vadd.f32 %v3508_v23, %v3420_v53  ;;  %v2690_v18 = vmul.f32 %v4391_v35, %v2689_v3 }
 0x455   : > { %3263 = vmatmul.bf16.gmra.mxu0 %v2992_v43  ;;  %3352 = vmatmul.bf16.gmra.mxu1 %v2993_v37  ;;  %v3583_v4 = vadd.f32 %v4433_v8, %v3509_v31  ;;  %v2691_v19 = vmul.f32 0.5, %v2690_v18  ;;  %v4434_v31 = vld [vmem:[%s4921_s25 + $0xe0] sm:$0xff] }
 0x456   : > { %3441 = vmatmul.bf16.gmra.mxu2 %v2992_v43  ;;  %3530 = vmatmul.bf16.gmra.mxu3 %v2993_v37 }
 0x457   : > { %3647 = vst [vmem:[%s7092_s24 + $0xd8] sm:$0xff] %v3583_v4  ;;  %v2692_v21 = vsub.f32 1.5, %v2691_v19 }
 0x459   : > { %v2693_v12 = vmul.f32 %v4391_v35, %v2692_v21 }
 0x45b   : > { %v2697_v11 = vsel %vm2696_vm11, %v4391_v35, %v2693_v12 }
 0x45c   : > { %v2816_v48 = vmul.f32 %v2697_v11, %v7184_v0  ;;  %v2817_v53 = vmul.f32 %v2697_v11, %v7187_v58  ;;  %v4435_v11 = vld [vmem:[%s4921_s25 + $0xe8] sm:$0xff] }
 0x45e   : > { %v2885_v35 = vmul.f32 %v6637_v32, %v2816_v48 }
 0x46a   : > { %v2371_v63 = vpop.xlane.xlu0 %2370 }
 0x46b   : > { %v2411_v56 = vmul.f32 %v2371_v63, %v4987_v33 }
 0x46d   : > { %v7527_v24 = vadd.f32 1e-05, %v2411_v56 }
 0x46f   : > { %4392 = vrsqrt.f32 %v7527_v24  ;;  %vm2724_vm2 = vweird.f32 %v7527_v24 }
 0x475   : > { %v7531_v59 = vpop.eup %4392 }
 0x476   : > { %v2719_v28 = vmul.f32 %v7531_v59, %v7527_v24  ;;  %vm2725_vm15 = vweird.f32 %v7531_v59 }
 0x477   : > { %vm2726_vm4 = vmor %vm2724_vm2, %vm2725_vm15 }
 0x478   : > { %v2720_v51 = vmul.f32 %v7531_v59, %v2719_v28 }
 0x47a   : > { %v2721_v23 = vmul.f32 0.5, %v2720_v51 }
 0x47c   : > { %v2722_v19 = vsub.f32 1.5, %v2721_v23 }
 0x483   : > { %v2365_v16 = vpop.xlane.xlu1 %2364 }
 0x484   : > { %v2409_v26 = vmul.f32 %v2365_v16, %v4987_v33  ;;  %v2886_v16 = vmul.f32 %v6685_v41, %v2817_v53 }
 0x486   : > { %v2441_v25 = vadd.f32 1e-05, %v2409_v26 }
 0x488   : > { %4394 = vrsqrt.f32 %v2441_v25  ;;  %vm2704_vm13 = vweird.f32 %v2441_v25 }
 0x48b   : > { %v2368_v30 = vpop.xlane.xlu2 %2367 }
 0x48c   : > { %v2410_v27 = vmul.f32 %v2368_v30, %v4987_v33  ;;  %v2374_v40 = vpop.xlane.xlu1 %2373 }
 0x48d   : > { %v2412_v20 = vmul.f32 %v2374_v40, %v4987_v33 }
 0x48e   : > { %v7536_v2 = vadd.f32 1e-05, %v2410_v27  ;;  %v4395_v55 = vpop.eup %4394 }
 0x48f   : > { %v2699_v44 = vmul.f32 %v4395_v55, %v2441_v25  ;;  %v7542_v7 = vadd.f32 1e-05, %v2412_v20  ;;  %vm2705_vm12 = vweird.f32 %v4395_v55  ;;  %v2954_v20 = vadd.f32 %v6671_v1, %v2885_v35 }
 0x490   : > { %4396 = vrsqrt.f32 %v7536_v2  ;;  %vm2706_vm14 = vmor %vm2704_vm13, %vm2705_vm12  ;;  %vm2714_vm1 = vweird.f32 %v7536_v2 }
 0x491   : > { %v2700_v38 = vmul.f32 %v4395_v55, %v2699_v44  ;;  %4398 = vrsqrt.f32 %v7542_v7  ;;  %vm2734_vm9 = vweird.f32 %v7542_v7 }
 0x492   : > { %v3244_v10 = vpop.f32.mrf.mxu0  ;;  %v3333_v14 = vpop.f32.mrf.mxu1 }
 0x493   : > { %v3245_v61 = vadd.f32 %v3244_v10, %v7028_v9  ;;  %v2701_v39 = vmul.f32 0.5, %v2700_v38  ;;  %v2955_v38 = vadd.f32 %v6694_v52, %v2886_v16 }
 0x495   : > { %v3334_v15 = vadd.f32 %v3333_v14, %v3245_v61  ;;  %v2702_v37 = vsub.f32 1.5, %v2701_v39  ;;  %v2377_v36 = vpop.xlane.xlu2 %2376  ;;  %v2723_v61 = vmul.f32 %v7531_v59, %v2722_v19  ;;  %v4437_v19 = vld [vmem:[%s4921_s25 + $0xf8] sm:$0xff] }
 0x496   : > { %v7546_v43 = vpop.eup %4396  ;;  %v2413_v0 = vmul.f32 %v2377_v36, %v4987_v33 }
 0x497   : > { %v3584_v8 = vadd.f32 %v4434_v31, %v3334_v15  ;;  %v2709_v4 = vmul.f32 %v7546_v43, %v7536_v2  ;;  %v2703_v34 = vmul.f32 %v4395_v55, %v2702_v37  ;;  %v7565_v44 = vpop.eup %4398  ;;  %vm2715_vm0 = vweird.f32 %v7546_v43 }
 0x498   : > { %v7558_v25 = vadd.f32 1e-05, %v2413_v0  ;;  %v2729_v23 = vmul.f32 %v7565_v44, %v7542_v7  ;;  %vm2716_vm3 = vmor %vm2714_vm1, %vm2715_vm0  ;;  %v2727_v35 = vsel %vm2726_vm4, %v7531_v59, %v2723_v61  ;;  %vm2735_vm6 = vweird.f32 %v7565_v44 }
 0x499   : > { %3648 = vst [vmem:[%s7092_s24 + $0xe0] sm:$0xff] %v3584_v8  ;;  %v3422_v62 = vpop.f32.mrf.mxu2  ;;  %v3511_v58 = vpop.f32.mrf.mxu3  ;;  %v2710_v63 = vmul.f32 %v7546_v43, %v2709_v4  ;;  %v2707_v26 = vsel %vm2706_vm14, %v4395_v55, %v2703_v34  ;;  %vm2736_vm10 = vmor %vm2734_vm9, %vm2735_vm6 }
 0x49a   : > { %v3423_v3 = vadd.f32 %v3422_v62, %v7057_v17  ;;  %v3246_v56 = vpop.f32.mrf.mxu0  ;;  %v3335_v18 = vpop.f32.mrf.mxu1  ;;  %v2818_v30 = vmul.f32 %v2707_v26, %v7265_v49  ;;  %v2819_v27 = vmul.f32 %v2707_v26, %v7268_v29  ;;  %4400 = vrsqrt.f32 %v7558_v25  ;;  %v4436_v29 = vld [vmem:[%s4921_s25 + $0xf0] sm:$0xff] }
 0x49b   : > { %v3247_v21 = vadd.f32 %v3246_v56, %v7028_v9  ;;  %v2711_v40 = vmul.f32 0.5, %v2710_v63  ;;  %vm2744_vm7 = vweird.f32 %v7558_v25 }
 0x49c   : > { %v3512_v12 = vadd.f32 %v3511_v58, %v3423_v3  ;;  %v2887_v14 = vmul.f32 %v6637_v32, %v2818_v30  ;;  %v2888_v49 = vmul.f32 %v6685_v41, %v2819_v27  ;;  %v2730_v3 = vmul.f32 %v7565_v44, %v2729_v23 }
 0x49d   : > { %v3336_v28 = vadd.f32 %v3335_v18, %v3247_v21  ;;  %v2712_v55 = vsub.f32 1.5, %v2711_v40  ;;  %v2380_v39 = vpop.xlane.xlu0 %2379  ;;  %v2822_v30 = vmul.f32 %v2727_v35, %v7222_v45  ;;  %v2823_v27 = vmul.f32 %v2727_v35, %v7225_v42 }
 0x49e   : > { %v3585_v10 = vadd.f32 %v4435_v11, %v3512_v12  ;;  %v2956_v15 = vadd.f32 %v6671_v1, %v2887_v14  ;;  %v2957_v53 = vadd.f32 %v6694_v52, %v2888_v49  ;;  %v2414_v37 = vmul.f32 %v2380_v39, %v4987_v33 }
 0x49f   : > { %v3586_v51 = vadd.f32 %v4436_v29, %v3336_v28  ;;  %v2713_v48 = vmul.f32 %v7546_v43, %v2712_v55  ;;  %v2731_v12 = vmul.f32 0.5, %v2730_v3  ;;  %v4438_v28 = vld [vmem:[%s4921_s25 + $0x100] sm:$0xff]  ;;  %v2892_v61 = vmul.f32 %v6685_v41, %v2823_v27 }
 0x4a0   : > { %3649 = vst [vmem:[%s7092_s24 + $0xe8] sm:$0xff] %v3585_v10  ;;  %v2994_v36 = vpack.c.bf16 %v2956_v15, %v2954_v20  ;;  %v2995_v34 = vpack.c.bf16 %v2957_v53, %v2955_v38  ;;  %v7588_v62 = vpop.eup %4400  ;;  %v7596_v63 = vadd.f32 1e-05, %v2414_v37  ;;  %v2891_v38 = vmul.f32 %v6637_v32, %v2822_v30 }
 0x4a1   : > { %3650 = vst [vmem:[%s7092_s24 + $0xf0] sm:$0xff] %v3586_v51  ;;  %v3424_v31 = vpop.f32.mrf.mxu2  ;;  %v3513_v8 = vpop.f32.mrf.mxu3  ;;  %v2717_v2 = vsel %vm2716_vm3, %v7546_v43, %v2713_v48  ;;  %v2739_v24 = vmul.f32 %v7588_v62, %v7558_v25  ;;  %v2732_v48 = vsub.f32 1.5, %v2731_v12  ;;  %vm2745_vm5 = vweird.f32 %v7588_v62  ;;  %v4441_v12 = vld [vmem:[%s4921_s25 + $0x118] sm:$0xff] }
 0x4a2   : > { %v3425_v4 = vadd.f32 %v3424_v31, %v7057_v17  ;;  %v3249_v0 = vpop.f32.mrf.mxu0  ;;  %v3338_v58 = vpop.f32.mrf.mxu1  ;;  %3268 = vmatmul.bf16.gmra.mxu0 %v2994_v36  ;;  %3357 = vmatmul.bf16.gmra.mxu1 %v2995_v34  ;;  %v2820_v43 = vmul.f32 %v2717_v2, %v7307_v57  ;;  %v2821_v59 = vmul.f32 %v2717_v2, %v7310_v22  ;;  %4402 = vrsqrt.f32 %v7596_v63  ;;  %vm2746_vm8 = vmor %vm2744_vm7, %vm2745_vm5 }
 0x4a3   : > { %3446 = vmatmul.bf16.gmra.mxu2 %v2994_v36  ;;  %3535 = vmatmul.bf16.gmra.mxu3 %v2995_v34  ;;  %v3250_v18 = vadd.f32 %v3249_v0, %v7028_v9  ;;  %v2740_v16 = vmul.f32 %v7588_v62, %v2739_v24  ;;  %v4440_v36 = vld [vmem:[%s4921_s25 + $0x110] sm:$0xff]  ;;  %v2960_v0 = vadd.f32 %v6671_v1, %v2891_v38  ;;  %vm2754_vm15 = vweird.f32 %v7596_v63 }
 0x4a4   : > { %v3514_v56 = vadd.f32 %v3513_v8, %v3425_v4  ;;  %v2889_v10 = vmul.f32 %v6637_v32, %v2820_v43  ;;  %v2890_v14 = vmul.f32 %v6685_v41, %v2821_v59  ;;  %v2961_v2 = vadd.f32 %v6694_v52, %v2892_v61 }
 0x4a5   : > { %v3339_v21 = vadd.f32 %v3338_v58, %v3250_v18  ;;  %v2741_v40 = vmul.f32 0.5, %v2740_v16  ;;  %v2733_v58 = vmul.f32 %v7565_v44, %v2732_v48 }
 0x4a6   : > { %v3587_v26 = vadd.f32 %v4437_v19, %v3514_v56  ;;  %v2958_v37 = vadd.f32 %v6671_v1, %v2889_v10  ;;  %v2959_v31 = vadd.f32 %v6694_v52, %v2890_v14 }
 0x4a7   : > { %v3588_v20 = vadd.f32 %v4438_v28, %v3339_v21  ;;  %v2742_v49 = vsub.f32 1.5, %v2741_v40  ;;  %v2383_v45 = vpop.xlane.xlu1 %2382  ;;  %v2737_v21 = vsel %vm2736_vm10, %v7565_v44, %v2733_v58  ;;  %v4442_v44 = vld [vmem:[%s4921_s25 + $0x120] sm:$0xff] }
 0x4a8   : > { %3651 = vst [vmem:[%s7092_s24 + $0xf8] sm:$0xff] %v3587_v26  ;;  %v2415_v51 = vmul.f32 %v2383_v45, %v4987_v33  ;;  %v7617_v53 = vpop.eup %4402  ;;  %v4439_v33 = vld [vmem:[%s4921_s25 + $0x108] sm:$0xff]  ;;  %v2996_v18 = vpack.c.bf16 %v2960_v0, %v2958_v37  ;;  %v2997_v43 = vpack.c.bf16 %v2961_v2, %v2959_v31 }
 0x4a9   : > { %v3427_v57 = vpop.f32.mrf.mxu2  ;;  %v3516_v55 = vpop.f32.mrf.mxu3  ;;  %3652 = vst [vmem:[%s7092_s24 + $0x100] sm:$0xff] %v3588_v20  ;;  %v2743_v8 = vmul.f32 %v7588_v62, %v2742_v49  ;;  %v2749_v35 = vmul.f32 %v7617_v53, %v7596_v63  ;;  %v4443_v37 = vld [vmem:[%s4921_s25 + $0x128] sm:$0xff]  ;;  %vm2755_vm12 = vweird.f32 %v7617_v53 }
 0x4aa   : > { %v3428_v22 = vadd.f32 %v3427_v57, %v7057_v17  ;;  %v3251_v11 = vpop.f32.mrf.mxu0  ;;  %v3340_v29 = vpop.f32.mrf.mxu1  ;;  %v7619_v23 = vadd.f32 1e-05, %v2415_v51  ;;  %v2824_v57 = vmul.f32 %v2737_v21, %v7287_v54  ;;  %vm2756_vm0 = vmor %vm2754_vm15, %vm2755_vm12 }
 0x4ab   : > { %v3252_v42 = vadd.f32 %v3251_v11, %v7028_v9  ;;  %v2747_v16 = vsel %vm2746_vm8, %v7588_v62, %v2743_v8  ;;  %v2750_v30 = vmul.f32 %v7617_v53, %v2749_v35 }
 0x4ac   : > { %v3517_v39 = vadd.f32 %v3516_v55, %v3428_v22  ;;  %4404 = vrsqrt.f32 %v7619_v23  ;;  %v2826_v27 = vmul.f32 %v2747_v16, %v7361_v60  ;;  %v2827_v40 = vmul.f32 %v2747_v16, %v7364_v13 }
 0x4ad   : > { %v3341_v15 = vadd.f32 %v3340_v29, %v3252_v42  ;;  %v2825_v22 = vmul.f32 %v2737_v21, %v7296_v6  ;;  %v2751_v11 = vmul.f32 0.5, %v2750_v30  ;;  %v2893_v38 = vmul.f32 %v6637_v32, %v2824_v57  ;;  %v4445_v30 = vld [vmem:[%s4921_s25 + $0x138] sm:$0xff] }
 0x4ae   : > { %v3589_v4 = vadd.f32 %v4439_v33, %v3517_v39  ;;  %v2895_v45 = vmul.f32 %v6637_v32, %v2826_v27  ;;  %v2896_v42 = vmul.f32 %v6685_v41, %v2827_v40  ;;  %vm2764_vm13 = vweird.f32 %v7619_v23 }
 0x4af   : > { %v3590_v34 = vadd.f32 %v4440_v36, %v3341_v15  ;;  %v2894_v61 = vmul.f32 %v6685_v41, %v2825_v22  ;;  %v2752_v48 = vsub.f32 1.5, %v2751_v11  ;;  %v4444_v36 = vld [vmem:[%s4921_s25 + $0x130] sm:$0xff]  ;;  %v2962_v0 = vadd.f32 %v6671_v1, %v2893_v38 }
 0x4b0   : > { %3653 = vst [vmem:[%s7092_s24 + $0x108] sm:$0xff] %v3589_v4  ;;  %v2964_v8 = vadd.f32 %v6671_v1, %v2895_v45  ;;  %v2965_v33 = vadd.f32 %v6694_v52, %v2896_v42 }
 0x4b1   : > { %v3429_v24 = vpop.f32.mrf.mxu2  ;;  %3654 = vst [vmem:[%s7092_s24 + $0x110] sm:$0xff] %v3590_v34  ;;  %v3518_v56 = vpop.f32.mrf.mxu3  ;;  %v2963_v2 = vadd.f32 %v6694_v52, %v2894_v61  ;;  %v2753_v58 = vmul.f32 %v7617_v53, %v2752_v48 }
 0x4b2   : > { %v3430_v3 = vadd.f32 %v3429_v24, %v7057_v17  ;;  %v3254_v59 = vpop.f32.mrf.mxu0  ;;  %v3343_v19 = vpop.f32.mrf.mxu1  ;;  %3273 = vmatmul.bf16.gmra.mxu0 %v2996_v18  ;;  %3362 = vmatmul.bf16.gmra.mxu1 %v2997_v43 }
 0x4b3   : > { %v3255_v25 = vadd.f32 %v3254_v59, %v7028_v9  ;;  %3451 = vmatmul.bf16.gmra.mxu2 %v2996_v18  ;;  %3540 = vmatmul.bf16.gmra.mxu3 %v2997_v43  ;;  %v4405_v62 = vpop.eup %4404  ;;  %v2999_v18 = vpack.c.bf16 %v2965_v33, %v2963_v2 }
 0x4b4   : > { %v3519_v26 = vadd.f32 %v3518_v56, %v3430_v3  ;;  %v2759_v20 = vmul.f32 %v4405_v62, %v7619_v23  ;;  %vm2765_vm11 = vweird.f32 %v4405_v62  ;;  %v2998_v56 = vpack.c.bf16 %v2964_v8, %v2962_v0 }
 0x4b5   : > { %v3344_v7 = vadd.f32 %v3343_v19, %v3255_v25  ;;  %vm2766_vm14 = vmor %vm2764_vm13, %vm2765_vm11  ;;  %v2757_v19 = vsel %vm2756_vm0, %v7617_v53, %v2753_v58 }
 0x4b6   : > { %v3591_v28 = vadd.f32 %v4441_v12, %v3519_v26  ;;  %v2760_v10 = vmul.f32 %v4405_v62, %v2759_v20  ;;  %v2828_v40 = vmul.f32 %v2757_v19, %v7399_v46  ;;  %v2829_v12 = vmul.f32 %v2757_v19, %v7402_v47 }
 0x4b7   : > { %v3592_v55 = vadd.f32 %v4442_v44, %v3344_v7 }
 0x4b8   : > { %3655 = vst [vmem:[%s7092_s24 + $0x118] sm:$0xff] %v3591_v28  ;;  %v2761_v54 = vmul.f32 0.5, %v2760_v10  ;;  %v2897_v47 = vmul.f32 %v6637_v32, %v2828_v40  ;;  %v4447_v10 = vld [vmem:[%s4921_s25 + $0x148] sm:$0xff] }
 0x4b9   : > { %v3432_v14 = vpop.f32.mrf.mxu2  ;;  %3656 = vst [vmem:[%s7092_s24 + $0x120] sm:$0xff] %v3592_v55  ;;  %v3521_v49 = vpop.f32.mrf.mxu3  ;;  %v2898_v55 = vmul.f32 %v6685_v41, %v2829_v12 }
 0x4ba   : > { %v3433_v60 = vadd.f32 %v3432_v14, %v7057_v17  ;;  %v3256_v13 = vpop.f32.mrf.mxu0  ;;  %v3345_v29 = vpop.f32.mrf.mxu1  ;;  %v2762_v39 = vsub.f32 1.5, %v2761_v54  ;;  %v2966_v42 = vadd.f32 %v6671_v1, %v2897_v47 }
 0x4bb   : > { %v3257_v6 = vadd.f32 %v3256_v13, %v7028_v9  ;;  %v4448_v13 = vld [vmem:[%s4921_s25 + $0x150] sm:$0xff]  ;;  %v2967_v54 = vadd.f32 %v6694_v52, %v2898_v55 }
 0x4bc   : > { %v3522_v51 = vadd.f32 %v3521_v49, %v3433_v60  ;;  %v2763_v4 = vmul.f32 %v4405_v62, %v2762_v39 }
 0x4bd   : > { %v3346_v15 = vadd.f32 %v3345_v29, %v3257_v6 }
 0x4be   : > { %v3593_v31 = vadd.f32 %v4443_v37, %v3522_v51  ;;  %v2767_v59 = vsel %vm2766_vm14, %v4405_v62, %v2763_v4  ;;  %v4446_v62 = vld [vmem:[%s4921_s25 + $0x140] sm:$0xff] }
 0x4bf   : > { %v3594_v34 = vadd.f32 %v4444_v36, %v3346_v15  ;;  %v2830_v21 = vmul.f32 %v2767_v59, %v7440_v50  ;;  %v2831_v63 = vmul.f32 %v2767_v59, %v7443_v5  ;;  %v4450_v37 = vld [vmem:[%s4921_s25 + $0x160] sm:$0xff] }
 0x4c0   : > { %3657 = vst [vmem:[%s7092_s24 + $0x128] sm:$0xff] %v3593_v31 }
 0x4c1   : > { %3658 = vst [vmem:[%s7092_s24 + $0x130] sm:$0xff] %v3594_v34  ;;  %v3434_v35 = vpop.f32.mrf.mxu2  ;;  %v3523_v3 = vpop.f32.mrf.mxu3  ;;  %v2899_v5 = vmul.f32 %v6637_v32, %v2830_v21  ;;  %v2900_v57 = vmul.f32 %v6685_v41, %v2831_v63 }
 0x4c2   : > { %v3435_v24 = vadd.f32 %v3434_v35, %v7057_v17  ;;  %v3259_v43 = vpop.f32.mrf.mxu0  ;;  %v3348_v25 = vpop.f32.mrf.mxu1  ;;  %3278 = vmatmul.bf16.gmra.mxu0 %v2998_v56  ;;  %3367 = vmatmul.bf16.gmra.mxu1 %v2999_v18  ;;  %v4451_v35 = vld [vmem:[%s4921_s25 + $0x168] sm:$0xff] }
 0x4c3   : > { %v3260_v16 = vadd.f32 %v3259_v43, %v7028_v9  ;;  %3456 = vmatmul.bf16.gmra.mxu2 %v2998_v56  ;;  %3545 = vmatmul.bf16.gmra.mxu3 %v2999_v18  ;;  %v2968_v60 = vadd.f32 %v6671_v1, %v2899_v5  ;;  %v2969_v49 = vadd.f32 %v6694_v52, %v2900_v57  ;;  %v4449_v52 = vld [vmem:[%s4921_s25 + $0x158] sm:$0xff]  ;;  %v4455_v5 = vld [vmem:[%s4921_s25 + $0x188] sm:$0xff] }
 0x4c4   : > { %v3524_v23 = vadd.f32 %v3523_v3, %v3435_v24  ;;  %v4452_v3 = vld [vmem:[%s4921_s25 + $0x170] sm:$0xff] }
 0x4c5   : > { %v3349_v26 = vadd.f32 %v3348_v25, %v3260_v16  ;;  %v3000_v29 = vpack.c.bf16 %v2968_v60, %v2966_v42  ;;  %v3001_v51 = vpack.c.bf16 %v2969_v49, %v2967_v54  ;;  %v4453_v25 = vld [vmem:[%s4921_s25 + $0x178] sm:$0xff]  ;;  %v4458_v42 = vld [vmem:[%s4921_s25 + $0x1a0] sm:$0xff] }
 0x4c6   : > { %v3595_v7 = vadd.f32 %v4445_v30, %v3524_v23  ;;  %v4454_v30 = vld [vmem:[%s4921_s25 + $0x180] sm:$0xff] }
 0x4c7   : > { %v3596_v27 = vadd.f32 %v4446_v62, %v3349_v26 }
 0x4c8   : > { %3659 = vst [vmem:[%s7092_s24 + $0x138] sm:$0xff] %v3595_v7 }
 0x4c9   : > { %3660 = vst [vmem:[%s7092_s24 + $0x140] sm:$0xff] %v3596_v27  ;;  %v3437_v28 = vpop.f32.mrf.mxu2  ;;  %v3526_v20 = vpop.f32.mrf.mxu3 }
 0x4ca   : > { %v3438_v53 = vadd.f32 %v3437_v28, %v7057_v17  ;;  %v3261_v50 = vpop.f32.mrf.mxu0  ;;  %v3350_v46 = vpop.f32.mrf.mxu1 }
 0x4cb   : > { %v3262_v22 = vadd.f32 %v3261_v50, %v7028_v9 }
 0x4cc   : > { %v3527_v44 = vadd.f32 %v3526_v20, %v3438_v53 }
 0x4cd   : > { %v3351_v11 = vadd.f32 %v3350_v46, %v3262_v22  ;;  %v4456_v22 = vld [vmem:[%s4921_s25 + $0x190] sm:$0xff] }
 0x4ce   : > { %v3597_v14 = vadd.f32 %v4447_v10, %v3527_v44 }
 0x4cf   : > { %v3598_v45 = vadd.f32 %v4448_v13, %v3351_v11  ;;  %v4457_v13 = vld [vmem:[%s4921_s25 + $0x198] sm:$0xff] }
 0x4d0   : > { %3661 = vst [vmem:[%s7092_s24 + $0x148] sm:$0xff] %v3597_v14 }
 0x4d1   : > { %3662 = vst [vmem:[%s7092_s24 + $0x150] sm:$0xff] %v3598_v45  ;;  %v3439_v6 = vpop.f32.mrf.mxu2  ;;  %v3528_v41 = vpop.f32.mrf.mxu3 }
 0x4d2   : > { %v3440_v32 = vadd.f32 %v3439_v6, %v7057_v17  ;;  %v3264_v38 = vpop.f32.mrf.mxu0  ;;  %v3353_v48 = vpop.f32.mrf.mxu1  ;;  %3283 = vmatmul.bf16.gmra.mxu0 %v3000_v29  ;;  %3372 = vmatmul.bf16.gmra.mxu1 %v3001_v51 }
 0x4d3   : > { %v3265_v61 = vadd.f32 %v3264_v38, %v7028_v9  ;;  %3461 = vmatmul.bf16.gmra.mxu2 %v3000_v29  ;;  %3550 = vmatmul.bf16.gmra.mxu3 %v3001_v51 }
 0x4d4   : > { %v3529_v39 = vadd.f32 %v3528_v41, %v3440_v32 }
 0x4d5   : > { %v3354_v1 = vadd.f32 %v3353_v48, %v3265_v61 }
 0x4d6   : > { %v3599_v15 = vadd.f32 %v4449_v52, %v3529_v39  ;;  %v4459_v39 = vld [vmem:[%s4921_s25 + $0x1a8] sm:$0xff]  ;;  %v4460_v52 = vld [vmem:[%s4921_s25 + $0x1b0] sm:$0xff] }
 0x4d7   : > { %v3600_v31 = vadd.f32 %v4450_v37, %v3354_v1 }
 0x4d8   : > { %3663 = vst [vmem:[%s7092_s24 + $0x158] sm:$0xff] %v3599_v15 }
 0x4d9   : > { %3664 = vst [vmem:[%s7092_s24 + $0x160] sm:$0xff] %v3600_v31  ;;  %v3442_v8 = vpop.f32.mrf.mxu2  ;;  %v3531_v4 = vpop.f32.mrf.mxu3 }
 0x4da   : > { %v3443_v33 = vadd.f32 %v3442_v8, %v7057_v17  ;;  %v3266_v36 = vpop.f32.mrf.mxu0  ;;  %v3355_v2 = vpop.f32.mrf.mxu1 }
 0x4db   : > { %v3267_v34 = vadd.f32 %v3266_v36, %v7028_v9 }
 0x4dc   : > { %v3532_v0 = vadd.f32 %v3531_v4, %v3443_v33 }
 0x4dd   : > { %v3356_v58 = vadd.f32 %v3355_v2, %v3267_v34  ;;  %v4461_v2 = vld [vmem:[%s4921_s25 + $0x1b8] sm:$0xff] }
 0x4de   : > { %v3601_v24 = vadd.f32 %v4451_v35, %v3532_v0  ;;  %v4462_v35 = vld [vmem:[%s4921_s25 + $0x1c0] sm:$0xff] }
 0x4df   : > { %v3602_v56 = vadd.f32 %v4452_v3, %v3356_v58 }
 0x4e0   : > { %3665 = vst [vmem:[%s7092_s24 + $0x168] sm:$0xff] %v3601_v24 }
 0x4e1   : > { %3666 = vst [vmem:[%s7092_s24 + $0x170] sm:$0xff] %v3602_v56  ;;  %v3444_v18 = vpop.f32.mrf.mxu2  ;;  %v3533_v59 = vpop.f32.mrf.mxu3 }
 0x4e2   : > { %v3445_v43 = vadd.f32 %v3444_v18, %v7057_v17 }
 0x4e4   : > { %v3534_v16 = vadd.f32 %v3533_v59, %v3445_v43 }
 0x4e6   : > { %v3603_v23 = vadd.f32 %v4453_v25, %v3534_v16 }
 0x4e8   : > { %3667 = vst [vmem:[%s7092_s24 + $0x178] sm:$0xff] %v3603_v23 }
 0x51f   : > { %v3269_v19 = vpop.f32.mrf.mxu0  ;;  %v3358_v26 = vpop.f32.mrf.mxu1 }
 0x520   : > { %v3270_v21 = vadd.f32 %v3269_v19, %v7028_v9  ;;  %v4463_v19 = vld [vmem:[%s4921_s25 + $0x1c8] sm:$0xff] }
 0x522   : > { %v3359_v63 = vadd.f32 %v3358_v26, %v3270_v21  ;;  %v4464_v21 = vld [vmem:[%s4921_s25 + $0x1d0] sm:$0xff] }
 0x524   : > { %v3604_v7 = vadd.f32 %v4454_v30, %v3359_v63 }
 0x526   : > { %3668 = vst [vmem:[%s7092_s24 + $0x180] sm:$0xff] %v3604_v7  ;;  %v3447_v62 = vpop.f32.mrf.mxu2  ;;  %v3536_v27 = vpop.f32.mrf.mxu3 }
 0x527   : > { %v3448_v40 = vadd.f32 %v3447_v62, %v7057_v17  ;;  %v3271_v12 = vpop.f32.mrf.mxu0  ;;  %v3360_v28 = vpop.f32.mrf.mxu1 }
 0x528   : > { %v3272_v53 = vadd.f32 %v3271_v12, %v7028_v9 }
 0x529   : > { %v3537_v20 = vadd.f32 %v3536_v27, %v3448_v40 }
 0x52a   : > { %v3361_v50 = vadd.f32 %v3360_v28, %v3272_v53 }
 0x52b   : > { %v3605_v57 = vadd.f32 %v4455_v5, %v3537_v20  ;;  %v4465_v20 = vld [vmem:[%s4921_s25 + $0x1d8] sm:$0xff]  ;;  %v4466_v5 = vld [vmem:[%s4921_s25 + $0x1e0] sm:$0xff] }
 0x52c   : > { %v3606_v46 = vadd.f32 %v4456_v22, %v3361_v50 }
 0x52d   : > { %3669 = vst [vmem:[%s7092_s24 + $0x188] sm:$0xff] %v3605_v57 }
 0x52e   : > { %3670 = vst [vmem:[%s7092_s24 + $0x190] sm:$0xff] %v3606_v46  ;;  %v3449_v44 = vpop.f32.mrf.mxu2  ;;  %v3538_v47 = vpop.f32.mrf.mxu3 }
 0x52f   : > { %v3450_v55 = vadd.f32 %v3449_v44, %v7057_v17  ;;  %v3274_v11 = vpop.f32.mrf.mxu0  ;;  %v3363_v10 = vpop.f32.mrf.mxu1 }
 0x530   : > { %v3275_v14 = vadd.f32 %v3274_v11, %v7028_v9 }
 0x531   : > { %v3539_v60 = vadd.f32 %v3538_v47, %v3450_v55 }
 0x532   : > { %v3364_v49 = vadd.f32 %v3363_v10, %v3275_v14 }
 0x533   : > { %v3607_v45 = vadd.f32 %v4457_v13, %v3539_v60  ;;  %v4467_v60 = vld [vmem:[%s4921_s25 + $0x1e8] sm:$0xff]  ;;  %v4468_v13 = vld [vmem:[%s4921_s25 + $0x1f0] sm:$0xff] }
 0x534   : > { %v3608_v54 = vadd.f32 %v4458_v42, %v3364_v49 }
 0x535   : > { %3671 = vst [vmem:[%s7092_s24 + $0x198] sm:$0xff] %v3607_v45 }
 0x536   : > { %3672 = vst [vmem:[%s7092_s24 + $0x1a0] sm:$0xff] %v3608_v54  ;;  %v3452_v6 = vpop.f32.mrf.mxu2  ;;  %v3541_v32 = vpop.f32.mrf.mxu3 }
 0x537   : > { %v3453_v41 = vadd.f32 %v3452_v6, %v7057_v17  ;;  %v3276_v29 = vpop.f32.mrf.mxu0  ;;  %v3365_v51 = vpop.f32.mrf.mxu1 }
 0x538   : > { %v3277_v38 = vadd.f32 %v3276_v29, %v7028_v9 }
 0x539   : > { %v3542_v61 = vadd.f32 %v3541_v32, %v3453_v41  ;;  %v4469_v32 = vld [vmem:[%s4921_s25 + $0x1f8] sm:$0xff] }
 0x53a   : > { %v3366_v48 = vadd.f32 %v3365_v51, %v3277_v38 }
 0x53b   : > { %v3609_v1 = vadd.f32 %v4459_v39, %v3542_v61 }
 0x53c   : > { %v3610_v15 = vadd.f32 %v4460_v52, %v3366_v48 }
 0x53d   : > { %3673 = vst [vmem:[%s7092_s24 + $0x1a8] sm:$0xff] %v3609_v1 }
 0x53e   : > { %3674 = vst [vmem:[%s7092_s24 + $0x1b0] sm:$0xff] %v3610_v15  ;;  %v3454_v37 = vpop.f32.mrf.mxu2  ;;  %v3543_v31 = vpop.f32.mrf.mxu3 }
 0x53f   : > { %v3455_v8 = vadd.f32 %v3454_v37, %v7057_v17  ;;  %v3279_v33 = vpop.f32.mrf.mxu0  ;;  %v3368_v4 = vpop.f32.mrf.mxu1 }
 0x540   : > { %v3280_v36 = vadd.f32 %v3279_v33, %v7028_v9 }
 0x541   : > { %v3544_v34 = vadd.f32 %v3543_v31, %v3455_v8 }
 0x542   : > { %v3369_v0 = vadd.f32 %v3368_v4, %v3280_v36 }
 0x543   : > { %v3611_v58 = vadd.f32 %v4461_v2, %v3544_v34 }
 0x544   : > { %v3612_v24 = vadd.f32 %v4462_v35, %v3369_v0 }
 0x545   : > { %3675 = vst [vmem:[%s7092_s24 + $0x1b8] sm:$0xff] %v3611_v58 }
 0x546   : > { %3676 = vst [vmem:[%s7092_s24 + $0x1c0] sm:$0xff] %v3612_v24  ;;  %v3457_v3 = vpop.f32.mrf.mxu2  ;;  %v3546_v56 = vpop.f32.mrf.mxu3 }
 0x547   : > { %v3458_v18 = vadd.f32 %v3457_v3, %v7057_v17  ;;  %v3281_v43 = vpop.f32.mrf.mxu0  ;;  %v3370_v59 = vpop.f32.mrf.mxu1 }
 0x548   : > { %v3282_v16 = vadd.f32 %v3281_v43, %v7028_v9 }
 0x549   : > { %v3547_v25 = vadd.f32 %v3546_v56, %v3458_v18 }
 0x54a   : > { %v3371_v23 = vadd.f32 %v3370_v59, %v3282_v16 }
 0x54b   : > { %v3613_v26 = vadd.f32 %v4463_v19, %v3547_v25 }
 0x54c   : > { %v3614_v63 = vadd.f32 %v4464_v21, %v3371_v23 }
 0x54d   : > { %3677 = vst [vmem:[%s7092_s24 + $0x1c8] sm:$0xff] %v3613_v26 }
 0x54e   : > { %3678 = vst [vmem:[%s7092_s24 + $0x1d0] sm:$0xff] %v3614_v63  ;;  %v3459_v30 = vpop.f32.mrf.mxu2  ;;  %v3548_v7 = vpop.f32.mrf.mxu3 }
 0x54f   : > { %v3460_v62 = vadd.f32 %v3459_v30, %v7057_v17  ;;  %v3284_v27 = vpop.f32.mrf.mxu0  ;;  %v3373_v40 = vpop.f32.mrf.mxu1 }
 0x550   : > { %v3285_v12 = vadd.f32 %v3284_v27, %v7028_v9 }
 0x551   : > { %v3549_v28 = vadd.f32 %v3548_v7, %v3460_v62 }
 0x552   : > { %v3374_v53 = vadd.f32 %v3373_v40, %v3285_v12 }
 0x553   : > { %v3615_v50 = vadd.f32 %v4465_v20, %v3549_v28 }
 0x554   : > { %v3616_v57 = vadd.f32 %v4466_v5, %v3374_v53 }
 0x555   : > { %3679 = vst [vmem:[%s7092_s24 + $0x1d8] sm:$0xff] %v3615_v50 }
 0x556   : > { %3680 = vst [vmem:[%s7092_s24 + $0x1e0] sm:$0xff] %v3616_v57  ;;  %v3462_v22 = vpop.f32.mrf.mxu2  ;;  %v3551_v46 = vpop.f32.mrf.mxu3 }
 0x557   : > { %v3463_v44 = vadd.f32 %v3462_v22, %v7057_v17  ;;  %v3286_v47 = vpop.f32.mrf.mxu0  ;;  %v3375_v10 = vpop.f32.mrf.mxu1 }
 0x558   : > { %v3287_v55 = vadd.f32 %v3286_v47, %v7028_v9 }
 0x559   : > { %v3552_v11 = vadd.f32 %v3551_v46, %v3463_v44 }
 0x55a   : > { %v3376_v14 = vadd.f32 %v3375_v10, %v3287_v55 }
 0x55b   : > { %v3617_v49 = vadd.f32 %v4467_v60, %v3552_v11 }
 0x55c   : > { %v3618_v45 = vadd.f32 %v4468_v13, %v3376_v14 }
 0x55d   : > { %3681 = vst [vmem:[%s7092_s24 + $0x1e8] sm:$0xff] %v3617_v49 }
 0x55e   : > { %3682 = vst [vmem:[%s7092_s24 + $0x1f0] sm:$0xff] %v3618_v45  ;;  %v3464_v42 = vpop.f32.mrf.mxu2  ;;  %v3553_v54 = vpop.f32.mrf.mxu3 }
 0x55f   : > { %v3465_v9 = vadd.f32 %v3464_v42, %v7057_v17 }
 0x561   : > { %v3554_v6 = vadd.f32 %v3553_v54, %v3465_v9 }
 0x563   : > { %v3619_v41 = vadd.f32 %v4469_v32, %v3554_v6 }
 0x565   : > { %3683 = vst [vmem:[%s7092_s24 + $0x1f8] sm:$0xff] %v3619_v41 }
 0x566   : > { %4677 = shalt.err (!%p4674_p9)
}
 0x567   : > { %s4740_s21 = smov 256   ;;  %s4741_s25 = smov 16  }
 0x568   : > { %4194 = dma.vmem_to_hbm [thread:$0]  (%p4882_p0), %s3699_s13, 8192, %s3701_s16, %s3685_s3, %s4740_s21, %s4740_s21, %s4741_s25  }
 0x569 PF: > { %s3715_s24 = sand.u32 1, %s4716_s30   ;;  %p8094_p10 = scmp.ge.s32.totalorder %s4728_s12, 2 }
 0x56a   : > { %s3716_s28 = scalar_lea.sflag [#allocation4], %s3715_s24 }
 0x56b   : > { %p4217_p11 = pnand %p8094_p10, %p4888_p6 }
 0x56d   : > { %p4218_p12 = pneg %p4217_p11 }
 0x56f   : > { %4711 = dma.done.wait (%p4218_p12), %s3716_s28, 8192  }
 0x570   : > { %4713 = vsyncadd (%p4218_p12), %s3716_s28, 4294959104  ;;  %p25_p2 = scmp.ge.s32.totalorder %s4858_s18, 4   ;;  %s8095_s30 = smov %s4720_s10 }
 0x571   : > { %s8096_s10 = smov %s4724_s11  ;;  %s8097_s11 = smov %s4870_s15 }
 0x572   : > { %s8098_s12 = smov %s4858_s18  ;;  %27 = sbr.rel (!%p25_p2) target bundleno = 13 (0xd), region = 121 }
 0x577   :  { %3722 = vsyncpa [#allocation3], 1 }
 0x578   :  { %3724 = vsyncpa [#allocation3 + $0x1], 1 }
 0x579   :  { %3725 = vsyncpa [#allocation6], 1 }
 0x57a   :  { %3726 = vsyncpa [#allocation9], 1 }
 0x57b   :  { %3727 = vsyncpa [#allocation12], 1 }
 0x57c   :  { %3728 = vsyncpa [#allocation4], 1 }
 0x57d   :  { %3730 = vsyncpa [#allocation4 + $0x1], 1 }

// kernel: tpu_custom_call.1
= control target key start
LH: loop header
LB: loop body
LE: loop exit
PB: predicated region body
PF: predicated region fallthrough
CT: control target
= control target key end

     0   :  { %s7794_s0 = inlined_call_operand.hbm [shape: f32[512,256], index: 0, kind: input, shape index: {}]   ;;  %s7795_s1 = inlined_call_operand.hbm [shape: f32[1,256], index: 1, kind: input, shape index: {}]   ;;  %s7796_s2 = inlined_call_operand.hbm [shape: f32[1,256], index: 2, kind: input, shape index: {}]   ;;  %s7797_s3 = inlined_call_operand.hbm [shape: bf16[256,256], index: 3, kind: input, shape index: {}]   ;;  %s7798_s4 = inlined_call_operand.vmem [shape: f32[1,256], index: 4, kind: input, shape index: {}]   ;;  %s7799_s5 = inlined_call_operand.vmem [shape: f32[1,256], index: 5, kind: input, shape index: {}]   ;;  %s7800_s6 = inlined_call_operand.hbm [shape: f32[1,256], index: 6, kind: input, shape index: {}]   ;;  %s7801_s7 = inlined_call_operand.hbm [shape: bf16[256,256], index: 7, kind: input, shape index: {}]   ;;  %s7802_s8 = inlined_call_operand.vmem [shape: f32[1,256], index: 8, kind: input, shape index: {}]   ;;  %s7803_s9 = inlined_call_operand.hbm [shape: f32[512,256], index: 9, kind: output, shape index: {}]  }
   0x1   :  { %7889 = sst [smem:[#allocation44_spill]] %s7795_s1 }
   0x2   :  { %7890 = sst [smem:[#allocation45_spill]] %s7796_s2 }
   0x3   :  { %7891 = sst [smem:[#allocation46_spill]] %s7797_s3 }
   0x4   :  { %7892 = sst [smem:[#allocation47_spill]] %s7800_s6 }
   0x5   :  { %14 = vsyncpa [#allocation3], 0 }
   0x6   :  { %16 = vsyncpa [#allocation3 + $0x1], 0 }
   0x7   :  { %17 = vsyncpa [#allocation6], 0 }
   0x8   :  { %18 = vsyncpa [#allocation9], 0 }
   0x9   :  { %19 = vsyncpa [#allocation12], 0 }
   0xa   :  { %20 = vsyncpa [#allocation4], 0 }
   0xb   :  { %22 = vsyncpa [#allocation4 + $0x1], 0  ;;  %s4792_s30 = smov 0   ;;  %s4794_s10 = smov 0  }
   0xc   :  { %s4796_s11 = smov 0   ;;  %s4798_s12 = smov 0  }
   0xd LB: > { %s7893_s1 = sld [smem:[#allocation44_spill]]  ;;  %s4816_s16 = sadd.s32 4294967295, %s4728_s12   ;;  %s4728_s12 = sphi %s4798_s12, %s8098_s12   ;;  %s4724_s11 = sphi %s4796_s11, %s8097_s11   ;;  %s4720_s10 = sphi %s4794_s10, %s8096_s10   ;;  %s4716_s30 = sphi %s4792_s30, %s8095_s30  }
   0xe   : > { %p3823_p0 = scmp.ge.s32.totalorder %s4728_s12, 1  ;;  %p49_p1 = scmp.eq.s32.totalorder %s4816_s16, 0 }
   0xf   : > { %p253_p2 = scmp.lt.s32.totalorder %s4728_s12, 3  ;;  %s4730_s18 = smov [#allocation5]  }
  0x10   : > { %s267_s19 = sshll.u32 %s4730_s18, 4  ;;  %s7895_s3 = sld [smem:[#allocation46_spill]]  ;;  %s268_s19 = int_to_ptr.vmem [resolvable:$true] %s267_s19 }
  0x11   : > { %p4821_p3 = pnand %p3823_p0, %p253_p2  ;;  %s4731_s24 = smov [#allocation8]  }
  0x12   : > { %s290_s25 = sshll.u32 %s4731_s24, 4  ;;  %s4732_s26 = smov 128   ;;  %s291_s25 = int_to_ptr.vmem [resolvable:$true] %s290_s25 }
  0x13   : > { %s265_s15 = sshll.u32 %s7893_s1, 4  ;;  %p4196_p5 = pneg %p4821_p3  ;;  %s266_s15 = int_to_ptr.hbm [resolvable:$true] %s265_s15 }
  0x14   : > { %s4733_s27 = smov 8   ;;  %s7897_s2 = sld [smem:[#allocation45_spill]] }
  0x15   : > { %p4833_p6 = pnand %p4196_p5, %p49_p1  ;;  %s4734_s14 = smov [#allocation7]  }
  0x16   : > { %s288_s22 = sshll.u32 %s7895_s3, 4  ;;  %s279_s18 = sshll.u32 %s4734_s14, 4  ;;  %s289_s22 = int_to_ptr.hbm [resolvable:$true] %s288_s22  ;;  %s280_s18 = int_to_ptr.vmem [resolvable:$true] %s279_s18 }
  0x17   : > { %4199 = dma.hbm_to_vmem [thread:$0]  (!%p4833_p6), %s266_s15, 32, %s268_s19, [#allocation6]  }
  0x18   : > { %4205 = dma.hbm_to_vmem [thread:$0]  (!%p4833_p6), %s289_s22, 4096, %s291_s25, [#allocation9], %s4732_s26, %s4732_s26, %s4733_s27  }
  0x19   : > { %s7898_s6 = sld [smem:[#allocation47_spill]]  ;;  %s4735_s19 = smov [#allocation10]  }
  0x1a   : > { %s277_s13 = sshll.u32 %s7897_s2, 4  ;;  %s311_s22 = sshll.u32 %s4735_s19, 4  ;;  %s278_s13 = int_to_ptr.hbm [resolvable:$true] %s277_s13  ;;  %s312_s22 = int_to_ptr.vmem [resolvable:$true] %s311_s22 }
  0x1b   : > { %4202 = dma.hbm_to_vmem [thread:$0]  (!%p4833_p6), %s278_s13, 32, %s280_s18, [#allocation6]  }
  0x1c   : > { %s320_s28 = sshll.u32 %s7801_s7, 4  ;;  %s4736_s29 = smov [#allocation11]   ;;  %s321_s28 = int_to_ptr.hbm [resolvable:$true] %s320_s28 }
  0x1d   : > { %s322_s13 = sshll.u32 %s4736_s29, 4  ;;  %s3822_s14 = sadd.s32 4294967294, %s4728_s12   ;;  %s323_s13 = int_to_ptr.vmem [resolvable:$true] %s322_s13 }
  0x1e   : > { %4211 = dma.hbm_to_vmem [thread:$0]  (!%p4833_p6), %s321_s28, 4096, %s323_s13, [#allocation12], %s4732_s26, %s4732_s26, %s4733_s27  }
  0x1f   : > { %s309_s15 = sshll.u32 %s7898_s6, 4  ;;  %s4858_s18 = sadd.s32 1, %s4728_s12   ;;  %s310_s15 = int_to_ptr.hbm [resolvable:$true] %s309_s15 }
  0x20   : > { %4208 = dma.hbm_to_vmem [thread:$0]  (!%p4833_p6), %s310_s15, 32, %s312_s22, [#allocation9]  }
  0x21   : > { %s35_s20 = sadd.s32 1, %s4724_s11  ;;  %s32_s21 = ssub.s32 %s4728_s12, %s4858_s18 }
  0x22   : > { %p42_p7 = scmp.ne.s32.totalorder %s4724_s11, %s4720_s10  ;;  %p33_p8 = scmp.eq.s32.totalorder %s32_s21, 0 }
  0x23   : > { %p43_p9 = scmp.eq.s32.totalorder %s4728_s12, 0  ;;  %p48_p10 = scmp.ne.s32.totalorder %s4720_s10, %s4716_s30 }
  0x24   : > { %p240_p11 = scmp.eq.s32.totalorder %s4816_s16, 1  ;;  %p246_p2 = scmp.eq.s32.totalorder %s3822_s14, 1 }
  0x25   : > { %s4870_s15 = scalar_select %p33_p8, %s4724_s11, %s35_s20  }
  0x26   : > { %p4872_p12 = por %p43_p9, %p42_p7  ;;  %p4878_p13 = por %p49_p1, %p48_p10 }
  0x27   : > { %p4882_p0 = por %p240_p11, %p42_p7  ;;  %p4225_p5 = scmp.lt.s32.totalorder %s4728_s12, 2 }
  0x28   : > { %s339_s27 = sand.u32 1, %s4724_s11   ;;  %p4888_p6 = por %p246_p2, %p48_p10 }
  0x29   : > { %s3830_s24 = sshll.u32 %s339_s27, 9  ;;  %s4105_s25 = sshll.u32 %s4728_s12, 9 }
  0x2a   : > { %s349_s13 = scalar_lea.hbm %s7794_s0, %s4105_s25  ;;  %s343_s21 = scalar_lea.vmem [#allocation2], %s3830_s24 }
  0x2b   : > { %s350_s20 = sshll.u32 %s349_s13, 4  ;;  %s352_s1 = sshll.u32 %s343_s21, 4  ;;  %s351_s20 = int_to_ptr.hbm [resolvable:$true] %s350_s20  ;;  %s353_s1 = int_to_ptr.vmem [resolvable:$true] %s352_s1 }
  0x2c   : > { %p4898_p7 = pnand %p4225_p5, %p4872_p12  ;;  %s340_s2 = scalar_lea.sflag [#allocation3], %s339_s27 }
  0x2d   : > { %s4620_s3 = sshra.s32 %s351_s20, 4  ;;  %s4627_s28 = scalar_lea.hbm %s7794_s0, 1024  ;;  %s4621_s3 = int_to_ptr.hbm [resolvable:$true] %s4620_s3 }
  0x2e   : > { %s4622_s6 = scalar_lea.hbm %s4621_s3, 512  ;;  %p4624_p9 = pneg %p4898_p7 }
  0x2f   : > { %p4623_p8 = scmp.ne.s32.totalorder %s4621_s3, %s4622_s6  ;;  %p4628_p12 = scmp.lt.s32.totalorder %s4621_s3, %s7794_s0 }
  0x30   : > { %p4629_p2 = scmp.lt.s32.totalorder %s4627_s28, %s4622_s6 }
  0x31   : > { %p4625_p10 = pnand %p4624_p9, %p4623_p8 }
  0x32   : > { %p4630_p5 = por %p4629_p2, %p4628_p12 }
  0x33   : > { %p4626_p11 = pneg %p4625_p10 }
  0x35   : > { %p4631_p4 = pnand %p4630_p5, %p4626_p11 }
  0x37   : > { %4634 = shalt.err (!%p4631_p4)
}
  0x38   : > { %s4737_s27 = smov 256   ;;  %s4738_s13 = smov 16  }
  0x39   : > { %4215 = dma.hbm_to_vmem [thread:$0]  (!%p4898_p7), %s351_s20, 8192, %s353_s1, %s340_s2, %s4737_s27, %s4737_s27, %s4738_s13  }
  0x3a   : > { %364 = sbr.rel (%p4821_p3) target bundleno = 1385 (0x569), region = 56 }
  0x3f   : > { %s4915_s21 = sand.u32 1, %s4720_s10  }
  0x40   : > { %s3835_s3 = sshll.u32 %s4915_s21, 9  ;;  %s367_s6 = scalar_lea.sflag [#allocation3], %s4915_s21 }
  0x41   : > { %s4921_s25 = scalar_lea.vmem [#allocation2], %s3835_s3 }
  0x42   : > { %4695 = dma.done.wait (%p4878_p13), %s367_s6, 8192  }
  0x43   : > { %4697 = vsyncadd (%p4878_p13), %s367_s6, 4294959104 }
  0x44   : > { %4699 = dma.done.wait (%p49_p1), [#allocation6], 64  }
  0x45   : > { %4701 = vsyncadd (%p49_p1), [#allocation6], 4294967232 }
  0x46   : > { %4703 = dma.done.wait (%p49_p1), [#allocation9], 4128  }
  0x47   : > { %4705 = vsyncadd (%p49_p1), [#allocation9], 4294963168 }
  0x48   : > { %4707 = dma.done.wait (%p49_p1), [#allocation12], 4096  }
  0x49   : > { %4709 = vsyncadd (%p49_p1), [#allocation12], 4294963200  ;;  %v4940_v0 = vld [vmem:[%s4921_s25 + $0x20] sm:$0xff]  ;;  %v4943_v1 = vld [vmem:[%s4921_s25 + $0x28] sm:$0xff]  ;;  %v4739_v27 = vmov 256.0   ;;  %s7092_s24 = scalar_lea.vmem [#allocation13], %s3835_s3 }
  0x4a   : > { %v433_v2 = vld [vmem:[%s4921_s25] sm:$0xff]  ;;  %v505_v3 = vadd.f32 %v4943_v1, %v4940_v0  ;;  %v434_v4 = vld [vmem:[%s4921_s25 + $0x8] sm:$0xff]  ;;  %v439_v8 = vld [vmem:[%s4921_s25 + $0x30] sm:$0xff]  ;;  %4276 = vrcp.f32 %v4739_v27  ;;  %s4171_s28 = sshll.u32 %s4816_s16, 9  ;;  %s3698_s13 = sshll.u32 %s7092_s24, 4  ;;  %s3699_s13 = int_to_ptr.vmem [resolvable:$true] %s3698_s13 }
  0x4b   : > { %v499_v5 = vadd.f32 %v434_v4, %v433_v2  ;;  %v441_v6 = vld [vmem:[%s4921_s25 + $0x40] sm:$0xff]  ;;  %v442_v7 = vld [vmem:[%s4921_s25 + $0x48] sm:$0xff]  ;;  %v440_v9 = vld [vmem:[%s4921_s25 + $0x38] sm:$0xff]  ;;  %s3697_s27 = scalar_lea.hbm %s7803_s9, %s4171_s28  ;;  %s3685_s3 = scalar_lea.sflag [#allocation4], %s4915_s21 }
  0x4c   : > { %506 = vadd.xlane.f32.xlu1 %v505_v3  ;;  %v511_v10 = vadd.f32 %v442_v7, %v441_v6  ;;  %v435_v11 = vld [vmem:[%s4921_s25 + $0x10] sm:$0xff]  ;;  %v436_v12 = vld [vmem:[%s4921_s25 + $0x18] sm:$0xff]  ;;  %v508_v13 = vadd.f32 %v440_v9, %v439_v8  ;;  %v4970_v20 = vld [vmem:[%s4921_s25 + $0x60] sm:$0xff]  ;;  %s3700_s16 = sshll.u32 %s3697_s27, 4  ;;  %s4670_s23 = scalar_lea.hbm %s7803_s9, 1024  ;;  %s3701_s16 = int_to_ptr.hbm [resolvable:$true] %s3700_s16 }
  0x4d   : > { %500 = vadd.xlane.f32.xlu0 %v499_v5  ;;  %v4956_v14 = vld [vmem:[%s4921_s25 + $0x50] sm:$0xff]  ;;  %v4959_v15 = vld [vmem:[%s4921_s25 + $0x58] sm:$0xff]  ;;  %v502_v16 = vadd.f32 %v436_v12, %v435_v11  ;;  %v4973_v21 = vld [vmem:[%s4921_s25 + $0x68] sm:$0xff]  ;;  %s4664_s6 = sshra.s32 %s3701_s16, 4  ;;  %s4665_s6 = int_to_ptr.hbm [resolvable:$true] %s4664_s6 }
  0x4e   : > { %512 = vadd.xlane.f32.xlu2 %v511_v10  ;;  %v514_v17 = vadd.f32 %v4959_v15, %v4956_v14  ;;  %v4964_v18 = vld [vmem:[%s4921_s25 + $0x70] sm:$0xff]  ;;  %v4967_v19 = vld [vmem:[%s4921_s25 + $0x78] sm:$0xff]  ;;  %v517_v23 = vadd.f32 %v4973_v21, %v4970_v20  ;;  %v4980_v24 = vld [vmem:[%s4921_s25 + $0x80] sm:$0xff]  ;;  %s4666_s1 = scalar_lea.hbm %s4665_s6, 512  ;;  %p4671_p13 = scmp.lt.s32.totalorder %s4665_s6, %s7803_s9 }
  0x4f   : > { %v520_v22 = vadd.f32 %v4967_v19, %v4964_v18  ;;  %v4983_v25 = vld [vmem:[%s4921_s25 + $0x88] sm:$0xff]  ;;  %v5001_v47 = vld [vmem:[%s4921_s25 + $0x90] sm:$0xff]  ;;  %v5004_v48 = vld [vmem:[%s4921_s25 + $0x98] sm:$0xff]  ;;  %p4667_p1 = scmp.ne.s32.totalorder %s4665_s6, %s4666_s1  ;;  %p4672_p7 = scmp.lt.s32.totalorder %s4670_s23, %s4666_s1 }
  0x50   : > { %v523_v26 = vadd.f32 %v4983_v25, %v4980_v24  ;;  %v4277_v28 = vpop.eup %4276  ;;  %v526_v55 = vadd.f32 %v5004_v48, %v5001_v47  ;;  %v5071_v27 = vld [vmem:[%s4921_s25 + $0xb0] sm:$0xff] }
  0x51   : > { %v596_v29 = vmul.f32 256.0, %v4277_v28  ;;  %vm600_vm0 = vweird.f32 %v4277_v28  ;;  %p4668_p3 = pnand %p4667_p1, %p4882_p0  ;;  %p4673_p8 = por %p4672_p7, %p4671_p13 }
  0x53   : > { %v597_v30 = vsub.f32 1.0, %v596_v29  ;;  %p4669_p4 = pneg %p4668_p3 }
  0x54   : > { %509 = vadd.xlane.f32.xlu1 %v508_v13 }
  0x55   : > { %503 = vadd.xlane.f32.xlu0 %v502_v16  ;;  %v598_v31 = vmul.f32 %v4277_v28, %v597_v30  ;;  %p4674_p9 = pnand %p4673_p8, %p4669_p4 }
  0x56   : > { %515 = vadd.xlane.f32.xlu2 %v514_v17 }
  0x57   : > { %v599_v32 = vadd.f32 %v4277_v28, %v598_v31 }
  0x59   : > { %v4987_v33 = vsel %vm600_vm0, %v4277_v28, %v599_v32  ;;  %v5074_v28 = vld [vmem:[%s4921_s25 + $0xb8] sm:$0xff] }
  0x5c   : > { %521 = vadd.xlane.f32.xlu1 %v520_v22 }
  0x5d   : > { %518 = vadd.xlane.f32.xlu0 %v517_v23  ;;  %v5061_v23 = vld [vmem:[%s4921_s25 + $0xd0] sm:$0xff] }
  0x64   : > { %524 = vadd.xlane.f32.xlu1 %v523_v26  ;;  %v5064_v26 = vld [vmem:[%s4921_s25 + $0xd8] sm:$0xff] }
  0x65   : > { %v538_v29 = vadd.f32 %v5064_v26, %v5061_v23 }
  0xbf   : > { %v507_v34 = vpop.xlane.xlu1 %506 }
  0xc0   : > { %v501_v35 = vpop.xlane.xlu0 %500  ;;  %v604_v49 = vmul.f32 %v4987_v33, %v507_v34 }
  0xc1   : > { %v602_v36 = vmul.f32 %v4987_v33, %v501_v35  ;;  %v513_v39 = vpop.xlane.xlu2 %512  ;;  %v532_v35 = vadd.f32 %v5074_v28, %v5071_v27 }
  0xc2   : > { %v606_v46 = vmul.f32 %v4987_v33, %v513_v39  ;;  %v5027_v60 = vsub.f32 %v4940_v0, %v604_v49  ;;  %v5030_v61 = vsub.f32 %v4943_v1, %v604_v49  ;;  %v5088_v39 = vld [vmem:[%s4921_s25 + $0xe0] sm:$0xff] }
  0xc3   : > { %v4990_v37 = vsub.f32 %v433_v2, %v602_v36  ;;  %v4992_v38 = vsub.f32 %v434_v4, %v602_v36 }
  0xc4   : > { %v5018_v56 = vsub.f32 %v441_v6, %v606_v46  ;;  %v5020_v57 = vsub.f32 %v442_v7, %v606_v46  ;;  %v702_v6 = vmul.f32 %v5027_v60, %v5027_v60  ;;  %v703_v7 = vmul.f32 %v5030_v61, %v5030_v61 }
  0xc5   : > { %v698_v40 = vmul.f32 %v4990_v37, %v4990_v37  ;;  %v699_v41 = vmul.f32 %v4992_v38, %v4992_v38 }
  0xc6   : > { %v706_v5 = vmul.f32 %v5018_v56, %v5018_v56  ;;  %v707_v0 = vmul.f32 %v5020_v57, %v5020_v57  ;;  %v768_v16 = vadd.f32 %v703_v7, %v702_v6  ;;  %v5145_v6 = vld [vmem:[%s4921_s25 + $0x110] sm:$0xff]  ;;  %v5148_v7 = vld [vmem:[%s4921_s25 + $0x118] sm:$0xff] }
  0xc7   : > { %v510_v42 = vpop.xlane.xlu1 %509  ;;  %v762_v43 = vadd.f32 %v699_v41, %v698_v40  ;;  %v5091_v40 = vld [vmem:[%s4921_s25 + $0xe8] sm:$0xff]  ;;  %v5098_v41 = vld [vmem:[%s4921_s25 + $0xc0] sm:$0xff] }
  0xc8   : > { %v605_v44 = vmul.f32 %v4987_v33, %v510_v42  ;;  %v504_v45 = vpop.xlane.xlu0 %503  ;;  %v774_v10 = vadd.f32 %v707_v0, %v706_v5  ;;  %v5101_v42 = vld [vmem:[%s4921_s25 + $0xc8] sm:$0xff]  ;;  %v5137_v0 = vld [vmem:[%s4921_s25 + $0x100] sm:$0xff] }
  0xc9   : > { %v603_v50 = vmul.f32 %v4987_v33, %v504_v45  ;;  %763 = vadd.xlane.f32.xlu2 %v762_v43  ;;  %v516_v3 = vpop.xlane.xlu2 %515  ;;  %v541_v43 = vadd.f32 %v5091_v40, %v5088_v39  ;;  %v535_v46 = vadd.f32 %v5101_v42, %v5098_v41 }
  0xca   : > { %v5008_v51 = vsub.f32 %v439_v8, %v605_v44  ;;  %v5010_v52 = vsub.f32 %v440_v9, %v605_v44  ;;  %v607_v1 = vmul.f32 %v4987_v33, %v516_v3  ;;  %v5046_v8 = vld [vmem:[%s4921_s25 + $0xa0] sm:$0xff]  ;;  %v5049_v9 = vld [vmem:[%s4921_s25 + $0xa8] sm:$0xff] }
  0xcb   : > { %v5012_v53 = vsub.f32 %v435_v11, %v603_v50  ;;  %v5014_v54 = vsub.f32 %v436_v12, %v603_v50  ;;  %v529_v13 = vadd.f32 %v5049_v9, %v5046_v8 }
  0xcc   : > { %v704_v58 = vmul.f32 %v5008_v51, %v5008_v51  ;;  %v705_v59 = vmul.f32 %v5010_v52, %v5010_v52  ;;  %v5052_v11 = vsub.f32 %v4956_v14, %v607_v1  ;;  %v5055_v12 = vsub.f32 %v4959_v15, %v607_v1 }
  0xcd   : > { %v700_v62 = vmul.f32 %v5012_v53, %v5012_v53  ;;  %v701_v63 = vmul.f32 %v5014_v54, %v5014_v54 }
  0xce   : > { %v771_v2 = vadd.f32 %v705_v59, %v704_v58  ;;  %v708_v14 = vmul.f32 %v5052_v11, %v5052_v11  ;;  %v709_v15 = vmul.f32 %v5055_v12, %v5055_v12  ;;  %v5122_v59 = vld [vmem:[%s4921_s25 + $0xf8] sm:$0xff] }
  0xcf   : > { %v765_v4 = vadd.f32 %v701_v63, %v700_v62  ;;  %v522_v30 = vpop.xlane.xlu1 %521 }
  0xd0   : > { %772 = vadd.xlane.f32.xlu1 %v771_v2  ;;  %v519_v17 = vpop.xlane.xlu0 %518  ;;  %v777_v34 = vadd.f32 %v709_v15, %v708_v14  ;;  %v609_v36 = vmul.f32 %v4987_v33, %v522_v30  ;;  %v4121_v14 = vld [vmem:[#allocation8 + $0x74] sm:$0xf0]  ;;  %v3964_v15 = vld [vmem:[#allocation8 + $0xf0] sm:$0xf] }
  0xd1   : > { %527 = vadd.xlane.f32.xlu2 %v526_v55  ;;  %766 = vadd.xlane.f32.xlu0 %v765_v4  ;;  %v608_v22 = vmul.f32 %v4987_v33, %v519_v17  ;;  %v4137_v30 = vld [vmem:[#allocation8 + $0xf4] sm:$0xf0] }
  0xd2   : > { %v5106_v44 = vsub.f32 %v4964_v18, %v609_v36  ;;  %v5109_v45 = vsub.f32 %v4967_v19, %v609_v36  ;;  %v5119_v19 = vld [vmem:[%s4921_s25 + $0xf0] sm:$0xff]  ;;  %v3965_v36 = vor.u32 %v4137_v30, %v3964_v15  ;;  %v4116_v30 = vld [vmem:[#allocation8 + $0x54] sm:$0xf] }
  0xd3   : > { %v5079_v31 = vsub.f32 %v4970_v20, %v608_v22  ;;  %v5082_v32 = vsub.f32 %v4973_v21, %v608_v22  ;;  %v544_v3 = vadd.f32 %v5122_v59, %v5119_v19  ;;  %v3900_v22 = vld [vmem:[#allocation8 + $0x70] sm:$0xf] }
  0xd4   : > { %v712_v58 = vmul.f32 %v5106_v44, %v5106_v44  ;;  %v713_v18 = vmul.f32 %v5109_v45, %v5109_v45  ;;  %1763 = vmatpush.bf16.msra.mxu1 %v3965_v36 }
  0xd5   : > { %v710_v20 = vmul.f32 %v5079_v31, %v5079_v31  ;;  %v711_v21 = vmul.f32 %v5082_v32, %v5082_v32 }
  0xd6   : > { %v783_v2 = vadd.f32 %v713_v18, %v712_v58  ;;  %v4135_v18 = vld [vmem:[#allocation8 + $0xe4] sm:$0xf0] }
  0xd7   : > { %v780_v49 = vadd.f32 %v711_v21, %v710_v20  ;;  %v525_v50 = vpop.xlane.xlu1 %524  ;;  %v4136_v21 = vld [vmem:[#allocation8 + $0xf4] sm:$0xf] }
  0xd8   : > { %775 = vadd.xlane.f32.xlu1 %v774_v10  ;;  %v610_v55 = vmul.f32 %v4987_v33, %v525_v50  ;;  %v550_v10 = vadd.f32 %v5148_v7, %v5145_v6  ;;  %v4119_v50 = vld [vmem:[#allocation8 + $0x64] sm:$0xf0] }
  0xd9   : > { %530 = vadd.xlane.f32.xlu2 %v529_v13  ;;  %769 = vadd.xlane.f32.xlu0 %v768_v16  ;;  %v5153_v13 = vld [vmem:[%s4921_s25 + $0x120] sm:$0xff]  ;;  %v5156_v16 = vld [vmem:[%s4921_s25 + $0x128] sm:$0xff] }
  0xda   : > { %v5125_v62 = vsub.f32 %v4980_v24, %v610_v55  ;;  %v5128_v63 = vsub.f32 %v4983_v25, %v610_v55  ;;  %v5140_v24 = vld [vmem:[%s4921_s25 + $0x108] sm:$0xff]  ;;  %v553_v17 = vadd.f32 %v5156_v16, %v5153_v13  ;;  %v3956_v55 = vld [vmem:[#allocation8 + $0xe0] sm:$0xf] }
  0xdb   : > { %v547_v1 = vadd.f32 %v5140_v24, %v5137_v0 }
  0xdc   : > { %7904 = vst [vmem:[#allocation19_spill] sm:$0xff] %v5128_v63  ;;  %v714_v4 = vmul.f32 %v5125_v62, %v5125_v62  ;;  %v715_v5 = vmul.f32 %v5128_v63, %v5128_v63 }
  0xde   : > { %v786_v25 = vadd.f32 %v715_v5, %v714_v4  ;;  %v3957_v4 = vor.u32 %v4135_v18, %v3956_v55  ;;  %v4114_v18 = vld [vmem:[#allocation8 + $0x44] sm:$0xf] }
  0xe0   : > { %539 = vadd.xlane.f32.xlu1 %v538_v29  ;;  %v3901_v29 = vor.u32 %v4121_v14, %v3900_v22  ;;  %1764 = vmatpush.bf16.msra.mxu1 %v3957_v4  ;;  %v4117_v22 = vld [vmem:[#allocation8 + $0x54] sm:$0xf0]  ;;  %v3948_v14 = vld [vmem:[#allocation8 + $0xd0] sm:$0xf] }
  0xe1   : > { %778 = vadd.xlane.f32.xlu2 %v777_v34  ;;  %533 = vadd.xlane.f32.xlu0 %v532_v35  ;;  %v4120_v34 = vld [vmem:[#allocation8 + $0x74] sm:$0xf]  ;;  %v3902_v35 = vld [vmem:[#allocation8 + $0x78] sm:$0xf0] }
  0xe2   : > { %v3905_v20 = vor.u32 %v4120_v34, %v3902_v35  ;;  %1674 = vmatpush.bf16.msra.mxu0 %v3901_v29  ;;  %v4133_v29 = vld [vmem:[#allocation8 + $0xd4] sm:$0xf0]  ;;  %v3886_v34 = vld [vmem:[#allocation8 + $0x58] sm:$0xf0] }
  0xe3   : > { %v3949_v35 = vor.u32 %v4133_v29, %v3948_v14  ;;  %v3889_v36 = vor.u32 %v4116_v30, %v3886_v34  ;;  %v4112_v29 = vld [vmem:[#allocation8 + $0x34] sm:$0xf]  ;;  %v3870_v30 = vld [vmem:[#allocation8 + $0x38] sm:$0xf0] }
  0xe4   : > { %1852 = vmatpush.bf16.msra.mxu2 %v3905_v20  ;;  %v4132_v20 = vld [vmem:[#allocation8 + $0xd4] sm:$0xf] }
  0xe5   : > { %1765 = vmatpush.bf16.msra.mxu1 %v3949_v35  ;;  %v3873_v35 = vor.u32 %v4112_v29, %v3870_v30  ;;  %v4108_v29 = vld [vmem:[#allocation8 + $0x14] sm:$0xf]  ;;  %v3854_v30 = vld [vmem:[#allocation8 + $0x18] sm:$0xf0] }
  0xe8   : > { %542 = vadd.xlane.f32.xlu1 %v541_v43  ;;  %v3966_v43 = vld [vmem:[#allocation8 + $0xf8] sm:$0xf0] }
  0xe9   : > { %536 = vadd.xlane.f32.xlu0 %v535_v46  ;;  %781 = vadd.xlane.f32.xlu2 %v780_v49  ;;  %v3969_v46 = vor.u32 %v4136_v21, %v3966_v43  ;;  %v3892_v49 = vld [vmem:[#allocation8 + $0x60] sm:$0xf]  ;;  %v3950_v21 = vld [vmem:[#allocation8 + $0xd8] sm:$0xf0] }
  0xea   : > { %v3893_v58 = vor.u32 %v4119_v50, %v3892_v49  ;;  %v3953_v43 = vor.u32 %v4132_v20, %v3950_v21  ;;  %v4115_v49 = vld [vmem:[#allocation8 + $0x44] sm:$0xf0]  ;;  %v3940_v50 = vld [vmem:[#allocation8 + $0xc0] sm:$0xf]  ;;  %v3934_v20 = vld [vmem:[#allocation8 + $0xb8] sm:$0xf0] }
  0xeb   : > { %1941 = vmatpush.bf16.msra.mxu3 %v3969_v46  ;;  %v3876_v46 = vld [vmem:[#allocation8 + $0x40] sm:$0xf] }
  0xec   : > { %1675 = vmatpush.bf16.msra.mxu0 %v3893_v58  ;;  %v3877_v55 = vor.u32 %v4115_v49, %v3876_v46  ;;  %v4131_v58 = vld [vmem:[#allocation8 + $0xc4] sm:$0xf0]  ;;  %v3924_v49 = vld [vmem:[#allocation8 + $0xa0] sm:$0xf] }
  0xed   : > { %v4111_v46 = vld [vmem:[#allocation8 + $0x24] sm:$0xf0] }
  0xf1   : > { %784 = vadd.xlane.f32.xlu0 %v783_v2  ;;  %545 = vadd.xlane.f32.xlu2 %v544_v3  ;;  %v4118_v2 = vld [vmem:[#allocation8 + $0x64] sm:$0xf]  ;;  %v3894_v3 = vld [vmem:[#allocation8 + $0x68] sm:$0xf0] }
  0xf2   : > { %v3897_v5 = vor.u32 %v4118_v2, %v3894_v3  ;;  %v3878_v2 = vld [vmem:[#allocation8 + $0x48] sm:$0xf0]  ;;  %v3941_v3 = vor.u32 %v4131_v58, %v3940_v50  ;;  %v4110_v58 = vld [vmem:[#allocation8 + $0x24] sm:$0xf] }
  0xf3   : > { %v3881_v4 = vor.u32 %v4114_v18, %v3878_v2  ;;  %v3862_v18 = vld [vmem:[#allocation8 + $0x28] sm:$0xf0] }
  0xf4   : > { %1853 = vmatpush.bf16.msra.mxu2 %v3897_v5  ;;  %v4130_v5 = vld [vmem:[#allocation8 + $0xc4] sm:$0xf]  ;;  %1766 = vmatpush.bf16.msra.mxu1 %v3941_v3  ;;  %v3865_v3 = vor.u32 %v4110_v58, %v3862_v18  ;;  %v3908_v58 = vld [vmem:[#allocation8 + $0x80] sm:$0xf]  ;;  %v4123_v18 = vld [vmem:[#allocation8 + $0x84] sm:$0xf0] }
  0xf8   : > { %1854 = vmatpush.bf16.msra.mxu2 %v3889_v36  ;;  %v4128_v36 = vld [vmem:[#allocation8 + $0xb4] sm:$0xf] }
  0xf9   : > { %787 = vadd.xlane.f32.xlu0 %v786_v25  ;;  %548 = vadd.xlane.f32.xlu2 %v547_v1  ;;  %v4134_v25 = vld [vmem:[#allocation8 + $0xe4] sm:$0xf]  ;;  %v3958_v1 = vld [vmem:[#allocation8 + $0xe8] sm:$0xf0]  ;;  %v3937_v21 = vor.u32 %v4128_v36, %v3934_v20  ;;  %v3857_v36 = vor.u32 %v4108_v29, %v3854_v30  ;;  %v4124_v20 = vld [vmem:[#allocation8 + $0x94] sm:$0xf] }
  0xfc   : > { %1855 = vmatpush.bf16.msra.mxu2 %v3881_v4  ;;  %v4126_v4 = vld [vmem:[#allocation8 + $0xa4] sm:$0xf] }
 0x100   : > { %1856 = vmatpush.bf16.msra.mxu2 %v3873_v35 }
 0x101   : > { %551 = vadd.xlane.f32.xlu0 %v550_v10  ;;  %v3961_v10 = vor.u32 %v4134_v25, %v3958_v1  ;;  %v3942_v25 = vld [vmem:[#allocation8 + $0xc8] sm:$0xf0] }
 0x102   : > { %v3945_v1 = vor.u32 %v4130_v5, %v3942_v25  ;;  %v3926_v5 = vld [vmem:[#allocation8 + $0xa8] sm:$0xf0] }
 0x103   : > { %1942 = vmatpush.bf16.msra.mxu3 %v3961_v10  ;;  %v3868_v10 = vld [vmem:[#allocation8 + $0x30] sm:$0xf]  ;;  %v3929_v25 = vor.u32 %v4126_v4, %v3926_v5  ;;  %v3846_v4 = vld [vmem:[#allocation8 + $0x8] sm:$0xf0]  ;;  %v4122_v5 = vld [vmem:[#allocation8 + $0x84] sm:$0xf] }
 0x104   : > { %1857 = vmatpush.bf16.msra.mxu2 %v3865_v3  ;;  %v3909_v3 = vor.u32 %v4123_v18, %v3908_v58 }
 0x107   : > { %1943 = vmatpush.bf16.msra.mxu3 %v3953_v43  ;;  %v3860_v43 = vld [vmem:[#allocation8 + $0x20] sm:$0xf] }
 0x108   : > { %v3861_v50 = vor.u32 %v4111_v46, %v3860_v43  ;;  %1858 = vmatpush.bf16.msra.mxu2 %v3857_v36 }
 0x109   : > { %554 = vadd.xlane.f32.xlu0 %v553_v17  ;;  %v3884_v17 = vld [vmem:[#allocation8 + $0x50] sm:$0xf] }
 0x10a   : > { %v3885_v15 = vor.u32 %v4117_v22, %v3884_v17  ;;  %v4113_v17 = vld [vmem:[#allocation8 + $0x34] sm:$0xf0]  ;;  %v3932_v22 = vld [vmem:[#allocation8 + $0xb0] sm:$0xf] }
 0x10b   : > { %1944 = vmatpush.bf16.msra.mxu3 %v3945_v1  ;;  %v3869_v14 = vor.u32 %v4113_v17, %v3868_v10  ;;  %v3852_v1 = vld [vmem:[#allocation8 + $0x10] sm:$0xf]  ;;  %v4109_v10 = vld [vmem:[#allocation8 + $0x14] sm:$0xf0] }
 0x10c   : > { %1676 = vmatpush.bf16.msra.mxu0 %v3885_v15  ;;  %v4129_v15 = vld [vmem:[#allocation8 + $0xb4] sm:$0xf0]  ;;  %v3916_v17 = vld [vmem:[#allocation8 + $0x90] sm:$0xf] }
 0x10d   : > { %v3933_v34 = vor.u32 %v4129_v15, %v3932_v22  ;;  %v4125_v15 = vld [vmem:[#allocation8 + $0x94] sm:$0xf0] }
 0x10e   : > { %v3917_v35 = vor.u32 %v4125_v15, %v3916_v17 }
 0x10f   : > { %1767 = vmatpush.bf16.msra.mxu1 %v3933_v34  ;;  %1945 = vmatpush.bf16.msra.mxu3 %v3937_v21  ;;  %v3918_v21 = vld [vmem:[#allocation8 + $0x98] sm:$0xf0] }
 0x110   : > { %1677 = vmatpush.bf16.msra.mxu0 %v3877_v55  ;;  %v4127_v55 = vld [vmem:[#allocation8 + $0xa4] sm:$0xf0]  ;;  %v3921_v43 = vor.u32 %v4124_v20, %v3918_v21 }
 0x111   : > { %v3925_v2 = vor.u32 %v4127_v55, %v3924_v49  ;;  %v3844_v49 = vld [vmem:[#allocation8] sm:$0xf] }
 0x113   : > { %1768 = vmatpush.bf16.msra.mxu1 %v3925_v2  ;;  %1946 = vmatpush.bf16.msra.mxu3 %v3929_v25  ;;  %v4106_v2 = vld [vmem:[#allocation8 + $0x4] sm:$0xf]  ;;  %v3910_v25 = vld [vmem:[#allocation8 + $0x88] sm:$0xf0] }
 0x114   : > { %1678 = vmatpush.bf16.msra.mxu0 %v3869_v14  ;;  %v3853_v14 = vor.u32 %v4109_v10, %v3852_v1  ;;  %v3849_v1 = vor.u32 %v4106_v2, %v3846_v4  ;;  %v3913_v10 = vor.u32 %v4122_v5, %v3910_v25 }
 0x116   : > { %1859 = vmatpush.bf16.msra.mxu2 %v3849_v1 }
 0x117   : > { %1769 = vmatpush.bf16.msra.mxu1 %v3917_v35  ;;  %1947 = vmatpush.bf16.msra.mxu3 %v3921_v43 }
 0x118   : > { %1679 = vmatpush.bf16.msra.mxu0 %v3861_v50  ;;  %v4107_v50 = vld [vmem:[#allocation8 + $0x4] sm:$0xf0] }
 0x119   : > { %v3845_v55 = vor.u32 %v4107_v50, %v3844_v49 }
 0x11b   : > { %1770 = vmatpush.bf16.msra.mxu1 %v3909_v3  ;;  %1948 = vmatpush.bf16.msra.mxu3 %v3913_v10 }
 0x11c   : > { %1680 = vmatpush.bf16.msra.mxu0 %v3853_v14 }
 0x120   : > { %1681 = vmatpush.bf16.msra.mxu0 %v3845_v55 }
 0x13c   : > { %v764_v22 = vpop.xlane.xlu2 %763 }
 0x13d   : > { %v858_v34 = vmul.f32 %v764_v22, %v4987_v33 }
 0x13f   : > { %v5161_v46 = vadd.f32 1e-05, %v858_v34 }
 0x141   : > { %4278 = vrsqrt.f32 %v5161_v46  ;;  %vm928_vm2 = vweird.f32 %v5161_v46 }
 0x143   : > { %v773_v17 = vpop.xlane.xlu1 %772 }
 0x144   : > { %v861_v22 = vmul.f32 %v773_v17, %v4987_v33  ;;  %v528_v14 = vpop.xlane.xlu2 %527  ;;  %v767_v15 = vpop.xlane.xlu0 %766  ;;  %v497_v17 = vld [vmem:[#allocation5] sm:$0x3] }
 0x145   : > { %v611_v29 = vmul.f32 %v4987_v33, %v528_v14  ;;  %v859_v30 = vmul.f32 %v767_v15, %v4987_v33 }
 0x146   : > { %v5167_v34 = vadd.f32 1e-05, %v861_v22 }
 0x147   : > { %v4279_v35 = vpop.eup %4278  ;;  %v5170_v36 = vsub.f32 %v5001_v47, %v611_v29  ;;  %v5173_v20 = vsub.f32 %v5004_v48, %v611_v29  ;;  %v5175_v21 = vadd.f32 1e-05, %v859_v30 }
 0x148   : > { %v923_v43 = vmul.f32 %v4279_v35, %v5161_v46  ;;  %4280 = vrsqrt.f32 %v5167_v34  ;;  %vm929_vm1 = vweird.f32 %v4279_v35  ;;  %v5224_v46 = vperm.slane %v497_v17, 1 }
 0x149   : > { %7905 = vst [vmem:[#allocation20_spill] sm:$0xff] %v5170_v36  ;;  %4282 = vrsqrt.f32 %v5175_v21  ;;  %v716_v49 = vmul.f32 %v5170_v36, %v5170_v36  ;;  %v717_v50 = vmul.f32 %v5173_v20, %v5173_v20  ;;  %vm930_vm3 = vmor %vm928_vm2, %vm929_vm1  ;;  %vm938_vm4 = vweird.f32 %v5175_v21 }
 0x14a   : > { %7906 = vst [vmem:[#allocation21_spill] sm:$0xff] %v5173_v20  ;;  %v924_v55 = vmul.f32 %v4279_v35, %v923_v43  ;;  %vm958_vm5 = vweird.f32 %v5167_v34 }
 0x14b   : > { %v776_v47 = vpop.xlane.xlu1 %775  ;;  %v789_v58 = vadd.f32 %v717_v50, %v716_v49  ;;  %v498_v49 = vld [vmem:[#allocation7] sm:$0x3] }
 0x14c   : > { %v925_v18 = vmul.f32 0.5, %v924_v55  ;;  %v862_v48 = vmul.f32 %v776_v47, %v4987_v33  ;;  %v531_v2 = vpop.xlane.xlu2 %530  ;;  %v770_v3 = vpop.xlane.xlu0 %769  ;;  %v5207_v47 = vperm.slane %v497_v17, 0  ;;  %v5231_v63 = vperm.slane %v498_v49, 1 }
 0x14d   : > { %v612_v4 = vmul.f32 %v4987_v33, %v531_v2  ;;  %v860_v5 = vmul.f32 %v770_v3, %v4987_v33  ;;  %790 = vadd.xlane.f32.xlu1 %v789_v58  ;;  %v5215_v58 = vld [vmem:[%s4921_s25 + $0x130] sm:$0xff]  ;;  %v5222_v3 = vperm.slane %v498_v49, 0 }
 0x14e   : > { %v5187_v25 = vpop.eup %4280  ;;  %v926_v1 = vsub.f32 1.5, %v925_v18  ;;  %v5189_v10 = vadd.f32 1e-05, %v862_v48  ;;  %7909 = vst [vmem:[#allocation24_spill] sm:$0xff] %v5215_v58  ;;  %v5218_v18 = vld [vmem:[%s4921_s25 + $0x138] sm:$0xff] }
 0x14f   : > { %v5191_v22 = vpop.eup %4282  ;;  %v953_v14 = vmul.f32 %v5187_v25, %v5167_v34  ;;  %v5196_v15 = vsub.f32 %v5046_v8, %v612_v4  ;;  %v5199_v29 = vsub.f32 %v5049_v9, %v612_v4  ;;  %v5203_v50 = vadd.f32 1e-05, %v860_v5  ;;  %7910 = vst [vmem:[#allocation25_spill] sm:$0xff] %v5218_v18 }
 0x150   : > { %v927_v30 = vmul.f32 %v4279_v35, %v926_v1  ;;  %v933_v43 = vmul.f32 %v5191_v22, %v5175_v21  ;;  %4284 = vrsqrt.f32 %v5189_v10  ;;  %v556_v36 = vadd.f32 %v5218_v18, %v5215_v58 }
 0x151   : > { %7907 = vst [vmem:[#allocation22_spill] sm:$0xff] %v5196_v15  ;;  %v718_v55 = vmul.f32 %v5196_v15, %v5196_v15  ;;  %v719_v9 = vmul.f32 %v5199_v29, %v5199_v29  ;;  %v954_v48 = vmul.f32 %v5187_v25, %v953_v14  ;;  %4286 = vrsqrt.f32 %v5203_v50 }
 0x152   : > { %7908 = vst [vmem:[#allocation23_spill] sm:$0xff] %v5199_v29  ;;  %v934_v8 = vmul.f32 %v5191_v22, %v933_v43  ;;  %v931_v15 = vsel %vm930_vm3, %v4279_v35, %v927_v30  ;;  %v5241_v35 = vld [vmem:[%s4921_s25 + $0x140] sm:$0xff]  ;;  %v5244_v30 = vld [vmem:[%s4921_s25 + $0x148] sm:$0xff]  ;;  %vm939_vm6 = vweird.f32 %v5191_v22  ;;  %vm959_vm7 = vweird.f32 %v5187_v25 }
 0x153   : > { %v540_v2 = vpop.xlane.xlu1 %539  ;;  %v792_v29 = vadd.f32 %v719_v9, %v718_v55  ;;  %7913 = vst [vmem:[#allocation28_spill] sm:$0xff] %v5241_v35  ;;  %v955_v55 = vmul.f32 0.5, %v954_v48  ;;  %v1242_v9 = vmul.f32 %v931_v15, %v4990_v37  ;;  %v1243_v37 = vmul.f32 %v931_v15, %v4992_v38  ;;  %vm940_vm8 = vmor %vm938_vm4, %vm939_vm6 }
 0x154   : > { %v935_v4 = vmul.f32 0.5, %v934_v8  ;;  %v615_v5 = vmul.f32 %v4987_v33, %v540_v2  ;;  %v779_v1 = vpop.xlane.xlu2 %778  ;;  %v534_v43 = vpop.xlane.xlu0 %533  ;;  %7914 = vst [vmem:[#allocation29_spill] sm:$0xff] %v5244_v30  ;;  %vm948_vm10 = vweird.f32 %v5203_v50  ;;  %vm5313_vm11 = vmor %vm958_vm5, %vm959_vm7  ;;  %vm968_vm15 = vweird.f32 %v5189_v10 }
 0x155   : > { %v863_v20 = vmul.f32 %v779_v1, %v4987_v33  ;;  %v613_v14 = vmul.f32 %v4987_v33, %v534_v43  ;;  %793 = vadd.xlane.f32.xlu1 %v792_v29  ;;  %v559_v1 = vadd.f32 %v5244_v30, %v5241_v35  ;;  %v1311_v15 = vmul.f32 %v5207_v47, %v1242_v9 }
 0x156   : > { %v936_v17 = vsub.f32 1.5, %v935_v4  ;;  %v5235_v8 = vsub.f32 %v5061_v23, %v615_v5  ;;  %v5238_v2 = vsub.f32 %v5064_v26, %v615_v5  ;;  %v5251_v4 = vpop.eup %4284 }
 0x157   : > { %v5248_v49 = vadd.f32 1e-05, %v863_v20  ;;  %v5255_v26 = vsub.f32 %v5071_v27, %v613_v14  ;;  %v5258_v29 = vsub.f32 %v5074_v28, %v613_v14  ;;  %v4287_v5 = vpop.eup %4286  ;;  %v956_v14 = vsub.f32 1.5, %v955_v55 }
 0x158   : > { %7911 = vst [vmem:[#allocation26_spill] sm:$0xff] %v5235_v8  ;;  %v937_v23 = vmul.f32 %v5191_v22, %v936_v17  ;;  %v724_v48 = vmul.f32 %v5235_v8, %v5235_v8  ;;  %v725_v20 = vmul.f32 %v5238_v2, %v5238_v2  ;;  %v943_v27 = vmul.f32 %v4287_v5, %v5203_v50 }
 0x159   : > { %7912 = vst [vmem:[#allocation27_spill] sm:$0xff] %v5238_v2  ;;  %4288 = vrsqrt.f32 %v5248_v49  ;;  %v720_v28 = vmul.f32 %v5255_v26, %v5255_v26  ;;  %v721_v43 = vmul.f32 %v5258_v29, %v5258_v29  ;;  %vm949_vm9 = vweird.f32 %v4287_v5 }
 0x15a   : > { %7915 = vst [vmem:[#allocation30_spill] sm:$0xff] %v5255_v26  ;;  %v801_v2 = vadd.f32 %v725_v20, %v724_v48  ;;  %v941_v38 = vsel %vm940_vm8, %v5191_v22, %v937_v23  ;;  %v944_v8 = vmul.f32 %v4287_v5, %v943_v27  ;;  %v963_v26 = vmul.f32 %v5251_v4, %v5189_v10  ;;  %vm950_vm12 = vmor %vm948_vm10, %vm949_vm9 }
 0x15b   : > { %7916 = vst [vmem:[#allocation31_spill] sm:$0xff] %v5258_v29  ;;  %v543_v17 = vpop.xlane.xlu1 %542  ;;  %v795_v18 = vadd.f32 %v721_v43, %v720_v28  ;;  %v1244_v58 = vmul.f32 %v941_v38, %v5012_v53  ;;  %v1245_v55 = vmul.f32 %v941_v38, %v5014_v54  ;;  %v1312_v22 = vmul.f32 %v5224_v46, %v1243_v37 }
 0x15c   : > { %v616_v30 = vmul.f32 %v4987_v33, %v543_v17  ;;  %v782_v21 = vpop.xlane.xlu2 %781  ;;  %v537_v35 = vpop.xlane.xlu0 %536  ;;  %802 = vadd.xlane.f32.xlu0 %v801_v2  ;;  %v945_v23 = vmul.f32 0.5, %v944_v8  ;;  %v1380_v8 = vadd.f32 %v5222_v3, %v1311_v15  ;;  %vm978_vm13 = vweird.f32 %v5248_v49 }
 0x15d   : > { %v614_v29 = vmul.f32 %v4987_v33, %v537_v35  ;;  %557 = vadd.xlane.f32.xlu1 %v556_v36  ;;  %796 = vadd.xlane.f32.xlu2 %v795_v18  ;;  %v1313_v48 = vmul.f32 %v5207_v47, %v1244_v58  ;;  %v864_v36 = vmul.f32 %v782_v21, %v4987_v33  ;;  %vm969_vm0 = vweird.f32 %v5251_v4 }
 0x15e   : > { %v5286_v9 = vsub.f32 %v5088_v39, %v616_v30  ;;  %v5292_v20 = vsub.f32 %v5091_v40, %v616_v30  ;;  %v946_v35 = vsub.f32 1.5, %v945_v23  ;;  %v957_v18 = vmul.f32 %v5187_v25, %v956_v14  ;;  %vm970_vm2 = vmor %vm968_vm15, %vm969_vm0 }
 0x15f   : > { %v5289_v53 = vpop.eup %4288  ;;  %v5295_v2 = vsub.f32 %v5098_v41, %v614_v29  ;;  %v5298_v54 = vsub.f32 %v5101_v42, %v614_v29  ;;  %v1382_v58 = vadd.f32 %v5222_v3, %v1313_v48  ;;  %v1314_v40 = vmul.f32 %v5224_v46, %v1245_v55 }
 0x160   : > { %v973_v39 = vmul.f32 %v5289_v53, %v5248_v49  ;;  %v1381_v41 = vadd.f32 %v5231_v63, %v1312_v22  ;;  %v947_v30 = vmul.f32 %v4287_v5, %v946_v35  ;;  %v726_v27 = vmul.f32 %v5286_v9, %v5286_v9 }
 0x161   : > { %v1444_v37 = vpack.c.bf16 %v1382_v58, %v1380_v8  ;;  %v1383_v50 = vadd.f32 %v5231_v63, %v1314_v40  ;;  %v727_v28 = vmul.f32 %v5292_v20, %v5292_v20  ;;  %v722_v34 = vmul.f32 %v5295_v2, %v5295_v2  ;;  %v5359_v40 = vld [vmem:[%s4921_s25 + $0x150] sm:$0xff] }
 0x162   : > { %v974_v29 = vmul.f32 %v5289_v53, %v973_v39  ;;  %v723_v43 = vmul.f32 %v5298_v54, %v5298_v54  ;;  %v964_v14 = vmul.f32 %v5251_v4, %v963_v26  ;;  %v5329_v17 = vadd.f32 1e-05, %v864_v36 }
 0x163   : > { %1682 = vmatmul.bf16.vlgmr.msra.gmra.mxu0 %v1444_v37  ;;  %1860 = vmatmul.bf16.vlgmr.msra.gmra.mxu2 %v1444_v37  ;;  %v951_v21 = vsel %vm950_vm12, %v4287_v5, %v947_v30  ;;  %v1445_v55 = vpack.c.bf16 %v1383_v50, %v1381_v41  ;;  %v804_v48 = vadd.f32 %v727_v28, %v726_v27  ;;  %v5362_v41 = vld [vmem:[%s4921_s25 + $0x158] sm:$0xff]  ;;  %vm979_vm14 = vweird.f32 %v5289_v53 }
 0x164   : > { %v546_v38 = vpop.xlane.xlu2 %545  ;;  %v785_v15 = vpop.xlane.xlu0 %784  ;;  %v798_v8 = vadd.f32 %v723_v43, %v722_v34  ;;  %v961_v26 = vsel %vm5313_vm11, %v5187_v25, %v957_v18  ;;  %v1246_v35 = vmul.f32 %v951_v21, %v5027_v60  ;;  %v975_v39 = vmul.f32 0.5, %v974_v29  ;;  %v5347_v25 = vld [vmem:[%s4921_s25 + $0x170] sm:$0xff]  ;;  %v5352_v18 = vld [vmem:[%s4921_s25 + $0x178] sm:$0xff]  ;;  %vm5395_vm1 = vmor %vm978_vm13, %vm979_vm14 }
 0x165   : > { %v617_v22 = vmul.f32 %v4987_v33, %v546_v38  ;;  %v865_v23 = vmul.f32 %v785_v15, %v4987_v33  ;;  %560 = vadd.xlane.f32.xlu1 %v559_v1  ;;  %1771 = vmatmul.bf16.vlgmr.msra.gmra.mxu1 %v1445_v55  ;;  %4290 = vrsqrt.f32 %v5329_v17  ;;  %v1248_v60 = vmul.f32 %v961_v26, %v5008_v51 }
 0x166   : > { %1949 = vmatmul.bf16.vlgmr.msra.gmra.mxu3 %v1445_v55  ;;  %805 = vadd.xlane.f32.xlu0 %v804_v48  ;;  %v965_v58 = vmul.f32 0.5, %v964_v14  ;;  %v1315_v42 = vmul.f32 %v5207_v47, %v1246_v35  ;;  %v1247_v30 = vmul.f32 %v951_v21, %v5030_v61  ;;  %v976_v51 = vsub.f32 1.5, %v975_v39 }
 0x167   : > { %v5338_v5 = vsub.f32 %v5119_v19, %v617_v22  ;;  %v5341_v36 = vsub.f32 %v5122_v59, %v617_v22  ;;  %v5343_v1 = vadd.f32 1e-05, %v865_v23  ;;  %799 = vadd.xlane.f32.xlu2 %v798_v8  ;;  %v1249_v37 = vmul.f32 %v961_v26, %v5010_v52  ;;  %v5446_v8 = vld [vmem:[%s4921_s25 + $0x190] sm:$0xff] }
 0x168   : > { %v568_v28 = vadd.f32 %v5352_v18, %v5347_v25  ;;  %v562_v34 = vadd.f32 %v5362_v41, %v5359_v40  ;;  %v1317_v43 = vmul.f32 %v5207_v47, %v1248_v60  ;;  %v966_v14 = vsub.f32 1.5, %v965_v58  ;;  %v5410_v60 = vld [vmem:[%s4921_s25 + $0x188] sm:$0xff] }
 0x169   : > { %4292 = vrsqrt.f32 %v5343_v1  ;;  %v728_v19 = vmul.f32 %v5338_v5, %v5338_v5  ;;  %v729_v59 = vmul.f32 %v5341_v36, %v5341_v36  ;;  %v1316_v52 = vmul.f32 %v5224_v46, %v1247_v30 }
 0x16a   : > { %v1384_v15 = vadd.f32 %v5222_v3, %v1315_v42  ;;  %v977_v55 = vmul.f32 %v5289_v53, %v976_v51  ;;  %v1318_v48 = vmul.f32 %v5224_v46, %v1249_v37  ;;  %v1386_v35 = vadd.f32 %v5222_v3, %v1317_v43 }
 0x16b   : > { %v807_v29 = vadd.f32 %v729_v59, %v728_v19  ;;  %v5378_v38 = vpop.eup %4290  ;;  %v1385_v49 = vadd.f32 %v5231_v63, %v1316_v52  ;;  %v5415_v19 = vld [vmem:[%s4921_s25 + $0x160] sm:$0xff]  ;;  %v5418_v59 = vld [vmem:[%s4921_s25 + $0x168] sm:$0xff]  ;;  %vm998_vm3 = vweird.f32 %v5343_v1  ;;  %vm988_vm5 = vweird.f32 %v5329_v17 }
 0x16c   : > { %v549_v27 = vpop.xlane.xlu2 %548  ;;  %v5368_v50 = vpop.xlane.xlu0 %787  ;;  %v983_v39 = vmul.f32 %v5378_v38, %v5329_v17  ;;  %v1446_v42 = vpack.c.bf16 %v1386_v35, %v1384_v15  ;;  %v981_v37 = vsel %vm5395_vm1, %v5289_v53, %v977_v55  ;;  %vm989_vm6 = vweird.f32 %v5378_v38 }
 0x16d   : > { %v618_v61 = vmul.f32 %v4987_v33, %v549_v27  ;;  %808 = vadd.xlane.f32.xlu1 %v807_v29  ;;  %v1387_v29 = vadd.f32 %v5231_v63, %v1318_v48  ;;  %v1252_v53 = vmul.f32 %v981_v37, %v5052_v11  ;;  %vm990_vm8 = vmor %vm988_vm5, %vm989_vm6 }
 0x16e   : > { %569 = vadd.xlane.f32.xlu0 %v568_v28  ;;  %v984_v43 = vmul.f32 %v5378_v38, %v983_v39 }
 0x16f   : > { %v5383_v21 = vpop.eup %4292  ;;  %v5387_v22 = vsub.f32 %v5137_v0, %v618_v61  ;;  %v5390_v23 = vsub.f32 %v5140_v24, %v618_v61  ;;  %563 = vadd.xlane.f32.xlu2 %v562_v34  ;;  %v5403_v0 = vld [vmem:[%s4921_s25 + $0x180] sm:$0xff]  ;;  %v967_v24 = vmul.f32 %v5251_v4, %v966_v14  ;;  %v565_v34 = vadd.f32 %v5418_v59, %v5415_v19 }
 0x170   : > { %v993_v26 = vmul.f32 %v5383_v21, %v5343_v1  ;;  %v571_v10 = vadd.f32 %v5410_v60, %v5403_v0  ;;  %v1447_v14 = vpack.c.bf16 %v1387_v29, %v1385_v49  ;;  %v985_v35 = vmul.f32 0.5, %v984_v43  ;;  %v5481_v43 = vld [vmem:[%s4921_s25 + $0x1a8] sm:$0xff] }
 0x171   : > { %7919 = vst [vmem:[#allocation32_spill] sm:$0xff] %v5387_v22  ;;  %v730_v58 = vmul.f32 %v5387_v22, %v5387_v22  ;;  %v731_v30 = vmul.f32 %v5390_v23, %v5390_v23  ;;  %v971_v52 = vsel %vm970_vm2, %v5251_v4, %v967_v24  ;;  %v1321_v39 = vmul.f32 %v5207_v47, %v1252_v53 }
 0x172   : > { %7920 = vst [vmem:[#allocation33_spill] sm:$0xff] %v5390_v23  ;;  %v994_v51 = vmul.f32 %v5383_v21, %v993_v26  ;;  %v5449_v26 = vld [vmem:[%s4921_s25 + $0x198] sm:$0xff]  ;;  %v1250_v4 = vmul.f32 %v971_v52, %v5018_v56  ;;  %vm999_vm4 = vweird.f32 %v5383_v21 }
 0x173   : > { %1687 = vmatmul.bf16.gmra.mxu0 %v1446_v42  ;;  %1865 = vmatmul.bf16.gmra.mxu2 %v1446_v42  ;;  %v810_v28 = vadd.f32 %v731_v30, %v730_v58  ;;  %v1251_v58 = vmul.f32 %v971_v52, %v5020_v57  ;;  %v1390_v57 = vadd.f32 %v5222_v3, %v1321_v39  ;;  %vm1000_vm7 = vmor %vm998_vm3, %vm999_vm4  ;;  %v5507_v39 = vld [vmem:[%s4921_s25 + $0x1b8] sm:$0xff] }
 0x174   : > { %v552_v27 = vpop.xlane.xlu0 %551  ;;  %v995_v15 = vmul.f32 0.5, %v994_v51  ;;  %v1319_v30 = vmul.f32 %v5207_v47, %v1250_v4  ;;  %v986_v51 = vsub.f32 1.5, %v985_v35 }
 0x175   : > { %v619_v61 = vmul.f32 %v4987_v33, %v552_v27  ;;  %811 = vadd.xlane.f32.xlu1 %v810_v28  ;;  %1776 = vmatmul.bf16.gmra.mxu1 %v1447_v14  ;;  %v1320_v28 = vmul.f32 %v5224_v46, %v1251_v58 }
 0x176   : > { %1954 = vmatmul.bf16.gmra.mxu3 %v1447_v14  ;;  %572 = vadd.xlane.f32.xlu0 %v571_v10  ;;  %v996_v49 = vsub.f32 1.5, %v995_v15  ;;  %v1388_v14 = vadd.f32 %v5222_v3, %v1319_v30 }
 0x177   : > { %v5440_v55 = vsub.f32 %v5145_v6, %v619_v61  ;;  %v5443_v48 = vsub.f32 %v5148_v7, %v619_v61  ;;  %566 = vadd.xlane.f32.xlu2 %v565_v34  ;;  %v1253_v6 = vmul.f32 %v981_v37, %v5055_v12  ;;  %v574_v7 = vadd.f32 %v5449_v26, %v5446_v8  ;;  %v5478_v34 = vld [vmem:[%s4921_s25 + $0x1a0] sm:$0xff] }
 0x178   : > { %v997_v37 = vmul.f32 %v5383_v21, %v996_v49  ;;  %v987_v61 = vmul.f32 %v5378_v38, %v986_v51  ;;  %v1448_v1 = vpack.c.bf16 %v1390_v57, %v1388_v14  ;;  %v577_v53 = vadd.f32 %v5481_v43, %v5478_v34  ;;  %v5521_v51 = vld [vmem:[%s4921_s25 + $0x1c0] sm:$0xff] }
 0x179   : > { %7923 = vst [vmem:[#allocation34_spill] sm:$0xff] %v5440_v55  ;;  %v732_v11 = vmul.f32 %v5440_v55, %v5440_v55  ;;  %v733_v24 = vmul.f32 %v5443_v48, %v5443_v48  ;;  %v1322_v29 = vmul.f32 %v5224_v46, %v1253_v6  ;;  %v1389_v15 = vadd.f32 %v5231_v63, %v1320_v28 }
 0x17a   : > { %7924 = vst [vmem:[#allocation35_spill] sm:$0xff] %v5443_v48  ;;  %v1001_v4 = vsel %vm1000_vm7, %v5383_v21, %v997_v37  ;;  %v866_v28 = vmul.f32 %v5368_v50, %v4987_v33 }
 0x17b   : > { %v813_v42 = vadd.f32 %v733_v24, %v732_v11  ;;  %v991_v24 = vsel %vm990_vm8, %v5378_v38, %v987_v61  ;;  %v1256_v17 = vmul.f32 %v1001_v4, %v5106_v44  ;;  %v1257_v21 = vmul.f32 %v1001_v4, %v5109_v45 }
 0x17c   : > { %v555_v56 = vpop.xlane.xlu0 %554  ;;  %v1254_v6 = vmul.f32 %v991_v24, %v5079_v31  ;;  %v1255_v38 = vmul.f32 %v991_v24, %v5082_v32  ;;  %v898_v14 = vadd.f32 1e-05, %v866_v28  ;;  %v7927_v28 = vld [vmem:[#allocation24_spill] sm:$0xff] }
 0x17d   : > { %v620_v12 = vmul.f32 %v4987_v33, %v555_v56  ;;  %575 = vadd.xlane.f32.xlu1 %v574_v7  ;;  %v5504_v7 = vld [vmem:[%s4921_s25 + $0x1b0] sm:$0xff]  ;;  %v1325_v49 = vmul.f32 %v5207_v47, %v1256_v17  ;;  %v1326_v56 = vmul.f32 %v5224_v46, %v1257_v21 }
 0x17e   : > { %v580_v44 = vadd.f32 %v5507_v39, %v5504_v7  ;;  %v1323_v58 = vmul.f32 %v5207_v47, %v1254_v6  ;;  %v1324_v31 = vmul.f32 %v5224_v46, %v1255_v38  ;;  %4294 = vrsqrt.f32 %v898_v14 }
 0x17f   : > { %v5471_v27 = vsub.f32 %v5153_v13, %v620_v12  ;;  %v5474_v10 = vsub.f32 %v5156_v16, %v620_v12  ;;  %814 = vadd.xlane.f32.xlu2 %v813_v42  ;;  %v1391_v13 = vadd.f32 %v5231_v63, %v1322_v29  ;;  %v1394_v42 = vadd.f32 %v5222_v3, %v1325_v49  ;;  %v5524_v12 = vld [vmem:[%s4921_s25 + $0x1c8] sm:$0xff] }
 0x180   : > { %v1392_v30 = vadd.f32 %v5222_v3, %v1323_v58  ;;  %v1395_v45 = vadd.f32 %v5231_v63, %v1326_v56  ;;  %v1393_v29 = vadd.f32 %v5231_v63, %v1324_v31  ;;  %v583_v57 = vadd.f32 %v5524_v12, %v5521_v51 }
 0x181   : > { %7925 = vst [vmem:[#allocation36_spill] sm:$0xff] %v5471_v27  ;;  %v734_v16 = vmul.f32 %v5471_v27, %v5471_v27  ;;  %v735_v52 = vmul.f32 %v5474_v10, %v5474_v10  ;;  %v1449_v11 = vpack.c.bf16 %v1391_v13, %v1389_v15  ;;  %vm1008_vm9 = vweird.f32 %v898_v14 }
 0x182   : > { %7926 = vst [vmem:[#allocation37_spill] sm:$0xff] %v5474_v10  ;;  %v1450_v32 = vpack.c.bf16 %v1394_v42, %v1392_v30  ;;  %v1451_v37 = vpack.c.bf16 %v1395_v45, %v1393_v29 }
 0x183   : > { %1692 = vmatmul.bf16.gmra.mxu0 %v1448_v1  ;;  %1870 = vmatmul.bf16.gmra.mxu2 %v1448_v1  ;;  %v816_v35 = vadd.f32 %v735_v52, %v734_v16 }
 0x184   : > { %v4295_v61 = vpop.eup %4294 }
 0x185   : > { %578 = vadd.xlane.f32.xlu1 %v577_v53  ;;  %1781 = vmatmul.bf16.gmra.mxu1 %v1449_v11  ;;  %v1003_v13 = vmul.f32 %v4295_v61, %v898_v14  ;;  %vm1009_vm10 = vweird.f32 %v4295_v61 }
 0x186   : > { %1959 = vmatmul.bf16.gmra.mxu3 %v1449_v11  ;;  %vm1010_vm11 = vmor %vm1008_vm9, %vm1009_vm10 }
 0x187   : > { %817 = vadd.xlane.f32.xlu2 %v816_v35  ;;  %v1004_v16 = vmul.f32 %v4295_v61, %v1003_v13 }
 0x189   : > { %v1005_v15 = vmul.f32 0.5, %v1004_v16 }
 0x18b   : > { %v1006_v4 = vsub.f32 1.5, %v1005_v15 }
 0x18d   : > { %v1007_v17 = vmul.f32 %v4295_v61, %v1006_v4 }
 0x18f   : > { %581 = vadd.xlane.f32.xlu2 %v580_v44  ;;  %v1011_v44 = vsel %vm1010_vm11, %v4295_v61, %v1007_v17  ;;  %v7929_v61 = vld [vmem:[#allocation25_spill] sm:$0xff]  ;;  %v7932_v17 = vld [vmem:[#allocation20_spill] sm:$0xff] }
 0x190   : > { %v1258_v29 = vmul.f32 %v1011_v44, %v5125_v62 }
 0x193   : > { %1697 = vmatmul.bf16.gmra.mxu0 %v1450_v32  ;;  %1875 = vmatmul.bf16.gmra.mxu2 %v1450_v32 }
 0x195   : > { %1786 = vmatmul.bf16.gmra.mxu1 %v1451_v37 }
 0x196   : > { %1964 = vmatmul.bf16.gmra.mxu3 %v1451_v37 }
 0x197   : > { %584 = vadd.xlane.f32.xlu2 %v583_v57 }
 0x1c0   : > { %v791_v52 = vpop.xlane.xlu1 %790 }
 0x1c1   : > { %v867_v1 = vmul.f32 %v791_v52, %v4987_v33 }
 0x1c3   : > { %v899_v53 = vadd.f32 1e-05, %v867_v1  ;;  %v7931_v1 = vld [vmem:[#allocation19_spill] sm:$0xff] }
 0x1c4   : > { %v1259_v15 = vmul.f32 %v1011_v44, %v7931_v1 }
 0x1c5   : > { %4296 = vrsqrt.f32 %v899_v53  ;;  %vm1018_vm13 = vweird.f32 %v899_v53 }
 0x1c8   : > { %v794_v35 = vpop.xlane.xlu1 %793 }
 0x1c9   : > { %v868_v11 = vmul.f32 %v794_v35, %v4987_v33 }
 0x1cb   : > { %v4297_v24 = vpop.eup %4296  ;;  %v5533_v6 = vadd.f32 1e-05, %v868_v11 }
 0x1cc   : > { %v1013_v50 = vmul.f32 %v4297_v24, %v899_v53  ;;  %vm1019_vm12 = vweird.f32 %v4297_v24 }
 0x1cd   : > { %4298 = vrsqrt.f32 %v5533_v6  ;;  %vm1020_vm14 = vmor %vm1018_vm13, %vm1019_vm12  ;;  %vm1028_vm0 = vweird.f32 %v5533_v6 }
 0x1ce   : > { %v1014_v21 = vmul.f32 %v4297_v24, %v1013_v50 }
 0x1cf   : > { %v803_v38 = vpop.xlane.xlu0 %802 }
 0x1d0   : > { %v1015_v49 = vmul.f32 0.5, %v1014_v21  ;;  %v558_v58 = vpop.xlane.xlu1 %557  ;;  %v797_v56 = vpop.xlane.xlu2 %796  ;;  %v871_v42 = vmul.f32 %v803_v38, %v4987_v33  ;;  %v1327_v21 = vmul.f32 %v5207_v47, %v1258_v29  ;;  %v7934_v29 = vld [vmem:[#allocation28_spill] sm:$0xff] }
 0x1d1   : > { %v621_v30 = vmul.f32 %v4987_v33, %v558_v58  ;;  %v869_v45 = vmul.f32 %v797_v56, %v4987_v33  ;;  %v1328_v56 = vmul.f32 %v5224_v46, %v1259_v15 }
 0x1d2   : > { %v1016_v31 = vsub.f32 1.5, %v1015_v49  ;;  %v5539_v32 = vadd.f32 1e-05, %v871_v42  ;;  %v7933_v49 = vld [vmem:[#allocation21_spill] sm:$0xff]  ;;  %v1396_v15 = vadd.f32 %v5222_v3, %v1327_v21 }
 0x1d3   : > { %v5542_v57 = vpop.eup %4298  ;;  %v5545_v14 = vsub.f32 %v7927_v28, %v621_v30  ;;  %v5548_v13 = vsub.f32 %v7929_v61, %v621_v30  ;;  %v5550_v16 = vadd.f32 1e-05, %v869_v45 }
 0x1d4   : > { %v1017_v37 = vmul.f32 %v4297_v24, %v1016_v31  ;;  %v1023_v52 = vmul.f32 %v5542_v57, %v5533_v6  ;;  %4300 = vrsqrt.f32 %v5539_v32  ;;  %vm1029_vm15 = vweird.f32 %v5542_v57 }
 0x1d5   : > { %7928 = vst [vmem:[#allocation24_spill] sm:$0xff] %v5545_v14  ;;  %4302 = vrsqrt.f32 %v5550_v16  ;;  %v736_v62 = vmul.f32 %v5545_v14, %v5545_v14  ;;  %v737_v4 = vmul.f32 %v5548_v13, %v5548_v13  ;;  %vm1038_vm1 = vweird.f32 %v5550_v16  ;;  %vm1030_vm3 = vmor %vm1028_vm0, %vm1029_vm15 }
 0x1d6   : > { %7930 = vst [vmem:[#allocation25_spill] sm:$0xff] %v5548_v13  ;;  %v1024_v35 = vmul.f32 %v5542_v57, %v1023_v52  ;;  %v1021_v11 = vsel %vm1020_vm14, %v4297_v24, %v1017_v37  ;;  %v7936_v52 = vld [vmem:[#allocation29_spill] sm:$0xff]  ;;  %vm1058_vm5 = vweird.f32 %v5539_v32 }
 0x1d7   : > { %v819_v53 = vadd.f32 %v737_v4, %v736_v62  ;;  %v1260_v50 = vmul.f32 %v1021_v11, %v7932_v17  ;;  %v1261_v38 = vmul.f32 %v1021_v11, %v7933_v49  ;;  %v1397_v11 = vadd.f32 %v5231_v63, %v1328_v56 }
 0x1d8   : > { %v1025_v44 = vmul.f32 0.5, %v1024_v35  ;;  %v561_v58 = vpop.xlane.xlu1 %560 }
 0x1d9   : > { %v622_v42 = vmul.f32 %v4987_v33, %v561_v58  ;;  %820 = vadd.xlane.f32.xlu0 %v819_v53  ;;  %v1329_v31 = vmul.f32 %v5207_v47, %v1260_v50  ;;  %v1330_v30 = vmul.f32 %v5224_v46, %v1261_v38  ;;  %v806_v37 = vpop.xlane.xlu0 %805 }
 0x1da   : > { %v5569_v45 = vpop.eup %4300  ;;  %v800_v24 = vpop.xlane.xlu2 %799  ;;  %v1026_v62 = vsub.f32 1.5, %v1025_v44  ;;  %v872_v17 = vmul.f32 %v806_v37, %v4987_v33 }
 0x1db   : > { %v5571_v28 = vpop.eup %4302  ;;  %v5574_v61 = vsub.f32 %v7934_v29, %v622_v42  ;;  %v5577_v1 = vsub.f32 %v7936_v52, %v622_v42  ;;  %v870_v35 = vmul.f32 %v800_v24, %v4987_v33  ;;  %v1053_v53 = vmul.f32 %v5569_v45, %v5539_v32 }
 0x1dc   : > { %v1033_v4 = vmul.f32 %v5571_v28, %v5550_v16  ;;  %v1398_v50 = vadd.f32 %v5222_v3, %v1329_v31  ;;  %v1399_v49 = vadd.f32 %v5231_v63, %v1330_v30  ;;  %v5599_v30 = vadd.f32 1e-05, %v872_v17 }
 0x1dd   : > { %7935 = vst [vmem:[#allocation19_spill] sm:$0xff] %v5574_v61  ;;  %v5590_v21 = vadd.f32 1e-05, %v870_v35  ;;  %v738_v44 = vmul.f32 %v5574_v61, %v5574_v61  ;;  %v739_v58 = vmul.f32 %v5577_v1, %v5577_v1  ;;  %v1054_v35 = vmul.f32 %v5569_v45, %v1053_v53 }
 0x1de   : > { %7937 = vst [vmem:[#allocation20_spill] sm:$0xff] %v5577_v1  ;;  %v1034_v38 = vmul.f32 %v5571_v28, %v1033_v4  ;;  %v1452_v56 = vpack.c.bf16 %v1398_v50, %v1396_v15  ;;  %v1453_v42 = vpack.c.bf16 %v1399_v49, %v1397_v11  ;;  %v1027_v4 = vmul.f32 %v5542_v57, %v1026_v62  ;;  %v5615_v62 = vld [vmem:[%s4921_s25 + $0x1d8] sm:$0xff] }
 0x1df   : > { %4304 = vrsqrt.f32 %v5590_v21  ;;  %v822_v31 = vadd.f32 %v739_v58, %v738_v44  ;;  %v5612_v58 = vld [vmem:[%s4921_s25 + $0x1d0] sm:$0xff]  ;;  %7939 = vst [vmem:[#allocation28_spill] sm:$0xff] %v5615_v62  ;;  %vm1039_vm2 = vweird.f32 %v5571_v28  ;;  %v1055_v6 = vmul.f32 0.5, %v1054_v35  ;;  %v7944_v1 = vld [vmem:[#allocation22_spill] sm:$0xff] }
 0x1e0   : > { %v1035_v24 = vmul.f32 0.5, %v1034_v38  ;;  %v809_v37 = vpop.xlane.xlu1 %808  ;;  %v5597_v29 = vpop.f32.mrf.mxu0  ;;  %1702 = vmatmul.bf16.gmra.mxu0 %v1452_v56  ;;  %1791 = vmatmul.bf16.gmra.mxu1 %v1453_v42  ;;  %7938 = vst [vmem:[#allocation21_spill] sm:$0xff] %v5612_v58  ;;  %4306 = vrsqrt.f32 %v5599_v30  ;;  %vm1040_vm4 = vmor %vm1038_vm1, %vm1039_vm2  ;;  %vm1059_vm6 = vweird.f32 %v5569_v45  ;;  %vm1048_vm9 = vweird.f32 %v5590_v21 }
 0x1e1   : > { %v873_v52 = vmul.f32 %v809_v37, %v4987_v33  ;;  %1880 = vmatmul.bf16.gmra.mxu2 %v1452_v56  ;;  %1969 = vmatmul.bf16.gmra.mxu3 %v1453_v42  ;;  %v570_v50 = vpop.xlane.xlu0 %569  ;;  %vm5767_vm8 = vmor %vm1058_vm5, %vm1059_vm6  ;;  %vm1068_vm11 = vweird.f32 %v5599_v30 }
 0x1e2   : > { %v1036_v15 = vsub.f32 1.5, %v1035_v24  ;;  %v564_v11 = vpop.xlane.xlu2 %563  ;;  %v5607_v17 = vpop.f32.mrf.mxu1  ;;  %v625_v44 = vmul.f32 %v4987_v33, %v570_v50  ;;  %823 = vadd.xlane.f32.xlu0 %v822_v31  ;;  %v586_v31 = vadd.f32 %v5615_v62, %v5612_v58 }
 0x1e3   : > { %v5605_v49 = vadd.f32 1e-05, %v873_v52  ;;  %v623_v38 = vmul.f32 %v4987_v33, %v564_v11  ;;  %v1031_v52 = vsel %vm1030_vm3, %v5542_v57, %v1027_v4  ;;  %v1056_v4 = vsub.f32 1.5, %v1055_v6  ;;  %v5672_v6 = vld [vmem:[%s4921_s25 + $0x1e0] sm:$0xff] }
 0x1e4   : > { %v1037_v53 = vmul.f32 %v5571_v28, %v1036_v15  ;;  %7945 = vst [vmem:[#allocation22_spill] sm:$0xff] %v5672_v6 }
 0x1e5   : > { %v5625_v56 = vsub.f32 %v5359_v40, %v623_v38  ;;  %v5628_v42 = vsub.f32 %v5362_v41, %v623_v38  ;;  %v5630_v24 = vpop.eup %4304  ;;  %4308 = vrsqrt.f32 %v5605_v49  ;;  %v5639_v40 = vsub.f32 %v5347_v25, %v625_v44  ;;  %v1508_v38 = vld [vmem:[%s7798_s4] sm:$0x3] }
 0x1e6   : > { %v1861_v37 = vpop.f32.mrf.mxu2  ;;  %v1043_v15 = vmul.f32 %v5630_v24, %v5590_v21  ;;  %v5642_v41 = vsub.f32 %v5352_v18, %v625_v44  ;;  %v1041_v18 = vsel %vm1040_vm4, %v5571_v28, %v1037_v53  ;;  %v5661_v61 = vpop.eup %4306  ;;  %vm1049_vm7 = vweird.f32 %v5630_v24 }
 0x1e7   : > { %7940 = vst [vmem:[#allocation29_spill] sm:$0xff] %v5625_v56  ;;  %v740_v35 = vmul.f32 %v5625_v56, %v5625_v56  ;;  %v741_v57 = vmul.f32 %v5628_v42, %v5628_v42  ;;  %v1262_v56 = vmul.f32 %v1031_v52, %v7944_v1  ;;  %v744_v28 = vmul.f32 %v5639_v40, %v5639_v40  ;;  %vm1050_vm10 = vmor %vm1048_vm9, %vm1049_vm7 }
 0x1e8   : > { %7941 = vst [vmem:[#allocation38_spill] sm:$0xff] %v5628_v42  ;;  %v812_v11 = vpop.xlane.xlu1 %811  ;;  %v5650_v50 = vpop.f32.mrf.mxu0  ;;  %v1044_v13 = vmul.f32 %v5630_v24, %v1043_v15  ;;  %v745_v53 = vmul.f32 %v5642_v41, %v5642_v41  ;;  %v7947_v15 = vld [vmem:[#allocation30_spill] sm:$0xff]  ;;  %vm1078_vm12 = vweird.f32 %v5605_v49  ;;  %vm1069_vm14 = vweird.f32 %v5661_v61 }
 0x1e9   : > { %7942 = vst [vmem:[#allocation39_spill] sm:$0xff] %v5639_v40  ;;  %v5654_v25 = vpop.f32.mrf.mxu3  ;;  %v825_v16 = vadd.f32 %v741_v57, %v740_v35  ;;  %v573_v10 = vpop.xlane.xlu0 %572  ;;  %v5675_v35 = vld [vmem:[%s4921_s25 + $0x1e8] sm:$0xff]  ;;  %v5679_v57 = vperm.slane %v1508_v38, 1  ;;  %v1264_v62 = vmul.f32 %v1041_v18, %v7947_v15  ;;  %v5686_v40 = vmul.f32 %v5569_v45, %v1056_v4  ;;  %vm5858_vm0 = vmor %vm1068_vm11, %vm1069_vm14 }
 0x1ea   : > { %7943 = vst [vmem:[#allocation40_spill] sm:$0xff] %v5642_v41  ;;  %v567_v44 = vpop.xlane.xlu2 %566  ;;  %v5664_v42 = vpop.f32.mrf.mxu1  ;;  %587 = vadd.xlane.f32.xlu0 %v586_v31  ;;  %v7948_v31 = vld [vmem:[#allocation23_spill] sm:$0xff]  ;;  %v626_v41 = vmul.f32 %v4987_v33, %v573_v10  ;;  %v1331_v23 = vmul.f32 %v5207_v47, %v1262_v56  ;;  %v874_v15 = vmul.f32 %v812_v11, %v4987_v33 }
 0x1eb   : > { %v624_v14 = vmul.f32 %v4987_v33, %v567_v44  ;;  %7946 = vst [vmem:[#allocation41_spill] sm:$0xff] %v5675_v35  ;;  %v5677_v1 = vpop.eup %4308  ;;  %826 = vadd.xlane.f32.xlu1 %v825_v16  ;;  %v5682_v44 = vperm.slane %v1508_v38, 0  ;;  %v1263_v58 = vmul.f32 %v1031_v52, %v7948_v31  ;;  %v589_v16 = vadd.f32 %v5675_v35, %v5672_v6  ;;  %v7950_v11 = vld [vmem:[#allocation31_spill] sm:$0xff] }
 0x1ec   : > { %v1045_v38 = vmul.f32 0.5, %v1044_v13  ;;  %v831_v4 = vadd.f32 %v745_v53, %v744_v28  ;;  %v1063_v31 = vmul.f32 %v5661_v61, %v5599_v30  ;;  %v1073_v10 = vmul.f32 %v5677_v1, %v5605_v49 }
 0x1ed   : > { %v5698_v52 = vsub.f32 %v5415_v19, %v624_v14  ;;  %v5705_v48 = vadd.f32 %v1861_v37, %v5679_v57  ;;  %v1333_v56 = vmul.f32 %v5207_v47, %v1264_v62  ;;  %v5711_v13 = vsub.f32 %v5418_v59, %v624_v14 }
 0x1ee   : > { %v5691_v27 = vpop.f32.mrf.mxu2  ;;  %832 = vadd.xlane.f32.xlu2 %v831_v4  ;;  %v1265_v28 = vmul.f32 %v1041_v18, %v7950_v11  ;;  %v1332_v53 = vmul.f32 %v5224_v46, %v1263_v58  ;;  %v5719_v37 = vsub.f32 %v5403_v0, %v626_v41  ;;  %v5722_v62 = vsub.f32 %v5410_v60, %v626_v41 }
 0x1ef   : > { %v1400_v55 = vadd.f32 %v5222_v3, %v1331_v23  ;;  %v1402_v59 = vadd.f32 %v5222_v3, %v1333_v56  ;;  %v1046_v4 = vsub.f32 1.5, %v1045_v38  ;;  %v1074_v0 = vmul.f32 %v5677_v1, %v1073_v10 }
 0x1f0   : > { %v576_v22 = vpop.xlane.xlu1 %575  ;;  %v5708_v35 = vpop.f32.mrf.mxu0  ;;  %7951 = vst [vmem:[#allocation23_spill] sm:$0xff] %v5722_v62  ;;  %v1334_v18 = vmul.f32 %v5224_v46, %v1265_v28  ;;  %v1401_v41 = vadd.f32 %v5231_v63, %v1332_v53  ;;  %v1064_v10 = vmul.f32 %v5661_v61, %v1063_v31  ;;  %vm1079_vm13 = vweird.f32 %v5677_v1 }
 0x1f1   : > { %7949 = vst [vmem:[#allocation30_spill] sm:$0xff] %v5708_v35  ;;  %v5713_v19 = vpop.f32.mrf.mxu3  ;;  %v627_v6 = vmul.f32 %v4987_v33, %v576_v22  ;;  %v5726_v35 = vadd.f32 1e-05, %v874_v15  ;;  %v742_v22 = vmul.f32 %v5698_v52, %v5698_v52  ;;  %v1454_v60 = vpack.c.bf16 %v1402_v59, %v1400_v55  ;;  %vm5838_vm15 = vmor %vm1078_vm12, %vm1079_vm13 }
 0x1f2   : > { %v815_v14 = vpop.xlane.xlu2 %814  ;;  %v5729_v11 = vpop.f32.mrf.mxu1  ;;  %590 = vadd.xlane.f32.xlu0 %v589_v16  ;;  %v1403_v38 = vadd.f32 %v5231_v63, %v1334_v18  ;;  %v743_v16 = vmul.f32 %v5711_v13, %v5711_v13  ;;  %v746_v55 = vmul.f32 %v5719_v37, %v5719_v37 }
 0x1f3   : > { %v5735_v58 = vsub.f32 %v5446_v8, %v627_v6  ;;  %v5738_v23 = vsub.f32 %v5449_v26, %v627_v6  ;;  %v875_v15 = vmul.f32 %v815_v14, %v4987_v33  ;;  %1707 = vmatmul.bf16.gmra.mxu0 %v1454_v60  ;;  %1885 = vmatmul.bf16.gmra.mxu2 %v1454_v60  ;;  %4310 = vrsqrt.f32 %v5726_v35 }
 0x1f4   : > { %v747_v8 = vmul.f32 %v5722_v62, %v5722_v62  ;;  %v1047_v6 = vmul.f32 %v5630_v24, %v1046_v4  ;;  %v1455_v56 = vpack.c.bf16 %v1403_v38, %v1401_v41  ;;  %v828_v53 = vadd.f32 %v743_v16, %v742_v22 }
 0x1f5   : > { %7952 = vst [vmem:[#allocation31_spill] sm:$0xff] %v5735_v58  ;;  %v5754_v28 = vadd.f32 1e-05, %v875_v15  ;;  %v748_v18 = vmul.f32 %v5735_v58, %v5735_v58  ;;  %v749_v60 = vmul.f32 %v5738_v23, %v5738_v23  ;;  %v1075_v22 = vmul.f32 0.5, %v1074_v0  ;;  %v5784_v0 = vld [vmem:[%s4921_s25 + $0x1f0] sm:$0xff] }
 0x1f6   : > { %7953 = vst [vmem:[#allocation42_spill] sm:$0xff] %v5738_v23  ;;  %v5751_v26 = vpop.f32.mrf.mxu2  ;;  %v834_v59 = vadd.f32 %v747_v8, %v746_v55  ;;  %1796 = vmatmul.bf16.gmra.mxu1 %v1455_v56  ;;  %1974 = vmatmul.bf16.gmra.mxu3 %v1455_v56  ;;  %v1065_v16 = vmul.f32 0.5, %v1064_v10  ;;  %v5787_v55 = vld [vmem:[%s4921_s25 + $0x1f8] sm:$0xff]  ;;  %v1051_v8 = vsel %vm1050_vm10, %v5630_v24, %v1047_v6  ;;  %v7957_v6 = vld [vmem:[#allocation27_spill] sm:$0xff]  ;;  %vm1088_vm1 = vweird.f32 %v5726_v35 }
 0x1f7   : > { %4312 = vrsqrt.f32 %v5754_v28  ;;  %829 = vadd.xlane.f32.xlu1 %v828_v53  ;;  %v837_v15 = vadd.f32 %v749_v60, %v748_v18  ;;  %v1684_v56 = vadd.f32 %v5597_v29, %v5682_v44  ;;  %v5794_v53 = vadd.f32 %v5654_v25, %v5705_v48  ;;  %v7956_v18 = vld [vmem:[#allocation26_spill] sm:$0xff] }
 0x1f8   : > { %v579_v31 = vpop.xlane.xlu1 %578  ;;  %v5757_v14 = vpop.f32.mrf.mxu0  ;;  %835 = vadd.xlane.f32.xlu2 %v834_v59  ;;  %v1061_v10 = vsel %vm5767_vm8, %v5569_v45, %v5686_v40  ;;  %v1266_v59 = vmul.f32 %v1051_v8, %v5295_v2  ;;  %v1267_v24 = vmul.f32 %v1051_v8, %v5298_v54  ;;  %v592_v45 = vadd.f32 %v5787_v55, %v5784_v0 }
 0x1f9   : > { %v5773_v41 = vpop.f32.mrf.mxu3  ;;  %v628_v32 = vmul.f32 %v4987_v33, %v579_v31  ;;  %v1076_v31 = vsub.f32 1.5, %v1075_v22  ;;  %v1268_v60 = vmul.f32 %v1061_v10, %v7956_v18  ;;  %v1269_v62 = vmul.f32 %v1061_v10, %v7957_v6  ;;  %v5804_v29 = vpop.eup %4310 }
 0x1fa   : > { %v5778_v38 = vpop.xlane.xlu2 %817  ;;  %v5781_v21 = vpop.f32.mrf.mxu1  ;;  %838 = vadd.xlane.f32.xlu0 %v837_v15  ;;  %v1335_v2 = vmul.f32 %v5207_v47, %v1266_v59  ;;  %v1066_v54 = vsub.f32 1.5, %v1065_v16  ;;  %v5823_v22 = vadd.f32 %v5607_v17, %v1684_v56  ;;  %v1336_v15 = vmul.f32 %v5224_v46, %v1267_v24 }
 0x1fb   : > { %v5807_v48 = vsub.f32 %v5478_v34, %v628_v32  ;;  %v5810_v25 = vsub.f32 %v5481_v43, %v628_v32  ;;  %v1337_v34 = vmul.f32 %v5207_v47, %v1268_v60  ;;  %v1077_v49 = vmul.f32 %v5677_v1, %v1076_v31 }
 0x1fc   : > { %v1404_v32 = vadd.f32 %v5222_v3, %v1335_v2  ;;  %v1083_v16 = vmul.f32 %v5804_v29, %v5726_v35  ;;  %v1338_v17 = vmul.f32 %v5224_v46, %v1269_v62  ;;  %v2032_v60 = vadd.f32 %v5794_v53, %v5823_v22 }
 0x1fd   : > { %7958 = vst [vmem:[#allocation26_spill] sm:$0xff] %v5807_v48  ;;  %v5817_v4 = vpop.eup %4312  ;;  %v1406_v59 = vadd.f32 %v5222_v3, %v1337_v34  ;;  %v750_v31 = vmul.f32 %v5807_v48, %v5807_v48  ;;  %v751_v24 = vmul.f32 %v5810_v25, %v5810_v25  ;;  %v1067_v6 = vmul.f32 %v5661_v61, %v1066_v54 }
 0x1fe   : > { %7959 = vst [vmem:[#allocation27_spill] sm:$0xff] %v5810_v25  ;;  %v5814_v40 = vpop.f32.mrf.mxu2  ;;  %v1093_v43 = vmul.f32 %v5817_v4, %v5754_v28  ;;  %v1405_v62 = vadd.f32 %v5231_v63, %v1336_v15  ;;  %v1407_v54 = vadd.f32 %v5231_v63, %v1338_v17  ;;  %v1081_v30 = vsel %vm5838_vm15, %v5677_v1, %v1077_v49 }
 0x1ff   : > { %593 = vadd.xlane.f32.xlu1 %v592_v45  ;;  %v1456_v23 = vpack.c.bf16 %v1406_v59, %v1404_v32  ;;  %v840_v58 = vadd.f32 %v751_v24, %v750_v31  ;;  %v1686_v1 = vadd.f32 %v5650_v50, %v5682_v44  ;;  %vm1089_vm2 = vweird.f32 %v5804_v29 }
 0x200   : > { %v5829_v8 = vpop.f32.mrf.mxu0  ;;  %v1094_v48 = vmul.f32 %v5817_v4, %v1093_v43  ;;  %v1457_v32 = vpack.c.bf16 %v1407_v54, %v1405_v62  ;;  %vm1098_vm3 = vweird.f32 %v5754_v28  ;;  %vm1099_vm4 = vweird.f32 %v5817_v4  ;;  %vm1090_vm6 = vmor %vm1088_vm1, %vm1089_vm2 }
 0x201   : > { %v5835_v10 = vpop.f32.mrf.mxu3  ;;  %vm1100_vm5 = vmor %vm1098_vm3, %vm1099_vm4 }
 0x202   : > { %v582_v18 = vpop.xlane.xlu2 %581  ;;  %v5851_v2 = vpop.f32.mrf.mxu1  ;;  %2033 = vadd.xlane.f32.xlu0 %v2032_v60  ;;  %v1095_v56 = vmul.f32 0.5, %v1094_v48 }
 0x203   : > { %v629_v45 = vmul.f32 %v4987_v33, %v582_v18  ;;  %v1084_v18 = vmul.f32 %v5804_v29, %v1083_v16  ;;  %1712 = vmatmul.bf16.gmra.mxu0 %v1456_v23  ;;  %1890 = vmatmul.bf16.gmra.mxu2 %v1456_v23  ;;  %v1864_v23 = vadd.f32 %v5691_v27, %v5679_v57 }
 0x204   : > { %v1272_v16 = vmul.f32 %v1081_v30, %v5338_v5  ;;  %v1273_v27 = vmul.f32 %v1081_v30, %v5341_v36  ;;  %v5899_v5 = vadd.f32 %v5664_v42, %v1686_v1  ;;  %v1096_v62 = vsub.f32 1.5, %v1095_v56 }
 0x205   : > { %v5865_v15 = vsub.f32 %v5504_v7, %v629_v45  ;;  %v5868_v25 = vsub.f32 %v5507_v39, %v629_v45  ;;  %v1071_v39 = vsel %vm5858_vm0, %v5661_v61, %v1067_v6  ;;  %v1085_v31 = vmul.f32 0.5, %v1084_v18 }
 0x206   : > { %v5874_v43 = vpop.f32.mrf.mxu2  ;;  %1801 = vmatmul.bf16.gmra.mxu1 %v1457_v32  ;;  %1979 = vmatmul.bf16.gmra.mxu3 %v1457_v32  ;;  %v1270_v61 = vmul.f32 %v1071_v39, %v5286_v9  ;;  %v5902_v48 = vadd.f32 %v5713_v19, %v1864_v23  ;;  %v1271_v34 = vmul.f32 %v1071_v39, %v5292_v20 }
 0x207   : > { %v752_v17 = vmul.f32 %v5865_v15, %v5865_v15  ;;  %v753_v7 = vmul.f32 %v5868_v25, %v5868_v25  ;;  %841 = vadd.xlane.f32.xlu1 %v840_v58  ;;  %v1341_v58 = vmul.f32 %v5207_v47, %v1272_v16  ;;  %v1086_v36 = vsub.f32 1.5, %v1085_v31 }
 0x208   : > { %v5887_v49 = vpop.f32.mrf.mxu0  ;;  %v1339_v19 = vmul.f32 %v5207_v47, %v1270_v61  ;;  %v1342_v54 = vmul.f32 %v5224_v46, %v1273_v27  ;;  %v1867_v20 = vadd.f32 %v5751_v26, %v5679_v57  ;;  %v1869_v30 = vadd.f32 %v5814_v40, %v5679_v57  ;;  %v7965_v26 = vld [vmem:[#allocation30_spill] sm:$0xff] }
 0x209   : > { %v5890_v59 = vpop.f32.mrf.mxu3  ;;  %v843_v60 = vadd.f32 %v753_v7, %v752_v17  ;;  %v2035_v18 = vadd.f32 %v5902_v48, %v5899_v5  ;;  %v1410_v32 = vadd.f32 %v5222_v3, %v1341_v58  ;;  %v1097_v7 = vmul.f32 %v5817_v4, %v1096_v62 }
 0x20a   : > { %v585_v24 = vpop.xlane.xlu2 %584  ;;  %v5893_v6 = vpop.f32.mrf.mxu1  ;;  %v1340_v1 = vmul.f32 %v5224_v46, %v1271_v34  ;;  %v1689_v56 = vadd.f32 %v7965_v26, %v5682_v44  ;;  %v1408_v40 = vadd.f32 %v5222_v3, %v1339_v19  ;;  %v1691_v31 = vadd.f32 %v5757_v14, %v5682_v44 }
 0x20b   : > { %v630_v50 = vmul.f32 %v4987_v33, %v585_v24  ;;  %844 = vadd.xlane.f32.xlu2 %v843_v60  ;;  %v1087_v60 = vmul.f32 %v5804_v29, %v1086_v36  ;;  %v1411_v24 = vadd.f32 %v5231_v63, %v1342_v54  ;;  %v5951_v28 = vadd.f32 %v5773_v41, %v1867_v20 }
 0x20c   : > { %v5956_v58 = vadd.f32 %v5835_v10, %v1869_v30  ;;  %v1409_v14 = vadd.f32 %v5231_v63, %v1340_v1  ;;  %v1101_v62 = vsel %vm1100_vm5, %v5817_v4, %v1097_v7  ;;  %v5961_v34 = vadd.f32 %v5729_v11, %v1689_v56  ;;  %v7967_v30 = vld [vmem:[#allocation32_spill] sm:$0xff]  ;;  %v7969_v1 = vld [vmem:[#allocation33_spill] sm:$0xff] }
 0x20d   : > { %v5906_v9 = vsub.f32 %v5521_v51, %v630_v50  ;;  %v5909_v45 = vsub.f32 %v5524_v12, %v630_v50  ;;  %v1458_v50 = vpack.c.bf16 %v1410_v32, %v1408_v40  ;;  %v5964_v36 = vadd.f32 %v5781_v21, %v1691_v31  ;;  %v7968_v32 = vld [vmem:[#allocation35_spill] sm:$0xff] }
 0x20e   : > { %v5914_v42 = vpop.f32.mrf.mxu2  ;;  %v1459_v41 = vpack.c.bf16 %v1411_v24, %v1409_v14  ;;  %v1091_v54 = vsel %vm1090_vm6, %v5804_v29, %v1087_v60  ;;  %v2038_v10 = vadd.f32 %v5951_v28, %v5961_v34  ;;  %v1872_v11 = vadd.f32 %v5874_v43, %v5679_v57 }
 0x20f   : > { %7964 = vst [vmem:[#allocation43_spill] sm:$0xff] %v5909_v45  ;;  %v754_v51 = vmul.f32 %v5906_v9, %v5906_v9  ;;  %v755_v12 = vmul.f32 %v5909_v45, %v5909_v45  ;;  %2036 = vadd.xlane.f32.xlu1 %v2035_v18  ;;  %v2041_v21 = vadd.f32 %v5956_v58, %v5964_v36 }
 0x210   : > { %v1698_v17 = vpop.f32.mrf.mxu0  ;;  %v1274_v18 = vmul.f32 %v1091_v54, %v7967_v30  ;;  %v1694_v29 = vadd.f32 %v5829_v8, %v5682_v44  ;;  %v5983_v43 = vadd.f32 %v5890_v59, %v1872_v11 }
 0x211   : > { %v5931_v39 = vpop.f32.mrf.mxu3  ;;  %v1699_v23 = vadd.f32 %v1698_v17, %v5682_v44  ;;  %v846_v16 = vadd.f32 %v755_v12, %v754_v51  ;;  %v7966_v51 = vld [vmem:[#allocation34_spill] sm:$0xff]  ;;  %v1277_v17 = vmul.f32 %v1101_v62, %v7968_v32 }
 0x212   : > { %v1787_v61 = vpop.f32.mrf.mxu1  ;;  %v1276_v12 = vmul.f32 %v1101_v62, %v7966_v51  ;;  %v1343_v26 = vmul.f32 %v5207_v47, %v1274_v18  ;;  %v5988_v56 = vadd.f32 %v5851_v2, %v1694_v29 }
 0x213   : > { %847 = vadd.xlane.f32.xlu2 %v846_v16  ;;  %v5953_v27 = vadd.f32 %v1787_v61, %v1699_v23  ;;  %1717 = vmatmul.bf16.gmra.mxu0 %v1458_v50  ;;  %v1275_v23 = vmul.f32 %v1091_v54, %v7969_v1  ;;  %v1346_v40 = vmul.f32 %v5224_v46, %v1277_v17 }
 0x214   : > { %1895 = vmatmul.bf16.gmra.mxu2 %v1458_v50  ;;  %v1345_v7 = vmul.f32 %v5207_v47, %v1276_v12  ;;  %v2044_v59 = vadd.f32 %v5983_v43, %v5988_v56  ;;  %v1412_v61 = vadd.f32 %v5222_v3, %v1343_v26  ;;  %v876_v12 = vmul.f32 %v5778_v38, %v4987_v33 }
 0x215   : > { %v1344_v24 = vmul.f32 %v5224_v46, %v1275_v23  ;;  %v1415_v14 = vadd.f32 %v5231_v63, %v1346_v40 }
 0x216   : > { %v1876_v35 = vpop.f32.mrf.mxu2  ;;  %1806 = vmatmul.bf16.gmra.mxu1 %v1459_v41  ;;  %1984 = vmatmul.bf16.gmra.mxu3 %v1459_v41  ;;  %v1414_v8 = vadd.f32 %v5222_v3, %v1345_v7  ;;  %v908_v11 = vadd.f32 1e-05, %v876_v12 }
 0x217   : > { %v1877_v19 = vadd.f32 %v1876_v35, %v5679_v57  ;;  %2039 = vadd.xlane.f32.xlu1 %v2038_v10  ;;  %v1413_v41 = vadd.f32 %v5231_v63, %v1344_v24 }
 0x218   : > { %v1700_v60 = vpop.f32.mrf.mxu0  ;;  %v1460_v62 = vpack.c.bf16 %v1414_v8, %v1412_v61  ;;  %4314 = vrsqrt.f32 %v908_v11  ;;  %vm1108_vm7 = vweird.f32 %v908_v11 }
 0x219   : > { %v1965_v4 = vpop.f32.mrf.mxu3  ;;  %v1701_v50 = vadd.f32 %v1700_v60, %v5682_v44  ;;  %v1461_v10 = vpack.c.bf16 %v1415_v14, %v1413_v41 }
 0x21a   : > { %v5975_v20 = vadd.f32 %v1965_v4, %v1877_v19  ;;  %v1789_v19 = vpop.f32.mrf.mxu1 }
 0x21b   : > { %2042 = vadd.xlane.f32.xlu2 %v2041_v21  ;;  %v6002_v54 = vadd.f32 %v1789_v19, %v1701_v50  ;;  %v7970_v50 = vld [vmem:[#allocation36_spill] sm:$0xff] }
 0x21e   : > { %v1878_v16 = vpop.f32.mrf.mxu2  ;;  %v4315_v4 = vpop.eup %4314 }
 0x21f   : > { %v1879_v31 = vadd.f32 %v1878_v16, %v5679_v57  ;;  %v1103_v21 = vmul.f32 %v4315_v4, %v908_v11  ;;  %vm1109_vm8 = vweird.f32 %v4315_v4  ;;  %v7971_v11 = vld [vmem:[#allocation21_spill] sm:$0xff] }
 0x220   : > { %vm1110_vm9 = vmor %vm1108_vm7, %vm1109_vm8 }
 0x221   : > { %v1967_v2 = vpop.f32.mrf.mxu3  ;;  %v1104_v30 = vmul.f32 %v4315_v4, %v1103_v21  ;;  %v7973_v21 = vld [vmem:[#allocation28_spill] sm:$0xff] }
 0x222   : > { %v5999_v35 = vadd.f32 %v1967_v2, %v1879_v31 }
 0x223   : > { %2045 = vadd.xlane.f32.xlu2 %v2044_v59  ;;  %1722 = vmatmul.bf16.gmra.mxu0 %v1460_v62  ;;  %v1105_v17 = vmul.f32 0.5, %v1104_v30 }
 0x224   : > { %1900 = vmatmul.bf16.gmra.mxu2 %v1460_v62  ;;  %v2053_v51 = vadd.f32 %v5999_v35, %v6002_v54 }
 0x225   : > { %v1106_v7 = vsub.f32 1.5, %v1105_v17  ;;  %v7975_v17 = vld [vmem:[#allocation37_spill] sm:$0xff] }
 0x226   : > { %1811 = vmatmul.bf16.gmra.mxu1 %v1461_v10  ;;  %1989 = vmatmul.bf16.gmra.mxu3 %v1461_v10 }
 0x227   : > { %v1107_v26 = vmul.f32 %v4315_v4, %v1106_v7 }
 0x229   : > { %v1111_v31 = vsel %vm1110_vm9, %v4315_v4, %v1107_v26 }
 0x22a   : > { %v1278_v14 = vmul.f32 %v1111_v31, %v7970_v50  ;;  %v1279_v7 = vmul.f32 %v1111_v31, %v7975_v17 }
 0x22b   : > { %2054 = vadd.xlane.f32.xlu2 %v2053_v51 }
 0x24c   : > { %v821_v18 = vpop.xlane.xlu0 %820 }
 0x24d   : > { %v877_v29 = vmul.f32 %v821_v18, %v4987_v33 }
 0x24f   : > { %v909_v32 = vadd.f32 1e-05, %v877_v29  ;;  %v1347_v29 = vmul.f32 %v5207_v47, %v1278_v14 }
 0x251   : > { %4316 = vrsqrt.f32 %v909_v32  ;;  %vm1118_vm11 = vweird.f32 %v909_v32 }
 0x255   : > { %v824_v1 = vpop.xlane.xlu0 %823 }
 0x256   : > { %v878_v16 = vmul.f32 %v824_v1, %v4987_v33 }
 0x257   : > { %v4317_v23 = vpop.eup %4316 }
 0x258   : > { %v1113_v38 = vmul.f32 %v4317_v23, %v909_v32  ;;  %v6010_v40 = vadd.f32 1e-05, %v878_v16  ;;  %vm1119_vm10 = vweird.f32 %v4317_v23 }
 0x259   : > { %vm1120_vm12 = vmor %vm1118_vm11, %vm1119_vm10 }
 0x25a   : > { %v1114_v60 = vmul.f32 %v4317_v23, %v1113_v38  ;;  %4318 = vrsqrt.f32 %v6010_v40  ;;  %vm1128_vm14 = vweird.f32 %v6010_v40 }
 0x25c   : > { %v1115_v8 = vmul.f32 0.5, %v1114_v60 }
 0x25d   : > { %v588_v61 = vpop.xlane.xlu0 %587  ;;  %v1703_v10 = vpop.f32.mrf.mxu0 }
 0x25e   : > { %v1116_v24 = vsub.f32 1.5, %v1115_v8  ;;  %v827_v59 = vpop.xlane.xlu1 %826  ;;  %v631_v41 = vmul.f32 %v4987_v33, %v588_v61  ;;  %v1704_v1 = vadd.f32 %v1703_v10, %v5682_v44  ;;  %v7976_v8 = vld [vmem:[#allocation24_spill] sm:$0xff]  ;;  %v1792_v50 = vpop.f32.mrf.mxu1 }
 0x25f   : > { %v879_v62 = vmul.f32 %v827_v59, %v4987_v33  ;;  %v7977_v59 = vld [vmem:[#allocation25_spill] sm:$0xff] }
 0x260   : > { %v1117_v2 = vmul.f32 %v4317_v23, %v1116_v24  ;;  %v6016_v19 = vpop.eup %4318  ;;  %v6023_v4 = vsub.f32 %v7971_v11, %v631_v41  ;;  %v6026_v30 = vsub.f32 %v7973_v21, %v631_v41  ;;  %v1348_v11 = vmul.f32 %v5224_v46, %v1279_v7  ;;  %v7980_v7 = vld [vmem:[#allocation41_spill] sm:$0xff] }
 0x261   : > { %v1123_v51 = vmul.f32 %v6016_v19, %v6010_v40  ;;  %v6020_v12 = vadd.f32 1e-05, %v879_v62  ;;  %v833_v16 = vpop.xlane.xlu2 %832  ;;  %v6045_v21 = vadd.f32 %v1792_v50, %v1704_v1  ;;  %vm1129_vm13 = vweird.f32 %v6016_v19 }
 0x262   : > { %7972 = vst [vmem:[#allocation30_spill] sm:$0xff] %v6023_v4  ;;  %v1121_v18 = vsel %vm1120_vm12, %v4317_v23, %v1117_v2  ;;  %v756_v26 = vmul.f32 %v6023_v4, %v6023_v4  ;;  %v881_v38 = vmul.f32 %v833_v16, %v4987_v33  ;;  %v757_v23 = vmul.f32 %v6026_v30, %v6026_v30  ;;  %vm1130_vm15 = vmor %vm1128_vm14, %vm1129_vm13 }
 0x263   : > { %7974 = vst [vmem:[#allocation34_spill] sm:$0xff] %v6026_v30  ;;  %v1124_v32 = vmul.f32 %v6016_v19, %v1123_v51  ;;  %4320 = vrsqrt.f32 %v6020_v12  ;;  %v1280_v24 = vmul.f32 %v1121_v18, %v7976_v8  ;;  %v1281_v31 = vmul.f32 %v1121_v18, %v7977_v59 }
 0x264   : > { %v1881_v60 = vpop.f32.mrf.mxu2  ;;  %v6041_v2 = vadd.f32 1e-05, %v881_v38  ;;  %v1970_v62 = vpop.f32.mrf.mxu3  ;;  %v849_v10 = vadd.f32 %v757_v23, %v756_v26  ;;  %v1416_v38 = vadd.f32 %v5222_v3, %v1347_v29  ;;  %v7978_v23 = vld [vmem:[#allocation22_spill] sm:$0xff]  ;;  %vm1138_vm1 = vweird.f32 %v6020_v12 }
 0x265   : > { %v1125_v61 = vmul.f32 0.5, %v1124_v32  ;;  %v1882_v14 = vadd.f32 %v1881_v60, %v5679_v57  ;;  %v591_v41 = vpop.xlane.xlu0 %590  ;;  %v1349_v51 = vmul.f32 %v5207_v47, %v1280_v24  ;;  %v1350_v18 = vmul.f32 %v5224_v46, %v1281_v31 }
 0x266   : > { %v632_v16 = vmul.f32 %v4987_v33, %v591_v41  ;;  %4322 = vrsqrt.f32 %v6041_v2  ;;  %850 = vadd.xlane.f32.xlu0 %v849_v10  ;;  %vm1158_vm3 = vweird.f32 %v6041_v2 }
 0x267   : > { %v6047_v17 = vadd.f32 %v1970_v62, %v1882_v14  ;;  %v1126_v32 = vsub.f32 1.5, %v1125_v61  ;;  %v1418_v26 = vadd.f32 %v5222_v3, %v1349_v51  ;;  %v1417_v61 = vadd.f32 %v5231_v63, %v1348_v11 }
 0x268   : > { %v6055_v8 = vsub.f32 %v7978_v23, %v632_v16  ;;  %v6058_v1 = vsub.f32 %v7980_v7, %v632_v16  ;;  %v1419_v50 = vadd.f32 %v5231_v63, %v1350_v18  ;;  %v1874_v11 = vadd.f32 %v5914_v42, %v5679_v57 }
 0x269   : > { %v4321_v60 = vpop.eup %4320  ;;  %v2056_v24 = vadd.f32 %v6047_v17, %v6045_v21  ;;  %v1462_v31 = vpack.c.bf16 %v1418_v26, %v1416_v38  ;;  %v1127_v62 = vmul.f32 %v6016_v19, %v1126_v32 }
 0x26a   : > { %7979 = vst [vmem:[#allocation32_spill] sm:$0xff] %v6055_v8  ;;  %v1133_v59 = vmul.f32 %v4321_v60, %v6020_v12  ;;  %v758_v29 = vmul.f32 %v6055_v8, %v6055_v8  ;;  %v759_v14 = vmul.f32 %v6058_v1, %v6058_v1  ;;  %v830_v10 = vpop.xlane.xlu1 %829  ;;  %v1463_v16 = vpack.c.bf16 %v1419_v50, %v1417_v61 }
 0x26b   : > { %7981 = vst [vmem:[#allocation35_spill] sm:$0xff] %v6058_v1  ;;  %2057 = vadd.xlane.f32.xlu2 %v2056_v24  ;;  %v836_v51 = vpop.xlane.xlu2 %835  ;;  %1727 = vmatmul.bf16.gmra.mxu0 %v1462_v31  ;;  %v880_v18 = vmul.f32 %v830_v10, %v4987_v33  ;;  %v1696_v24 = vadd.f32 %v5887_v49, %v5682_v44  ;;  %vm1139_vm0 = vweird.f32 %v4321_v60 }
 0x26c   : > { %v1134_v41 = vmul.f32 %v4321_v60, %v1133_v59  ;;  %1905 = vmatmul.bf16.gmra.mxu2 %v1462_v31  ;;  %v882_v38 = vmul.f32 %v836_v51, %v4987_v33  ;;  %v852_v26 = vadd.f32 %v759_v14, %v758_v29  ;;  %v6075_v23 = vpop.eup %4322  ;;  %1816 = vmatmul.bf16.gmra.mxu1 %v1463_v16  ;;  %vm1140_vm2 = vmor %vm1138_vm1, %vm1139_vm0  ;;  %v6099_v10 = vpop.f32.mrf.mxu2  ;;  %v7983_v51 = vld [vmem:[#allocation19_spill] sm:$0xff] }
 0x26d   : > { %1994 = vmatmul.bf16.gmra.mxu3 %v1463_v16  ;;  %v839_v7 = vpop.xlane.xlu0 %838  ;;  %v1153_v42 = vmul.f32 %v6075_v23, %v6041_v2  ;;  %v6084_v59 = vadd.f32 1e-05, %v880_v18  ;;  %v1131_v50 = vsel %vm1130_vm15, %v6016_v19, %v1127_v62  ;;  %v6091_v29 = vadd.f32 %v5931_v39, %v1874_v11  ;;  %v6106_v62 = vpop.f32.mrf.mxu0  ;;  %v7985_v18 = vld [vmem:[#allocation29_spill] sm:$0xff] }
 0x26e   : > { %v1135_v32 = vmul.f32 0.5, %v1134_v41  ;;  %v6086_v31 = vadd.f32 1e-05, %v882_v38  ;;  %v883_v40 = vmul.f32 %v839_v7, %v4987_v33  ;;  %853 = vadd.xlane.f32.xlu0 %v852_v26  ;;  %v1282_v16 = vmul.f32 %v1131_v50, %v7983_v51  ;;  %v7986_v26 = vld [vmem:[#allocation20_spill] sm:$0xff]  ;;  %v7987_v7 = vld [vmem:[#allocation38_spill] sm:$0xff] }
 0x26f   : > { %7982 = vst [vmem:[#allocation33_spill] sm:$0xff] %v6091_v29  ;;  %4324 = vrsqrt.f32 %v6084_v59  ;;  %v1154_v14 = vmul.f32 %v6075_v23, %v1153_v42  ;;  %v6103_v19 = vadd.f32 %v5893_v6, %v1696_v24  ;;  %vm1159_vm4 = vweird.f32 %v6075_v23 }
 0x270   : > { %v1136_v61 = vsub.f32 1.5, %v1135_v32  ;;  %4326 = vrsqrt.f32 %v6086_v31  ;;  %v6097_v41 = vadd.f32 1e-05, %v883_v40  ;;  %v1283_v32 = vmul.f32 %v1131_v50, %v7986_v26  ;;  %vm6172_vm6 = vmor %vm1158_vm3, %vm1159_vm4 }
 0x271   : > { %7984 = vst [vmem:[#allocation36_spill] sm:$0xff] %v6103_v19  ;;  %v2047_v6 = vadd.f32 %v6091_v29, %v6103_v19  ;;  %vm1148_vm7 = vweird.f32 %v6084_v59  ;;  %v2050_v2 = vadd.f32 %v5975_v20, %v5953_v27  ;;  %vm1168_vm9 = vweird.f32 %v6086_v31 }
 0x272   : > { %v1137_v49 = vmul.f32 %v4321_v60, %v1136_v61  ;;  %v594_v39 = vpop.xlane.xlu1 %593  ;;  %4328 = vrsqrt.f32 %v6097_v41  ;;  %v1155_v61 = vmul.f32 0.5, %v1154_v14  ;;  %vm1178_vm11 = vweird.f32 %v6097_v41 }
 0x273   : > { %v633_v11 = vmul.f32 %v4987_v33, %v594_v39  ;;  %v1351_v39 = vmul.f32 %v5207_v47, %v1282_v16 }
 0x274   : > { %v1141_v12 = vsel %vm1140_vm2, %v4321_v60, %v1137_v49  ;;  %v1156_v26 = vsub.f32 1.5, %v1155_v61 }
 0x275   : > { %v1284_v38 = vmul.f32 %v1141_v12, %v7985_v18  ;;  %v1285_v42 = vmul.f32 %v1141_v12, %v7987_v7  ;;  %v2034_v40 = vpop.xlane.xlu0 %2033  ;;  %v4325_v24 = vpop.eup %4324  ;;  %v6115_v51 = vsub.f32 %v5784_v0, %v633_v11  ;;  %v6118_v60 = vsub.f32 %v5787_v55, %v633_v11 }
 0x276   : > { %v2128_v49 = vmul.f32 %v2034_v40, %v4987_v33  ;;  %v6122_v18 = vpop.eup %4326  ;;  %v1143_v50 = vmul.f32 %v4325_v24, %v6084_v59  ;;  %2048 = vadd.xlane.f32.xlu0 %v2047_v6  ;;  %v6127_v12 = vpop.f32.mrf.mxu3  ;;  %v1352_v0 = vmul.f32 %v5224_v46, %v1283_v32  ;;  %vm1149_vm5 = vweird.f32 %v4325_v24 }
 0x277   : > { %7988 = vst [vmem:[#allocation21_spill] sm:$0xff] %v6115_v51  ;;  %v1353_v14 = vmul.f32 %v5207_v47, %v1284_v38  ;;  %v1354_v55 = vmul.f32 %v5224_v46, %v1285_v42  ;;  %v760_v16 = vmul.f32 %v6115_v51, %v6115_v51  ;;  %v761_v40 = vmul.f32 %v6118_v60, %v6118_v60  ;;  %v1794_v38 = vpop.f32.mrf.mxu1  ;;  %v6150_v30 = vpop.f32.mrf.mxu2  ;;  %vm1150_vm8 = vmor %vm1148_vm7, %vm1149_vm5 }
 0x278   : > { %7989 = vst [vmem:[#allocation28_spill] sm:$0xff] %v6118_v60  ;;  %v6131_v11 = vpop.eup %4328  ;;  %v1144_v7 = vmul.f32 %v4325_v24, %v1143_v50  ;;  %v1163_v6 = vmul.f32 %v6122_v18, %v6086_v31  ;;  %v6141_v32 = vsub.f32 %v5823_v22, %v2128_v49  ;;  %v1420_v42 = vadd.f32 %v5222_v3, %v1351_v39 }
 0x279   : > { %v6145_v50 = vsub.f32 %v5794_v53, %v2128_v49  ;;  %v855_v51 = vadd.f32 %v761_v40, %v760_v16  ;;  %v1422_v8 = vadd.f32 %v5222_v3, %v1353_v14  ;;  %v1173_v60 = vmul.f32 %v6131_v11, %v6097_v41  ;;  %v6158_v16 = vpop.f32.mrf.mxu0 }
 0x27a   : > { %v1145_v1 = vmul.f32 0.5, %v1144_v7  ;;  %v842_v61 = vpop.xlane.xlu1 %841  ;;  %v1421_v22 = vadd.f32 %v5231_v63, %v1352_v0  ;;  %v1423_v29 = vadd.f32 %v5231_v63, %v1354_v55  ;;  %v1157_v7 = vmul.f32 %v6075_v23, %v1156_v26 }
 0x27b   : > { %v884_v4 = vmul.f32 %v842_v61, %v4987_v33  ;;  %856 = vadd.xlane.f32.xlu1 %v855_v51  ;;  %v1464_v53 = vpack.c.bf16 %v1422_v8, %v1420_v42  ;;  %v1164_v14 = vmul.f32 %v6122_v18, %v1163_v6  ;;  %v2225_v8 = vmul.f32 %v6145_v50, %v6145_v50 }
 0x27c   : > { %v1146_v19 = vsub.f32 1.5, %v1145_v1  ;;  %v1465_v61 = vpack.c.bf16 %v1423_v29, %v1421_v22  ;;  %v2224_v1 = vmul.f32 %v6141_v32, %v6141_v32  ;;  %v1884_v29 = vadd.f32 %v6099_v10, %v5679_v57 }
 0x27d   : > { %v6160_v40 = vadd.f32 1e-05, %v884_v4  ;;  %1732 = vmatmul.bf16.gmra.mxu0 %v1464_v53  ;;  %1910 = vmatmul.bf16.gmra.mxu2 %v1464_v53  ;;  %v1174_v4 = vmul.f32 %v6131_v11, %v1173_v60  ;;  %v1706_v59 = vadd.f32 %v6106_v62, %v5682_v44  ;;  %v1165_v60 = vmul.f32 0.5, %v1164_v14 }
 0x27e   : > { %v845_v39 = vpop.xlane.xlu2 %844  ;;  %v1147_v45 = vmul.f32 %v4325_v24, %v1146_v19  ;;  %1821 = vmatmul.bf16.gmra.mxu1 %v1465_v61  ;;  %1999 = vmatmul.bf16.gmra.mxu3 %v1465_v61  ;;  %v2288_v19 = vadd.f32 %v2225_v8, %v2224_v1  ;;  %v6182_v55 = vpop.f32.mrf.mxu3  ;;  %v1161_v10 = vsel %vm6172_vm6, %v6075_v23, %v1157_v7  ;;  %vm1169_vm10 = vweird.f32 %v6122_v18 }
 0x27f   : > { %v885_v49 = vmul.f32 %v845_v39, %v4987_v33  ;;  %v6192_v42 = vpop.f32.mrf.mxu1  ;;  %v1175_v22 = vmul.f32 0.5, %v1174_v4  ;;  %v6202_v14 = vpop.f32.mrf.mxu2  ;;  %v6213_v8 = vadd.f32 %v1794_v38, %v1706_v59  ;;  %vm1179_vm12 = vweird.f32 %v6131_v11  ;;  %vm6241_vm13 = vmor %vm1168_vm9, %vm1169_vm10 }
 0x280   : > { %v1151_v26 = vsel %vm1150_vm8, %v4325_v24, %v1147_v45  ;;  %2289 = vadd.xlane.f32.xlu0 %v2288_v19  ;;  %v7992_v24 = vld [vmem:[#allocation39_spill] sm:$0xff]  ;;  %vm1180_vm14 = vmor %vm1178_vm11, %vm1179_vm12  ;;  %vm1188_vm1 = vweird.f32 %v6160_v40 }
 0x281   : > { %v6162_v0 = vadd.f32 1e-05, %v885_v49  ;;  %v1286_v45 = vmul.f32 %v1151_v26, %v5698_v52  ;;  %v1288_v62 = vmul.f32 %v1161_v10, %v7992_v24  ;;  %v6200_v49 = vadd.f32 %v6127_v12, %v1884_v29  ;;  %v6217_v4 = vpop.f32.mrf.mxu0 }
 0x282   : > { %v2037_v6 = vpop.xlane.xlu1 %2036  ;;  %v1166_v52 = vsub.f32 1.5, %v1165_v60  ;;  %v1176_v12 = vsub.f32 1.5, %v1175_v22 }
 0x283   : > { %4330 = vrsqrt.f32 %v6162_v0  ;;  %v2129_v39 = vmul.f32 %v2037_v6, %v4987_v33  ;;  %2051 = vadd.xlane.f32.xlu1 %v2050_v2  ;;  %v1355_v7 = vmul.f32 %v5207_v47, %v1286_v45  ;;  %v1357_v51 = vmul.f32 %v5207_v47, %v1288_v62 }
 0x284   : > { %4332 = vrsqrt.f32 %v6160_v40  ;;  %v2059_v19 = vadd.f32 %v6200_v49, %v6213_v8  ;;  %v1887_v2 = vadd.f32 %v6150_v30, %v5679_v57  ;;  %v1167_v59 = vmul.f32 %v6122_v18, %v1166_v52 }
 0x285   : > { %v6205_v61 = vsub.f32 %v5899_v5, %v2129_v39  ;;  %v6208_v23 = vsub.f32 %v5902_v48, %v2129_v39  ;;  %v1287_v48 = vmul.f32 %v1151_v26, %v5711_v13  ;;  %v1424_v26 = vadd.f32 %v5222_v3, %v1355_v7  ;;  %v7993_v39 = vld [vmem:[#allocation40_spill] sm:$0xff] }
 0x286   : > { %v6195_v53 = vpop.xlane.xlu2 %847  ;;  %v1426_v22 = vadd.f32 %v5222_v3, %v1357_v51  ;;  %v1289_v45 = vmul.f32 %v1161_v10, %v7993_v39  ;;  %v1177_v30 = vmul.f32 %v6131_v11, %v1176_v12  ;;  %v6248_v7 = vpop.f32.mrf.mxu3  ;;  %v1171_v41 = vsel %vm6241_vm13, %v6122_v18, %v1167_v59 }
 0x287   : > { %v2226_v5 = vmul.f32 %v6205_v61, %v6205_v61  ;;  %v2227_v38 = vmul.f32 %v6208_v23, %v6208_v23  ;;  %v1290_v59 = vmul.f32 %v1171_v41, %v5719_v37  ;;  %vm1198_vm15 = vweird.f32 %v6162_v0 }
 0x288   : > { %2060 = vadd.xlane.f32.xlu0 %v2059_v19  ;;  %v1466_v31 = vpack.c.bf16 %v1426_v22, %v1424_v26  ;;  %v1358_v10 = vmul.f32 %v5224_v46, %v1289_v45  ;;  %v6260_v19 = vpop.f32.mrf.mxu1  ;;  %v1891_v22 = vpop.f32.mrf.mxu2 }
 0x289   : > { %v6211_v1 = vpop.eup %4330  ;;  %v2291_v6 = vadd.f32 %v2227_v38, %v2226_v5  ;;  %v1356_v5 = vmul.f32 %v5224_v46, %v1287_v48  ;;  %v1709_v38 = vadd.f32 %v6158_v16, %v5682_v44  ;;  %v6273_v16 = vadd.f32 %v6182_v55, %v1887_v2  ;;  %v1713_v55 = vpop.f32.mrf.mxu0 }
 0x28a   : > { %v6222_v29 = vpop.eup %4332  ;;  %v1193_v13 = vmul.f32 %v6211_v1, %v6162_v0  ;;  %v2040_v60 = vpop.xlane.xlu1 %2039  ;;  %v1427_v26 = vadd.f32 %v5231_v63, %v1358_v10  ;;  %vm1199_vm0 = vweird.f32 %v6211_v1 }
 0x28b   : > { %v1183_v62 = vmul.f32 %v6222_v29, %v6160_v40  ;;  %v2130_v52 = vmul.f32 %v2040_v60, %v4987_v33  ;;  %2292 = vadd.xlane.f32.xlu1 %v2291_v6  ;;  %v1425_v39 = vadd.f32 %v5231_v63, %v1356_v5  ;;  %v1181_v6 = vsel %vm1180_vm14, %v6131_v11, %v1177_v30  ;;  %v7997_v30 = vld [vmem:[#allocation31_spill] sm:$0xff]  ;;  %vm1200_vm3 = vmor %vm1198_vm15, %vm1199_vm0 }
 0x28c   : > { %v1194_v60 = vmul.f32 %v6211_v1, %v1193_v13  ;;  %v6287_v11 = vadd.f32 %v6192_v42, %v1709_v38  ;;  %v7999_v38 = vld [vmem:[#allocation23_spill] sm:$0xff]  ;;  %vm1189_vm2 = vweird.f32 %v6222_v29 }
 0x28d   : > { %v6264_v48 = vsub.f32 %v5961_v34, %v2130_v52  ;;  %1737 = vmatmul.bf16.gmra.mxu0 %v1466_v31  ;;  %1915 = vmatmul.bf16.gmra.mxu2 %v1466_v31  ;;  %v1184_v13 = vmul.f32 %v6222_v29, %v1183_v62  ;;  %v6277_v34 = vsub.f32 %v5951_v28, %v2130_v52  ;;  %v7998_v52 = vld [vmem:[#allocation42_spill] sm:$0xff]  ;;  %vm1190_vm4 = vmor %vm1188_vm1, %vm1189_vm2 }
 0x28e   : > { %v2043_v51 = vpop.xlane.xlu2 %2042  ;;  %v1467_v45 = vpack.c.bf16 %v1427_v26, %v1425_v39  ;;  %v1195_v2 = vmul.f32 0.5, %v1194_v60  ;;  %v1292_v28 = vmul.f32 %v1181_v6, %v7997_v30  ;;  %v2062_v37 = vadd.f32 %v6273_v16, %v6287_v11  ;;  %v1980_v39 = vpop.f32.mrf.mxu3 }
 0x28f   : > { %v2131_v12 = vmul.f32 %v2043_v51, %v4987_v33  ;;  %7996 = vst [vmem:[#allocation37_spill] sm:$0xff] %v6277_v34  ;;  %v2228_v24 = vmul.f32 %v6264_v48, %v6264_v48  ;;  %v1185_v62 = vmul.f32 0.5, %v1184_v13  ;;  %v1293_v51 = vmul.f32 %v1181_v6, %v7998_v52 }
 0x290   : > { %1826 = vmatmul.bf16.gmra.mxu1 %v1467_v45  ;;  %2004 = vmatmul.bf16.gmra.mxu3 %v1467_v45  ;;  %v1291_v60 = vmul.f32 %v1171_v41, %v7999_v38  ;;  %v1359_v13 = vmul.f32 %v5207_v47, %v1290_v59  ;;  %v1802_v41 = vpop.f32.mrf.mxu1  ;;  %v1892_v38 = vadd.f32 %v1891_v22, %v5679_v57 }
 0x291   : > { %v6280_v5 = vsub.f32 %v5964_v36, %v2131_v12  ;;  %v6283_v18 = vsub.f32 %v5956_v58, %v2131_v12  ;;  %v1889_v36 = vadd.f32 %v6202_v14, %v5679_v57  ;;  %v2229_v58 = vmul.f32 %v6277_v34, %v6277_v34  ;;  %2063 = vadd.xlane.f32.xlu0 %v2062_v37 }
 0x292   : > { %v1196_v14 = vsub.f32 1.5, %v1195_v2  ;;  %v1186_v52 = vsub.f32 1.5, %v1185_v62  ;;  %v1711_v34 = vadd.f32 %v6217_v4, %v5682_v44  ;;  %v1893_v2 = vpop.f32.mrf.mxu2  ;;  %v1360_v62 = vmul.f32 %v5224_v46, %v1291_v60 }
 0x293   : > { %v2230_v10 = vmul.f32 %v6280_v5, %v6280_v5  ;;  %v2231_v12 = vmul.f32 %v6283_v18, %v6283_v18  ;;  %v2294_v26 = vadd.f32 %v2229_v58, %v2228_v24  ;;  %v6324_v4 = vadd.f32 %v6248_v7, %v1889_v36 }
 0x294   : > { %v1197_v0 = vmul.f32 %v6211_v1, %v1196_v14  ;;  %v1187_v58 = vmul.f32 %v6222_v29, %v1186_v52  ;;  %v6333_v37 = vadd.f32 %v6260_v19, %v1711_v34  ;;  %v1894_v14 = vadd.f32 %v1893_v2, %v5679_v57 }
 0x295   : > { %v2297_v30 = vadd.f32 %v2231_v12, %v2230_v10  ;;  %2295 = vadd.xlane.f32.xlu1 %v2294_v26  ;;  %v1429_v19 = vadd.f32 %v5231_v63, %v1360_v62  ;;  %v1714_v34 = vadd.f32 %v1713_v55, %v5682_v44 }
 0x296   : > { %v2046_v42 = vpop.xlane.xlu2 %2045  ;;  %v1201_v12 = vsel %vm1200_vm3, %v6211_v1, %v1197_v0  ;;  %v2065_v60 = vadd.f32 %v6324_v4, %v6333_v37  ;;  %v1191_v40 = vsel %vm1190_vm4, %v6222_v29, %v1187_v58  ;;  %v1982_v26 = vpop.f32.mrf.mxu3  ;;  %v8005_v58 = vld [vmem:[#allocation27_spill] sm:$0xff] }
 0x297   : > { %v2132_v31 = vmul.f32 %v2046_v42, %v4987_v33  ;;  %v1361_v42 = vmul.f32 %v5207_v47, %v1292_v28  ;;  %2298 = vadd.xlane.f32.xlu2 %v2297_v30  ;;  %v1428_v28 = vadd.f32 %v5222_v3, %v1359_v13  ;;  %v1296_v1 = vmul.f32 %v1201_v12, %v5865_v15 }
 0x298   : > { %v1804_v52 = vpop.f32.mrf.mxu1  ;;  %v6354_v29 = vadd.f32 %v1802_v41, %v1714_v34  ;;  %v1297_v2 = vmul.f32 %v1201_v12, %v5868_v25  ;;  %v1295_v41 = vmul.f32 %v1191_v40, %v8005_v58 }
 0x299   : > { %v6307_v45 = vsub.f32 %v5988_v56, %v2132_v31  ;;  %v6310_v6 = vsub.f32 %v5983_v43, %v2132_v31  ;;  %v1430_v56 = vadd.f32 %v5222_v3, %v1361_v42  ;;  %v1362_v43 = vmul.f32 %v5224_v46, %v1293_v51  ;;  %v1715_v51 = vpop.f32.mrf.mxu0 }
 0x29a   : > { %v1716_v22 = vadd.f32 %v1715_v51, %v5682_v44  ;;  %v6349_v42 = vadd.f32 %v1980_v39, %v1892_v38  ;;  %v1896_v55 = vpop.f32.mrf.mxu2 }
 0x29b   : > { %8000 = vst [vmem:[#allocation24_spill] sm:$0xff] %v6307_v45  ;;  %v2232_v59 = vmul.f32 %v6307_v45, %v6307_v45  ;;  %v2233_v24 = vmul.f32 %v6310_v6, %v6310_v6  ;;  %v1468_v7 = vpack.c.bf16 %v1430_v56, %v1428_v28  ;;  %v1431_v36 = vadd.f32 %v5231_v63, %v1362_v43  ;;  %v8002_v56 = vld [vmem:[#allocation26_spill] sm:$0xff] }
 0x29c   : > { %8001 = vst [vmem:[#allocation25_spill] sm:$0xff] %v6310_v6  ;;  %v1294_v43 = vmul.f32 %v1191_v40, %v8002_v56  ;;  %v6363_v39 = vadd.f32 %v1804_v52, %v1716_v22  ;;  %v2068_v62 = vadd.f32 %v6349_v42, %v6354_v29  ;;  %v1897_v51 = vadd.f32 %v1896_v55, %v5679_v57 }
 0x29d   : > { %v2300_v10 = vadd.f32 %v2233_v24, %v2232_v59  ;;  %1742 = vmatmul.bf16.gmra.mxu0 %v1468_v7  ;;  %1920 = vmatmul.bf16.gmra.mxu2 %v1468_v7  ;;  %v1469_v30 = vpack.c.bf16 %v1431_v36, %v1429_v19  ;;  %v6352_v59 = vadd.f32 %v1982_v26, %v1894_v14 }
 0x29e   : > { %v2055_v31 = vpop.xlane.xlu2 %2054  ;;  %2066 = vadd.xlane.f32.xlu1 %v2065_v60  ;;  %v1365_v24 = vmul.f32 %v5207_v47, %v1296_v1  ;;  %v1985_v12 = vpop.f32.mrf.mxu3  ;;  %v1364_v14 = vmul.f32 %v5224_v46, %v1295_v41  ;;  %v886_v52 = vmul.f32 %v6195_v53, %v4987_v33 }
 0x29f   : > { %v2135_v13 = vmul.f32 %v2055_v31, %v4987_v33  ;;  %2301 = vadd.xlane.f32.xlu2 %v2300_v10  ;;  %v1366_v10 = vmul.f32 %v5224_v46, %v1297_v2  ;;  %v6380_v38 = vadd.f32 %v1985_v12, %v1897_v51  ;;  %v4094_v51 = vld [vmem:[#allocation11 + $0xf8] sm:$0xf0]  ;;  %v4092_v12 = vld [vmem:[#allocation11 + $0xf0] sm:$0xf] }
 0x2a0   : > { %1831 = vmatmul.bf16.gmra.mxu1 %v1469_v30  ;;  %2009 = vmatmul.bf16.gmra.mxu3 %v1469_v30  ;;  %v1434_v31 = vadd.f32 %v5222_v3, %v1365_v24  ;;  %v1807_v19 = vpop.f32.mrf.mxu1  ;;  %v1433_v1 = vadd.f32 %v5231_v63, %v1364_v14  ;;  %v918_v56 = vadd.f32 1e-05, %v886_v52  ;;  %v4152_v24 = vld [vmem:[#allocation11 + $0x74] sm:$0xf] }
 0x2a1   : > { %v6357_v0 = vsub.f32 %v6002_v54, %v2135_v13  ;;  %v6360_v15 = vsub.f32 %v5999_v35, %v2135_v13  ;;  %v1718_v28 = vpop.f32.mrf.mxu0  ;;  %v2071_v54 = vadd.f32 %v6352_v59, %v6363_v39  ;;  %v1363_v35 = vmul.f32 %v5207_v47, %v1294_v43  ;;  %8006 = vst [vmem:[#allocation19_spill] sm:$0xff] %v6380_v38 }
 0x2a2   : > { %v1719_v36 = vadd.f32 %v1718_v28, %v5682_v44  ;;  %v1435_v13 = vadd.f32 %v5231_v63, %v1366_v10  ;;  %4334 = vrsqrt.f32 %v918_v56  ;;  %v6394_v55 = vpop.f32.mrf.mxu2  ;;  %v4030_v28 = vld [vmem:[#allocation11 + $0x78] sm:$0xf0]  ;;  %v4153_v10 = vld [vmem:[#allocation11 + $0x74] sm:$0xf0]  ;;  %vm1208_vm5 = vweird.f32 %v918_v56 }
 0x2a3   : > { %8003 = vst [vmem:[#allocation22_spill] sm:$0xff] %v6357_v0  ;;  %v2238_v25 = vmul.f32 %v6357_v0, %v6357_v0  ;;  %v2239_v7 = vmul.f32 %v6360_v15, %v6360_v15  ;;  %v1432_v60 = vadd.f32 %v5222_v3, %v1363_v35  ;;  %v4033_v41 = vor.u32 %v4152_v24, %v4030_v28 }
 0x2a4   : > { %8004 = vst [vmem:[#allocation41_spill] sm:$0xff] %v6360_v15  ;;  %v6384_v34 = vadd.f32 %v1807_v19, %v1719_v36  ;;  %v1471_v30 = vpack.c.bf16 %v1435_v13, %v1433_v1  ;;  %v4169_v19 = vld [vmem:[#allocation11 + $0xf4] sm:$0xf0] }
 0x2a5   : > { %v2309_v40 = vadd.f32 %v2239_v7, %v2238_v25  ;;  %v1470_v26 = vpack.c.bf16 %v1434_v31, %v1432_v60  ;;  %3378 = vmatpush.bf16.msrb.mxu2 %v4033_v41  ;;  %v4028_v31 = vld [vmem:[#allocation11 + $0x70] sm:$0xf]  ;;  %v8017_v15 = vld [vmem:[#allocation30_spill] sm:$0xff] }
 0x2a6   : > { %2069 = vadd.xlane.f32.xlu1 %v2068_v62  ;;  %v2074_v22 = vadd.f32 %v6380_v38, %v6384_v34  ;;  %v4168_v62 = vld [vmem:[#allocation11 + $0xf4] sm:$0xf]  ;;  %v4029_v14 = vor.u32 %v4153_v10, %v4028_v31 }
 0x2a7   : > { %2072 = vadd.xlane.f32.xlu2 %v2071_v54  ;;  %v6398_v54 = vpop.f32.mrf.mxu3  ;;  %v4097_v35 = vor.u32 %v4168_v62, %v4094_v51 }
 0x2a8   : > { %v4335_v2 = vpop.eup %4334  ;;  %v6396_v58 = vpop.f32.mrf.mxu1  ;;  %3200 = vmatpush.bf16.msrb.mxu0 %v4029_v14 }
 0x2a9   : > { %v6392_v43 = vpop.f32.mrf.mxu0  ;;  %v1203_v25 = vmul.f32 %v4335_v2, %v918_v56  ;;  %3467 = vmatpush.bf16.msrb.mxu3 %v4097_v35  ;;  %vm1209_vm6 = vweird.f32 %v4335_v2 }
 0x2aa   : > { %v6402_v7 = vpop.f32.mrf.mxu2  ;;  %vm1210_vm7 = vmor %vm1208_vm5, %vm1209_vm6 }
 0x2ab   : > { %v1204_v36 = vmul.f32 %v4335_v2, %v1203_v25 }
 0x2ad   : > { %1747 = vmatmul.bf16.gmra.mxu0 %v1470_v26  ;;  %1925 = vmatmul.bf16.gmra.mxu2 %v1470_v26  ;;  %v4093_v26 = vor.u32 %v4169_v19, %v4092_v12  ;;  %v1205_v13 = vmul.f32 0.5, %v1204_v36 }
 0x2ae   : > { %2310 = vadd.xlane.f32.xlu1 %v2309_v40 }
 0x2af   : > { %2075 = vadd.xlane.f32.xlu2 %v2074_v22  ;;  %v6407_v22 = vpop.f32.mrf.mxu3  ;;  %3289 = vmatpush.bf16.msrb.mxu1 %v4093_v26  ;;  %v1206_v28 = vsub.f32 1.5, %v1205_v13 }
 0x2b0   : > { %1836 = vmatmul.bf16.gmra.mxu1 %v1471_v30  ;;  %2014 = vmatmul.bf16.gmra.mxu3 %v1471_v30  ;;  %v6405_v1 = vpop.f32.mrf.mxu1 }
 0x2b1   : > { %v6400_v53 = vpop.f32.mrf.mxu0  ;;  %v1207_v12 = vmul.f32 %v4335_v2, %v1206_v28 }
 0x2b2   : > { %v1903_v35 = vpop.f32.mrf.mxu2 }
 0x2b3   : > { %v1211_v13 = vsel %vm1210_vm7, %v4335_v2, %v1207_v12 }
 0x2b7   : > { %v1992_v26 = vpop.f32.mrf.mxu3 }
 0x2b9   : > { %v1725_v51 = vpop.f32.mrf.mxu0 }
 0x2ba   : > { %v1726_v56 = vadd.f32 %v1725_v51, %v5682_v44 }
 0x2d9   : > { %v851_v60 = vpop.xlane.xlu0 %850 }
 0x2da   : > { %v887_v40 = vmul.f32 %v851_v60, %v4987_v33 }
 0x2dc   : > { %v919_v30 = vadd.f32 1e-05, %v887_v40  ;;  %v1814_v40 = vpop.f32.mrf.mxu1 }
 0x2de   : > { %v2058_v52 = vpop.xlane.xlu2 %2057  ;;  %4336 = vrsqrt.f32 %v919_v30  ;;  %vm1218_vm9 = vweird.f32 %v919_v30 }
 0x2df   : > { %v2136_v24 = vmul.f32 %v2058_v52, %v4987_v33 }
 0x2e1   : > { %v6411_v62 = vsub.f32 %v6045_v21, %v2136_v24  ;;  %v6414_v41 = vsub.f32 %v6047_v17, %v2136_v24  ;;  %v854_v25 = vpop.xlane.xlu0 %853  ;;  %v1904_v21 = vadd.f32 %v1903_v35, %v5679_v57 }
 0x2e2   : > { %v888_v10 = vmul.f32 %v854_v25, %v4987_v33  ;;  %v6428_v25 = vadd.f32 %v1814_v40, %v1726_v56 }
 0x2e3   : > { %8007 = vst [vmem:[#allocation29_spill] sm:$0xff] %v6411_v62  ;;  %v2240_v36 = vmul.f32 %v6411_v62, %v6411_v62  ;;  %v2241_v31 = vmul.f32 %v6414_v41, %v6414_v41  ;;  %v6426_v52 = vadd.f32 %v1992_v26, %v1904_v21  ;;  %v8012_v21 = vld [vmem:[#allocation36_spill] sm:$0xff] }
 0x2e4   : > { %8008 = vst [vmem:[#allocation20_spill] sm:$0xff] %v6414_v41  ;;  %v4337_v14 = vpop.eup %4336  ;;  %v6422_v17 = vadd.f32 1e-05, %v888_v10  ;;  %v8011_v10 = vld [vmem:[#allocation43_spill] sm:$0xff] }
 0x2e5   : > { %v2312_v60 = vadd.f32 %v2241_v31, %v2240_v36  ;;  %v1213_v19 = vmul.f32 %v4337_v14, %v919_v30  ;;  %8009 = vst [vmem:[#allocation38_spill] sm:$0xff] %v6426_v52  ;;  %v1298_v31 = vmul.f32 %v1211_v13, %v5906_v9  ;;  %v1299_v41 = vmul.f32 %v1211_v13, %v8011_v10 }
 0x2e6   : > { %4338 = vrsqrt.f32 %v6422_v17  ;;  %8010 = vst [vmem:[#allocation39_spill] sm:$0xff] %v6428_v25  ;;  %vm1219_vm8 = vweird.f32 %v4337_v14  ;;  %v2083_v2 = vadd.f32 %v6426_v52, %v6428_v25  ;;  %vm1228_vm12 = vweird.f32 %v6422_v17  ;;  %v3990_v25 = vld [vmem:[#allocation11 + $0x28] sm:$0xf0] }
 0x2e7   : > { %2313 = vadd.xlane.f32.xlu1 %v2312_v60  ;;  %v1214_v24 = vmul.f32 %v4337_v14, %v1213_v19  ;;  %v8014_v19 = vld [vmem:[#allocation33_spill] sm:$0xff]  ;;  %vm1220_vm10 = vmor %vm1218_vm9, %vm1219_vm8  ;;  %v1367_v10 = vmul.f32 %v5207_v47, %v1298_v31 }
 0x2e8   : > { %v1728_v28 = vpop.f32.mrf.mxu0 }
 0x2e9   : > { %v1215_v35 = vmul.f32 0.5, %v1214_v24  ;;  %v2049_v36 = vpop.xlane.xlu0 %2048  ;;  %v1729_v62 = vadd.f32 %v1728_v28, %v5682_v44  ;;  %v1817_v24 = vpop.f32.mrf.mxu1 }
 0x2ea   : > { %v2133_v51 = vmul.f32 %v2049_v36, %v4987_v33 }
 0x2eb   : > { %v1216_v60 = vsub.f32 1.5, %v1215_v35 }
 0x2ec   : > { %v6436_v12 = vpop.eup %4338  ;;  %v6439_v56 = vsub.f32 %v8012_v21, %v2133_v51  ;;  %v6442_v40 = vsub.f32 %v8014_v19, %v2133_v51  ;;  %v6453_v21 = vadd.f32 %v1817_v24, %v1729_v62  ;;  %v1368_v19 = vmul.f32 %v5224_v46, %v1299_v41 }
 0x2ed   : > { %v1217_v9 = vmul.f32 %v4337_v14, %v1216_v60  ;;  %v1223_v26 = vmul.f32 %v6436_v12, %v6422_v17  ;;  %vm1229_vm11 = vweird.f32 %v6436_v12  ;;  %v1899_v17 = vadd.f32 %v6394_v55, %v5679_v57 }
 0x2ee   : > { %8013 = vst [vmem:[#allocation40_spill] sm:$0xff] %v6439_v56  ;;  %v2234_v35 = vmul.f32 %v6439_v56, %v6439_v56  ;;  %v2235_v36 = vmul.f32 %v6442_v40, %v6442_v40  ;;  %v857_v60 = vpop.xlane.xlu1 %856  ;;  %v1437_v24 = vadd.f32 %v5231_v63, %v1368_v19  ;;  %vm1230_vm13 = vmor %vm1228_vm12, %vm1229_vm11 }
 0x2ef   : > { %8015 = vst [vmem:[#allocation31_spill] sm:$0xff] %v6442_v40  ;;  %2084 = vadd.xlane.f32.xlu1 %v2083_v2  ;;  %v1906_v13 = vpop.f32.mrf.mxu2  ;;  %v1221_v51 = vsel %vm1220_vm10, %v4337_v14, %v1217_v9  ;;  %v1224_v30 = vmul.f32 %v6436_v12, %v1223_v26  ;;  %v889_v56 = vmul.f32 %v857_v60, %v4987_v33  ;;  %v4167_v60 = vld [vmem:[#allocation11 + $0xe4] sm:$0xf0] }
 0x2f0   : > { %v1907_v28 = vadd.f32 %v1906_v13, %v5679_v57  ;;  %8016 = vst [vmem:[#allocation42_spill] sm:$0xff] %v6453_v21  ;;  %v1995_v2 = vpop.f32.mrf.mxu3  ;;  %v1300_v0 = vmul.f32 %v1221_v51, %v8017_v15  ;;  %v8018_v13 = vld [vmem:[#allocation34_spill] sm:$0xff]  ;;  %v2303_v52 = vadd.f32 %v2235_v36, %v2234_v35  ;;  %v1436_v15 = vadd.f32 %v5222_v3, %v1367_v10 }
 0x2f1   : > { %v1301_v6 = vmul.f32 %v1221_v51, %v8018_v13  ;;  %v1225_v40 = vmul.f32 0.5, %v1224_v30  ;;  %v6461_v31 = vadd.f32 1e-05, %v889_v56  ;;  %v4151_v51 = vld [vmem:[#allocation11 + $0x64] sm:$0xf0] }
 0x2f2   : > { %v6459_v45 = vadd.f32 %v1995_v2, %v1907_v28  ;;  %v1369_v62 = vmul.f32 %v5207_v47, %v1300_v0  ;;  %2304 = vadd.xlane.f32.xlu0 %v2303_v52  ;;  %v4150_v0 = vld [vmem:[#allocation11 + $0x64] sm:$0xf]  ;;  %v4084_v30 = vld [vmem:[#allocation11 + $0xe0] sm:$0xf] }
 0x2f3   : > { %v1370_v9 = vmul.f32 %v5224_v46, %v1301_v6  ;;  %v1226_v41 = vsub.f32 1.5, %v1225_v40  ;;  %4340 = vrsqrt.f32 %v6461_v31  ;;  %v2290_v35 = vpop.xlane.xlu0 %2289  ;;  %v4022_v6 = vld [vmem:[#allocation11 + $0x68] sm:$0xf0]  ;;  %v4020_v40 = vld [vmem:[#allocation11 + $0x60] sm:$0xf]  ;;  %vm1238_vm15 = vweird.f32 %v6461_v31 }
 0x2f4   : > { %8019 = vst [vmem:[#allocation23_spill] sm:$0xff] %v6459_v45  ;;  %v2086_v14 = vadd.f32 %v6459_v45, %v6453_v21  ;;  %v1438_v26 = vadd.f32 %v5222_v3, %v1369_v62  ;;  %v2384_v52 = vmul.f32 %v2290_v35, %v4987_v33  ;;  %v4025_v19 = vor.u32 %v4150_v0, %v4022_v6  ;;  %v4012_v45 = vld [vmem:[#allocation11 + $0x50] sm:$0xf]  ;;  %v4165_v0 = vld [vmem:[#allocation11 + $0xd4] sm:$0xf0] }
 0x2f5   : > { %v1439_v56 = vadd.f32 %v5231_v63, %v1370_v9  ;;  %v1227_v28 = vmul.f32 %v6436_v12, %v1226_v41  ;;  %v4021_v13 = vor.u32 %v4151_v51, %v4020_v40  ;;  %v4085_v62 = vor.u32 %v4167_v60, %v4084_v30  ;;  %v4166_v9 = vld [vmem:[#allocation11 + $0xe4] sm:$0xf]  ;;  %v4086_v41 = vld [vmem:[#allocation11 + $0xe8] sm:$0xf0]  ;;  %v4148_v6 = vld [vmem:[#allocation11 + $0x54] sm:$0xf] }
 0x2f6   : > { %v1472_v36 = vpack.c.bf16 %v1438_v26, %v1436_v15  ;;  %v2052_v2 = vpop.xlane.xlu1 %2051  ;;  %v6479_v35 = vadd.f32 1e-05, %v2384_v52  ;;  %v4149_v15 = vld [vmem:[#allocation11 + $0x54] sm:$0xf0]  ;;  %v4076_v26 = vld [vmem:[#allocation11 + $0xd0] sm:$0xf]  ;;  %3379 = vmatpush.bf16.msrb.mxu2 %v4025_v19 }
 0x2f7   : > { %2087 = vadd.xlane.f32.xlu1 %v2086_v14  ;;  %v1473_v10 = vpack.c.bf16 %v1439_v56, %v1437_v24  ;;  %v2134_v14 = vmul.f32 %v2052_v2, %v4987_v33  ;;  %v6484_v24 = vsel %vm1230_vm13, %v6436_v12, %v1227_v28  ;;  %v4089_v56 = vor.u32 %v4166_v9, %v4086_v41  ;;  %v4014_v40 = vld [vmem:[#allocation11 + $0x58] sm:$0xf0]  ;;  %v4164_v12 = vld [vmem:[#allocation11 + $0xd4] sm:$0xf] }
 0x2f8   : > { %1752 = vmatmul.bf16.gmra.mxu0 %v1472_v36  ;;  %1930 = vmatmul.bf16.gmra.mxu2 %v1472_v36  ;;  %4342 = vrsqrt.f32 %v6479_v35  ;;  %v4013_v55 = vor.u32 %v4149_v15, %v4012_v45  ;;  %v4078_v28 = vld [vmem:[#allocation11 + $0xd8] sm:$0xf0]  ;;  %v4017_v60 = vor.u32 %v4148_v6, %v4014_v40  ;;  %v6504_v45 = vadd.f32 %v6398_v54, %v1899_v17  ;;  %v4068_v15 = vld [vmem:[#allocation11 + $0xc0] sm:$0xf]  ;;  %v4006_v6 = vld [vmem:[#allocation11 + $0x48] sm:$0xf0] }
 0x2f9   : > { %1841 = vmatmul.bf16.gmra.mxu1 %v1473_v10  ;;  %2019 = vmatmul.bf16.gmra.mxu3 %v1473_v10  ;;  %v6486_v51 = vpop.eup %4340  ;;  %v6489_v52 = vsub.f32 %v5953_v27, %v2134_v14  ;;  %v6492_v30 = vsub.f32 %v5975_v20, %v2134_v14  ;;  %v4077_v10 = vor.u32 %v4165_v0, %v4076_v26  ;;  %v4147_v14 = vld [vmem:[#allocation11 + $0x44] sm:$0xf0]  ;;  %v4146_v0 = vld [vmem:[#allocation11 + $0x44] sm:$0xf]  ;;  %vm2454_vm2 = vweird.f32 %v6479_v35 }
 0x2fa   : > { %3201 = vmatpush.bf16.msrb.mxu0 %v4021_v13  ;;  %v1233_v36 = vmul.f32 %v6486_v51, %v6461_v31  ;;  %3290 = vmatpush.bf16.msrb.mxu1 %v4085_v62  ;;  %v1721_v27 = vadd.f32 %v6392_v43, %v5682_v44  ;;  %v4081_v19 = vor.u32 %v4164_v12, %v4078_v28  ;;  %v4004_v43 = vld [vmem:[#allocation11 + $0x40] sm:$0xf]  ;;  %v8023_v26 = vld [vmem:[#allocation32_spill] sm:$0xff]  ;;  %vm1239_vm14 = vweird.f32 %v6486_v51 }
 0x2fb   : > { %8020 = vst [vmem:[#allocation26_spill] sm:$0xff] %v6489_v52  ;;  %3468 = vmatpush.bf16.msrb.mxu3 %v4089_v56  ;;  %v2236_v20 = vmul.f32 %v6489_v52, %v6489_v52  ;;  %v2237_v2 = vmul.f32 %v6492_v30, %v6492_v30  ;;  %v1724_v13 = vadd.f32 %v6400_v53, %v5682_v44  ;;  %v2061_v41 = vpop.xlane.xlu0 %2060  ;;  %v4163_v53 = vld [vmem:[#allocation11 + $0xc4] sm:$0xf0]  ;;  %v4070_v52 = vld [vmem:[#allocation11 + $0xc8] sm:$0xf0]  ;;  %vm6534_vm0 = vmor %vm1238_vm15, %vm1239_vm14 }
 0x2fc   : > { %8021 = vst [vmem:[#allocation27_spill] sm:$0xff] %v6492_v30  ;;  %v1902_v62 = vadd.f32 %v6402_v7, %v5679_v57  ;;  %v1234_v9 = vmul.f32 %v6486_v51, %v1233_v36  ;;  %v1302_v56 = vmul.f32 %v6484_v24, %v8023_v26  ;;  %v2137_v54 = vmul.f32 %v2061_v41, %v4987_v33  ;;  %v4162_v30 = vld [vmem:[#allocation11 + $0xc4] sm:$0xf]  ;;  %v4145_v41 = vld [vmem:[#allocation11 + $0x34] sm:$0xf0] }
 0x2fd   : > { %8022 = vst [vmem:[#allocation43_spill] sm:$0xff] %v6504_v45  ;;  %v2306_v17 = vadd.f32 %v2237_v2, %v2236_v20  ;;  %3380 = vmatpush.bf16.msrb.mxu2 %v4017_v60  ;;  %v4005_v12 = vor.u32 %v4147_v14, %v4004_v43  ;;  %v4069_v28 = vor.u32 %v4163_v53, %v4068_v15  ;;  %v8027_v43 = vld [vmem:[#allocation35_spill] sm:$0xff]  ;;  %v4160_v53 = vld [vmem:[#allocation11 + $0xb4] sm:$0xf] }
 0x2fe   : > { %3202 = vmatpush.bf16.msrb.mxu0 %v4013_v55  ;;  %v1235_v7 = vmul.f32 0.5, %v1234_v9  ;;  %v2293_v40 = vpop.xlane.xlu1 %2292  ;;  %3291 = vmatpush.bf16.msrb.mxu1 %v4077_v10  ;;  %v4009_v36 = vor.u32 %v4146_v0, %v4006_v6  ;;  %v6515_v26 = vpop.eup %4342  ;;  %v6519_v20 = vsub.f32 %v6213_v8, %v2137_v54  ;;  %v6522_v55 = vsub.f32 %v6200_v49, %v2137_v54  ;;  %v3996_v9 = vld [vmem:[#allocation11 + $0x30] sm:$0xf]  ;;  %v4062_v6 = vld [vmem:[#allocation11 + $0xb8] sm:$0xf0] }
 0x2ff   : > { %3469 = vmatpush.bf16.msrb.mxu3 %v4081_v19  ;;  %v2385_v21 = vmul.f32 %v2293_v40, %v4987_v33  ;;  %2307 = vadd.xlane.f32.xlu0 %v2306_v17  ;;  %v4073_v60 = vor.u32 %v4162_v30, %v4070_v52  ;;  %v6525_v10 = vadd.f32 %v6396_v58, %v1721_v27  ;;  %v4060_v30 = vld [vmem:[#allocation11 + $0xb0] sm:$0xf]  ;;  %v4161_v27 = vld [vmem:[#allocation11 + $0xb4] sm:$0xf0]  ;;  %v6549_v54 = vpop.f32.mrf.mxu2  ;;  %v3998_v17 = vld [vmem:[#allocation11 + $0x38] sm:$0xf0]  ;;  %vm2455_vm1 = vweird.f32 %v6515_v26 }
 0x300   : > { %8024 = vst [vmem:[#allocation36_spill] sm:$0xff] %v6519_v20  ;;  %v1236_v2 = vsub.f32 1.5, %v1235_v7  ;;  %v2449_v19 = vmul.f32 %v6515_v26, %v6479_v35  ;;  %v1303_v8 = vmul.f32 %v6484_v24, %v8027_v43  ;;  %v2242_v58 = vmul.f32 %v6519_v20, %v6519_v20  ;;  %v3988_v7 = vld [vmem:[#allocation11 + $0x20] sm:$0xf]  ;;  %v4143_v40 = vld [vmem:[#allocation11 + $0x24] sm:$0xf0]  ;;  %vm6596_vm3 = vmor %vm2454_vm2, %vm2455_vm1 }
 0x301   : > { %8025 = vst [vmem:[#allocation33_spill] sm:$0xff] %v6522_v55  ;;  %v6538_v52 = vadd.f32 1e-05, %v2385_v21  ;;  %v2243_v31 = vmul.f32 %v6522_v55, %v6522_v55  ;;  %3381 = vmatpush.bf16.msrb.mxu2 %v4009_v36  ;;  %v6545_v24 = vadd.f32 %v6405_v1, %v1724_v13  ;;  %v4144_v21 = vld [vmem:[#allocation11 + $0x34] sm:$0xf]  ;;  %v6552_v0 = vadd.f32 %v6407_v22, %v1902_v62  ;;  %v8031_v55 = vld [vmem:[#allocation28_spill] sm:$0xff] }
 0x302   : > { %8026 = vst [vmem:[#allocation30_spill] sm:$0xff] %v6525_v10  ;;  %3203 = vmatpush.bf16.msrb.mxu0 %v4005_v12  ;;  %v1237_v14 = vmul.f32 %v6486_v51, %v1236_v2  ;;  %v2450_v15 = vmul.f32 %v6515_v26, %v2449_v19  ;;  %3292 = vmatpush.bf16.msrb.mxu1 %v4069_v28  ;;  %v1730_v28 = vpop.f32.mrf.mxu0  ;;  %v4052_v22 = vld [vmem:[#allocation11 + $0xa0] sm:$0xf]  ;;  %v4159_v62 = vld [vmem:[#allocation11 + $0xa4] sm:$0xf0]  ;;  %v8030_v19 = vld [vmem:[#allocation21_spill] sm:$0xff] }
 0x303   : > { %3470 = vmatpush.bf16.msrb.mxu3 %v4073_v60  ;;  %4344 = vrsqrt.f32 %v6538_v52  ;;  %v2077_v1 = vadd.f32 %v6504_v45, %v6525_v10  ;;  %v1371_v13 = vmul.f32 %v5207_v47, %v1302_v56  ;;  %v2315_v60 = vadd.f32 %v2243_v31, %v2242_v58  ;;  %v4142_v10 = vld [vmem:[#allocation11 + $0x24] sm:$0xf]  ;;  %v4054_v58 = vld [vmem:[#allocation11 + $0xa8] sm:$0xf0] }
 0x304   : > { %v1241_v12 = vsel %vm6534_vm0, %v6486_v51, %v1237_v14  ;;  %v2451_v36 = vmul.f32 0.5, %v2450_v15  ;;  %v3997_v2 = vor.u32 %v4145_v41, %v3996_v9  ;;  %v1372_v45 = vmul.f32 %v5224_v46, %v1303_v8  ;;  %v4158_v15 = vld [vmem:[#allocation11 + $0xa4] sm:$0xf]  ;;  %v2064_v9 = vpop.xlane.xlu0 %2063  ;;  %v6566_v8 = vpop.f32.mrf.mxu3 }
 0x305   : > { %v1304_v43 = vmul.f32 %v1241_v12, %v8030_v19  ;;  %v1305_v20 = vmul.f32 %v1241_v12, %v8031_v55  ;;  %v4061_v56 = vor.u32 %v4161_v27, %v4060_v30  ;;  %2316 = vadd.xlane.f32.xlu2 %v2315_v60  ;;  %v4001_v49 = vor.u32 %v4144_v21, %v3998_v17  ;;  %v3980_v12 = vld [vmem:[#allocation11 + $0x10] sm:$0xf]  ;;  %v4140_v19 = vld [vmem:[#allocation11 + $0x14] sm:$0xf] }
 0x306   : > { %v2452_v38 = vsub.f32 1.5, %v2451_v36  ;;  %3204 = vmatpush.bf16.msrb.mxu0 %v3997_v2  ;;  %v4065_v51 = vor.u32 %v4160_v53, %v4062_v6  ;;  %v3989_v14 = vor.u32 %v4143_v40, %v3988_v7  ;;  %v4053_v55 = vor.u32 %v4159_v62, %v4052_v22  ;;  %v4141_v36 = vld [vmem:[#allocation11 + $0x14] sm:$0xf0]  ;;  %v4044_v60 = vld [vmem:[#allocation11 + $0x90] sm:$0xf] }
 0x307   : > { %2078 = vadd.xlane.f32.xlu0 %v2077_v1  ;;  %v1373_v41 = vmul.f32 %v5207_v47, %v1304_v43  ;;  %v1374_v31 = vmul.f32 %v5224_v46, %v1305_v20  ;;  %3293 = vmatpush.bf16.msrb.mxu1 %v4061_v56  ;;  %v2138_v30 = vmul.f32 %v2064_v9, %v4987_v33  ;;  %v6576_v1 = vpop.f32.mrf.mxu1  ;;  %v4157_v62 = vld [vmem:[#allocation11 + $0x94] sm:$0xf0]  ;;  %v3982_v43 = vld [vmem:[#allocation11 + $0x18] sm:$0xf0]  ;;  %v6601_v35 = vpop.f32.mrf.mxu2  ;;  %vm2464_vm5 = vweird.f32 %v6538_v52 }
 0x308   : > { %3382 = vmatpush.bf16.msrb.mxu2 %v4001_v49  ;;  %3471 = vmatpush.bf16.msrb.mxu3 %v4065_v51  ;;  %v2080_v27 = vadd.f32 %v6552_v0, %v6545_v24  ;;  %v3993_v21 = vor.u32 %v4142_v10, %v3990_v25  ;;  %v2296_v53 = vpop.xlane.xlu1 %2295  ;;  %v4057_v20 = vor.u32 %v4158_v15, %v4054_v58  ;;  %v4046_v56 = vld [vmem:[#allocation11 + $0x98] sm:$0xf0]  ;;  %v3972_v15 = vld [vmem:[#allocation11] sm:$0xf]  ;;  %v4139_v58 = vld [vmem:[#allocation11 + $0x4] sm:$0xf0] }
 0x309   : > { %v6571_v17 = vpop.eup %4344  ;;  %v1442_v47 = vadd.f32 %v5222_v3, %v1373_v41  ;;  %v1443_v46 = vadd.f32 %v5231_v63, %v1374_v31  ;;  %v2453_v6 = vmul.f32 %v6515_v26, %v2452_v38  ;;  %v2386_v40 = vmul.f32 %v2296_v53, %v4987_v33  ;;  %v6613_v9 = vld [vmem:[%s7799_s5] sm:$0x3] }
 0x30a   : > { %v2459_v7 = vmul.f32 %v6571_v17, %v6538_v52  ;;  %v1440_v25 = vadd.f32 %v5222_v3, %v1371_v13  ;;  %v2299_v10 = vpop.xlane.xlu2 %2298  ;;  %3205 = vmatpush.bf16.msrb.mxu0 %v3989_v14  ;;  %v6585_v2 = vsub.f32 %v6287_v11, %v2138_v30  ;;  %v6588_v22 = vsub.f32 %v6273_v16, %v2138_v30  ;;  %v4036_v30 = vld [vmem:[#allocation11 + $0x80] sm:$0xf] }
 0x30b   : > { %v1441_v38 = vadd.f32 %v5231_v63, %v1372_v45  ;;  %3294 = vmatpush.bf16.msrb.mxu1 %v4053_v55  ;;  %v6592_v3 = vadd.f32 %v1730_v28, %v5682_v44  ;;  %v6603_v16 = vadd.f32 1e-05, %v2386_v40  ;;  %v4156_v45 = vld [vmem:[#allocation11 + $0x94] sm:$0xf]  ;;  %v1909_v28 = vadd.f32 %v6549_v54, %v5679_v57  ;;  %v6620_v54 = vpop.f32.mrf.mxu0 }
 0x30c   : > { %v2460_v11 = vmul.f32 %v6571_v17, %v2459_v7  ;;  %v1474_v63 = vpack.c.bf16 %v1442_v47, %v1440_v25  ;;  %3383 = vmatpush.bf16.msrb.mxu2 %v3993_v21  ;;  %3472 = vmatpush.bf16.msrb.mxu3 %v4057_v20  ;;  %v2387_v51 = vmul.f32 %v2299_v10, %v4987_v33  ;;  %v4155_v21 = vld [vmem:[#allocation11 + $0x84] sm:$0xf0]  ;;  %vm2465_vm4 = vweird.f32 %v6571_v17  ;;  %v3974_v20 = vld [vmem:[#allocation11 + $0x8] sm:$0xf0]  ;;  %v4154_v10 = vld [vmem:[#allocation11 + $0x84] sm:$0xf] }
 0x30d   : > { %v1475_v49 = vpack.c.bf16 %v1443_v46, %v1441_v38  ;;  %v2244_v14 = vmul.f32 %v6585_v2, %v6585_v2  ;;  %v6618_v41 = vsel %vm6596_vm3, %v6515_v26, %v2453_v6  ;;  %4346 = vrsqrt.f32 %v6603_v16  ;;  %v4138_v46 = vld [vmem:[#allocation11 + $0x4] sm:$0xf]  ;;  %v4038_v38 = vld [vmem:[#allocation11 + $0x88] sm:$0xf0]  ;;  %vm2466_vm6 = vmor %vm2464_vm5, %vm2465_vm4 }
 0x30e   : > { %v2461_v31 = vmul.f32 0.5, %v2460_v11  ;;  %1757 = vmatmul.bf16.gmra.mxu0 %v1474_v63  ;;  %1935 = vmatmul.bf16.gmra.mxu2 %v1474_v63  ;;  %v2245_v55 = vmul.f32 %v6588_v22, %v6588_v22  ;;  %v6626_v53 = vadd.f32 1e-05, %v2387_v51  ;;  %v3981_v26 = vor.u32 %v4141_v36, %v3980_v12 }
 0x30f   : > { %1846 = vmatmul.bf16.gmra.mxu1 %v1475_v49  ;;  %2024 = vmatmul.bf16.gmra.mxu3 %v1475_v49  ;;  %v4045_v47 = vor.u32 %v4157_v62, %v4044_v60  ;;  %v3985_v40 = vor.u32 %v4140_v19, %v3982_v43  ;;  %v4049_v25 = vor.u32 %v4156_v45, %v4046_v56  ;;  %v2000_v60 = vpop.f32.mrf.mxu3  ;;  %v1822_v49 = vpop.f32.mrf.mxu1  ;;  %vm2474_vm8 = vweird.f32 %v6603_v16 }
 0x310   : > { %v2462_v6 = vsub.f32 1.5, %v2461_v31  ;;  %2081 = vadd.xlane.f32.xlu0 %v2080_v27  ;;  %v2318_v7 = vadd.f32 %v2245_v55, %v2244_v14  ;;  %v2768_v13 = vmul.f32 %v6618_v41, %v6141_v32  ;;  %4348 = vrsqrt.f32 %v6626_v53  ;;  %3206 = vmatpush.bf16.msrb.mxu0 %v3981_v26 }
 0x311   : > { %v2067_v11 = vpop.xlane.xlu1 %2066  ;;  %3295 = vmatpush.bf16.msrb.mxu1 %v4045_v47  ;;  %v3973_v12 = vor.u32 %v4139_v58, %v3972_v15  ;;  %3384 = vmatpush.bf16.msrb.mxu2 %v3985_v40  ;;  %v4037_v19 = vor.u32 %v4155_v21, %v4036_v30  ;;  %v6637_v32 = vperm.slane %v6613_v9, 0  ;;  %v3977_v52 = vor.u32 %v4138_v46, %v3974_v20  ;;  %v2031_v15 = vld [vmem:[#allocation10] sm:$0x3] }
 0x312   : > { %v2463_v36 = vmul.f32 %v6571_v17, %v2462_v6  ;;  %v2139_v27 = vmul.f32 %v2067_v11, %v4987_v33  ;;  %2319 = vadd.xlane.f32.xlu2 %v2318_v7  ;;  %v6634_v62 = vpop.xlane.xlu2 %2301  ;;  %3473 = vmatpush.bf16.msrb.mxu3 %v4049_v25  ;;  %v4041_v43 = vor.u32 %v4154_v10, %v4038_v38  ;;  %vm2484_vm11 = vweird.f32 %v6626_v53 }
 0x313   : > { %v6641_v63 = vpop.eup %4346  ;;  %v6644_v45 = vadd.f32 %v6566_v8, %v1909_v28  ;;  %v2837_v8 = vmul.f32 %v6637_v32, %v2768_v13  ;;  %v6661_v28 = vpop.f32.mrf.mxu2  ;;  %v1912_v55 = vadd.f32 %v6601_v35, %v5679_v57  ;;  %v1734_v26 = vadd.f32 %v6620_v54, %v5682_v44 }
 0x314   : > { %v2467_v56 = vsel %vm2466_vm6, %v6571_v17, %v2463_v36  ;;  %v6648_v51 = vsub.f32 %v6333_v37, %v2139_v27  ;;  %v6651_v14 = vsub.f32 %v6324_v4, %v2139_v27  ;;  %v2469_v31 = vmul.f32 %v6641_v63, %v6603_v16  ;;  %3207 = vmatpush.bf16.msrb.mxu0 %v3973_v12  ;;  %v1735_v47 = vpop.f32.mrf.mxu0 }
 0x315   : > { %v2770_v58 = vmul.f32 %v2467_v56, %v6205_v61  ;;  %3296 = vmatpush.bf16.msrb.mxu1 %v4037_v19  ;;  %v6659_v17 = vadd.f32 %v6576_v1, %v6592_v3  ;;  %3385 = vmatpush.bf16.msrb.mxu2 %v3977_v52  ;;  %v6671_v1 = vperm.slane %v2031_v15, 0  ;;  %v2769_v3 = vmul.f32 %v6618_v41, %v6145_v50 }
 0x316   : > { %v2246_v4 = vmul.f32 %v6648_v51, %v6648_v51  ;;  %v2247_v37 = vmul.f32 %v6651_v14, %v6651_v14  ;;  %v4349_v61 = vpop.eup %4348  ;;  %v2470_v30 = vmul.f32 %v6641_v63, %v2469_v31  ;;  %3474 = vmatpush.bf16.msrb.mxu3 %v4041_v43  ;;  %v2771_v35 = vmul.f32 %v2467_v56, %v6208_v23 }
 0x317   : > { %v2839_v21 = vmul.f32 %v6637_v32, %v2770_v58  ;;  %v2479_v46 = vmul.f32 %v4349_v61, %v6626_v53  ;;  %v2089_v20 = vadd.f32 %v6644_v45, %v6659_v17  ;;  %v2906_v25 = vadd.f32 %v6671_v1, %v2837_v8  ;;  %v2002_v12 = vpop.f32.mrf.mxu3  ;;  %v1824_v58 = vpop.f32.mrf.mxu1 }
 0x318   : > { %v2471_v6 = vmul.f32 0.5, %v2470_v30  ;;  %v2321_v40 = vadd.f32 %v2247_v37, %v2246_v4  ;;  %v6685_v41 = vperm.slane %v6613_v9, 1  ;;  %v6687_v13 = vadd.f32 %v2000_v60, %v1912_v55 }
 0x319   : > { %v2070_v7 = vpop.xlane.xlu1 %2069  ;;  %v2480_v10 = vmul.f32 %v4349_v61, %v2479_v46  ;;  %v2908_v50 = vadd.f32 %v6671_v1, %v2839_v21  ;;  %vm2475_vm7 = vweird.f32 %v6641_v63  ;;  %v6694_v52 = vperm.slane %v2031_v15, 1 }
 0x31a   : > { %v2140_v38 = vmul.f32 %v2070_v7, %v4987_v33  ;;  %2090 = vadd.xlane.f32.xlu2 %v2089_v20  ;;  %v2073_v54 = vpop.xlane.xlu2 %2072  ;;  %v2472_v11 = vsub.f32 1.5, %v2471_v6  ;;  %2322 = vadd.xlane.f32.xlu0 %v2321_v40  ;;  %v2838_v60 = vmul.f32 %v6685_v41, %v2769_v3  ;;  %v2840_v56 = vmul.f32 %v6685_v41, %v2771_v35  ;;  %vm2476_vm10 = vmor %vm2474_vm8, %vm2475_vm7 }
 0x31b   : > { %v2141_v23 = vmul.f32 %v2073_v54, %v4987_v33  ;;  %v2481_v36 = vmul.f32 0.5, %v2480_v10  ;;  %v2970_v19 = vpack.c.bf16 %v2908_v50, %v2906_v25  ;;  %vm2485_vm9 = vweird.f32 %v4349_v61  ;;  %v1916_v4 = vpop.f32.mrf.mxu2 }
 0x31c   : > { %v6692_v27 = vsub.f32 %v6354_v29, %v2140_v38  ;;  %v2473_v9 = vmul.f32 %v6641_v63, %v2472_v11  ;;  %v6698_v43 = vsub.f32 %v6349_v42, %v2140_v38  ;;  %v6703_v29 = vadd.f32 %v1822_v49, %v1734_v26  ;;  %vm2486_vm12 = vmor %vm2484_vm11, %vm2485_vm9  ;;  %v1738_v21 = vpop.f32.mrf.mxu0 }
 0x31d   : > { %v2482_v31 = vsub.f32 1.5, %v2481_v36  ;;  %v6709_v42 = vsub.f32 %v6363_v39, %v2141_v23  ;;  %v2907_v37 = vadd.f32 %v6694_v52, %v2838_v60  ;;  %v2909_v49 = vadd.f32 %v6694_v52, %v2840_v56 }
 0x31e   : > { %8034 = vst [vmem:[#allocation34_spill] sm:$0xff] %v6692_v27  ;;  %3208 = vmatmul.bf16.vlgmr.msrb.gmra.mxu0 %v2970_v19  ;;  %3386 = vmatmul.bf16.vlgmr.msrb.gmra.mxu2 %v2970_v19  ;;  %v2248_v15 = vmul.f32 %v6692_v27, %v6692_v27  ;;  %v2477_v16 = vsel %vm2476_vm10, %v6641_v63, %v2473_v9 }
 0x31f   : > { %8035 = vst [vmem:[#allocation32_spill] sm:$0xff] %v6698_v43  ;;  %v2483_v8 = vmul.f32 %v4349_v61, %v2482_v31  ;;  %v6717_v55 = vsub.f32 %v6352_v59, %v2141_v23  ;;  %v2249_v53 = vmul.f32 %v6698_v43, %v6698_v43  ;;  %v2092_v39 = vadd.f32 %v6687_v13, %v6703_v29  ;;  %v1827_v11 = vpop.f32.mrf.mxu1  ;;  %v8055_v43 = vld [vmem:[#allocation30_spill] sm:$0xff] }
 0x320   : > { %v2971_v3 = vpack.c.bf16 %v2909_v49, %v2907_v37  ;;  %v2772_v26 = vmul.f32 %v2477_v16, %v6264_v48  ;;  %v1914_v46 = vadd.f32 %v6661_v28, %v5679_v57  ;;  %v1736_v7 = vadd.f32 %v1735_v47, %v5682_v44  ;;  %v8037_v28 = vld [vmem:[#allocation37_spill] sm:$0xff] }
 0x321   : > { %8036 = vst [vmem:[#allocation35_spill] sm:$0xff] %v6717_v55  ;;  %v2487_v30 = vsel %vm2486_vm12, %v4349_v61, %v2483_v8  ;;  %v2324_v35 = vadd.f32 %v2249_v53, %v2248_v15  ;;  %v2250_v61 = vmul.f32 %v6709_v42, %v6709_v42  ;;  %v2251_v48 = vmul.f32 %v6717_v55, %v6717_v55 }
 0x322   : > { %v2076_v63 = vpop.xlane.xlu2 %2075  ;;  %v2774_v20 = vmul.f32 %v2487_v30, %v6280_v5  ;;  %2093 = vadd.xlane.f32.xlu2 %v2092_v39  ;;  %v2775_v59 = vmul.f32 %v2487_v30, %v6283_v18  ;;  %3297 = vmatmul.bf16.vlgmr.msrb.gmra.mxu1 %v2971_v3  ;;  %v2773_v40 = vmul.f32 %v2477_v16, %v8037_v28  ;;  %v2005_v5 = vpop.f32.mrf.mxu3  ;;  %v8039_v18 = vld [vmem:[#allocation19_spill] sm:$0xff] }
 0x323   : > { %3475 = vmatmul.bf16.vlgmr.msrb.gmra.mxu3 %v2971_v3  ;;  %v2142_v6 = vmul.f32 %v2076_v63, %v4987_v33  ;;  %2325 = vadd.xlane.f32.xlu0 %v2324_v35  ;;  %v6741_v38 = vadd.f32 %v2002_v12, %v1914_v46  ;;  %v2327_v50 = vadd.f32 %v2251_v48, %v2250_v61  ;;  %v1918_v9 = vpop.f32.mrf.mxu2 }
 0x324   : > { %v2841_v54 = vmul.f32 %v6637_v32, %v2772_v26  ;;  %v2843_v47 = vmul.f32 %v6637_v32, %v2774_v20  ;;  %v2844_v23 = vmul.f32 %v6685_v41, %v2775_v59  ;;  %v6746_v36 = vadd.f32 %v1824_v58, %v1736_v7  ;;  %v1740_v15 = vpop.f32.mrf.mxu0 }
 0x325   : > { %v6736_v25 = vsub.f32 %v6384_v34, %v2142_v6  ;;  %v6739_v10 = vsub.f32 %v8039_v18, %v2142_v6  ;;  %2328 = vadd.xlane.f32.xlu1 %v2327_v50  ;;  %v2842_v56 = vmul.f32 %v6685_v41, %v2773_v40  ;;  %v1917_v31 = vadd.f32 %v1916_v4, %v5679_v57 }
 0x326   : > { %v2910_v12 = vadd.f32 %v6671_v1, %v2841_v54  ;;  %v2912_v60 = vadd.f32 %v6671_v1, %v2843_v47  ;;  %v2095_v58 = vadd.f32 %v6741_v38, %v6746_v36  ;;  %v2913_v8 = vadd.f32 %v6694_v52, %v2844_v23  ;;  %v2311_v54 = vpop.xlane.xlu1 %2310 }
 0x327   : > { %8038 = vst [vmem:[#allocation21_spill] sm:$0xff] %v6736_v25  ;;  %v2252_v34 = vmul.f32 %v6736_v25, %v6736_v25  ;;  %v2253_v19 = vmul.f32 %v6739_v10, %v6739_v10  ;;  %v1739_v37 = vadd.f32 %v1738_v21, %v5682_v44  ;;  %v2911_v53 = vadd.f32 %v6694_v52, %v2842_v56  ;;  %v1829_v46 = vpop.f32.mrf.mxu1 }
 0x328   : > { %8040 = vst [vmem:[#allocation28_spill] sm:$0xff] %v6739_v10  ;;  %v2972_v16 = vpack.c.bf16 %v2912_v60, %v2910_v12  ;;  %v6761_v39 = vadd.f32 %v2005_v5, %v1917_v31  ;;  %v1919_v30 = vadd.f32 %v1918_v9, %v5679_v57  ;;  %v1741_v26 = vadd.f32 %v1740_v15, %v5682_v44 }
 0x329   : > { %v2330_v49 = vadd.f32 %v2253_v19, %v2252_v34  ;;  %v2973_v3 = vpack.c.bf16 %v2913_v8, %v2911_v53  ;;  %v6764_v63 = vadd.f32 %v1827_v11, %v1739_v37  ;;  %v2388_v11 = vmul.f32 %v6634_v62, %v4987_v33  ;;  %v8043_v37 = vld [vmem:[#allocation38_spill] sm:$0xff] }
 0x32a   : > { %v2007_v4 = vpop.f32.mrf.mxu3  ;;  %v6771_v59 = vadd.f32 %v1829_v46, %v1741_v26 }
 0x32b   : > { %2096 = vadd.xlane.f32.xlu0 %v2095_v58  ;;  %v6767_v20 = vadd.f32 %v2007_v4, %v1919_v30  ;;  %v2098_v21 = vadd.f32 %v6761_v39, %v6764_v63  ;;  %v1921_v35 = vpop.f32.mrf.mxu2  ;;  %v2420_v47 = vadd.f32 1e-05, %v2388_v11  ;;  %v2391_v58 = vmul.f32 %v2311_v54, %v4987_v33  ;;  %v8045_v54 = vld [vmem:[#allocation42_spill] sm:$0xff] }
 0x32c   : > { %v1743_v6 = vpop.f32.mrf.mxu0  ;;  %v1922_v61 = vadd.f32 %v1921_v35, %v5679_v57 }
 0x32d   : > { %2331 = vadd.xlane.f32.xlu1 %v2330_v49  ;;  %v2101_v7 = vadd.f32 %v6767_v20, %v6771_v59  ;;  %v1744_v48 = vadd.f32 %v1743_v6, %v5682_v44  ;;  %4350 = vrsqrt.f32 %v2420_v47  ;;  %vm2494_vm14 = vweird.f32 %v2420_v47 }
 0x32e   : > { %3213 = vmatmul.bf16.gmra.mxu0 %v2972_v16  ;;  %3391 = vmatmul.bf16.gmra.mxu2 %v2972_v16  ;;  %v8041_v16 = vld [vmem:[#allocation39_spill] sm:$0xff] }
 0x32f   : > { %v1832_v5 = vpop.f32.mrf.mxu1 }
 0x330   : > { %v6779_v18 = vadd.f32 %v1832_v5, %v1744_v48 }
 0x332   : > { %3302 = vmatmul.bf16.gmra.mxu1 %v2973_v3  ;;  %v2010_v28 = vpop.f32.mrf.mxu3 }
 0x333   : > { %3480 = vmatmul.bf16.gmra.mxu3 %v2973_v3  ;;  %2099 = vadd.xlane.f32.xlu0 %v2098_v21  ;;  %v6777_v40 = vadd.f32 %v2010_v28, %v1922_v61  ;;  %v6785_v23 = vpop.f32.mrf.mxu2  ;;  %v4351_v60 = vpop.eup %4350  ;;  %v6809_v3 = vadd.f32 1e-05, %v2391_v58 }
 0x334   : > { %v6787_v19 = vpop.f32.mrf.mxu0  ;;  %v2489_v62 = vmul.f32 %v4351_v60, %v2420_v47  ;;  %vm2495_vm13 = vweird.f32 %v4351_v60  ;;  %v8051_v47 = vld [vmem:[#allocation24_spill] sm:$0xff] }
 0x335   : > { %2102 = vadd.xlane.f32.xlu1 %v2101_v7  ;;  %v2104_v50 = vadd.f32 %v6777_v40, %v6779_v18  ;;  %4352 = vrsqrt.f32 %v6809_v3  ;;  %vm2496_vm15 = vmor %vm2494_vm14, %vm2495_vm13  ;;  %vm2524_vm5 = vweird.f32 %v6809_v3 }
 0x336   : > { %v2490_v46 = vmul.f32 %v4351_v60, %v2489_v62 }
 0x337   : > { %v6789_v9 = vpop.f32.mrf.mxu1 }
 0x33a   : > { %v6791_v12 = vpop.f32.mrf.mxu3 }
 0x33b   : > { %v6795_v15 = vpop.f32.mrf.mxu2 }
 0x33c   : > { %v6803_v53 = vpop.f32.mrf.mxu0 }
 0x33d   : > { %2105 = vadd.xlane.f32.xlu1 %v2104_v50  ;;  %v2491_v50 = vmul.f32 0.5, %v2490_v46  ;;  %v6832_v46 = vpop.eup %4352 }
 0x33e   : > { %vm2525_vm3 = vweird.f32 %v6832_v46 }
 0x33f   : > { %v6811_v21 = vpop.f32.mrf.mxu1  ;;  %vm2526_vm7 = vmor %vm2524_vm5, %vm2525_vm3 }
 0x342   : > { %v6814_v61 = vpop.f32.mrf.mxu3 }
 0x343   : > { %v1928_v58 = vpop.f32.mrf.mxu2 }
 0x35a   : > { %v2314_v34 = vpop.xlane.xlu1 %2313 }
 0x35b   : > { %v2392_v5 = vmul.f32 %v2314_v34, %v4987_v33  ;;  %v1929_v34 = vadd.f32 %v1928_v58, %v5679_v57 }
 0x362   : > { %v2085_v56 = vpop.xlane.xlu1 %2084 }
 0x363   : > { %v2145_v31 = vmul.f32 %v2085_v56, %v4987_v33  ;;  %v8047_v56 = vld [vmem:[#allocation23_spill] sm:$0xff] }
 0x365   : > { %v6798_v8 = vsub.f32 %v8041_v16, %v2145_v31  ;;  %v6801_v49 = vsub.f32 %v8043_v37, %v2145_v31  ;;  %v2305_v26 = vpop.xlane.xlu0 %2304  ;;  %v1750_v37 = vpop.f32.mrf.mxu0 }
 0x366   : > { %v2389_v35 = vmul.f32 %v2305_v26, %v4987_v33 }
 0x367   : > { %8042 = vst [vmem:[#allocation37_spill] sm:$0xff] %v6798_v8  ;;  %v2258_v30 = vmul.f32 %v6798_v8, %v6798_v8  ;;  %v2259_v4 = vmul.f32 %v6801_v49, %v6801_v49 }
 0x368   : > { %8044 = vst [vmem:[#allocation19_spill] sm:$0xff] %v6801_v49  ;;  %v2421_v48 = vadd.f32 1e-05, %v2389_v35 }
 0x369   : > { %v2339_v6 = vadd.f32 %v2259_v4, %v2258_v30  ;;  %v6829_v30 = vadd.f32 1e-05, %v2392_v5  ;;  %v2492_v4 = vsub.f32 1.5, %v2491_v50  ;;  %v2519_v5 = vmul.f32 %v6832_v46, %v6809_v3 }
 0x36a   : > { %v2088_v7 = vpop.xlane.xlu1 %2087  ;;  %4354 = vrsqrt.f32 %v2421_v48  ;;  %vm2504_vm1 = vweird.f32 %v2421_v48 }
 0x36b   : > { %v2146_v28 = vmul.f32 %v2088_v7, %v4987_v33  ;;  %2340 = vadd.xlane.f32.xlu0 %v2339_v6  ;;  %v1751_v6 = vadd.f32 %v1750_v37, %v5682_v44  ;;  %v1839_v7 = vpop.f32.mrf.mxu1  ;;  %4356 = vrsqrt.f32 %v6829_v30  ;;  %vm2534_vm10 = vweird.f32 %v6829_v30 }
 0x36d   : > { %v6820_v11 = vsub.f32 %v8045_v54, %v2146_v28  ;;  %v6823_v31 = vsub.f32 %v8047_v56, %v2146_v28  ;;  %v2017_v28 = vpop.f32.mrf.mxu3  ;;  %v2493_v56 = vmul.f32 %v4351_v60, %v2492_v4  ;;  %v2520_v4 = vmul.f32 %v6832_v46, %v2519_v5 }
 0x36e   : > { %v6838_v50 = vadd.f32 %v2017_v28, %v1929_v34 }
 0x36f   : > { %8046 = vst [vmem:[#allocation39_spill] sm:$0xff] %v6820_v11  ;;  %v2260_v62 = vmul.f32 %v6820_v11, %v6820_v11  ;;  %v2261_v16 = vmul.f32 %v6823_v31, %v6823_v31  ;;  %v2497_v11 = vsel %vm2496_vm15, %v4351_v60, %v2493_v56  ;;  %v2521_v5 = vmul.f32 0.5, %v2520_v4 }
 0x370   : > { %8048 = vst [vmem:[#allocation38_spill] sm:$0xff] %v6823_v31  ;;  %v4355_v35 = vpop.eup %4354  ;;  %v6841_v31 = vadd.f32 %v1839_v7, %v1751_v6  ;;  %v2776_v6 = vmul.f32 %v2497_v11, %v8051_v47  ;;  %v8052_v7 = vld [vmem:[#allocation25_spill] sm:$0xff] }
 0x371   : > { %v2342_v26 = vadd.f32 %v2261_v16, %v2260_v62  ;;  %v2499_v54 = vmul.f32 %v4355_v35, %v2421_v48  ;;  %8049 = vst [vmem:[#allocation42_spill] sm:$0xff] %v6838_v50  ;;  %v6848_v8 = vpop.eup %4356  ;;  %vm2505_vm0 = vweird.f32 %v4355_v35 }
 0x372   : > { %v2308_v58 = vpop.xlane.xlu0 %2307  ;;  %8050 = vst [vmem:[#allocation23_spill] sm:$0xff] %v6841_v31  ;;  %v2113_v49 = vadd.f32 %v6838_v50, %v6841_v31  ;;  %vm2506_vm2 = vmor %vm2504_vm1, %vm2505_vm0  ;;  %v8053_v50 = vld [vmem:[#allocation40_spill] sm:$0xff]  ;;  %vm2535_vm9 = vweird.f32 %v6848_v8 }
 0x373   : > { %2343 = vadd.xlane.f32.xlu0 %v2342_v26  ;;  %v2500_v62 = vmul.f32 %v4355_v35, %v2499_v54  ;;  %v2390_v16 = vmul.f32 %v2308_v58, %v4987_v33  ;;  %v2777_v54 = vmul.f32 %v2497_v11, %v8052_v7  ;;  %vm2536_vm11 = vmor %vm2534_vm10, %vm2535_vm9 }
 0x375   : > { %v2501_v37 = vmul.f32 0.5, %v2500_v62  ;;  %v6843_v26 = vadd.f32 1e-05, %v2390_v16  ;;  %v1753_v28 = vpop.f32.mrf.mxu0  ;;  %v2529_v62 = vmul.f32 %v6848_v8, %v6829_v30 }
 0x376   : > { %v1842_v60 = vpop.f32.mrf.mxu1  ;;  %v1754_v25 = vadd.f32 %v1753_v28, %v5682_v44  ;;  %v2846_v28 = vmul.f32 %v6685_v41, %v2777_v54 }
 0x377   : > { %v2502_v34 = vsub.f32 1.5, %v2501_v37  ;;  %4358 = vrsqrt.f32 %v6843_v26  ;;  %vm2514_vm6 = vweird.f32 %v6843_v26 }
 0x378   : > { %v2317_v56 = vpop.xlane.xlu2 %2316 }
 0x379   : > { %v2503_v58 = vmul.f32 %v4355_v35, %v2502_v34  ;;  %v2393_v16 = vmul.f32 %v2317_v56, %v4987_v33  ;;  %v8054_v34 = vld [vmem:[#allocation31_spill] sm:$0xff] }
 0x37a   : > { %v2079_v37 = vpop.xlane.xlu0 %2078  ;;  %v8057_v56 = vld [vmem:[#allocation43_spill] sm:$0xff] }
 0x37b   : > { %2114 = vadd.xlane.f32.xlu0 %v2113_v49  ;;  %v2507_v10 = vsel %vm2506_vm2, %v4355_v35, %v2503_v58  ;;  %v2143_v49 = vmul.f32 %v2079_v37, %v4987_v33  ;;  %v1931_v47 = vpop.f32.mrf.mxu2  ;;  %v6860_v7 = vadd.f32 1e-05, %v2393_v16  ;;  %v2845_v35 = vmul.f32 %v6637_v32, %v2776_v6 }
 0x37c   : > { %v2778_v11 = vmul.f32 %v2507_v10, %v8053_v50  ;;  %v2779_v48 = vmul.f32 %v2507_v10, %v8054_v34  ;;  %v1932_v4 = vadd.f32 %v1931_v47, %v5679_v57  ;;  %v2522_v58 = vsub.f32 1.5, %v2521_v5  ;;  %v2020_v16 = vpop.f32.mrf.mxu3 }
 0x37d   : > { %v4359_v31 = vpop.eup %4358  ;;  %v6864_v27 = vsub.f32 %v8055_v43, %v2143_v49  ;;  %v6867_v55 = vsub.f32 %v8057_v56, %v2143_v49  ;;  %v2530_v50 = vmul.f32 %v6848_v8, %v2529_v62  ;;  %4360 = vrsqrt.f32 %v6860_v7  ;;  %v6884_v62 = vpop.f32.mrf.mxu0 }
 0x37e   : > { %v2509_v10 = vmul.f32 %v4359_v31, %v6843_v26  ;;  %v6874_v37 = vadd.f32 %v1842_v60, %v1754_v25  ;;  %v6876_v47 = vadd.f32 %v2020_v16, %v1932_v4  ;;  %v2847_v54 = vmul.f32 %v6637_v32, %v2778_v11 }
 0x37f   : > { %8056 = vst [vmem:[#allocation24_spill] sm:$0xff] %v6864_v27  ;;  %v2254_v43 = vmul.f32 %v6864_v27, %v6864_v27  ;;  %v2255_v6 = vmul.f32 %v6867_v55, %v6867_v55  ;;  %v2848_v5 = vmul.f32 %v6685_v41, %v2779_v48  ;;  %v2914_v4 = vadd.f32 %v6671_v1, %v2845_v35 }
 0x380   : > { %8058 = vst [vmem:[#allocation25_spill] sm:$0xff] %v6867_v55  ;;  %v2510_v49 = vmul.f32 %v4359_v31, %v2509_v10  ;;  %v2116_v25 = vadd.f32 %v6876_v47, %v6874_v37  ;;  %v2916_v56 = vadd.f32 %v6671_v1, %v2847_v54  ;;  %v2523_v55 = vmul.f32 %v6832_v46, %v2522_v58  ;;  %v6893_v10 = vpop.f32.mrf.mxu1 }
 0x381   : > { %8059 = vst [vmem:[#allocation40_spill] sm:$0xff] %v6874_v37  ;;  %v2333_v34 = vadd.f32 %v2255_v6, %v2254_v43  ;;  %v2917_v16 = vadd.f32 %v6694_v52, %v2848_v5  ;;  %v2531_v11 = vmul.f32 0.5, %v2530_v50  ;;  %v2915_v43 = vadd.f32 %v6694_v52, %v2846_v28 }
 0x382   : > { %8060 = vst [vmem:[#allocation31_spill] sm:$0xff] %v6876_v47  ;;  %v2511_v60 = vmul.f32 0.5, %v2510_v49  ;;  %vm2515_vm4 = vweird.f32 %v4359_v31  ;;  %v2974_v54 = vpack.c.bf16 %v2916_v56, %v2914_v4  ;;  %v2527_v3 = vsel %vm2526_vm7, %v6832_v46, %v2523_v55  ;;  %v8063_v46 = vld [vmem:[#allocation26_spill] sm:$0xff]  ;;  %v8071_v47 = vld [vmem:[#allocation36_spill] sm:$0xff] }
 0x383   : > { %v2082_v48 = vpop.xlane.xlu0 %2081  ;;  %2334 = vadd.xlane.f32.xlu2 %v2333_v34  ;;  %2117 = vadd.xlane.f32.xlu0 %v2116_v25  ;;  %v6896_v6 = vpop.eup %4360  ;;  %v2975_v5 = vpack.c.bf16 %v2917_v16, %v2915_v43  ;;  %v1746_v26 = vadd.f32 %v6787_v19, %v5682_v44  ;;  %v2532_v4 = vsub.f32 1.5, %v2531_v11  ;;  %vm2516_vm8 = vmor %vm2514_vm6, %vm2515_vm4  ;;  %v1924_v19 = vadd.f32 %v6785_v23, %v5679_v57  ;;  %v8064_v43 = vld [vmem:[#allocation27_spill] sm:$0xff] }
 0x384   : > { %v2512_v49 = vsub.f32 1.5, %v2511_v60  ;;  %v2144_v35 = vmul.f32 %v2082_v48, %v4987_v33  ;;  %v2539_v58 = vmul.f32 %v6896_v6, %v6860_v7  ;;  %3218 = vmatmul.bf16.gmra.mxu0 %v2974_v54  ;;  %v6917_v16 = vpop.f32.mrf.mxu2  ;;  %3396 = vmatmul.bf16.gmra.mxu2 %v2974_v54  ;;  %vm2545_vm12 = vweird.f32 %v6896_v6 }
 0x385   : > { %v2320_v50 = vpop.xlane.xlu2 %2319  ;;  %3307 = vmatmul.bf16.gmra.mxu1 %v2975_v5  ;;  %3485 = vmatmul.bf16.gmra.mxu3 %v2975_v5  ;;  %v8066_v5 = vld [vmem:[#allocation41_spill] sm:$0xff]  ;;  %vm2544_vm13 = vweird.f32 %v6860_v7 }
 0x386   : > { %v2513_v28 = vmul.f32 %v4359_v31, %v2512_v49  ;;  %v2394_v34 = vmul.f32 %v2320_v50, %v4987_v33  ;;  %v6907_v25 = vsub.f32 %v6545_v24, %v2144_v35  ;;  %v6910_v60 = vsub.f32 %v6552_v0, %v2144_v35  ;;  %vm2546_vm14 = vmor %vm2544_vm13, %vm2545_vm12 }
 0x387   : > { %v2540_v56 = vmul.f32 %v6896_v6, %v2539_v58  ;;  %v6929_v58 = vpop.f32.mrf.mxu3 }
 0x388   : > { %8061 = vst [vmem:[#allocation30_spill] sm:$0xff] %v6907_v25  ;;  %v2517_v24 = vsel %vm2516_vm8, %v4359_v31, %v2513_v28  ;;  %v6919_v48 = vadd.f32 1e-05, %v2394_v34  ;;  %v2256_v0 = vmul.f32 %v6907_v25, %v6907_v25  ;;  %v2257_v55 = vmul.f32 %v6910_v60, %v6910_v60  ;;  %v8065_v31 = vld [vmem:[#allocation22_spill] sm:$0xff] }
 0x389   : > { %8062 = vst [vmem:[#allocation43_spill] sm:$0xff] %v6910_v60  ;;  %v2780_v11 = vmul.f32 %v2517_v24, %v8063_v46  ;;  %v2781_v49 = vmul.f32 %v2517_v24, %v8064_v43  ;;  %v2541_v35 = vmul.f32 0.5, %v2540_v56  ;;  %v2782_v54 = vmul.f32 %v2527_v3, %v8065_v31 }
 0x38a   : > { %4362 = vrsqrt.f32 %v6919_v48  ;;  %v2336_v50 = vadd.f32 %v2257_v55, %v2256_v0  ;;  %v2783_v28 = vmul.f32 %v2527_v3, %v8066_v5  ;;  %v2533_v34 = vmul.f32 %v6848_v8, %v2532_v4 }
 0x38b   : > { %v6936_v60 = vpop.f32.mrf.mxu0  ;;  %v2542_v23 = vsub.f32 1.5, %v2541_v35  ;;  %v2849_v24 = vmul.f32 %v6637_v32, %v2780_v11  ;;  %v6940_v56 = vadd.f32 %v6789_v9, %v1746_v26  ;;  %v6943_v46 = vadd.f32 %v6791_v12, %v1924_v19 }
 0x38c   : > { %2337 = vadd.xlane.f32.xlu2 %v2336_v50  ;;  %v6946_v0 = vpop.f32.mrf.mxu1  ;;  %v2850_v4 = vmul.f32 %v6685_v41, %v2781_v49  ;;  %v1749_v55 = vadd.f32 %v6803_v53, %v5682_v44  ;;  %v1927_v43 = vadd.f32 %v6795_v15, %v5679_v57  ;;  %v2851_v12 = vmul.f32 %v6637_v32, %v2782_v54 }
 0x38d   : > { %v2091_v3 = vpop.xlane.xlu2 %2090  ;;  %v2323_v26 = vpop.xlane.xlu0 %2322  ;;  %v2537_v19 = vsel %vm2536_vm11, %v6848_v8, %v2533_v34  ;;  %v2852_v11 = vmul.f32 %v6685_v41, %v2783_v28  ;;  %v2543_v53 = vmul.f32 %v6896_v6, %v2542_v23  ;;  %v2918_v31 = vadd.f32 %v6671_v1, %v2849_v24  ;;  %v8069_v24 = vld [vmem:[#allocation29_spill] sm:$0xff] }
 0x38e   : > { %v2147_v9 = vmul.f32 %v2091_v3, %v4987_v33  ;;  %v2395_v30 = vmul.f32 %v2323_v26, %v4987_v33  ;;  %v2107_v5 = vadd.f32 %v6943_v46, %v6940_v56  ;;  %v2919_v28 = vadd.f32 %v6694_v52, %v2850_v4  ;;  %v8070_v26 = vld [vmem:[#allocation20_spill] sm:$0xff] }
 0x38f   : > { %v2920_v34 = vadd.f32 %v6671_v1, %v2851_v12  ;;  %v6985_v23 = vadd.f32 %v6814_v61, %v1927_v43  ;;  %v2784_v3 = vmul.f32 %v2537_v19, %v8069_v24  ;;  %v2547_v12 = vsel %vm2546_vm14, %v6896_v6, %v2543_v53  ;;  %v3034_v6 = vld [vmem:[%s7802_s8] sm:$0x3] }
 0x390   : > { %v6959_v49 = vpop.eup %4362  ;;  %v6963_v15 = vsub.f32 %v6659_v17, %v2147_v9  ;;  %v6966_v35 = vsub.f32 %v6644_v45, %v2147_v9  ;;  %v6971_v54 = vadd.f32 1e-05, %v2395_v30  ;;  %v2921_v9 = vadd.f32 %v6694_v52, %v2852_v11  ;;  %v8072_v11 = vld [vmem:[#allocation33_spill] sm:$0xff] }
 0x391   : > { %v2549_v8 = vmul.f32 %v6959_v49, %v6919_v48  ;;  %v6973_v50 = vpop.f32.mrf.mxu2  ;;  %v2785_v30 = vmul.f32 %v2537_v19, %v8070_v26  ;;  %v2976_v61 = vpack.c.bf16 %v2920_v34, %v2918_v31  ;;  %v2786_v37 = vmul.f32 %v2547_v12, %v8071_v47 }
 0x392   : > { %8067 = vst [vmem:[#allocation26_spill] sm:$0xff] %v6963_v15  ;;  %v2262_v45 = vmul.f32 %v6963_v15, %v6963_v15  ;;  %v2263_v17 = vmul.f32 %v6966_v35, %v6966_v35  ;;  %4364 = vrsqrt.f32 %v6971_v54  ;;  %v6991_v4 = vpop.f32.mrf.mxu3  ;;  %v2977_v24 = vpack.c.bf16 %v2921_v9, %v2919_v28 }
 0x393   : > { %8068 = vst [vmem:[#allocation27_spill] sm:$0xff] %v6966_v35  ;;  %v6993_v7 = vpop.f32.mrf.mxu0  ;;  %v2550_v43 = vmul.f32 %v6959_v49, %v2549_v8  ;;  %v7000_v15 = vadd.f32 %v6811_v21, %v1749_v55  ;;  %v2787_v53 = vmul.f32 %v2547_v12, %v8072_v11  ;;  %v2853_v55 = vmul.f32 %v6637_v32, %v2784_v3 }
 0x394   : > { %v2345_v35 = vadd.f32 %v2263_v17, %v2262_v45  ;;  %2108 = vadd.xlane.f32.xlu2 %v2107_v5  ;;  %3223 = vmatmul.bf16.gmra.mxu0 %v2976_v61  ;;  %v7003_v27 = vpop.f32.mrf.mxu1  ;;  %v2854_v47 = vmul.f32 %v6685_v41, %v2785_v30  ;;  %v1756_v17 = vadd.f32 %v6884_v62, %v5682_v44  ;;  %v7028_v9 = vperm.slane %v3034_v6, 0 }
 0x395   : > { %v2094_v25 = vpop.xlane.xlu2 %2093  ;;  %3312 = vmatmul.bf16.gmra.mxu1 %v2977_v24  ;;  %3401 = vmatmul.bf16.gmra.mxu2 %v2976_v61  ;;  %v2110_v21 = vadd.f32 %v6985_v23, %v7000_v15  ;;  %v2551_v8 = vmul.f32 0.5, %v2550_v43  ;;  %v1934_v34 = vadd.f32 %v6917_v16, %v5679_v57  ;;  %v2855_v12 = vmul.f32 %v6637_v32, %v2786_v37 }
 0x396   : > { %2346 = vadd.xlane.f32.xlu1 %v2345_v35  ;;  %v2148_v19 = vmul.f32 %v2094_v25, %v4987_v33  ;;  %v2326_v31 = vpop.xlane.xlu0 %2325  ;;  %3490 = vmatmul.bf16.gmra.mxu3 %v2977_v24  ;;  %v2922_v16 = vadd.f32 %v6671_v1, %v2853_v55  ;;  %v2923_v43 = vadd.f32 %v6694_v52, %v2854_v47  ;;  %vm2555_vm15 = vweird.f32 %v6959_v49 }
 0x397   : > { %v2396_v28 = vmul.f32 %v2326_v31, %v4987_v33  ;;  %v2552_v24 = vsub.f32 1.5, %v2551_v8  ;;  %v2856_v31 = vmul.f32 %v6685_v41, %v2787_v53  ;;  %v7049_v55 = vadd.f32 %v6929_v58, %v1934_v34 }
 0x398   : > { %v4365_v35 = vpop.eup %4364  ;;  %v7015_v25 = vsub.f32 %v6703_v29, %v2148_v19  ;;  %v7018_v5 = vsub.f32 %v6687_v13, %v2148_v19  ;;  %v2329_v62 = vpop.xlane.xlu1 %2328  ;;  %v1759_v47 = vadd.f32 %v6936_v60, %v5682_v44  ;;  %vm2554_vm1 = vweird.f32 %v6919_v48 }
 0x399   : > { %v7021_v45 = vpop.f32.mrf.mxu2  ;;  %v2559_v3 = vmul.f32 %v4365_v35, %v6971_v54  ;;  %v7030_v26 = vadd.f32 1e-05, %v2396_v28  ;;  %v2397_v11 = vmul.f32 %v2329_v62, %v4987_v33  ;;  %v7045_v28 = vadd.f32 %v6893_v10, %v1756_v17  ;;  %vm2556_vm4 = vmor %vm2554_vm1, %vm2555_vm15 }
 0x39a   : > { %8073 = vst [vmem:[#allocation22_spill] sm:$0xff] %v7018_v5  ;;  %v2264_v13 = vmul.f32 %v7015_v25, %v7015_v25  ;;  %v2265_v30 = vmul.f32 %v7018_v5, %v7018_v5  ;;  %v7040_v19 = vpop.f32.mrf.mxu3  ;;  %v2924_v5 = vadd.f32 %v6671_v1, %v2855_v12  ;;  %vm2565_vm0 = vweird.f32 %v4365_v35 }
 0x39b   : > { %v3209_v29 = vpop.f32.mrf.mxu0  ;;  %v2560_v61 = vmul.f32 %v4365_v35, %v2559_v3  ;;  %4366 = vrsqrt.f32 %v7030_v26  ;;  %v7053_v8 = vadd.f32 1e-05, %v2397_v11  ;;  %v7057_v17 = vperm.slane %v3034_v6, 1 }
 0x39c   : > { %2111 = vadd.xlane.f32.xlu2 %v2110_v21  ;;  %v3210_v3 = vadd.f32 %v3209_v29, %v7028_v9  ;;  %v2348_v21 = vadd.f32 %v2265_v30, %v2264_v13  ;;  %v2553_v29 = vmul.f32 %v6959_v49, %v2552_v24  ;;  %v2925_v13 = vadd.f32 %v6694_v52, %v2856_v31 }
 0x39d   : > { %v2561_v37 = vmul.f32 0.5, %v2560_v61  ;;  %4368 = vrsqrt.f32 %v7053_v8  ;;  %vm2564_vm2 = vweird.f32 %v6971_v54  ;;  %v1937_v6 = vadd.f32 %v6973_v50, %v5679_v57 }
 0x39e   : > { %v2097_v10 = vpop.xlane.xlu0 %2096  ;;  %2349 = vadd.xlane.f32.xlu1 %v2348_v21  ;;  %vm2566_vm3 = vmor %vm2564_vm2, %vm2565_vm0  ;;  %v2978_v48 = vpack.c.bf16 %v2924_v5, %v2922_v16  ;;  %v2119_v5 = vadd.f32 %v7049_v55, %v7045_v28  ;;  %v2979_v16 = vpack.c.bf16 %v2925_v13, %v2923_v43  ;;  %vm2584_vm6 = vweird.f32 %v7053_v8 }
 0x39f   : > { %v2562_v53 = vsub.f32 1.5, %v2561_v37  ;;  %v3298_v58 = vpop.f32.mrf.mxu1  ;;  %v2149_v34 = vmul.f32 %v2097_v10, %v4987_v33  ;;  %v4406_v37 = vld [vmem:[%s4921_s25] sm:$0xff]  ;;  %v7104_v43 = vadd.f32 %v6991_v4, %v1937_v6  ;;  %v7113_v4 = vadd.f32 %v6993_v7, %v5682_v44 }
 0x3a0   : > { %v3299_v12 = vadd.f32 %v3298_v58, %v3210_v3  ;;  %v7082_v21 = vpop.xlane.xlu1 %2331  ;;  %vm2574_vm9 = vweird.f32 %v7030_v26 }
 0x3a1   : > { %v3387_v60 = vpop.f32.mrf.mxu2  ;;  %v2563_v30 = vmul.f32 %v4365_v35, %v2562_v53  ;;  %v7065_v61 = vpop.eup %4366  ;;  %v7071_v62 = vsub.f32 %v6746_v36, %v2149_v34  ;;  %v7074_v24 = vsub.f32 %v6741_v38, %v2149_v34  ;;  %v2557_v36 = vsel %vm2556_vm4, %v6959_v49, %v2553_v29 }
 0x3a2   : > { %v2569_v31 = vmul.f32 %v7065_v61, %v7030_v26  ;;  %v3556_v3 = vadd.f32 %v4406_v37, %v3299_v12  ;;  %v3388_v50 = vadd.f32 %v3387_v60, %v7057_v17  ;;  %v7086_v38 = vadd.f32 %v6946_v0, %v1759_v47 }
 0x3a3   : > { %v3211_v11 = vpop.f32.mrf.mxu0  ;;  %v2567_v54 = vsel %vm2566_vm3, %v4365_v35, %v2563_v30  ;;  %v2266_v53 = vmul.f32 %v7071_v62, %v7071_v62  ;;  %v2267_v49 = vmul.f32 %v7074_v24, %v7074_v24  ;;  %v7100_v0 = vpop.eup %4368  ;;  %vm2575_vm7 = vweird.f32 %v7065_v61 }
 0x3a4   : > { %3620 = vst [vmem:[%s7092_s24] sm:$0xff] %v3556_v3  ;;  %v3212_v35 = vadd.f32 %v3211_v11, %v7028_v9  ;;  %3228 = vmatmul.bf16.gmra.mxu0 %v2978_v48  ;;  %v2790_v47 = vmul.f32 %v2567_v54, %v6648_v51  ;;  %v2570_v10 = vmul.f32 %v7065_v61, %v2569_v31  ;;  %vm2585_vm5 = vweird.f32 %v7100_v0  ;;  %vm2576_vm10 = vmor %vm2574_vm9, %vm2575_vm7 }
 0x3a5   : > { %3317 = vmatmul.bf16.gmra.mxu1 %v2979_v16  ;;  %3406 = vmatmul.bf16.gmra.mxu2 %v2978_v48  ;;  %v2791_v58 = vmul.f32 %v2567_v54, %v6651_v14  ;;  %v2579_v34 = vmul.f32 %v7100_v0, %v7053_v8  ;;  %v2788_v51 = vmul.f32 %v2557_v36, %v6585_v2  ;;  %v4407_v54 = vld [vmem:[%s4921_s25 + $0x8] sm:$0xff]  ;;  %vm2586_vm8 = vmor %vm2584_vm6, %vm2585_vm5  ;;  %v4410_v8 = vld [vmem:[%s4921_s25 + $0x20] sm:$0xff] }
 0x3a6   : > { %v3476_v29 = vpop.f32.mrf.mxu3  ;;  %v2100_v13 = vpop.xlane.xlu0 %2099  ;;  %2120 = vadd.xlane.f32.xlu1 %v2119_v5  ;;  %3495 = vmatmul.bf16.gmra.mxu3 %v2979_v16  ;;  %v2351_v6 = vadd.f32 %v2267_v49, %v2266_v53  ;;  %v2789_v11 = vmul.f32 %v2557_v36, %v6588_v22  ;;  %v2571_v3 = vmul.f32 0.5, %v2570_v10  ;;  %v4408_v22 = vld [vmem:[%s4921_s25 + $0x10] sm:$0xff]  ;;  %v1939_v10 = vadd.f32 %v7021_v45, %v5679_v57 }
 0x3a7   : > { %v3477_v60 = vadd.f32 %v3476_v29, %v3388_v50  ;;  %v3300_v30 = vpop.f32.mrf.mxu1  ;;  %v2150_v12 = vmul.f32 %v2100_v13, %v4987_v33  ;;  %v2580_v48 = vmul.f32 %v7100_v0, %v2579_v34  ;;  %v2859_v50 = vmul.f32 %v6637_v32, %v2790_v47 }
 0x3a8   : > { %v3301_v37 = vadd.f32 %v3300_v30, %v3212_v35  ;;  %2352 = vadd.xlane.f32.xlu2 %v2351_v6  ;;  %v2103_v53 = vpop.xlane.xlu1 %2102  ;;  %v2860_v35 = vmul.f32 %v6685_v41, %v2791_v58  ;;  %v2857_v58 = vmul.f32 %v6637_v32, %v2788_v51  ;;  %v2858_v6 = vmul.f32 %v6685_v41, %v2789_v11  ;;  %v4409_v11 = vld [vmem:[%s4921_s25 + $0x18] sm:$0xff] }
 0x3a9   : > { %v3389_v14 = vpop.f32.mrf.mxu2  ;;  %v3557_v31 = vadd.f32 %v4407_v54, %v3477_v60  ;;  %v7120_v2 = vsub.f32 %v6764_v63, %v2150_v12  ;;  %v7123_v44 = vsub.f32 %v6761_v39, %v2150_v12  ;;  %v2581_v5 = vmul.f32 0.5, %v2580_v48 }
 0x3aa   : > { %v3558_v36 = vadd.f32 %v4408_v22, %v3301_v37  ;;  %v3390_v16 = vadd.f32 %v3389_v14, %v7057_v17  ;;  %v2151_v63 = vmul.f32 %v2103_v53, %v4987_v33  ;;  %v2122_v39 = vadd.f32 %v7104_v43, %v7086_v38 }
 0x3ab   : > { %v3214_v7 = vpop.f32.mrf.mxu0  ;;  %3621 = vst [vmem:[%s7092_s24 + $0x8] sm:$0xff] %v3557_v31  ;;  %v2268_v49 = vmul.f32 %v7120_v2, %v7120_v2  ;;  %v2269_v47 = vmul.f32 %v7123_v44, %v7123_v44  ;;  %v2582_v29 = vsub.f32 1.5, %v2581_v5  ;;  %v2572_v60 = vsub.f32 1.5, %v2571_v3 }
 0x3ac   : > { %3622 = vst [vmem:[%s7092_s24 + $0x10] sm:$0xff] %v3558_v36  ;;  %v3215_v34 = vadd.f32 %v3214_v7, %v7028_v9  ;;  %v7143_v30 = vsub.f32 %v6771_v59, %v2151_v63  ;;  %v7146_v12 = vsub.f32 %v6767_v20, %v2151_v63  ;;  %v2928_v45 = vadd.f32 %v6671_v1, %v2859_v50 }
 0x3ad   : > { %v2929_v14 = vadd.f32 %v6694_v52, %v2860_v35  ;;  %v2583_v51 = vmul.f32 %v7100_v0, %v2582_v29  ;;  %v2354_v54 = vadd.f32 %v2269_v47, %v2268_v49  ;;  %v2926_v7 = vadd.f32 %v6671_v1, %v2857_v58 }
 0x3ae   : > { %v3478_v13 = vpop.f32.mrf.mxu3  ;;  %2123 = vadd.xlane.f32.xlu1 %v2122_v39  ;;  %v2270_v20 = vmul.f32 %v7143_v30, %v7143_v30  ;;  %v2271_v59 = vmul.f32 %v7146_v12, %v7146_v12  ;;  %v2573_v50 = vmul.f32 %v7065_v61, %v2572_v60  ;;  %v2927_v36 = vadd.f32 %v6694_v52, %v2858_v6  ;;  %v8074_v60 = vld [vmem:[#allocation35_spill] sm:$0xff] }
 0x3af   : > { %v3479_v57 = vadd.f32 %v3478_v13, %v3390_v16  ;;  %v3303_v48 = vpop.f32.mrf.mxu1  ;;  %v7164_v16 = vadd.f32 %v7040_v19, %v1939_v10  ;;  %v2980_v39 = vpack.c.bf16 %v2928_v45, %v2926_v7  ;;  %v2587_v49 = vsel %vm2586_vm8, %v7100_v0, %v2583_v51  ;;  %v8075_v45 = vld [vmem:[#allocation34_spill] sm:$0xff] }
 0x3b0   : > { %v3304_v3 = vadd.f32 %v3303_v48, %v3215_v34  ;;  %2355 = vadd.xlane.f32.xlu2 %v2354_v54  ;;  %v2357_v22 = vadd.f32 %v2271_v59, %v2270_v20  ;;  %v2106_v63 = vpop.xlane.xlu1 %2105  ;;  %v2981_v29 = vpack.c.bf16 %v2929_v14, %v2927_v36  ;;  %v7176_v19 = vadd.f32 %v7003_v27, %v7113_v4  ;;  %v4411_v14 = vld [vmem:[%s4921_s25 + $0x28] sm:$0xff]  ;;  %v4412_v59 = vld [vmem:[%s4921_s25 + $0x30] sm:$0xff] }
 0x3b1   : > { %v3392_v31 = vpop.f32.mrf.mxu2  ;;  %v3559_v37 = vadd.f32 %v4409_v11, %v3479_v57  ;;  %v2152_v47 = vmul.f32 %v2106_v63, %v4987_v33  ;;  %v2577_v34 = vsel %vm2576_vm10, %v7065_v61, %v2573_v50  ;;  %v2794_v27 = vmul.f32 %v2587_v49, %v6709_v42  ;;  %v8076_v54 = vld [vmem:[#allocation32_spill] sm:$0xff] }
 0x3b2   : > { %v3560_v53 = vadd.f32 %v4410_v8, %v3304_v3  ;;  %v3393_v35 = vadd.f32 %v3392_v31, %v7057_v17  ;;  %2358 = vadd.xlane.f32.xlu0 %v2357_v22  ;;  %v2795_v13 = vmul.f32 %v2587_v49, %v8074_v60  ;;  %v2125_v61 = vadd.f32 %v7164_v16, %v7176_v19 }
 0x3b3   : > { %v3216_v5 = vpop.f32.mrf.mxu0  ;;  %3623 = vst [vmem:[%s7092_s24 + $0x18] sm:$0xff] %v3559_v37  ;;  %v7184_v0 = vsub.f32 %v6779_v18, %v2152_v47  ;;  %v7187_v58 = vsub.f32 %v6777_v40, %v2152_v47  ;;  %v2792_v42 = vmul.f32 %v2577_v34, %v8075_v45  ;;  %v2793_v31 = vmul.f32 %v2577_v34, %v8076_v54 }
 0x3b4   : > { %3624 = vst [vmem:[%s7092_s24 + $0x20] sm:$0xff] %v3560_v53  ;;  %v3217_v10 = vadd.f32 %v3216_v5, %v7028_v9  ;;  %3233 = vmatmul.bf16.gmra.mxu0 %v2980_v39  ;;  %v2863_v3 = vmul.f32 %v6637_v32, %v2794_v27  ;;  %v2864_v7 = vmul.f32 %v6685_v41, %v2795_v13 }
 0x3b5   : > { %3322 = vmatmul.bf16.gmra.mxu1 %v2981_v29  ;;  %3411 = vmatmul.bf16.gmra.mxu2 %v2980_v39  ;;  %v2272_v18 = vmul.f32 %v7184_v0, %v7184_v0  ;;  %v2273_v40 = vmul.f32 %v7187_v58, %v7187_v58  ;;  %v2861_v50 = vmul.f32 %v6637_v32, %v2792_v42 }
 0x3b6   : > { %v3481_v26 = vpop.f32.mrf.mxu3  ;;  %3500 = vmatmul.bf16.gmra.mxu3 %v2981_v29  ;;  %v2862_v22 = vmul.f32 %v6685_v41, %v2793_v31  ;;  %v2932_v8 = vadd.f32 %v6671_v1, %v2863_v3  ;;  %v2933_v53 = vadd.f32 %v6694_v52, %v2864_v7 }
 0x3b7   : > { %v3482_v4 = vadd.f32 %v3481_v26, %v3393_v35  ;;  %v3305_v6 = vpop.f32.mrf.mxu1  ;;  %v2360_v20 = vadd.f32 %v2273_v40, %v2272_v18  ;;  %v4413_v35 = vld [vmem:[%s4921_s25 + $0x38] sm:$0xff]  ;;  %v2930_v39 = vadd.f32 %v6671_v1, %v2861_v50  ;;  %v8077_v40 = vld [vmem:[#allocation23_spill] sm:$0xff] }
 0x3b8   : > { %v3306_v48 = vadd.f32 %v3305_v6, %v3217_v10  ;;  %2126 = vadd.xlane.f32.xlu2 %v2125_v61  ;;  %v2931_v49 = vadd.f32 %v6694_v52, %v2862_v22  ;;  %v2398_v10 = vmul.f32 %v7082_v21, %v4987_v33  ;;  %v8078_v21 = vld [vmem:[#allocation42_spill] sm:$0xff] }
 0x3b9   : > { %v3394_v57 = vpop.f32.mrf.mxu2  ;;  %v3561_v51 = vadd.f32 %v4411_v14, %v3482_v4  ;;  %v2982_v47 = vpack.c.bf16 %v2932_v8, %v2930_v39  ;;  %v8079_v8 = vld [vmem:[#allocation21_spill] sm:$0xff] }
 0x3ba   : > { %v3562_v11 = vadd.f32 %v4412_v59, %v3306_v48  ;;  %v3395_v37 = vadd.f32 %v3394_v57, %v7057_v17  ;;  %2361 = vadd.xlane.f32.xlu0 %v2360_v20  ;;  %v2983_v29 = vpack.c.bf16 %v2933_v53, %v2931_v49  ;;  %v2430_v34 = vadd.f32 1e-05, %v2398_v10 }
 0x3bb   : > { %3625 = vst [vmem:[%s7092_s24 + $0x28] sm:$0xff] %v3561_v51 }
 0x3bc   : > { %3626 = vst [vmem:[%s7092_s24 + $0x30] sm:$0xff] %v3562_v11  ;;  %4370 = vrsqrt.f32 %v2430_v34  ;;  %vm2594_vm12 = vweird.f32 %v2430_v34 }
 0x3be   : > { %v3483_v5 = vpop.f32.mrf.mxu3 }
 0x3bf   : > { %v3484_v36 = vadd.f32 %v3483_v5, %v3395_v37 }
 0x3c1   : > { %v3563_v63 = vadd.f32 %v4413_v35, %v3484_v36 }
 0x3c2   : > { %v4371_v4 = vpop.eup %4370 }
 0x3c3   : > { %3627 = vst [vmem:[%s7092_s24 + $0x38] sm:$0xff] %v3563_v63  ;;  %v2589_v13 = vmul.f32 %v4371_v4, %v2430_v34  ;;  %vm2595_vm11 = vweird.f32 %v4371_v4 }
 0x3c4   : > { %3238 = vmatmul.bf16.gmra.mxu0 %v2982_v47  ;;  %vm2596_vm13 = vmor %vm2594_vm12, %vm2595_vm11 }
 0x3c5   : > { %3327 = vmatmul.bf16.gmra.mxu1 %v2983_v29  ;;  %3416 = vmatmul.bf16.gmra.mxu2 %v2982_v47  ;;  %v2590_v57 = vmul.f32 %v4371_v4, %v2589_v13 }
 0x3c6   : > { %3505 = vmatmul.bf16.gmra.mxu3 %v2983_v29  ;;  %v8080_v29 = vld [vmem:[#allocation28_spill] sm:$0xff] }
 0x3c7   : > { %v2591_v14 = vmul.f32 0.5, %v2590_v57 }
 0x3c9   : > { %v2592_v59 = vsub.f32 1.5, %v2591_v14 }
 0x3cb   : > { %v2593_v50 = vmul.f32 %v4371_v4, %v2592_v59 }
 0x3cd   : > { %v2597_v36 = vsel %vm2596_vm13, %v4371_v4, %v2593_v50 }
 0x3ce   : > { %v2796_v53 = vmul.f32 %v2597_v36, %v8079_v8  ;;  %v2797_v10 = vmul.f32 %v2597_v36, %v8080_v29 }
 0x3d0   : > { %v2865_v4 = vmul.f32 %v6637_v32, %v2796_v53 }
 0x3d2   : > { %v7252_v59 = vadd.f32 %v6671_v1, %v2865_v4 }
 0x3de   : > { %v2341_v26 = vpop.xlane.xlu0 %2340 }
 0x3df   : > { %v2401_v60 = vmul.f32 %v2341_v26, %v4987_v33 }
 0x3e1   : > { %v7217_v6 = vadd.f32 1e-05, %v2401_v60 }
 0x3e3   : > { %4372 = vrsqrt.f32 %v7217_v6  ;;  %vm2624_vm0 = vweird.f32 %v7217_v6 }
 0x3e6   : > { %v2344_v27 = vpop.xlane.xlu0 %2343 }
 0x3e7   : > { %v2402_v54 = vmul.f32 %v2344_v27, %v4987_v33 }
 0x3e9   : > { %v4373_v20 = vpop.eup %4372  ;;  %v7232_v11 = vadd.f32 1e-05, %v2402_v54 }
 0x3ea   : > { %v2619_v3 = vmul.f32 %v4373_v20, %v7217_v6  ;;  %vm2625_vm14 = vweird.f32 %v4373_v20 }
 0x3eb   : > { %4374 = vrsqrt.f32 %v7232_v11  ;;  %vm2626_vm2 = vmor %vm2624_vm0, %vm2625_vm14  ;;  %vm2634_vm8 = vweird.f32 %v7232_v11 }
 0x3ec   : > { %v2620_v22 = vmul.f32 %v4373_v20, %v2619_v3  ;;  %v4414_v3 = vld [vmem:[%s4921_s25 + $0x40] sm:$0xff] }
 0x3ee   : > { %v2115_v61 = vpop.xlane.xlu0 %2114  ;;  %v2621_v35 = vmul.f32 0.5, %v2620_v22 }
 0x3ef   : > { %v2155_v18 = vmul.f32 %v2115_v61, %v4987_v33 }
 0x3f0   : > { %v2622_v34 = vsub.f32 1.5, %v2621_v35 }
 0x3f1   : > { %v7222_v45 = vsub.f32 %v8077_v40, %v2155_v18  ;;  %v7225_v42 = vsub.f32 %v8078_v21, %v2155_v18  ;;  %v7238_v39 = vpop.eup %4374  ;;  %v2866_v40 = vmul.f32 %v6685_v41, %v2797_v10 }
 0x3f2   : > { %v2629_v60 = vmul.f32 %v7238_v39, %v7232_v11  ;;  %vm2635_vm7 = vweird.f32 %v7238_v39 }
 0x3f3   : > { %v2278_v51 = vmul.f32 %v7222_v45, %v7222_v45  ;;  %v2279_v48 = vmul.f32 %v7225_v42, %v7225_v42  ;;  %v2935_v8 = vadd.f32 %v6694_v52, %v2866_v40  ;;  %v8082_v40 = vld [vmem:[#allocation25_spill] sm:$0xff]  ;;  %vm2636_vm9 = vmor %vm2634_vm8, %vm2635_vm7 }
 0x3f4   : > { %v2630_v54 = vmul.f32 %v7238_v39, %v2629_v60 }
 0x3f5   : > { %v2369_v31 = vadd.f32 %v2279_v48, %v2278_v51  ;;  %v2623_v48 = vmul.f32 %v4373_v20, %v2622_v34 }
 0x3f6   : > { %v2335_v37 = vpop.xlane.xlu2 %2334  ;;  %v2118_v14 = vpop.xlane.xlu0 %2117  ;;  %v7272_v10 = vmul.f32 0.5, %v2630_v54 }
 0x3f7   : > { %2370 = vadd.xlane.f32.xlu0 %v2369_v31  ;;  %v2399_v7 = vmul.f32 %v2335_v37, %v4987_v33  ;;  %v2156_v22 = vmul.f32 %v2118_v14, %v4987_v33 }
 0x3f9   : > { %v2431_v5 = vadd.f32 1e-05, %v2399_v7 }
 0x3fb   : > { %4376 = vrsqrt.f32 %v2431_v5  ;;  %vm2604_vm1 = vweird.f32 %v2431_v5 }
 0x3ff   : > { %v2338_v63 = vpop.xlane.xlu2 %2337 }
 0x400   : > { %v2400_v49 = vmul.f32 %v2338_v63, %v4987_v33 }
 0x401   : > { %v4377_v47 = vpop.eup %4376  ;;  %v3219_v13 = vpop.f32.mrf.mxu0 }
 0x402   : > { %v2599_v26 = vmul.f32 %v4377_v47, %v2431_v5  ;;  %v7242_v27 = vadd.f32 1e-05, %v2400_v49  ;;  %v3220_v57 = vadd.f32 %v3219_v13, %v7028_v9  ;;  %v3308_v18 = vpop.f32.mrf.mxu1  ;;  %vm2605_vm15 = vweird.f32 %v4377_v47 }
 0x403   : > { %v7270_v5 = vsel %vm2626_vm2, %v4373_v20, %v2623_v48  ;;  %vm2606_vm3 = vmor %vm2604_vm1, %vm2605_vm15  ;;  %v8083_v48 = vld [vmem:[#allocation40_spill] sm:$0xff] }
 0x404   : > { %v2600_v61 = vmul.f32 %v4377_v47, %v2599_v26  ;;  %4378 = vrsqrt.f32 %v7242_v27  ;;  %v3309_v51 = vadd.f32 %v3308_v18, %v3220_v57  ;;  %v8081_v57 = vld [vmem:[#allocation24_spill] sm:$0xff]  ;;  %v7287_v54 = vsub.f32 %v8083_v48, %v2156_v22 }
 0x405   : > { %vm2614_vm5 = vweird.f32 %v7242_v27 }
 0x406   : > { %v2601_v21 = vmul.f32 0.5, %v2600_v61  ;;  %v3564_v7 = vadd.f32 %v4414_v3, %v3309_v51  ;;  %v4415_v3 = vld [vmem:[%s4921_s25 + $0x48] sm:$0xff] }
 0x407   : > { %v2109_v31 = vpop.xlane.xlu2 %2108  ;;  %v3397_v6 = vpop.f32.mrf.mxu2 }
 0x408   : > { %v2602_v37 = vsub.f32 1.5, %v2601_v21  ;;  %v2153_v50 = vmul.f32 %v2109_v31, %v4987_v33  ;;  %3628 = vst [vmem:[%s7092_s24 + $0x40] sm:$0xff] %v3564_v7  ;;  %v3398_v34 = vadd.f32 %v3397_v6, %v7057_v17  ;;  %v3486_v60 = vpop.f32.mrf.mxu3 }
 0x409   : > { %v2347_v36 = vpop.xlane.xlu1 %2346  ;;  %v3221_v13 = vpop.f32.mrf.mxu0 }
 0x40a   : > { %v7259_v53 = vpop.eup %4378  ;;  %v2603_v35 = vmul.f32 %v4377_v47, %v2602_v37  ;;  %v2403_v63 = vmul.f32 %v2347_v36, %v4987_v33  ;;  %v7265_v49 = vsub.f32 %v6940_v56, %v2153_v50  ;;  %v7268_v29 = vsub.f32 %v6943_v46, %v2153_v50  ;;  %v3310_v61 = vpop.f32.mrf.mxu1 }
 0x40b   : > { %v2609_v26 = vmul.f32 %v7259_v53, %v7242_v27  ;;  %v3222_v46 = vadd.f32 %v3221_v13, %v7028_v9  ;;  %v3487_v51 = vadd.f32 %v3486_v60, %v3398_v34  ;;  %vm2615_vm4 = vweird.f32 %v7259_v53 }
 0x40c   : > { %v2607_v56 = vsel %vm2606_vm3, %v4377_v47, %v2603_v35  ;;  %v7278_v4 = vadd.f32 1e-05, %v2403_v63  ;;  %v2274_v20 = vmul.f32 %v7265_v49, %v7265_v49  ;;  %v2275_v31 = vmul.f32 %v7268_v29, %v7268_v29  ;;  %v8084_v63 = vld [vmem:[#allocation31_spill] sm:$0xff]  ;;  %vm2616_vm6 = vmor %vm2614_vm5, %vm2615_vm4 }
 0x40d   : > { %v2798_v18 = vmul.f32 %v2607_v56, %v8081_v57  ;;  %v2799_v21 = vmul.f32 %v2607_v56, %v8082_v40  ;;  %v2610_v14 = vmul.f32 %v7259_v53, %v2609_v26  ;;  %v3311_v47 = vadd.f32 %v3310_v61, %v3222_v46  ;;  %v4416_v26 = vld [vmem:[%s4921_s25 + $0x50] sm:$0xff] }
 0x40e   : > { %4380 = vrsqrt.f32 %v7278_v4  ;;  %v3565_v7 = vadd.f32 %v4415_v3, %v3487_v51  ;;  %v7296_v6 = vsub.f32 %v8084_v63, %v2156_v22  ;;  %v2363_v13 = vadd.f32 %v2275_v31, %v2274_v20 }
 0x40f   : > { %v2611_v37 = vmul.f32 0.5, %v2610_v14  ;;  %v2112_v50 = vpop.xlane.xlu2 %2111  ;;  %v2867_v36 = vmul.f32 %v6637_v32, %v2798_v18  ;;  %v2868_v35 = vmul.f32 %v6685_v41, %v2799_v21  ;;  %v3566_v34 = vadd.f32 %v4416_v26, %v3311_v47  ;;  %v3399_v18 = vpop.f32.mrf.mxu2 }
 0x410   : > { %v2154_v60 = vmul.f32 %v2112_v50, %v4987_v33  ;;  %3629 = vst [vmem:[%s7092_s24 + $0x48] sm:$0xff] %v3565_v7  ;;  %2364 = vadd.xlane.f32.xlu1 %v2363_v13  ;;  %v2280_v20 = vmul.f32 %v7287_v54, %v7287_v54  ;;  %v3400_v14 = vadd.f32 %v3399_v18, %v7057_v17  ;;  %v3488_v51 = vpop.f32.mrf.mxu3  ;;  %v2632_v63 = vsub.f32 1.5, %v7272_v10  ;;  %v8087_v18 = vld [vmem:[#allocation43_spill] sm:$0xff] }
 0x411   : > { %v2612_v56 = vsub.f32 1.5, %v2611_v37  ;;  %v2936_v46 = vadd.f32 %v6671_v1, %v2867_v36  ;;  %v2937_v61 = vadd.f32 %v6694_v52, %v2868_v35  ;;  %3630 = vst [vmem:[%s7092_s24 + $0x50] sm:$0xff] %v3566_v34  ;;  %v2350_v21 = vpop.xlane.xlu1 %2349  ;;  %v8085_v36 = vld [vmem:[#allocation37_spill] sm:$0xff]  ;;  %vm2644_vm11 = vweird.f32 %v7278_v4 }
 0x412   : > { %v7307_v57 = vsub.f32 %v7000_v15, %v2154_v60  ;;  %v7310_v22 = vsub.f32 %v6985_v23, %v2154_v60  ;;  %v2404_v15 = vmul.f32 %v2350_v21, %v4987_v33  ;;  %v3224_v23 = vpop.f32.mrf.mxu0  ;;  %v3313_v31 = vpop.f32.mrf.mxu1  ;;  %v3489_v50 = vadd.f32 %v3488_v51, %v3400_v14  ;;  %v8088_v51 = vld [vmem:[#allocation19_spill] sm:$0xff] }
 0x413   : > { %v2613_v40 = vmul.f32 %v7259_v53, %v2612_v56  ;;  %v2984_v27 = vpack.c.bf16 %v2936_v46, %v7252_v59  ;;  %v2985_v48 = vpack.c.bf16 %v2937_v61, %v2935_v8  ;;  %v2281_v59 = vmul.f32 %v7296_v6, %v7296_v6  ;;  %v4417_v56 = vld [vmem:[%s4921_s25 + $0x58] sm:$0xff] }
 0x414   : > { %v7317_v47 = vpop.eup %4380  ;;  %v2276_v37 = vmul.f32 %v7307_v57, %v7307_v57  ;;  %v2277_v3 = vmul.f32 %v7310_v22, %v7310_v22  ;;  %v2802_v35 = vmul.f32 %v7270_v5, %v8085_v36  ;;  %v7334_v26 = vadd.f32 1e-05, %v2404_v15 }
 0x415   : > { %v2617_v8 = vsel %vm2616_vm6, %v7259_v53, %v2613_v40  ;;  %v2639_v7 = vmul.f32 %v7317_v47, %v7278_v4  ;;  %3243 = vmatmul.bf16.gmra.mxu0 %v2984_v27  ;;  %3332 = vmatmul.bf16.gmra.mxu1 %v2985_v48  ;;  %v3225_v34 = vadd.f32 %v3224_v23, %v7028_v9  ;;  %v8086_v53 = vld [vmem:[#allocation30_spill] sm:$0xff]  ;;  %vm2645_vm10 = vweird.f32 %v7317_v47 }
 0x416   : > { %3421 = vmatmul.bf16.gmra.mxu2 %v2984_v27  ;;  %3510 = vmatmul.bf16.gmra.mxu3 %v2985_v48  ;;  %v2800_v60 = vmul.f32 %v2617_v8, %v8086_v53  ;;  %v3567_v46 = vadd.f32 %v4417_v56, %v3489_v50  ;;  %v2366_v61 = vadd.f32 %v2277_v3, %v2276_v37  ;;  %4382 = vrsqrt.f32 %v7334_v26  ;;  %v4418_v48 = vld [vmem:[%s4921_s25 + $0x60] sm:$0xff]  ;;  %vm2646_vm12 = vmor %vm2644_vm11, %vm2645_vm10 }
 0x417   : > { %v2640_v13 = vmul.f32 %v7317_v47, %v2639_v7  ;;  %v2801_v40 = vmul.f32 %v2617_v8, %v8087_v18  ;;  %v3314_v21 = vadd.f32 %v3313_v31, %v3225_v34  ;;  %v2372_v10 = vadd.f32 %v2281_v59, %v2280_v20 }
 0x418   : > { %3631 = vst [vmem:[%s7092_s24 + $0x58] sm:$0xff] %v3567_v46  ;;  %2367 = vadd.xlane.f32.xlu2 %v2366_v61  ;;  %v2803_v27 = vmul.f32 %v7270_v5, %v8088_v51  ;;  %v3402_v23 = vpop.f32.mrf.mxu2  ;;  %v2871_v7 = vmul.f32 %v6637_v32, %v2802_v35  ;;  %v2633_v37 = vmul.f32 %v7238_v39, %v2632_v63  ;;  %vm2654_vm15 = vweird.f32 %v7334_v26 }
 0x419   : > { %v2641_v14 = vmul.f32 0.5, %v2640_v13  ;;  %v3568_v15 = vadd.f32 %v4418_v48, %v3314_v21  ;;  %2373 = vadd.xlane.f32.xlu1 %v2372_v10  ;;  %v2121_v3 = vpop.xlane.xlu1 %2120  ;;  %v3403_v20 = vadd.f32 %v3402_v23, %v7057_v17  ;;  %v3491_v31 = vpop.f32.mrf.mxu3  ;;  %v2869_v59 = vmul.f32 %v6637_v32, %v2800_v60  ;;  %v4419_v21 = vld [vmem:[%s4921_s25 + $0x68] sm:$0xff] }
 0x41a   : > { %v2157_v50 = vmul.f32 %v2121_v3, %v4987_v33  ;;  %v3226_v5 = vpop.f32.mrf.mxu0  ;;  %v3315_v36 = vpop.f32.mrf.mxu1  ;;  %v2870_v34 = vmul.f32 %v6685_v41, %v2801_v40  ;;  %v2940_v46 = vadd.f32 %v6671_v1, %v2871_v7  ;;  %v2872_v11 = vmul.f32 %v6685_v41, %v2803_v27  ;;  %v8089_v3 = vld [vmem:[#allocation39_spill] sm:$0xff] }
 0x41b   : > { %v2642_v8 = vsub.f32 1.5, %v2641_v14  ;;  %3632 = vst [vmem:[%s7092_s24 + $0x60] sm:$0xff] %v3568_v15  ;;  %v3492_v35 = vadd.f32 %v3491_v31, %v3403_v20  ;;  %v3227_v63 = vadd.f32 %v3226_v5, %v7028_v9  ;;  %v2353_v56 = vpop.xlane.xlu2 %2352  ;;  %v2637_v61 = vsel %vm2636_vm9, %v7238_v39, %v2633_v37  ;;  %v4420_v15 = vld [vmem:[%s4921_s25 + $0x70] sm:$0xff] }
 0x41c   : > { %v7356_v53 = vpop.eup %4382  ;;  %v7361_v60 = vsub.f32 %v7045_v28, %v2157_v50  ;;  %v7364_v13 = vsub.f32 %v7049_v55, %v2157_v50  ;;  %v2405_v18 = vmul.f32 %v2353_v56, %v4987_v33  ;;  %v2938_v40 = vadd.f32 %v6671_v1, %v2869_v59  ;;  %v8090_v56 = vld [vmem:[#allocation38_spill] sm:$0xff] }
 0x41d   : > { %v2643_v28 = vmul.f32 %v7317_v47, %v2642_v8  ;;  %v3569_v55 = vadd.f32 %v4419_v21, %v3492_v35  ;;  %v3316_v10 = vadd.f32 %v3315_v36, %v3227_v63  ;;  %v2939_v14 = vadd.f32 %v6694_v52, %v2870_v34 }
 0x41e   : > { %v2649_v51 = vmul.f32 %v7356_v53, %v7334_v26  ;;  %v7377_v27 = vadd.f32 1e-05, %v2405_v18  ;;  %v2282_v39 = vmul.f32 %v7361_v60, %v7361_v60  ;;  %v2283_v48 = vmul.f32 %v7364_v13, %v7364_v13 }
 0x41f   : > { %3633 = vst [vmem:[%s7092_s24 + $0x68] sm:$0xff] %v3569_v55  ;;  %v3570_v23 = vadd.f32 %v4420_v15, %v3316_v10  ;;  %v2941_v37 = vadd.f32 %v6694_v52, %v2872_v11  ;;  %v2804_v20 = vmul.f32 %v2637_v61, %v8089_v3  ;;  %v2986_v50 = vpack.c.bf16 %v2940_v46, %v2938_v40  ;;  %v8091_v55 = vld [vmem:[#allocation26_spill] sm:$0xff] }
 0x420   : > { %v3404_v7 = vpop.f32.mrf.mxu2  ;;  %4384 = vrsqrt.f32 %v7377_v27  ;;  %v2375_v59 = vadd.f32 %v2283_v48, %v2282_v39  ;;  %v2647_v5 = vsel %vm2646_vm12, %v7317_v47, %v2643_v28  ;;  %v2805_v11 = vmul.f32 %v2637_v61, %v8090_v56  ;;  %v4421_v48 = vld [vmem:[%s4921_s25 + $0x78] sm:$0xff] }
 0x421   : > { %v2124_v31 = vpop.xlane.xlu1 %2123  ;;  %v3493_v8 = vpop.f32.mrf.mxu3  ;;  %3634 = vst [vmem:[%s7092_s24 + $0x70] sm:$0xff] %v3570_v23  ;;  %v3405_v36 = vadd.f32 %v3404_v7, %v7057_v17  ;;  %v2987_v34 = vpack.c.bf16 %v2941_v37, %v2939_v14  ;;  %v2650_v18 = vmul.f32 %v7356_v53, %v2649_v51  ;;  %v2806_v61 = vmul.f32 %v2647_v5, %v8091_v55  ;;  %v8092_v51 = vld [vmem:[#allocation27_spill] sm:$0xff] }
 0x422   : > { %v2158_v4 = vmul.f32 %v2124_v31, %v4987_v33  ;;  %v3229_v35 = vpop.f32.mrf.mxu0  ;;  %v3318_v63 = vpop.f32.mrf.mxu1  ;;  %2376 = vadd.xlane.f32.xlu2 %v2375_v59  ;;  %v2807_v39 = vmul.f32 %v2647_v5, %v8092_v51  ;;  %v4422_v31 = vld [vmem:[%s4921_s25 + $0x80] sm:$0xff]  ;;  %vm2655_vm13 = vweird.f32 %v7356_v53  ;;  %vm2664_vm0 = vweird.f32 %v7377_v27 }
 0x423   : > { %v3230_v21 = vadd.f32 %v3229_v35, %v7028_v9  ;;  %v2356_v40 = vpop.xlane.xlu2 %2355  ;;  %v3494_v28 = vadd.f32 %v3493_v8, %v3405_v36  ;;  %v2651_v37 = vmul.f32 0.5, %v2650_v18  ;;  %v2874_v36 = vmul.f32 %v6685_v41, %v2805_v11  ;;  %vm2656_vm2 = vmor %vm2654_vm15, %vm2655_vm13 }
 0x424   : > { %v7399_v46 = vsub.f32 %v7086_v38, %v2158_v4  ;;  %v7402_v47 = vsub.f32 %v7104_v43, %v2158_v4  ;;  %v2406_v10 = vmul.f32 %v2356_v40, %v4987_v33  ;;  %v2873_v4 = vmul.f32 %v6637_v32, %v2804_v20 }
 0x425   : > { %3248 = vmatmul.bf16.gmra.mxu0 %v2986_v50  ;;  %3337 = vmatmul.bf16.gmra.mxu1 %v2987_v34  ;;  %v3319_v14 = vadd.f32 %v3318_v63, %v3230_v21  ;;  %v3571_v38 = vadd.f32 %v4421_v48, %v3494_v28  ;;  %v2359_v15 = vpop.xlane.xlu0 %2358  ;;  %v2875_v56 = vmul.f32 %v6637_v32, %v2806_v61  ;;  %v2652_v20 = vsub.f32 1.5, %v2651_v37 }
 0x426   : > { %3426 = vmatmul.bf16.gmra.mxu2 %v2986_v50  ;;  %3515 = vmatmul.bf16.gmra.mxu3 %v2987_v34  ;;  %v2284_v43 = vmul.f32 %v7399_v46, %v7399_v46  ;;  %v2285_v23 = vmul.f32 %v7402_v47, %v7402_v47  ;;  %v4385_v7 = vpop.eup %4384  ;;  %v7412_v3 = vadd.f32 1e-05, %v2406_v10  ;;  %v2407_v8 = vmul.f32 %v2359_v15, %v4987_v33 }
 0x427   : > { %v3572_v59 = vadd.f32 %v4422_v31, %v3319_v14  ;;  %v2659_v50 = vmul.f32 %v4385_v7, %v7377_v27  ;;  %3635 = vst [vmem:[%s7092_s24 + $0x78] sm:$0xff] %v3571_v38  ;;  %v2876_v55 = vmul.f32 %v6685_v41, %v2807_v39  ;;  %v2942_v61 = vadd.f32 %v6671_v1, %v2873_v4  ;;  %v4424_v4 = vld [vmem:[%s4921_s25 + $0x90] sm:$0xff] }
 0x428   : > { %v3407_v5 = vpop.f32.mrf.mxu2  ;;  %4386 = vrsqrt.f32 %v7412_v3  ;;  %v7422_v34 = vadd.f32 1e-05, %v2407_v8  ;;  %v2378_v35 = vadd.f32 %v2285_v23, %v2284_v43  ;;  %v2943_v48 = vadd.f32 %v6694_v52, %v2874_v36  ;;  %v4423_v23 = vld [vmem:[%s4921_s25 + $0x88] sm:$0xff] }
 0x429   : > { %3636 = vst [vmem:[%s7092_s24 + $0x80] sm:$0xff] %v3572_v59  ;;  %v3496_v63 = vpop.f32.mrf.mxu3  ;;  %v2660_v18 = vmul.f32 %v4385_v7, %v2659_v50  ;;  %v3408_v21 = vadd.f32 %v3407_v5, %v7057_v17  ;;  %v2944_v15 = vadd.f32 %v6671_v1, %v2875_v56  ;;  %vm2665_vm14 = vweird.f32 %v4385_v7 }
 0x42a   : > { %v3231_v40 = vpop.f32.mrf.mxu0  ;;  %v3320_v28 = vpop.f32.mrf.mxu1  ;;  %4388 = vrsqrt.f32 %v7422_v34  ;;  %2379 = vadd.xlane.f32.xlu0 %v2378_v35  ;;  %v2945_v31 = vadd.f32 %v6694_v52, %v2876_v55  ;;  %v2653_v8 = vmul.f32 %v7356_v53, %v2652_v20  ;;  %vm2666_vm1 = vmor %vm2664_vm0, %vm2665_vm14  ;;  %vm2684_vm5 = vweird.f32 %v7422_v34 }
 0x42b   : > { %v3232_v11 = vadd.f32 %v3231_v40, %v7028_v9  ;;  %v2661_v10 = vmul.f32 0.5, %v2660_v18  ;;  %v2127_v14 = vpop.xlane.xlu2 %2126  ;;  %v3497_v51 = vadd.f32 %v3496_v63, %v3408_v21  ;;  %v2988_v27 = vpack.c.bf16 %v2944_v15, %v2942_v61 }
 0x42c   : > { %v2159_v38 = vmul.f32 %v2127_v14, %v4987_v33  ;;  %v2989_v55 = vpack.c.bf16 %v2945_v31, %v2943_v48  ;;  %v8093_v31 = vld [vmem:[#allocation22_spill] sm:$0xff]  ;;  %vm2674_vm7 = vweird.f32 %v7412_v3 }
 0x42d   : > { %v3321_v39 = vadd.f32 %v3320_v28, %v3232_v11  ;;  %v2662_v43 = vsub.f32 1.5, %v2661_v10  ;;  %v3573_v37 = vadd.f32 %v4423_v23, %v3497_v51  ;;  %v2657_v10 = vsel %vm2656_vm2, %v7356_v53, %v2653_v8  ;;  %v4425_v53 = vld [vmem:[%s4921_s25 + $0x98] sm:$0xff] }
 0x42e   : > { %v7436_v59 = vpop.eup %4386  ;;  %v7440_v50 = vsub.f32 %v7176_v19, %v2159_v38  ;;  %v7443_v5 = vsub.f32 %v7164_v16, %v2159_v38  ;;  %v2808_v23 = vmul.f32 %v2657_v10, %v7015_v25  ;;  %v2809_v8 = vmul.f32 %v2657_v10, %v8093_v31 }
 0x42f   : > { %v3574_v36 = vadd.f32 %v4424_v4, %v3321_v39  ;;  %v2663_v35 = vmul.f32 %v4385_v7, %v2662_v43  ;;  %v2669_v63 = vmul.f32 %v7436_v59, %v7412_v3  ;;  %3637 = vst [vmem:[%s7092_s24 + $0x88] sm:$0xff] %v3573_v37  ;;  %vm2675_vm4 = vweird.f32 %v7436_v59  ;;  %v4429_v3 = vld [vmem:[%s4921_s25 + $0xb8] sm:$0xff] }
 0x430   : > { %v3409_v56 = vpop.f32.mrf.mxu2  ;;  %v7451_v18 = vpop.eup %4388  ;;  %v2286_v16 = vmul.f32 %v7440_v50, %v7440_v50  ;;  %v2287_v19 = vmul.f32 %v7443_v5, %v7443_v5  ;;  %vm2676_vm8 = vmor %vm2674_vm7, %vm2675_vm4 }
 0x431   : > { %3638 = vst [vmem:[%s7092_s24 + $0x90] sm:$0xff] %v3574_v36  ;;  %v3410_v26 = vadd.f32 %v3409_v56, %v7057_v17  ;;  %v3498_v21 = vpop.f32.mrf.mxu3  ;;  %v2667_v40 = vsel %vm2666_vm1, %v4385_v7, %v2663_v35  ;;  %v2679_v28 = vmul.f32 %v7451_v18, %v7422_v34  ;;  %v2670_v14 = vmul.f32 %v7436_v59, %v2669_v63 }
 0x432   : > { %v3234_v20 = vpop.f32.mrf.mxu0  ;;  %v3323_v11 = vpop.f32.mrf.mxu1  ;;  %v2381_v38 = vadd.f32 %v2287_v19, %v2286_v16  ;;  %v2810_v7 = vmul.f32 %v2667_v40, %v7071_v62  ;;  %v2811_v39 = vmul.f32 %v2667_v40, %v7074_v24  ;;  %v4426_v62 = vld [vmem:[%s4921_s25 + $0xa0] sm:$0xff]  ;;  %v2877_v40 = vmul.f32 %v6637_v32, %v2808_v23 }
 0x433   : > { %v2680_v51 = vmul.f32 %v7451_v18, %v2679_v28  ;;  %v3499_v61 = vadd.f32 %v3498_v21, %v3410_v26  ;;  %v3235_v48 = vadd.f32 %v3234_v20, %v7028_v9  ;;  %v2671_v4 = vmul.f32 0.5, %v2670_v14  ;;  %v4427_v20 = vld [vmem:[%s4921_s25 + $0xa8] sm:$0xff] }
 0x434   : > { %2382 = vadd.xlane.f32.xlu1 %v2381_v38  ;;  %v2879_v24 = vmul.f32 %v6637_v32, %v2810_v7  ;;  %v2880_v25 = vmul.f32 %v6685_v41, %v2811_v39  ;;  %vm2685_vm3 = vweird.f32 %v7451_v18 }
 0x435   : > { %3253 = vmatmul.bf16.gmra.mxu0 %v2988_v27  ;;  %3342 = vmatmul.bf16.gmra.mxu1 %v2989_v55  ;;  %v2681_v15 = vmul.f32 0.5, %v2680_v51  ;;  %v3575_v43 = vadd.f32 %v4425_v53, %v3499_v61  ;;  %v3324_v37 = vadd.f32 %v3323_v11, %v3235_v48  ;;  %v2672_v28 = vsub.f32 1.5, %v2671_v4  ;;  %v4428_v61 = vld [vmem:[%s4921_s25 + $0xb0] sm:$0xff]  ;;  %vm2686_vm6 = vmor %vm2684_vm5, %vm2685_vm3 }
 0x436   : > { %3431 = vmatmul.bf16.gmra.mxu2 %v2988_v27  ;;  %3520 = vmatmul.bf16.gmra.mxu3 %v2989_v55  ;;  %v2878_v55 = vmul.f32 %v6685_v41, %v2809_v8  ;;  %v2948_v14 = vadd.f32 %v6671_v1, %v2879_v24  ;;  %v2949_v38 = vadd.f32 %v6694_v52, %v2880_v25 }
 0x437   : > { %3639 = vst [vmem:[%s7092_s24 + $0x98] sm:$0xff] %v3575_v43  ;;  %v3576_v35 = vadd.f32 %v4426_v62, %v3324_v37  ;;  %v2682_v16 = vsub.f32 1.5, %v2681_v15  ;;  %v2946_v48 = vadd.f32 %v6671_v1, %v2877_v40  ;;  %v2673_v39 = vmul.f32 %v7436_v59, %v2672_v28 }
 0x438   : > { %v3412_v36 = vpop.f32.mrf.mxu2  ;;  %v2947_v53 = vadd.f32 %v6694_v52, %v2878_v55 }
 0x439   : > { %v3413_v63 = vadd.f32 %v3412_v36, %v7057_v17  ;;  %v3501_v56 = vpop.f32.mrf.mxu3  ;;  %3640 = vst [vmem:[%s7092_s24 + $0xa0] sm:$0xff] %v3576_v35  ;;  %v2683_v51 = vmul.f32 %v7451_v18, %v2682_v16  ;;  %v2990_v37 = vpack.c.bf16 %v2948_v14, %v2946_v48  ;;  %v2677_v35 = vsel %vm2676_vm8, %v7436_v59, %v2673_v39 }
 0x43a   : > { %v3236_v19 = vpop.f32.mrf.mxu0  ;;  %v3325_v26 = vpop.f32.mrf.mxu1  ;;  %v2991_v8 = vpack.c.bf16 %v2949_v38, %v2947_v53  ;;  %v2812_v16 = vmul.f32 %v2677_v35, %v7120_v2  ;;  %v2813_v25 = vmul.f32 %v2677_v35, %v7123_v44 }
 0x43b   : > { %v3502_v21 = vadd.f32 %v3501_v56, %v3413_v63  ;;  %v3237_v27 = vadd.f32 %v3236_v19, %v7028_v9  ;;  %v2687_v31 = vsel %vm2686_vm6, %v7451_v18, %v2683_v51  ;;  %v4430_v19 = vld [vmem:[%s4921_s25 + $0xc0] sm:$0xff] }
 0x43c   : > { %v2814_v63 = vmul.f32 %v2687_v31, %v7143_v30  ;;  %v2815_v24 = vmul.f32 %v2687_v31, %v7146_v12  ;;  %v2881_v55 = vmul.f32 %v6637_v32, %v2812_v16  ;;  %v2882_v44 = vmul.f32 %v6685_v41, %v2813_v25 }
 0x43d   : > { %v3577_v11 = vadd.f32 %v4427_v20, %v3502_v21  ;;  %v3326_v10 = vadd.f32 %v3325_v26, %v3237_v27 }
 0x43e   : > { %v2883_v27 = vmul.f32 %v6637_v32, %v2814_v63  ;;  %v2884_v12 = vmul.f32 %v6685_v41, %v2815_v24  ;;  %v2950_v48 = vadd.f32 %v6671_v1, %v2881_v55 }
 0x43f   : > { %3641 = vst [vmem:[%s7092_s24 + $0xa8] sm:$0xff] %v3577_v11  ;;  %v3578_v7 = vadd.f32 %v4428_v61, %v3326_v10  ;;  %v4431_v11 = vld [vmem:[%s4921_s25 + $0xc8] sm:$0xff]  ;;  %v4432_v61 = vld [vmem:[%s4921_s25 + $0xd0] sm:$0xff] }
 0x440   : > { %v3414_v15 = vpop.f32.mrf.mxu2  ;;  %v2952_v51 = vadd.f32 %v6671_v1, %v2883_v27  ;;  %v2953_v38 = vadd.f32 %v6694_v52, %v2884_v12 }
 0x441   : > { %3642 = vst [vmem:[%s7092_s24 + $0xb0] sm:$0xff] %v3578_v7  ;;  %v3415_v43 = vadd.f32 %v3414_v15, %v7057_v17  ;;  %v3503_v23 = vpop.f32.mrf.mxu3  ;;  %v2951_v15 = vadd.f32 %v6694_v52, %v2882_v44 }
 0x442   : > { %v3239_v4 = vpop.f32.mrf.mxu0  ;;  %v3328_v36 = vpop.f32.mrf.mxu1 }
 0x443   : > { %v3504_v34 = vadd.f32 %v3503_v23, %v3415_v43  ;;  %v3240_v62 = vadd.f32 %v3239_v4, %v7028_v9  ;;  %v2992_v43 = vpack.c.bf16 %v2952_v51, %v2950_v48 }
 0x445   : > { %3258 = vmatmul.bf16.gmra.mxu0 %v2990_v37  ;;  %3347 = vmatmul.bf16.gmra.mxu1 %v2991_v8  ;;  %v3579_v56 = vadd.f32 %v4429_v3, %v3504_v34  ;;  %v3329_v18 = vadd.f32 %v3328_v36, %v3240_v62  ;;  %v2362_v36 = vpop.xlane.xlu0 %2361 }
 0x446   : > { %3436 = vmatmul.bf16.gmra.mxu2 %v2990_v37  ;;  %3525 = vmatmul.bf16.gmra.mxu3 %v2991_v8  ;;  %v2993_v37 = vpack.c.bf16 %v2953_v38, %v2951_v15  ;;  %v4433_v8 = vld [vmem:[%s4921_s25 + $0xd8] sm:$0xff]  ;;  %v2408_v34 = vmul.f32 %v2362_v36, %v4987_v33 }
 0x447   : > { %3643 = vst [vmem:[%s7092_s24 + $0xb8] sm:$0xff] %v3579_v56  ;;  %v3580_v26 = vadd.f32 %v4430_v19, %v3329_v18 }
 0x448   : > { %v3417_v21 = vpop.f32.mrf.mxu2  ;;  %v2440_v62 = vadd.f32 1e-05, %v2408_v34 }
 0x449   : > { %3644 = vst [vmem:[%s7092_s24 + $0xc0] sm:$0xff] %v3580_v26  ;;  %v3418_v59 = vadd.f32 %v3417_v21, %v7057_v17  ;;  %v3506_v30 = vpop.f32.mrf.mxu3 }
 0x44a   : > { %v3241_v40 = vpop.f32.mrf.mxu0  ;;  %v3330_v20 = vpop.f32.mrf.mxu1  ;;  %4390 = vrsqrt.f32 %v2440_v62  ;;  %vm2694_vm10 = vweird.f32 %v2440_v62 }
 0x44b   : > { %v3507_v28 = vadd.f32 %v3506_v30, %v3418_v59  ;;  %v3242_v2 = vadd.f32 %v3241_v40, %v7028_v9 }
 0x44d   : > { %v3581_v10 = vadd.f32 %v4431_v11, %v3507_v28  ;;  %v3331_v14 = vadd.f32 %v3330_v20, %v3242_v2 }
 0x44f   : > { %3645 = vst [vmem:[%s7092_s24 + $0xc8] sm:$0xff] %v3581_v10  ;;  %v3582_v7 = vadd.f32 %v4432_v61, %v3331_v14 }
 0x450   : > { %v3419_v39 = vpop.f32.mrf.mxu2  ;;  %v4391_v35 = vpop.eup %4390 }
 0x451   : > { %3646 = vst [vmem:[%s7092_s24 + $0xd0] sm:$0xff] %v3582_v7  ;;  %v3420_v53 = vadd.f32 %v3419_v39, %v7057_v17  ;;  %v3508_v23 = vpop.f32.mrf.mxu3  ;;  %v2689_v3 = vmul.f32 %v4391_v35, %v2440_v62  ;;  %vm2695_vm9 = vweird.f32 %v4391_v35 }
 0x452   : > { %vm2696_vm11 = vmor %vm2694_vm10, %vm2695_vm9 }
 0x453   : > { %v3509_v31 = vadd.f32 %v3508_v23, %v3420_v53  ;;  %v2690_v18 = vmul.f32 %v4391_v35, %v2689_v3 }
 0x455   : > { %3263 = vmatmul.bf16.gmra.mxu0 %v2992_v43  ;;  %3352 = vmatmul.bf16.gmra.mxu1 %v2993_v37  ;;  %v3583_v4 = vadd.f32 %v4433_v8, %v3509_v31  ;;  %v2691_v19 = vmul.f32 0.5, %v2690_v18  ;;  %v4434_v31 = vld [vmem:[%s4921_s25 + $0xe0] sm:$0xff] }
 0x456   : > { %3441 = vmatmul.bf16.gmra.mxu2 %v2992_v43  ;;  %3530 = vmatmul.bf16.gmra.mxu3 %v2993_v37 }
 0x457   : > { %3647 = vst [vmem:[%s7092_s24 + $0xd8] sm:$0xff] %v3583_v4  ;;  %v2692_v21 = vsub.f32 1.5, %v2691_v19 }
 0x459   : > { %v2693_v12 = vmul.f32 %v4391_v35, %v2692_v21 }
 0x45b   : > { %v2697_v11 = vsel %vm2696_vm11, %v4391_v35, %v2693_v12 }
 0x45c   : > { %v2816_v48 = vmul.f32 %v2697_v11, %v7184_v0  ;;  %v2817_v53 = vmul.f32 %v2697_v11, %v7187_v58  ;;  %v4435_v11 = vld [vmem:[%s4921_s25 + $0xe8] sm:$0xff] }
 0x45e   : > { %v2885_v35 = vmul.f32 %v6637_v32, %v2816_v48 }
 0x46a   : > { %v2371_v63 = vpop.xlane.xlu0 %2370 }
 0x46b   : > { %v2411_v56 = vmul.f32 %v2371_v63, %v4987_v33 }
 0x46d   : > { %v7527_v24 = vadd.f32 1e-05, %v2411_v56 }
 0x46f   : > { %4392 = vrsqrt.f32 %v7527_v24  ;;  %vm2724_vm2 = vweird.f32 %v7527_v24 }
 0x475   : > { %v7531_v59 = vpop.eup %4392 }
 0x476   : > { %v2719_v28 = vmul.f32 %v7531_v59, %v7527_v24  ;;  %vm2725_vm15 = vweird.f32 %v7531_v59 }
 0x477   : > { %vm2726_vm4 = vmor %vm2724_vm2, %vm2725_vm15 }
 0x478   : > { %v2720_v51 = vmul.f32 %v7531_v59, %v2719_v28 }
 0x47a   : > { %v2721_v23 = vmul.f32 0.5, %v2720_v51 }
 0x47c   : > { %v2722_v19 = vsub.f32 1.5, %v2721_v23 }
 0x483   : > { %v2365_v16 = vpop.xlane.xlu1 %2364 }
 0x484   : > { %v2409_v26 = vmul.f32 %v2365_v16, %v4987_v33  ;;  %v2886_v16 = vmul.f32 %v6685_v41, %v2817_v53 }
 0x486   : > { %v2441_v25 = vadd.f32 1e-05, %v2409_v26 }
 0x488   : > { %4394 = vrsqrt.f32 %v2441_v25  ;;  %vm2704_vm13 = vweird.f32 %v2441_v25 }
 0x48b   : > { %v2368_v30 = vpop.xlane.xlu2 %2367 }
 0x48c   : > { %v2410_v27 = vmul.f32 %v2368_v30, %v4987_v33  ;;  %v2374_v40 = vpop.xlane.xlu1 %2373 }
 0x48d   : > { %v2412_v20 = vmul.f32 %v2374_v40, %v4987_v33 }
 0x48e   : > { %v7536_v2 = vadd.f32 1e-05, %v2410_v27  ;;  %v4395_v55 = vpop.eup %4394 }
 0x48f   : > { %v2699_v44 = vmul.f32 %v4395_v55, %v2441_v25  ;;  %v7542_v7 = vadd.f32 1e-05, %v2412_v20  ;;  %vm2705_vm12 = vweird.f32 %v4395_v55  ;;  %v2954_v20 = vadd.f32 %v6671_v1, %v2885_v35 }
 0x490   : > { %4396 = vrsqrt.f32 %v7536_v2  ;;  %vm2706_vm14 = vmor %vm2704_vm13, %vm2705_vm12  ;;  %vm2714_vm1 = vweird.f32 %v7536_v2 }
 0x491   : > { %v2700_v38 = vmul.f32 %v4395_v55, %v2699_v44  ;;  %4398 = vrsqrt.f32 %v7542_v7  ;;  %vm2734_vm9 = vweird.f32 %v7542_v7 }
 0x492   : > { %v3244_v10 = vpop.f32.mrf.mxu0  ;;  %v3333_v14 = vpop.f32.mrf.mxu1 }
 0x493   : > { %v3245_v61 = vadd.f32 %v3244_v10, %v7028_v9  ;;  %v2701_v39 = vmul.f32 0.5, %v2700_v38  ;;  %v2955_v38 = vadd.f32 %v6694_v52, %v2886_v16 }
 0x495   : > { %v3334_v15 = vadd.f32 %v3333_v14, %v3245_v61  ;;  %v2702_v37 = vsub.f32 1.5, %v2701_v39  ;;  %v2377_v36 = vpop.xlane.xlu2 %2376  ;;  %v2723_v61 = vmul.f32 %v7531_v59, %v2722_v19  ;;  %v4437_v19 = vld [vmem:[%s4921_s25 + $0xf8] sm:$0xff] }
 0x496   : > { %v7546_v43 = vpop.eup %4396  ;;  %v2413_v0 = vmul.f32 %v2377_v36, %v4987_v33 }
 0x497   : > { %v3584_v8 = vadd.f32 %v4434_v31, %v3334_v15  ;;  %v2709_v4 = vmul.f32 %v7546_v43, %v7536_v2  ;;  %v2703_v34 = vmul.f32 %v4395_v55, %v2702_v37  ;;  %v7565_v44 = vpop.eup %4398  ;;  %vm2715_vm0 = vweird.f32 %v7546_v43 }
 0x498   : > { %v7558_v25 = vadd.f32 1e-05, %v2413_v0  ;;  %v2729_v23 = vmul.f32 %v7565_v44, %v7542_v7  ;;  %vm2716_vm3 = vmor %vm2714_vm1, %vm2715_vm0  ;;  %v2727_v35 = vsel %vm2726_vm4, %v7531_v59, %v2723_v61  ;;  %vm2735_vm6 = vweird.f32 %v7565_v44 }
 0x499   : > { %3648 = vst [vmem:[%s7092_s24 + $0xe0] sm:$0xff] %v3584_v8  ;;  %v3422_v62 = vpop.f32.mrf.mxu2  ;;  %v3511_v58 = vpop.f32.mrf.mxu3  ;;  %v2710_v63 = vmul.f32 %v7546_v43, %v2709_v4  ;;  %v2707_v26 = vsel %vm2706_vm14, %v4395_v55, %v2703_v34  ;;  %vm2736_vm10 = vmor %vm2734_vm9, %vm2735_vm6 }
 0x49a   : > { %v3423_v3 = vadd.f32 %v3422_v62, %v7057_v17  ;;  %v3246_v56 = vpop.f32.mrf.mxu0  ;;  %v3335_v18 = vpop.f32.mrf.mxu1  ;;  %v2818_v30 = vmul.f32 %v2707_v26, %v7265_v49  ;;  %v2819_v27 = vmul.f32 %v2707_v26, %v7268_v29  ;;  %4400 = vrsqrt.f32 %v7558_v25  ;;  %v4436_v29 = vld [vmem:[%s4921_s25 + $0xf0] sm:$0xff] }
 0x49b   : > { %v3247_v21 = vadd.f32 %v3246_v56, %v7028_v9  ;;  %v2711_v40 = vmul.f32 0.5, %v2710_v63  ;;  %vm2744_vm7 = vweird.f32 %v7558_v25 }
 0x49c   : > { %v3512_v12 = vadd.f32 %v3511_v58, %v3423_v3  ;;  %v2887_v14 = vmul.f32 %v6637_v32, %v2818_v30  ;;  %v2888_v49 = vmul.f32 %v6685_v41, %v2819_v27  ;;  %v2730_v3 = vmul.f32 %v7565_v44, %v2729_v23 }
 0x49d   : > { %v3336_v28 = vadd.f32 %v3335_v18, %v3247_v21  ;;  %v2712_v55 = vsub.f32 1.5, %v2711_v40  ;;  %v2380_v39 = vpop.xlane.xlu0 %2379  ;;  %v2822_v30 = vmul.f32 %v2727_v35, %v7222_v45  ;;  %v2823_v27 = vmul.f32 %v2727_v35, %v7225_v42 }
 0x49e   : > { %v3585_v10 = vadd.f32 %v4435_v11, %v3512_v12  ;;  %v2956_v15 = vadd.f32 %v6671_v1, %v2887_v14  ;;  %v2957_v53 = vadd.f32 %v6694_v52, %v2888_v49  ;;  %v2414_v37 = vmul.f32 %v2380_v39, %v4987_v33 }
 0x49f   : > { %v3586_v51 = vadd.f32 %v4436_v29, %v3336_v28  ;;  %v2713_v48 = vmul.f32 %v7546_v43, %v2712_v55  ;;  %v2731_v12 = vmul.f32 0.5, %v2730_v3  ;;  %v4438_v28 = vld [vmem:[%s4921_s25 + $0x100] sm:$0xff]  ;;  %v2892_v61 = vmul.f32 %v6685_v41, %v2823_v27 }
 0x4a0   : > { %3649 = vst [vmem:[%s7092_s24 + $0xe8] sm:$0xff] %v3585_v10  ;;  %v2994_v36 = vpack.c.bf16 %v2956_v15, %v2954_v20  ;;  %v2995_v34 = vpack.c.bf16 %v2957_v53, %v2955_v38  ;;  %v7588_v62 = vpop.eup %4400  ;;  %v7596_v63 = vadd.f32 1e-05, %v2414_v37  ;;  %v2891_v38 = vmul.f32 %v6637_v32, %v2822_v30 }
 0x4a1   : > { %3650 = vst [vmem:[%s7092_s24 + $0xf0] sm:$0xff] %v3586_v51  ;;  %v3424_v31 = vpop.f32.mrf.mxu2  ;;  %v3513_v8 = vpop.f32.mrf.mxu3  ;;  %v2717_v2 = vsel %vm2716_vm3, %v7546_v43, %v2713_v48  ;;  %v2739_v24 = vmul.f32 %v7588_v62, %v7558_v25  ;;  %v2732_v48 = vsub.f32 1.5, %v2731_v12  ;;  %vm2745_vm5 = vweird.f32 %v7588_v62  ;;  %v4441_v12 = vld [vmem:[%s4921_s25 + $0x118] sm:$0xff] }
 0x4a2   : > { %v3425_v4 = vadd.f32 %v3424_v31, %v7057_v17  ;;  %v3249_v0 = vpop.f32.mrf.mxu0  ;;  %v3338_v58 = vpop.f32.mrf.mxu1  ;;  %3268 = vmatmul.bf16.gmra.mxu0 %v2994_v36  ;;  %3357 = vmatmul.bf16.gmra.mxu1 %v2995_v34  ;;  %v2820_v43 = vmul.f32 %v2717_v2, %v7307_v57  ;;  %v2821_v59 = vmul.f32 %v2717_v2, %v7310_v22  ;;  %4402 = vrsqrt.f32 %v7596_v63  ;;  %vm2746_vm8 = vmor %vm2744_vm7, %vm2745_vm5 }
 0x4a3   : > { %3446 = vmatmul.bf16.gmra.mxu2 %v2994_v36  ;;  %3535 = vmatmul.bf16.gmra.mxu3 %v2995_v34  ;;  %v3250_v18 = vadd.f32 %v3249_v0, %v7028_v9  ;;  %v2740_v16 = vmul.f32 %v7588_v62, %v2739_v24  ;;  %v4440_v36 = vld [vmem:[%s4921_s25 + $0x110] sm:$0xff]  ;;  %v2960_v0 = vadd.f32 %v6671_v1, %v2891_v38  ;;  %vm2754_vm15 = vweird.f32 %v7596_v63 }
 0x4a4   : > { %v3514_v56 = vadd.f32 %v3513_v8, %v3425_v4  ;;  %v2889_v10 = vmul.f32 %v6637_v32, %v2820_v43  ;;  %v2890_v14 = vmul.f32 %v6685_v41, %v2821_v59  ;;  %v2961_v2 = vadd.f32 %v6694_v52, %v2892_v61 }
 0x4a5   : > { %v3339_v21 = vadd.f32 %v3338_v58, %v3250_v18  ;;  %v2741_v40 = vmul.f32 0.5, %v2740_v16  ;;  %v2733_v58 = vmul.f32 %v7565_v44, %v2732_v48 }
 0x4a6   : > { %v3587_v26 = vadd.f32 %v4437_v19, %v3514_v56  ;;  %v2958_v37 = vadd.f32 %v6671_v1, %v2889_v10  ;;  %v2959_v31 = vadd.f32 %v6694_v52, %v2890_v14 }
 0x4a7   : > { %v3588_v20 = vadd.f32 %v4438_v28, %v3339_v21  ;;  %v2742_v49 = vsub.f32 1.5, %v2741_v40  ;;  %v2383_v45 = vpop.xlane.xlu1 %2382  ;;  %v2737_v21 = vsel %vm2736_vm10, %v7565_v44, %v2733_v58  ;;  %v4442_v44 = vld [vmem:[%s4921_s25 + $0x120] sm:$0xff] }
 0x4a8   : > { %3651 = vst [vmem:[%s7092_s24 + $0xf8] sm:$0xff] %v3587_v26  ;;  %v2415_v51 = vmul.f32 %v2383_v45, %v4987_v33  ;;  %v7617_v53 = vpop.eup %4402  ;;  %v4439_v33 = vld [vmem:[%s4921_s25 + $0x108] sm:$0xff]  ;;  %v2996_v18 = vpack.c.bf16 %v2960_v0, %v2958_v37  ;;  %v2997_v43 = vpack.c.bf16 %v2961_v2, %v2959_v31 }
 0x4a9   : > { %v3427_v57 = vpop.f32.mrf.mxu2  ;;  %v3516_v55 = vpop.f32.mrf.mxu3  ;;  %3652 = vst [vmem:[%s7092_s24 + $0x100] sm:$0xff] %v3588_v20  ;;  %v2743_v8 = vmul.f32 %v7588_v62, %v2742_v49  ;;  %v2749_v35 = vmul.f32 %v7617_v53, %v7596_v63  ;;  %v4443_v37 = vld [vmem:[%s4921_s25 + $0x128] sm:$0xff]  ;;  %vm2755_vm12 = vweird.f32 %v7617_v53 }
 0x4aa   : > { %v3428_v22 = vadd.f32 %v3427_v57, %v7057_v17  ;;  %v3251_v11 = vpop.f32.mrf.mxu0  ;;  %v3340_v29 = vpop.f32.mrf.mxu1  ;;  %v7619_v23 = vadd.f32 1e-05, %v2415_v51  ;;  %v2824_v57 = vmul.f32 %v2737_v21, %v7287_v54  ;;  %vm2756_vm0 = vmor %vm2754_vm15, %vm2755_vm12 }
 0x4ab   : > { %v3252_v42 = vadd.f32 %v3251_v11, %v7028_v9  ;;  %v2747_v16 = vsel %vm2746_vm8, %v7588_v62, %v2743_v8  ;;  %v2750_v30 = vmul.f32 %v7617_v53, %v2749_v35 }
 0x4ac   : > { %v3517_v39 = vadd.f32 %v3516_v55, %v3428_v22  ;;  %4404 = vrsqrt.f32 %v7619_v23  ;;  %v2826_v27 = vmul.f32 %v2747_v16, %v7361_v60  ;;  %v2827_v40 = vmul.f32 %v2747_v16, %v7364_v13 }
 0x4ad   : > { %v3341_v15 = vadd.f32 %v3340_v29, %v3252_v42  ;;  %v2825_v22 = vmul.f32 %v2737_v21, %v7296_v6  ;;  %v2751_v11 = vmul.f32 0.5, %v2750_v30  ;;  %v2893_v38 = vmul.f32 %v6637_v32, %v2824_v57  ;;  %v4445_v30 = vld [vmem:[%s4921_s25 + $0x138] sm:$0xff] }
 0x4ae   : > { %v3589_v4 = vadd.f32 %v4439_v33, %v3517_v39  ;;  %v2895_v45 = vmul.f32 %v6637_v32, %v2826_v27  ;;  %v2896_v42 = vmul.f32 %v6685_v41, %v2827_v40  ;;  %vm2764_vm13 = vweird.f32 %v7619_v23 }
 0x4af   : > { %v3590_v34 = vadd.f32 %v4440_v36, %v3341_v15  ;;  %v2894_v61 = vmul.f32 %v6685_v41, %v2825_v22  ;;  %v2752_v48 = vsub.f32 1.5, %v2751_v11  ;;  %v4444_v36 = vld [vmem:[%s4921_s25 + $0x130] sm:$0xff]  ;;  %v2962_v0 = vadd.f32 %v6671_v1, %v2893_v38 }
 0x4b0   : > { %3653 = vst [vmem:[%s7092_s24 + $0x108] sm:$0xff] %v3589_v4  ;;  %v2964_v8 = vadd.f32 %v6671_v1, %v2895_v45  ;;  %v2965_v33 = vadd.f32 %v6694_v52, %v2896_v42 }
 0x4b1   : > { %v3429_v24 = vpop.f32.mrf.mxu2  ;;  %3654 = vst [vmem:[%s7092_s24 + $0x110] sm:$0xff] %v3590_v34  ;;  %v3518_v56 = vpop.f32.mrf.mxu3  ;;  %v2963_v2 = vadd.f32 %v6694_v52, %v2894_v61  ;;  %v2753_v58 = vmul.f32 %v7617_v53, %v2752_v48 }
 0x4b2   : > { %v3430_v3 = vadd.f32 %v3429_v24, %v7057_v17  ;;  %v3254_v59 = vpop.f32.mrf.mxu0  ;;  %v3343_v19 = vpop.f32.mrf.mxu1  ;;  %3273 = vmatmul.bf16.gmra.mxu0 %v2996_v18  ;;  %3362 = vmatmul.bf16.gmra.mxu1 %v2997_v43 }
 0x4b3   : > { %v3255_v25 = vadd.f32 %v3254_v59, %v7028_v9  ;;  %3451 = vmatmul.bf16.gmra.mxu2 %v2996_v18  ;;  %3540 = vmatmul.bf16.gmra.mxu3 %v2997_v43  ;;  %v4405_v62 = vpop.eup %4404  ;;  %v2999_v18 = vpack.c.bf16 %v2965_v33, %v2963_v2 }
 0x4b4   : > { %v3519_v26 = vadd.f32 %v3518_v56, %v3430_v3  ;;  %v2759_v20 = vmul.f32 %v4405_v62, %v7619_v23  ;;  %vm2765_vm11 = vweird.f32 %v4405_v62  ;;  %v2998_v56 = vpack.c.bf16 %v2964_v8, %v2962_v0 }
 0x4b5   : > { %v3344_v7 = vadd.f32 %v3343_v19, %v3255_v25  ;;  %vm2766_vm14 = vmor %vm2764_vm13, %vm2765_vm11  ;;  %v2757_v19 = vsel %vm2756_vm0, %v7617_v53, %v2753_v58 }
 0x4b6   : > { %v3591_v28 = vadd.f32 %v4441_v12, %v3519_v26  ;;  %v2760_v10 = vmul.f32 %v4405_v62, %v2759_v20  ;;  %v2828_v40 = vmul.f32 %v2757_v19, %v7399_v46  ;;  %v2829_v12 = vmul.f32 %v2757_v19, %v7402_v47 }
 0x4b7   : > { %v3592_v55 = vadd.f32 %v4442_v44, %v3344_v7 }
 0x4b8   : > { %3655 = vst [vmem:[%s7092_s24 + $0x118] sm:$0xff] %v3591_v28  ;;  %v2761_v54 = vmul.f32 0.5, %v2760_v10  ;;  %v2897_v47 = vmul.f32 %v6637_v32, %v2828_v40  ;;  %v4447_v10 = vld [vmem:[%s4921_s25 + $0x148] sm:$0xff] }
 0x4b9   : > { %v3432_v14 = vpop.f32.mrf.mxu2  ;;  %3656 = vst [vmem:[%s7092_s24 + $0x120] sm:$0xff] %v3592_v55  ;;  %v3521_v49 = vpop.f32.mrf.mxu3  ;;  %v2898_v55 = vmul.f32 %v6685_v41, %v2829_v12 }
 0x4ba   : > { %v3433_v60 = vadd.f32 %v3432_v14, %v7057_v17  ;;  %v3256_v13 = vpop.f32.mrf.mxu0  ;;  %v3345_v29 = vpop.f32.mrf.mxu1  ;;  %v2762_v39 = vsub.f32 1.5, %v2761_v54  ;;  %v2966_v42 = vadd.f32 %v6671_v1, %v2897_v47 }
 0x4bb   : > { %v3257_v6 = vadd.f32 %v3256_v13, %v7028_v9  ;;  %v4448_v13 = vld [vmem:[%s4921_s25 + $0x150] sm:$0xff]  ;;  %v2967_v54 = vadd.f32 %v6694_v52, %v2898_v55 }
 0x4bc   : > { %v3522_v51 = vadd.f32 %v3521_v49, %v3433_v60  ;;  %v2763_v4 = vmul.f32 %v4405_v62, %v2762_v39 }
 0x4bd   : > { %v3346_v15 = vadd.f32 %v3345_v29, %v3257_v6 }
 0x4be   : > { %v3593_v31 = vadd.f32 %v4443_v37, %v3522_v51  ;;  %v2767_v59 = vsel %vm2766_vm14, %v4405_v62, %v2763_v4  ;;  %v4446_v62 = vld [vmem:[%s4921_s25 + $0x140] sm:$0xff] }
 0x4bf   : > { %v3594_v34 = vadd.f32 %v4444_v36, %v3346_v15  ;;  %v2830_v21 = vmul.f32 %v2767_v59, %v7440_v50  ;;  %v2831_v63 = vmul.f32 %v2767_v59, %v7443_v5  ;;  %v4450_v37 = vld [vmem:[%s4921_s25 + $0x160] sm:$0xff] }
 0x4c0   : > { %3657 = vst [vmem:[%s7092_s24 + $0x128] sm:$0xff] %v3593_v31 }
 0x4c1   : > { %3658 = vst [vmem:[%s7092_s24 + $0x130] sm:$0xff] %v3594_v34  ;;  %v3434_v35 = vpop.f32.mrf.mxu2  ;;  %v3523_v3 = vpop.f32.mrf.mxu3  ;;  %v2899_v5 = vmul.f32 %v6637_v32, %v2830_v21  ;;  %v2900_v57 = vmul.f32 %v6685_v41, %v2831_v63 }
 0x4c2   : > { %v3435_v24 = vadd.f32 %v3434_v35, %v7057_v17  ;;  %v3259_v43 = vpop.f32.mrf.mxu0  ;;  %v3348_v25 = vpop.f32.mrf.mxu1  ;;  %3278 = vmatmul.bf16.gmra.mxu0 %v2998_v56  ;;  %3367 = vmatmul.bf16.gmra.mxu1 %v2999_v18  ;;  %v4451_v35 = vld [vmem:[%s4921_s25 + $0x168] sm:$0xff] }
 0x4c3   : > { %v3260_v16 = vadd.f32 %v3259_v43, %v7028_v9  ;;  %3456 = vmatmul.bf16.gmra.mxu2 %v2998_v56  ;;  %3545 = vmatmul.bf16.gmra.mxu3 %v2999_v18  ;;  %v2968_v60 = vadd.f32 %v6671_v1, %v2899_v5  ;;  %v2969_v49 = vadd.f32 %v6694_v52, %v2900_v57  ;;  %v4449_v52 = vld [vmem:[%s4921_s25 + $0x158] sm:$0xff]  ;;  %v4455_v5 = vld [vmem:[%s4921_s25 + $0x188] sm:$0xff] }
 0x4c4   : > { %v3524_v23 = vadd.f32 %v3523_v3, %v3435_v24  ;;  %v4452_v3 = vld [vmem:[%s4921_s25 + $0x170] sm:$0xff] }
 0x4c5   : > { %v3349_v26 = vadd.f32 %v3348_v25, %v3260_v16  ;;  %v3000_v29 = vpack.c.bf16 %v2968_v60, %v2966_v42  ;;  %v3001_v51 = vpack.c.bf16 %v2969_v49, %v2967_v54  ;;  %v4453_v25 = vld [vmem:[%s4921_s25 + $0x178] sm:$0xff]  ;;  %v4458_v42 = vld [vmem:[%s4921_s25 + $0x1a0] sm:$0xff] }
 0x4c6   : > { %v3595_v7 = vadd.f32 %v4445_v30, %v3524_v23  ;;  %v4454_v30 = vld [vmem:[%s4921_s25 + $0x180] sm:$0xff] }
 0x4c7   : > { %v3596_v27 = vadd.f32 %v4446_v62, %v3349_v26 }
 0x4c8   : > { %3659 = vst [vmem:[%s7092_s24 + $0x138] sm:$0xff] %v3595_v7 }
 0x4c9   : > { %3660 = vst [vmem:[%s7092_s24 + $0x140] sm:$0xff] %v3596_v27  ;;  %v3437_v28 = vpop.f32.mrf.mxu2  ;;  %v3526_v20 = vpop.f32.mrf.mxu3 }
 0x4ca   : > { %v3438_v53 = vadd.f32 %v3437_v28, %v7057_v17  ;;  %v3261_v50 = vpop.f32.mrf.mxu0  ;;  %v3350_v46 = vpop.f32.mrf.mxu1 }
 0x4cb   : > { %v3262_v22 = vadd.f32 %v3261_v50, %v7028_v9 }
 0x4cc   : > { %v3527_v44 = vadd.f32 %v3526_v20, %v3438_v53 }
 0x4cd   : > { %v3351_v11 = vadd.f32 %v3350_v46, %v3262_v22  ;;  %v4456_v22 = vld [vmem:[%s4921_s25 + $0x190] sm:$0xff] }
 0x4ce   : > { %v3597_v14 = vadd.f32 %v4447_v10, %v3527_v44 }
 0x4cf   : > { %v3598_v45 = vadd.f32 %v4448_v13, %v3351_v11  ;;  %v4457_v13 = vld [vmem:[%s4921_s25 + $0x198] sm:$0xff] }
 0x4d0   : > { %3661 = vst [vmem:[%s7092_s24 + $0x148] sm:$0xff] %v3597_v14 }
 0x4d1   : > { %3662 = vst [vmem:[%s7092_s24 + $0x150] sm:$0xff] %v3598_v45  ;;  %v3439_v6 = vpop.f32.mrf.mxu2  ;;  %v3528_v41 = vpop.f32.mrf.mxu3 }
 0x4d2   : > { %v3440_v32 = vadd.f32 %v3439_v6, %v7057_v17  ;;  %v3264_v38 = vpop.f32.mrf.mxu0  ;;  %v3353_v48 = vpop.f32.mrf.mxu1  ;;  %3283 = vmatmul.bf16.gmra.mxu0 %v3000_v29  ;;  %3372 = vmatmul.bf16.gmra.mxu1 %v3001_v51 }
 0x4d3   : > { %v3265_v61 = vadd.f32 %v3264_v38, %v7028_v9  ;;  %3461 = vmatmul.bf16.gmra.mxu2 %v3000_v29  ;;  %3550 = vmatmul.bf16.gmra.mxu3 %v3001_v51 }
 0x4d4   : > { %v3529_v39 = vadd.f32 %v3528_v41, %v3440_v32 }
 0x4d5   : > { %v3354_v1 = vadd.f32 %v3353_v48, %v3265_v61 }
 0x4d6   : > { %v3599_v15 = vadd.f32 %v4449_v52, %v3529_v39  ;;  %v4459_v39 = vld [vmem:[%s4921_s25 + $0x1a8] sm:$0xff]  ;;  %v4460_v52 = vld [vmem:[%s4921_s25 + $0x1b0] sm:$0xff] }
 0x4d7   : > { %v3600_v31 = vadd.f32 %v4450_v37, %v3354_v1 }
 0x4d8   : > { %3663 = vst [vmem:[%s7092_s24 + $0x158] sm:$0xff] %v3599_v15 }
 0x4d9   : > { %3664 = vst [vmem:[%s7092_s24 + $0x160] sm:$0xff] %v3600_v31  ;;  %v3442_v8 = vpop.f32.mrf.mxu2  ;;  %v3531_v4 = vpop.f32.mrf.mxu3 }
 0x4da   : > { %v3443_v33 = vadd.f32 %v3442_v8, %v7057_v17  ;;  %v3266_v36 = vpop.f32.mrf.mxu0  ;;  %v3355_v2 = vpop.f32.mrf.mxu1 }
 0x4db   : > { %v3267_v34 = vadd.f32 %v3266_v36, %v7028_v9 }
 0x4dc   : > { %v3532_v0 = vadd.f32 %v3531_v4, %v3443_v33 }
 0x4dd   : > { %v3356_v58 = vadd.f32 %v3355_v2, %v3267_v34  ;;  %v4461_v2 = vld [vmem:[%s4921_s25 + $0x1b8] sm:$0xff] }
 0x4de   : > { %v3601_v24 = vadd.f32 %v4451_v35, %v3532_v0  ;;  %v4462_v35 = vld [vmem:[%s4921_s25 + $0x1c0] sm:$0xff] }
 0x4df   : > { %v3602_v56 = vadd.f32 %v4452_v3, %v3356_v58 }
 0x4e0   : > { %3665 = vst [vmem:[%s7092_s24 + $0x168] sm:$0xff] %v3601_v24 }
 0x4e1   : > { %3666 = vst [vmem:[%s7092_s24 + $0x170] sm:$0xff] %v3602_v56  ;;  %v3444_v18 = vpop.f32.mrf.mxu2  ;;  %v3533_v59 = vpop.f32.mrf.mxu3 }
 0x4e2   : > { %v3445_v43 = vadd.f32 %v3444_v18, %v7057_v17 }
 0x4e4   : > { %v3534_v16 = vadd.f32 %v3533_v59, %v3445_v43 }
 0x4e6   : > { %v3603_v23 = vadd.f32 %v4453_v25, %v3534_v16 }
 0x4e8   : > { %3667 = vst [vmem:[%s7092_s24 + $0x178] sm:$0xff] %v3603_v23 }
 0x51f   : > { %v3269_v19 = vpop.f32.mrf.mxu0  ;;  %v3358_v26 = vpop.f32.mrf.mxu1 }
 0x520   : > { %v3270_v21 = vadd.f32 %v3269_v19, %v7028_v9  ;;  %v4463_v19 = vld [vmem:[%s4921_s25 + $0x1c8] sm:$0xff] }
 0x522   : > { %v3359_v63 = vadd.f32 %v3358_v26, %v3270_v21  ;;  %v4464_v21 = vld [vmem:[%s4921_s25 + $0x1d0] sm:$0xff] }
 0x524   : > { %v3604_v7 = vadd.f32 %v4454_v30, %v3359_v63 }
 0x526   : > { %3668 = vst [vmem:[%s7092_s24 + $0x180] sm:$0xff] %v3604_v7  ;;  %v3447_v62 = vpop.f32.mrf.mxu2  ;;  %v3536_v27 = vpop.f32.mrf.mxu3 }
 0x527   : > { %v3448_v40 = vadd.f32 %v3447_v62, %v7057_v17  ;;  %v3271_v12 = vpop.f32.mrf.mxu0  ;;  %v3360_v28 = vpop.f32.mrf.mxu1 }
 0x528   : > { %v3272_v53 = vadd.f32 %v3271_v12, %v7028_v9 }
 0x529   : > { %v3537_v20 = vadd.f32 %v3536_v27, %v3448_v40 }
 0x52a   : > { %v3361_v50 = vadd.f32 %v3360_v28, %v3272_v53 }
 0x52b   : > { %v3605_v57 = vadd.f32 %v4455_v5, %v3537_v20  ;;  %v4465_v20 = vld [vmem:[%s4921_s25 + $0x1d8] sm:$0xff]  ;;  %v4466_v5 = vld [vmem:[%s4921_s25 + $0x1e0] sm:$0xff] }
 0x52c   : > { %v3606_v46 = vadd.f32 %v4456_v22, %v3361_v50 }
 0x52d   : > { %3669 = vst [vmem:[%s7092_s24 + $0x188] sm:$0xff] %v3605_v57 }
 0x52e   : > { %3670 = vst [vmem:[%s7092_s24 + $0x190] sm:$0xff] %v3606_v46  ;;  %v3449_v44 = vpop.f32.mrf.mxu2  ;;  %v3538_v47 = vpop.f32.mrf.mxu3 }
 0x52f   : > { %v3450_v55 = vadd.f32 %v3449_v44, %v7057_v17  ;;  %v3274_v11 = vpop.f32.mrf.mxu0  ;;  %v3363_v10 = vpop.f32.mrf.mxu1 }
 0x530   : > { %v3275_v14 = vadd.f32 %v3274_v11, %v7028_v9 }
 0x531   : > { %v3539_v60 = vadd.f32 %v3538_v47, %v3450_v55 }
 0x532   : > { %v3364_v49 = vadd.f32 %v3363_v10, %v3275_v14 }
 0x533   : > { %v3607_v45 = vadd.f32 %v4457_v13, %v3539_v60  ;;  %v4467_v60 = vld [vmem:[%s4921_s25 + $0x1e8] sm:$0xff]  ;;  %v4468_v13 = vld [vmem:[%s4921_s25 + $0x1f0] sm:$0xff] }
 0x534   : > { %v3608_v54 = vadd.f32 %v4458_v42, %v3364_v49 }
 0x535   : > { %3671 = vst [vmem:[%s7092_s24 + $0x198] sm:$0xff] %v3607_v45 }
 0x536   : > { %3672 = vst [vmem:[%s7092_s24 + $0x1a0] sm:$0xff] %v3608_v54  ;;  %v3452_v6 = vpop.f32.mrf.mxu2  ;;  %v3541_v32 = vpop.f32.mrf.mxu3 }
 0x537   : > { %v3453_v41 = vadd.f32 %v3452_v6, %v7057_v17  ;;  %v3276_v29 = vpop.f32.mrf.mxu0  ;;  %v3365_v51 = vpop.f32.mrf.mxu1 }
 0x538   : > { %v3277_v38 = vadd.f32 %v3276_v29, %v7028_v9 }
 0x539   : > { %v3542_v61 = vadd.f32 %v3541_v32, %v3453_v41  ;;  %v4469_v32 = vld [vmem:[%s4921_s25 + $0x1f8] sm:$0xff] }
 0x53a   : > { %v3366_v48 = vadd.f32 %v3365_v51, %v3277_v38 }
 0x53b   : > { %v3609_v1 = vadd.f32 %v4459_v39, %v3542_v61 }
 0x53c   : > { %v3610_v15 = vadd.f32 %v4460_v52, %v3366_v48 }
 0x53d   : > { %3673 = vst [vmem:[%s7092_s24 + $0x1a8] sm:$0xff] %v3609_v1 }
 0x53e   : > { %3674 = vst [vmem:[%s7092_s24 + $0x1b0] sm:$0xff] %v3610_v15  ;;  %v3454_v37 = vpop.f32.mrf.mxu2  ;;  %v3543_v31 = vpop.f32.mrf.mxu3 }
 0x53f   : > { %v3455_v8 = vadd.f32 %v3454_v37, %v7057_v17  ;;  %v3279_v33 = vpop.f32.mrf.mxu0  ;;  %v3368_v4 = vpop.f32.mrf.mxu1 }
 0x540   : > { %v3280_v36 = vadd.f32 %v3279_v33, %v7028_v9 }
 0x541   : > { %v3544_v34 = vadd.f32 %v3543_v31, %v3455_v8 }
 0x542   : > { %v3369_v0 = vadd.f32 %v3368_v4, %v3280_v36 }
 0x543   : > { %v3611_v58 = vadd.f32 %v4461_v2, %v3544_v34 }
 0x544   : > { %v3612_v24 = vadd.f32 %v4462_v35, %v3369_v0 }
 0x545   : > { %3675 = vst [vmem:[%s7092_s24 + $0x1b8] sm:$0xff] %v3611_v58 }
 0x546   : > { %3676 = vst [vmem:[%s7092_s24 + $0x1c0] sm:$0xff] %v3612_v24  ;;  %v3457_v3 = vpop.f32.mrf.mxu2  ;;  %v3546_v56 = vpop.f32.mrf.mxu3 }
 0x547   : > { %v3458_v18 = vadd.f32 %v3457_v3, %v7057_v17  ;;  %v3281_v43 = vpop.f32.mrf.mxu0  ;;  %v3370_v59 = vpop.f32.mrf.mxu1 }
 0x548   : > { %v3282_v16 = vadd.f32 %v3281_v43, %v7028_v9 }
 0x549   : > { %v3547_v25 = vadd.f32 %v3546_v56, %v3458_v18 }
 0x54a   : > { %v3371_v23 = vadd.f32 %v3370_v59, %v3282_v16 }
 0x54b   : > { %v3613_v26 = vadd.f32 %v4463_v19, %v3547_v25 }
 0x54c   : > { %v3614_v63 = vadd.f32 %v4464_v21, %v3371_v23 }
 0x54d   : > { %3677 = vst [vmem:[%s7092_s24 + $0x1c8] sm:$0xff] %v3613_v26 }
 0x54e   : > { %3678 = vst [vmem:[%s7092_s24 + $0x1d0] sm:$0xff] %v3614_v63  ;;  %v3459_v30 = vpop.f32.mrf.mxu2  ;;  %v3548_v7 = vpop.f32.mrf.mxu3 }
 0x54f   : > { %v3460_v62 = vadd.f32 %v3459_v30, %v7057_v17  ;;  %v3284_v27 = vpop.f32.mrf.mxu0  ;;  %v3373_v40 = vpop.f32.mrf.mxu1 }
 0x550   : > { %v3285_v12 = vadd.f32 %v3284_v27, %v7028_v9 }
 0x551   : > { %v3549_v28 = vadd.f32 %v3548_v7, %v3460_v62 }
 0x552   : > { %v3374_v53 = vadd.f32 %v3373_v40, %v3285_v12 }
 0x553   : > { %v3615_v50 = vadd.f32 %v4465_v20, %v3549_v28 }
 0x554   : > { %v3616_v57 = vadd.f32 %v4466_v5, %v3374_v53 }
 0x555   : > { %3679 = vst [vmem:[%s7092_s24 + $0x1d8] sm:$0xff] %v3615_v50 }
 0x556   : > { %3680 = vst [vmem:[%s7092_s24 + $0x1e0] sm:$0xff] %v3616_v57  ;;  %v3462_v22 = vpop.f32.mrf.mxu2  ;;  %v3551_v46 = vpop.f32.mrf.mxu3 }
 0x557   : > { %v3463_v44 = vadd.f32 %v3462_v22, %v7057_v17  ;;  %v3286_v47 = vpop.f32.mrf.mxu0  ;;  %v3375_v10 = vpop.f32.mrf.mxu1 }
 0x558   : > { %v3287_v55 = vadd.f32 %v3286_v47, %v7028_v9 }
 0x559   : > { %v3552_v11 = vadd.f32 %v3551_v46, %v3463_v44 }
 0x55a   : > { %v3376_v14 = vadd.f32 %v3375_v10, %v3287_v55 }
 0x55b   : > { %v3617_v49 = vadd.f32 %v4467_v60, %v3552_v11 }
 0x55c   : > { %v3618_v45 = vadd.f32 %v4468_v13, %v3376_v14 }
 0x55d   : > { %3681 = vst [vmem:[%s7092_s24 + $0x1e8] sm:$0xff] %v3617_v49 }
 0x55e   : > { %3682 = vst [vmem:[%s7092_s24 + $0x1f0] sm:$0xff] %v3618_v45  ;;  %v3464_v42 = vpop.f32.mrf.mxu2  ;;  %v3553_v54 = vpop.f32.mrf.mxu3 }
 0x55f   : > { %v3465_v9 = vadd.f32 %v3464_v42, %v7057_v17 }
 0x561   : > { %v3554_v6 = vadd.f32 %v3553_v54, %v3465_v9 }
 0x563   : > { %v3619_v41 = vadd.f32 %v4469_v32, %v3554_v6 }
 0x565   : > { %3683 = vst [vmem:[%s7092_s24 + $0x1f8] sm:$0xff] %v3619_v41 }
 0x566   : > { %4677 = shalt.err (!%p4674_p9)
}
 0x567   : > { %s4740_s21 = smov 256   ;;  %s4741_s25 = smov 16  }
 0x568   : > { %4194 = dma.vmem_to_hbm [thread:$0]  (%p4882_p0), %s3699_s13, 8192, %s3701_s16, %s3685_s3, %s4740_s21, %s4740_s21, %s4741_s25  }
 0x569 PF: > { %s3715_s24 = sand.u32 1, %s4716_s30   ;;  %p8094_p10 = scmp.ge.s32.totalorder %s4728_s12, 2 }
 0x56a   : > { %s3716_s28 = scalar_lea.sflag [#allocation4], %s3715_s24 }
 0x56b   : > { %p4217_p11 = pnand %p8094_p10, %p4888_p6 }
 0x56d   : > { %p4218_p12 = pneg %p4217_p11 }
 0x56f   : > { %4711 = dma.done.wait (%p4218_p12), %s3716_s28, 8192  }
 0x570   : > { %4713 = vsyncadd (%p4218_p12), %s3716_s28, 4294959104  ;;  %p25_p2 = scmp.ge.s32.totalorder %s4858_s18, 4   ;;  %s8095_s30 = smov %s4720_s10 }
 0x571   : > { %s8096_s10 = smov %s4724_s11  ;;  %s8097_s11 = smov %s4870_s15 }
 0x572   : > { %s8098_s12 = smov %s4858_s18  ;;  %27 = sbr.rel (!%p25_p2) target bundleno = 13 (0xd), region = 121 }
 0x577   :  { %3722 = vsyncpa [#allocation3], 1 }
 0x578   :  { %3724 = vsyncpa [#allocation3 + $0x1], 1 }
 0x579   :  { %3725 = vsyncpa [#allocation6], 1 }
 0x57a   :  { %3726 = vsyncpa [#allocation9], 1 }
 0x57b   :  { %3727 = vsyncpa [#allocation12], 1 }
 0x57c   :  { %3728 = vsyncpa [#allocation4], 1 }
 0x57d   :  { %3730 = vsyncpa [#allocation4 + $0x1], 1 }

</bundles_post_ra>
